<compile_context>
chip_gen: v7x
topology: tpu7x:2x2x1
jax: 0.10.0
libtpu: 0.0.40
codegen_flags: <defaults>
</compile_context>

<pallas_src>
import functools

import numpy as np

import jax
import jax.numpy as jnp
from jax.experimental import pallas as pl
from jax.experimental.pallas import tpu as pltpu


# ---------------------------------------------------------------------------
# Fused whole-network kernel: one batch tile per grid step.
# ---------------------------------------------------------------------------
def _ptmnist_kernel(x_ref, rhs1_ref, b1_ref, rhs2_ref, b2_ref, w1_ref, fb1_ref,
                    w2_ref, fb2_ref, o_ref, se_ref, so_ref, *, bt):
    """Shapes (bt = batch tile, a multiple of 8):
      x_ref   : (4, 8, bt, 32) bf16  H-padded input rows regrouped so that
                                     x_ref[m, j, b, :] = padded row 4*j + m of
                                     image b (W zero-padded 28 -> 32 lanes).
      rhs1_ref: (5, 32, 512)   bf16  conv1 banded weights, one (K, N) block per
                                     kernel row kh; N = two 256-wide pooling
                                     column-parity slabs (224 lanes used each).
      b1_ref  : (1, 256)       f32   conv1 bias tiled over (w, cout) lanes.
      rhs2_ref: (5, 256, 512)  bf16  conv2 banded weights (K = 14*16, padded).
      b2_ref  : (1, 256)       f32   conv2 bias tiled over (w, cout) lanes.
      w1_ref  : (7, 256, 512)  bf16  fc1 weights, one K=256 block per output
                                     map row h (K rows 224..255 are zero).
      fb1_ref : (1, 512)       f32   fc1 bias.
      w2_ref  : (512, 128)     bf16  logits weights, zero-padded 10 -> 128 cols.
      fb2_ref : (1, 128)       f32   logits bias, zero-padded 10 -> 128.
      o_ref   : (bt, 128)      f32   logits (first 10 lanes valid).
      se_ref/so_ref: (9, bt, 256) bf16 VMEM scratch: H-padded even/odd rows of
                                     the 14x14x16 conv1 output map.
    """
    m1 = 7 * bt

    # ---- conv1 (5x5 'same') + bias + 2x2 maxpool + ReLU --------------------
    # Computed per pooled-row parity r so the result lands directly in the
    # even/odd-row, H-padded scratch layout that conv2 consumes.
    for r, s_ref in ((0, se_ref), (1, so_ref)):
        pooled = None
        for p in (0, 1):                       # conv-row parity inside the pool
            acc = None
            for kh in range(5):
                s = 2 * r + p + kh             # padded-input row offset (0..7)
                lhs = x_ref[s % 4, (s // 4):(s // 4) + 7]        # (7, bt, 32)
                lhs = lhs.reshape(m1, 32)
                term = jnp.dot(lhs, rhs1_ref[kh],
                               preferred_element_type=jnp.float32)
                acc = term if acc is None else acc + term
            pooled = acc if pooled is None else jnp.maximum(pooled, acc)
        pooled = jnp.maximum(pooled[:, :256], pooled[:, 256:])     # pool over W
        pooled = jnp.maximum(pooled + b1_ref[...], 0.0)            # bias + ReLU
        s_ref[0] = jnp.zeros((bt, 256), jnp.bfloat16)              # H padding
        s_ref[8] = jnp.zeros((bt, 256), jnp.bfloat16)
        s_ref[1:8] = pooled.astype(jnp.bfloat16).reshape(7, bt, 256)

    # ---- conv2 (5x5 'same') + bias + 2x2 maxpool + ReLU --------------------
    pooled2 = None
    for p in (0, 1):
        acc = None
        for kh in range(5):
            q = p + kh                          # padded-map row offset (0..5)
            src = se_ref if q % 2 == 0 else so_ref
            lhs = src[(q // 2):(q // 2) + 7].reshape(m1, 256)      # (7*bt, 256)
            term = jnp.dot(lhs, rhs2_ref[kh],
                           preferred_element_type=jnp.float32)
            acc = term if acc is None else acc + term
        pooled2 = acc if pooled2 is None else jnp.maximum(pooled2, acc)
    pooled2 = jnp.maximum(pooled2[:, :256], pooled2[:, 256:])
    pooled2 = jnp.maximum(pooled2 + b2_ref[...], 0.0)
    x2 = pooled2.astype(jnp.bfloat16).reshape(7, bt, 256)          # (h, b, w*c)

    # ---- fc1 + ReLU + logits (fused GEMMs, no HBM round trip) --------------
    acc = None
    for h in range(7):
        term = jnp.dot(x2[h], w1_ref[h], preferred_element_type=jnp.float32)
        acc = term if acc is None else acc + term
    hidden = jnp.maximum(acc + fb1_ref[...], 0.0).astype(jnp.bfloat16)
    logits = jnp.dot(hidden, w2_ref[...], preferred_element_type=jnp.float32)
    o_ref[...] = logits + fb2_ref[...]


# ---------------------------------------------------------------------------
# Forward pass wrapper (PTMNIST.forward semantics).
# ---------------------------------------------------------------------------
@functools.partial(jax.jit, static_argnames=("batch_tile",))
def ptmnist_forward(x_nchw, prep, batch_tile=64):
    """x_nchw: (N, 1, 28, 28) f32  ->  logits (N, 10) f32."""
    n = x_nchw.shape[0]
    assert x_nchw.shape[1:] == (1, 28, 28)
    n8 = ((n + 7) // 8) * 8
    bt = max(8, (min(batch_tile, n8) // 8) * 8)        # tile size, multiple of 8
    n_total = ((n8 + bt - 1) // bt) * bt
    grid = (n_total // bt,)

    # Tiny input prep: bf16 cast, zero-pad (batch -> n_total, H 28->32 for the
    # 'same' halo, W 28->32 for lane alignment), then regroup padded rows by
    # (row mod 4) so the kernel's pooled-row-parity slices are contiguous.
    x = x_nchw.reshape(n, 28, 28).astype(jnp.bfloat16)
    x = jnp.pad(x, ((0, n_total - n), (2, 2), (0, 4)))             # (Nt, 32, 32)
    x = jnp.transpose(x, (1, 0, 2))                                # (32, Nt, 32)
    x = x.reshape(8, 4, n_total, 32).transpose(1, 0, 2, 3)         # (4, 8, Nt, 32)

    out = pl.pallas_call(
        functools.partial(_ptmnist_kernel, bt=bt),
        out_shape=jax.ShapeDtypeStruct((n_total, 128), jnp.float32),
        grid=grid,
        in_specs=[
            pl.BlockSpec((4, 8, bt, 32), lambda i: (0, 0, i, 0)),
            pl.BlockSpec((5, 32, 512), lambda i: (0, 0, 0)),
            pl.BlockSpec((1, 256), lambda i: (0, 0)),
            pl.BlockSpec((5, 256, 512), lambda i: (0, 0, 0)),
            pl.BlockSpec((1, 256), lambda i: (0, 0)),
            pl.BlockSpec((7, 256, 512), lambda i: (0, 0, 0)),
            pl.BlockSpec((1, 512), lambda i: (0, 0)),
            pl.BlockSpec((512, 128), lambda i: (0, 0)),
            pl.BlockSpec((1, 128), lambda i: (0, 0)),
        ],
        out_specs=pl.BlockSpec((bt, 128), lambda i: (i, 0)),
        scratch_shapes=[pltpu.VMEM((9, bt, 256), jnp.bfloat16),
                        pltpu.VMEM((9, bt, 256), jnp.bfloat16)],
        compiler_params=pltpu.CompilerParams(
            dimension_semantics=("parallel",),
            vmem_limit_bytes=32 * 1024 * 1024),
    )(x, prep["rhs1"], prep["b1"], prep["rhs2"], prep["b2"],
      prep["w1"], prep["fc1_b"], prep["w2"], prep["logits_b"])

    return out[:n, :10]


# ---------------------------------------------------------------------------
# Deterministic parameter init (mirrors PTMNIST.reset_parameters distributions)
# ---------------------------------------------------------------------------
def init_params(key):
    k1, k2, k3, k4, k5 = jax.random.split(key, 5)
    p = {}
    # Conv2d: kaiming_normal_(fan_in, relu) -> std = sqrt(2 / fan_in), bias = 0
    p["conv1_w"] = jax.random.normal(k1, (16, 1, 5, 5), jnp.float32) * np.sqrt(2.0 / 25.0)
    p["conv1_b"] = jnp.zeros((16,), jnp.float32)
    p["conv2_w"] = jax.random.normal(k2, (32, 16, 5, 5), jnp.float32) * np.sqrt(2.0 / (16 * 25))
    p["conv2_b"] = jnp.zeros((32,), jnp.float32)
    # fc1: kaiming_normal_(fan_in, relu), bias = 0
    p["fc1_w"] = jax.random.normal(k3, (512, 32 * 7 * 7), jnp.float32) * np.sqrt(2.0 / (32 * 7 * 7))
    p["fc1_b"] = jnp.zeros((512,), jnp.float32)
    # logits: default nn.Linear reset -> U(-1/sqrt(fan_in), 1/sqrt(fan_in))
    bound = 1.0 / float(np.sqrt(512.0))
    p["logits_w"] = jax.random.uniform(k4, (10, 512), jnp.float32, minval=-bound, maxval=bound)
    p["logits_b"] = jax.random.uniform(k5, (10,), jnp.float32, minval=-bound, maxval=bound)
    return p


# ---------------------------------------------------------------------------
# One-time (host side) parameter preparation for the fused kernel.
# ---------------------------------------------------------------------------
def _conv_banded_rhs(w_oihw, in_w):
    """Banded RHS for a 5x5 'same' conv fused with the 2x2 pool over W.

    Returns (5, in_w*Cin, 512): block kh maps an (unpadded) input row laid out
    as lane = xw*Cin + ci to output lane q*256 + u*Cout + co, where the output
    column is 2u+q and xw = 2u + q + kw - 2 (out-of-range taps are dropped,
    which implements the W-side 'same' zero padding).
    """
    w = np.asarray(w_oihw, np.float32)                 # (Cout, Cin, 5, 5)
    cout, cin, k, _ = w.shape
    w2 = in_w // 2
    rhs = np.zeros((k, in_w * cin, 2 * 256), np.float32)
    for kh in range(k):
        for kw in range(k):
            blk = w[:, :, kh, kw].T                    # (Cin, Cout)
            for q in range(2):
                for u in range(w2):
                    xw = 2 * u + q + kw - 2
                    if 0 <= xw < in_w:
                        rhs[kh, xw * cin:(xw + 1) * cin,
                            q * 256 + u * cout:q * 256 + u * cout + cout] = blk
    return rhs


def prepare_params(params):
    conv1_w = np.asarray(params["conv1_w"], np.float32)
    conv1_b = np.asarray(params["conv1_b"], np.float32)
    conv2_w = np.asarray(params["conv2_w"], np.float32)
    conv2_b = np.asarray(params["conv2_b"], np.float32)
    fc1_w = np.asarray(params["fc1_w"], np.float32)        # (512, 1568)
    fc1_b = np.asarray(params["fc1_b"], np.float32)
    lg_w = np.asarray(params["logits_w"], np.float32)      # (10, 512)
    lg_b = np.asarray(params["logits_b"], np.float32)

    # conv1: K = 28 input-W lanes, zero-padded to 32.
    rhs1 = np.pad(_conv_banded_rhs(conv1_w, 28), ((0, 0), (0, 4), (0, 0)))
    b1 = np.zeros((1, 256), np.float32)
    b1[0, :224] = np.tile(conv1_b, 14)

    # conv2: K = 14*16 = 224 lanes (conv1-output row layout), padded to 256.
    rhs2 = np.pad(_conv_banded_rhs(conv2_w, 14), ((0, 0), (0, 32), (0, 0)))
    b2 = np.zeros((1, 256), np.float32)
    b2[0, :224] = np.tile(conv2_b, 7)

    # fc1: one (256, 512) block per output-map row h; lane w*32 + c of block h
    # corresponds to the PyTorch NCHW-flatten feature index c*49 + h*7 + w.
    w1 = np.zeros((7, 256, 512), np.float32)
    w1[:, :224, :] = (fc1_w.T.reshape(32, 7, 7, 512)
                      .transpose(1, 2, 0, 3).reshape(7, 224, 512))

    # logits: transpose and zero-pad 10 -> 128 output lanes (lane-dense store).
    w2 = np.zeros((512, 128), np.float32)
    w2[:, :10] = lg_w.T
    b_lg = np.zeros((1, 128), np.float32)
    b_lg[0, :10] = lg_b

    return {
        "rhs1": jnp.asarray(rhs1, jnp.bfloat16),
        "b1": jnp.asarray(b1, jnp.float32),
        "rhs2": jnp.asarray(rhs2, jnp.bfloat16),
        "b2": jnp.asarray(b2, jnp.float32),
        "w1": jnp.asarray(w1, jnp.bfloat16),
        "fc1_b": jnp.asarray(fc1_b.reshape(1, 512), jnp.float32),
        "w2": jnp.asarray(w2, jnp.bfloat16),
        "logits_b": jnp.asarray(b_lg, jnp.float32),
    }


if __name__ == "__main__":
    key = jax.random.PRNGKey(0)
    pkey, xkey = jax.random.split(key)
    params = init_params(pkey)
    prep = prepare_params(params)
    # Input spatial size is fixed by the module (fc1 expects 32*7*7): 28x28.
    x = jax.random.normal(xkey, (2, 1, 28, 28), jnp.float32)
    logits = ptmnist_forward(x, prep)
    jax.block_until_ready(logits)
    assert logits.shape == (2, 10) and logits.dtype == jnp.float32
    assert bool(jnp.all(jnp.isfinite(logits)))
    print("KERNEL_OK")
</pallas_src>

<mosaic_0001>
module attributes {stable_mosaic.version = 11 : i64} {
  func.func @_ptmnist_kernel(%arg0: i32, %arg1: memref<4x8x8x32xbf16, #tpu.memory_space<vmem>>, %arg2: memref<5x32x512xbf16, #tpu.memory_space<vmem>>, %arg3: memref<1x256xf32, #tpu.memory_space<vmem>>, %arg4: memref<5x256x512xbf16, #tpu.memory_space<vmem>>, %arg5: memref<1x256xf32, #tpu.memory_space<vmem>>, %arg6: memref<7x256x512xbf16, #tpu.memory_space<vmem>>, %arg7: memref<1x512xf32, #tpu.memory_space<vmem>>, %arg8: memref<512x128xbf16, #tpu.memory_space<vmem>>, %arg9: memref<1x128xf32, #tpu.memory_space<vmem>>, %arg10: memref<8x128xf32, #tpu.memory_space<vmem>>, %arg11: memref<9x8x256xbf16, #tpu.memory_space<vmem>>, %arg12: memref<9x8x256xbf16, #tpu.memory_space<vmem>>) attributes {dimension_semantics = [#tpu.dimension_semantics<parallel>], iteration_bounds = array<i64: 1>, scalar_prefetch = 0 : i64, scratch_operands = 2 : i64, tpu.core_type = #tpu.core_type<tc>, window_params = [{transform_indices = @transform_0, window_bounds = array<i64: 4, 8, 8, 32>}, {pipeline_mode = #tpu.pipeline_mode<synchronous>, transform_indices = @transform_1, window_bounds = array<i64: 5, 32, 512>}, {pipeline_mode = #tpu.pipeline_mode<synchronous>, transform_indices = @transform_2, window_bounds = array<i64: 1, 256>}, {pipeline_mode = #tpu.pipeline_mode<synchronous>, transform_indices = @transform_3, window_bounds = array<i64: 5, 256, 512>}, {pipeline_mode = #tpu.pipeline_mode<synchronous>, transform_indices = @transform_4, window_bounds = array<i64: 1, 256>}, {pipeline_mode = #tpu.pipeline_mode<synchronous>, transform_indices = @transform_5, window_bounds = array<i64: 7, 256, 512>}, {pipeline_mode = #tpu.pipeline_mode<synchronous>, transform_indices = @transform_6, window_bounds = array<i64: 1, 512>}, {pipeline_mode = #tpu.pipeline_mode<synchronous>, transform_indices = @transform_7, window_bounds = array<i64: 512, 128>}, {pipeline_mode = #tpu.pipeline_mode<synchronous>, transform_indices = @transform_8, window_bounds = array<i64: 1, 128>}, {transform_indices = @transform_9, window_bounds = array<i64: 8, 128>}]} {
    %c0 = arith.constant 0 : index
    %c0_0 = arith.constant 0 : index
    %c0_1 = arith.constant 0 : index
    %c0_2 = arith.constant 0 : index
    %0 = vector.load %arg1[%c0, %c0_0, %c0_1, %c0_2] : memref<4x8x8x32xbf16, #tpu.memory_space<vmem>>, vector<1x7x8x32xbf16>
    %1 = vector.shape_cast %0 : vector<1x7x8x32xbf16> to vector<7x8x32xbf16>
    %2 = vector.shape_cast %1 : vector<7x8x32xbf16> to vector<56x32xbf16>
    %c0_3 = arith.constant 0 : index
    %c0_4 = arith.constant 0 : index
    %c0_5 = arith.constant 0 : index
    %3 = vector.load %arg2[%c0_3, %c0_4, %c0_5] : memref<5x32x512xbf16, #tpu.memory_space<vmem>>, vector<1x32x512xbf16>
    %4 = vector.shape_cast %3 : vector<1x32x512xbf16> to vector<32x512xbf16>
    %cst = arith.constant dense<0.000000e+00> : vector<56x512xf32>
    %5 = tpu.matmul %2, %4, %cst {dimension_numbers = #tpu.dot_dimension_numbers<[1], [0], [0], [1], [0, 0, 1, 1], [], []>} : vector<56x32xbf16>, vector<32x512xbf16>, vector<56x512xf32> -> vector<56x512xf32>
    %c1 = arith.constant 1 : index
    %c0_6 = arith.constant 0 : index
    %c0_7 = arith.constant 0 : index
    %c0_8 = arith.constant 0 : index
    %6 = vector.load %arg1[%c1, %c0_6, %c0_7, %c0_8] : memref<4x8x8x32xbf16, #tpu.memory_space<vmem>>, vector<1x7x8x32xbf16>
    %7 = vector.shape_cast %6 : vector<1x7x8x32xbf16> to vector<7x8x32xbf16>
    %8 = vector.shape_cast %7 : vector<7x8x32xbf16> to vector<56x32xbf16>
    %c1_9 = arith.constant 1 : index
    %c0_10 = arith.constant 0 : index
    %c0_11 = arith.constant 0 : index
    %9 = vector.load %arg2[%c1_9, %c0_10, %c0_11] : memref<5x32x512xbf16, #tpu.memory_space<vmem>>, vector<1x32x512xbf16>
    %10 = vector.shape_cast %9 : vector<1x32x512xbf16> to vector<32x512xbf16>
    %cst_12 = arith.constant dense<0.000000e+00> : vector<56x512xf32>
    %11 = tpu.matmul %8, %10, %cst_12 {dimension_numbers = #tpu.dot_dimension_numbers<[1], [0], [0], [1], [0, 0, 1, 1], [], []>} : vector<56x32xbf16>, vector<32x512xbf16>, vector<56x512xf32> -> vector<56x512xf32>
    %12 = arith.addf %5, %11 : vector<56x512xf32>
    %c2 = arith.constant 2 : index
    %c0_13 = arith.constant 0 : index
    %c0_14 = arith.constant 0 : index
    %c0_15 = arith.constant 0 : index
    %13 = vector.load %arg1[%c2, %c0_13, %c0_14, %c0_15] : memref<4x8x8x32xbf16, #tpu.memory_space<vmem>>, vector<1x7x8x32xbf16>
    %14 = vector.shape_cast %13 : vector<1x7x8x32xbf16> to vector<7x8x32xbf16>
    %15 = vector.shape_cast %14 : vector<7x8x32xbf16> to vector<56x32xbf16>
    %c2_16 = arith.constant 2 : index
    %c0_17 = arith.constant 0 : index
    %c0_18 = arith.constant 0 : index
    %16 = vector.load %arg2[%c2_16, %c0_17, %c0_18] : memref<5x32x512xbf16, #tpu.memory_space<vmem>>, vector<1x32x512xbf16>
    %17 = vector.shape_cast %16 : vector<1x32x512xbf16> to vector<32x512xbf16>
    %cst_19 = arith.constant dense<0.000000e+00> : vector<56x512xf32>
    %18 = tpu.matmul %15, %17, %cst_19 {dimension_numbers = #tpu.dot_dimension_numbers<[1], [0], [0], [1], [0, 0, 1, 1], [], []>} : vector<56x32xbf16>, vector<32x512xbf16>, vector<56x512xf32> -> vector<56x512xf32>
    %19 = arith.addf %12, %18 : vector<56x512xf32>
    %c3 = arith.constant 3 : index
    %c0_20 = arith.constant 0 : index
    %c0_21 = arith.constant 0 : index
    %c0_22 = arith.constant 0 : index
    %20 = vector.load %arg1[%c3, %c0_20, %c0_21, %c0_22] : memref<4x8x8x32xbf16, #tpu.memory_space<vmem>>, vector<1x7x8x32xbf16>
    %21 = vector.shape_cast %20 : vector<1x7x8x32xbf16> to vector<7x8x32xbf16>
    %22 = vector.shape_cast %21 : vector<7x8x32xbf16> to vector<56x32xbf16>
    %c3_23 = arith.constant 3 : index
    %c0_24 = arith.constant 0 : index
    %c0_25 = arith.constant 0 : index
    %23 = vector.load %arg2[%c3_23, %c0_24, %c0_25] : memref<5x32x512xbf16, #tpu.memory_space<vmem>>, vector<1x32x512xbf16>
    %24 = vector.shape_cast %23 : vector<1x32x512xbf16> to vector<32x512xbf16>
    %cst_26 = arith.constant dense<0.000000e+00> : vector<56x512xf32>
    %25 = tpu.matmul %22, %24, %cst_26 {dimension_numbers = #tpu.dot_dimension_numbers<[1], [0], [0], [1], [0, 0, 1, 1], [], []>} : vector<56x32xbf16>, vector<32x512xbf16>, vector<56x512xf32> -> vector<56x512xf32>
    %26 = arith.addf %19, %25 : vector<56x512xf32>
    %c0_27 = arith.constant 0 : index
    %c1_28 = arith.constant 1 : index
    %c0_29 = arith.constant 0 : index
    %c0_30 = arith.constant 0 : index
    %27 = vector.load %arg1[%c0_27, %c1_28, %c0_29, %c0_30] : memref<4x8x8x32xbf16, #tpu.memory_space<vmem>>, vector<1x7x8x32xbf16>
    %28 = vector.shape_cast %27 : vector<1x7x8x32xbf16> to vector<7x8x32xbf16>
    %29 = vector.shape_cast %28 : vector<7x8x32xbf16> to vector<56x32xbf16>
    %c4 = arith.constant 4 : index
    %c0_31 = arith.constant 0 : index
    %c0_32 = arith.constant 0 : index
    %30 = vector.load %arg2[%c4, %c0_31, %c0_32] : memref<5x32x512xbf16, #tpu.memory_space<vmem>>, vector<1x32x512xbf16>
    %31 = vector.shape_cast %30 : vector<1x32x512xbf16> to vector<32x512xbf16>
    %cst_33 = arith.constant dense<0.000000e+00> : vector<56x512xf32>
    %32 = tpu.matmul %29, %31, %cst_33 {dimension_numbers = #tpu.dot_dimension_numbers<[1], [0], [0], [1], [0, 0, 1, 1], [], []>} : vector<56x32xbf16>, vector<32x512xbf16>, vector<56x512xf32> -> vector<56x512xf32>
    %33 = arith.addf %26, %32 : vector<56x512xf32>
    %c1_34 = arith.constant 1 : index
    %c0_35 = arith.constant 0 : index
    %c0_36 = arith.constant 0 : index
    %c0_37 = arith.constant 0 : index
    %34 = vector.load %arg1[%c1_34, %c0_35, %c0_36, %c0_37] : memref<4x8x8x32xbf16, #tpu.memory_space<vmem>>, vector<1x7x8x32xbf16>
    %35 = vector.shape_cast %34 : vector<1x7x8x32xbf16> to vector<7x8x32xbf16>
    %36 = vector.shape_cast %35 : vector<7x8x32xbf16> to vector<56x32xbf16>
    %c0_38 = arith.constant 0 : index
    %c0_39 = arith.constant 0 : index
    %c0_40 = arith.constant 0 : index
    %37 = vector.load %arg2[%c0_38, %c0_39, %c0_40] : memref<5x32x512xbf16, #tpu.memory_space<vmem>>, vector<1x32x512xbf16>
    %38 = vector.shape_cast %37 : vector<1x32x512xbf16> to vector<32x512xbf16>
    %cst_41 = arith.constant dense<0.000000e+00> : vector<56x512xf32>
    %39 = tpu.matmul %36, %38, %cst_41 {dimension_numbers = #tpu.dot_dimension_numbers<[1], [0], [0], [1], [0, 0, 1, 1], [], []>} : vector<56x32xbf16>, vector<32x512xbf16>, vector<56x512xf32> -> vector<56x512xf32>
    %c2_42 = arith.constant 2 : index
    %c0_43 = arith.constant 0 : index
    %c0_44 = arith.constant 0 : index
    %c0_45 = arith.constant 0 : index
    %40 = vector.load %arg1[%c2_42, %c0_43, %c0_44, %c0_45] : memref<4x8x8x32xbf16, #tpu.memory_space<vmem>>, vector<1x7x8x32xbf16>
    %41 = vector.shape_cast %40 : vector<1x7x8x32xbf16> to vector<7x8x32xbf16>
    %42 = vector.shape_cast %41 : vector<7x8x32xbf16> to vector<56x32xbf16>
    %c1_46 = arith.constant 1 : index
    %c0_47 = arith.constant 0 : index
    %c0_48 = arith.constant 0 : index
    %43 = vector.load %arg2[%c1_46, %c0_47, %c0_48] : memref<5x32x512xbf16, #tpu.memory_space<vmem>>, vector<1x32x512xbf16>
    %44 = vector.shape_cast %43 : vector<1x32x512xbf16> to vector<32x512xbf16>
    %cst_49 = arith.constant dense<0.000000e+00> : vector<56x512xf32>
    %45 = tpu.matmul %42, %44, %cst_49 {dimension_numbers = #tpu.dot_dimension_numbers<[1], [0], [0], [1], [0, 0, 1, 1], [], []>} : vector<56x32xbf16>, vector<32x512xbf16>, vector<56x512xf32> -> vector<56x512xf32>
    %46 = arith.addf %39, %45 : vector<56x512xf32>
    %c3_50 = arith.constant 3 : index
    %c0_51 = arith.constant 0 : index
    %c0_52 = arith.constant 0 : index
    %c0_53 = arith.constant 0 : index
    %47 = vector.load %arg1[%c3_50, %c0_51, %c0_52, %c0_53] : memref<4x8x8x32xbf16, #tpu.memory_space<vmem>>, vector<1x7x8x32xbf16>
    %48 = vector.shape_cast %47 : vector<1x7x8x32xbf16> to vector<7x8x32xbf16>
    %49 = vector.shape_cast %48 : vector<7x8x32xbf16> to vector<56x32xbf16>
    %c2_54 = arith.constant 2 : index
    %c0_55 = arith.constant 0 : index
    %c0_56 = arith.constant 0 : index
    %50 = vector.load %arg2[%c2_54, %c0_55, %c0_56] : memref<5x32x512xbf16, #tpu.memory_space<vmem>>, vector<1x32x512xbf16>
    %51 = vector.shape_cast %50 : vector<1x32x512xbf16> to vector<32x512xbf16>
    %cst_57 = arith.constant dense<0.000000e+00> : vector<56x512xf32>
    %52 = tpu.matmul %49, %51, %cst_57 {dimension_numbers = #tpu.dot_dimension_numbers<[1], [0], [0], [1], [0, 0, 1, 1], [], []>} : vector<56x32xbf16>, vector<32x512xbf16>, vector<56x512xf32> -> vector<56x512xf32>
    %53 = arith.addf %46, %52 : vector<56x512xf32>
    %c0_58 = arith.constant 0 : index
    %c1_59 = arith.constant 1 : index
    %c0_60 = arith.constant 0 : index
    %c0_61 = arith.constant 0 : index
    %54 = vector.load %arg1[%c0_58, %c1_59, %c0_60, %c0_61] : memref<4x8x8x32xbf16, #tpu.memory_space<vmem>>, vector<1x7x8x32xbf16>
    %55 = vector.shape_cast %54 : vector<1x7x8x32xbf16> to vector<7x8x32xbf16>
    %56 = vector.shape_cast %55 : vector<7x8x32xbf16> to vector<56x32xbf16>
    %c3_62 = arith.constant 3 : index
    %c0_63 = arith.constant 0 : index
    %c0_64 = arith.constant 0 : index
    %57 = vector.load %arg2[%c3_62, %c0_63, %c0_64] : memref<5x32x512xbf16, #tpu.memory_space<vmem>>, vector<1x32x512xbf16>
    %58 = vector.shape_cast %57 : vector<1x32x512xbf16> to vector<32x512xbf16>
    %cst_65 = arith.constant dense<0.000000e+00> : vector<56x512xf32>
    %59 = tpu.matmul %56, %58, %cst_65 {dimension_numbers = #tpu.dot_dimension_numbers<[1], [0], [0], [1], [0, 0, 1, 1], [], []>} : vector<56x32xbf16>, vector<32x512xbf16>, vector<56x512xf32> -> vector<56x512xf32>
    %60 = arith.addf %53, %59 : vector<56x512xf32>
    %c1_66 = arith.constant 1 : index
    %c1_67 = arith.constant 1 : index
    %c0_68 = arith.constant 0 : index
    %c0_69 = arith.constant 0 : index
    %61 = vector.load %arg1[%c1_66, %c1_67, %c0_68, %c0_69] : memref<4x8x8x32xbf16, #tpu.memory_space<vmem>>, vector<1x7x8x32xbf16>
    %62 = vector.shape_cast %61 : vector<1x7x8x32xbf16> to vector<7x8x32xbf16>
    %63 = vector.shape_cast %62 : vector<7x8x32xbf16> to vector<56x32xbf16>
    %c4_70 = arith.constant 4 : index
    %c0_71 = arith.constant 0 : index
    %c0_72 = arith.constant 0 : index
    %64 = vector.load %arg2[%c4_70, %c0_71, %c0_72] : memref<5x32x512xbf16, #tpu.memory_space<vmem>>, vector<1x32x512xbf16>
    %65 = vector.shape_cast %64 : vector<1x32x512xbf16> to vector<32x512xbf16>
    %cst_73 = arith.constant dense<0.000000e+00> : vector<56x512xf32>
    %66 = tpu.matmul %63, %65, %cst_73 {dimension_numbers = #tpu.dot_dimension_numbers<[1], [0], [0], [1], [0, 0, 1, 1], [], []>} : vector<56x32xbf16>, vector<32x512xbf16>, vector<56x512xf32> -> vector<56x512xf32>
    %67 = arith.addf %60, %66 : vector<56x512xf32>
    %68 = arith.maximumf %33, %67 : vector<56x512xf32>
    %69 = vector.extract_strided_slice %68 {offsets = [0, 0], sizes = [56, 256], strides = [1, 1]} : vector<56x512xf32> to vector<56x256xf32>
    %70 = vector.extract_strided_slice %68 {offsets = [0, 256], sizes = [56, 256], strides = [1, 1]} : vector<56x512xf32> to vector<56x256xf32>
    %71 = arith.maximumf %69, %70 : vector<56x256xf32>
    %c0_74 = arith.constant 0 : index
    %c0_75 = arith.constant 0 : index
    %72 = vector.load %arg3[%c0_74, %c0_75] : memref<1x256xf32, #tpu.memory_space<vmem>>, vector<1x256xf32>
    %73 = vector.broadcast %72 : vector<1x256xf32> to vector<56x256xf32>
    %74 = arith.addf %71, %73 : vector<56x256xf32>
    %cst_76 = arith.constant 0.000000e+00 : f32
    %75 = vector.broadcast %cst_76 : f32 to vector<56x256xf32>
    %76 = arith.maximumf %74, %75 : vector<56x256xf32>
    %cst_77 = arith.constant 0.000000e+00 : bf16
    %77 = vector.broadcast %cst_77 : bf16 to vector<8x256xbf16>
    %c0_78 = arith.constant 0 : index
    %c0_79 = arith.constant 0 : index
    %c0_80 = arith.constant 0 : index
    %78 = vector.load %arg11[%c0_78, %c0_79, %c0_80] : memref<9x8x256xbf16, #tpu.memory_space<vmem>>, vector<1x8x256xbf16>
    %79 = vector.shape_cast %78 : vector<1x8x256xbf16> to vector<8x256xbf16>
    %80 = vector.shape_cast %77 : vector<8x256xbf16> to vector<1x8x256xbf16>
    tpu.vector_store %arg11[%c0_78, %c0_79, %c0_80], %80 {strides = array<i32>} : memref<9x8x256xbf16, #tpu.memory_space<vmem>>, vector<1x8x256xbf16>,
    %cst_81 = arith.constant 0.000000e+00 : bf16
    %81 = vector.broadcast %cst_81 : bf16 to vector<8x256xbf16>
    %c8 = arith.constant 8 : index
    %c0_82 = arith.constant 0 : index
    %c0_83 = arith.constant 0 : index
    %82 = vector.load %arg11[%c8, %c0_82, %c0_83] : memref<9x8x256xbf16, #tpu.memory_space<vmem>>, vector<1x8x256xbf16>
    %83 = vector.shape_cast %82 : vector<1x8x256xbf16> to vector<8x256xbf16>
    %84 = vector.shape_cast %81 : vector<8x256xbf16> to vector<1x8x256xbf16>
    tpu.vector_store %arg11[%c8, %c0_82, %c0_83], %84 {strides = array<i32>} : memref<9x8x256xbf16, #tpu.memory_space<vmem>>, vector<1x8x256xbf16>,
    %85 = arith.truncf %76 : vector<56x256xf32> to vector<56x256xbf16>
    %86 = vector.shape_cast %85 : vector<56x256xbf16> to vector<7x8x256xbf16>
    %c1_84 = arith.constant 1 : index
    %c0_85 = arith.constant 0 : index
    %c0_86 = arith.constant 0 : index
    %87 = vector.load %arg11[%c1_84, %c0_85, %c0_86] : memref<9x8x256xbf16, #tpu.memory_space<vmem>>, vector<7x8x256xbf16>
    tpu.vector_store %arg11[%c1_84, %c0_85, %c0_86], %86 {strides = array<i32>} : memref<9x8x256xbf16, #tpu.memory_space<vmem>>, vector<7x8x256xbf16>,
    %c2_87 = arith.constant 2 : index
    %c0_88 = arith.constant 0 : index
    %c0_89 = arith.constant 0 : index
    %c0_90 = arith.constant 0 : index
    %88 = vector.load %arg1[%c2_87, %c0_88, %c0_89, %c0_90] : memref<4x8x8x32xbf16, #tpu.memory_space<vmem>>, vector<1x7x8x32xbf16>
    %89 = vector.shape_cast %88 : vector<1x7x8x32xbf16> to vector<7x8x32xbf16>
    %90 = vector.shape_cast %89 : vector<7x8x32xbf16> to vector<56x32xbf16>
    %c0_91 = arith.constant 0 : index
    %c0_92 = arith.constant 0 : index
    %c0_93 = arith.constant 0 : index
    %91 = vector.load %arg2[%c0_91, %c0_92, %c0_93] : memref<5x32x512xbf16, #tpu.memory_space<vmem>>, vector<1x32x512xbf16>
    %92 = vector.shape_cast %91 : vector<1x32x512xbf16> to vector<32x512xbf16>
    %cst_94 = arith.constant dense<0.000000e+00> : vector<56x512xf32>
    %93 = tpu.matmul %90, %92, %cst_94 {dimension_numbers = #tpu.dot_dimension_numbers<[1], [0], [0], [1], [0, 0, 1, 1], [], []>} : vector<56x32xbf16>, vector<32x512xbf16>, vector<56x512xf32> -> vector<56x512xf32>
    %c3_95 = arith.constant 3 : index
    %c0_96 = arith.constant 0 : index
    %c0_97 = arith.constant 0 : index
    %c0_98 = arith.constant 0 : index
    %94 = vector.load %arg1[%c3_95, %c0_96, %c0_97, %c0_98] : memref<4x8x8x32xbf16, #tpu.memory_space<vmem>>, vector<1x7x8x32xbf16>
    %95 = vector.shape_cast %94 : vector<1x7x8x32xbf16> to vector<7x8x32xbf16>
    %96 = vector.shape_cast %95 : vector<7x8x32xbf16> to vector<56x32xbf16>
    %c1_99 = arith.constant 1 : index
    %c0_100 = arith.constant 0 : index
    %c0_101 = arith.constant 0 : index
    %97 = vector.load %arg2[%c1_99, %c0_100, %c0_101] : memref<5x32x512xbf16, #tpu.memory_space<vmem>>, vector<1x32x512xbf16>
    %98 = vector.shape_cast %97 : vector<1x32x512xbf16> to vector<32x512xbf16>
    %cst_102 = arith.constant dense<0.000000e+00> : vector<56x512xf32>
    %99 = tpu.matmul %96, %98, %cst_102 {dimension_numbers = #tpu.dot_dimension_numbers<[1], [0], [0], [1], [0, 0, 1, 1], [], []>} : vector<56x32xbf16>, vector<32x512xbf16>, vector<56x512xf32> -> vector<56x512xf32>
    %100 = arith.addf %93, %99 : vector<56x512xf32>
    %c0_103 = arith.constant 0 : index
    %c1_104 = arith.constant 1 : index
    %c0_105 = arith.constant 0 : index
    %c0_106 = arith.constant 0 : index
    %101 = vector.load %arg1[%c0_103, %c1_104, %c0_105, %c0_106] : memref<4x8x8x32xbf16, #tpu.memory_space<vmem>>, vector<1x7x8x32xbf16>
    %102 = vector.shape_cast %101 : vector<1x7x8x32xbf16> to vector<7x8x32xbf16>
    %103 = vector.shape_cast %102 : vector<7x8x32xbf16> to vector<56x32xbf16>
    %c2_107 = arith.constant 2 : index
    %c0_108 = arith.constant 0 : index
    %c0_109 = arith.constant 0 : index
    %104 = vector.load %arg2[%c2_107, %c0_108, %c0_109] : memref<5x32x512xbf16, #tpu.memory_space<vmem>>, vector<1x32x512xbf16>
    %105 = vector.shape_cast %104 : vector<1x32x512xbf16> to vector<32x512xbf16>
    %cst_110 = arith.constant dense<0.000000e+00> : vector<56x512xf32>
    %106 = tpu.matmul %103, %105, %cst_110 {dimension_numbers = #tpu.dot_dimension_numbers<[1], [0], [0], [1], [0, 0, 1, 1], [], []>} : vector<56x32xbf16>, vector<32x512xbf16>, vector<56x512xf32> -> vector<56x512xf32>
    %107 = arith.addf %100, %106 : vector<56x512xf32>
    %c1_111 = arith.constant 1 : index
    %c1_112 = arith.constant 1 : index
    %c0_113 = arith.constant 0 : index
    %c0_114 = arith.constant 0 : index
    %108 = vector.load %arg1[%c1_111, %c1_112, %c0_113, %c0_114] : memref<4x8x8x32xbf16, #tpu.memory_space<vmem>>, vector<1x7x8x32xbf16>
    %109 = vector.shape_cast %108 : vector<1x7x8x32xbf16> to vector<7x8x32xbf16>
    %110 = vector.shape_cast %109 : vector<7x8x32xbf16> to vector<56x32xbf16>
    %c3_115 = arith.constant 3 : index
    %c0_116 = arith.constant 0 : index
    %c0_117 = arith.constant 0 : index
    %111 = vector.load %arg2[%c3_115, %c0_116, %c0_117] : memref<5x32x512xbf16, #tpu.memory_space<vmem>>, vector<1x32x512xbf16>
    %112 = vector.shape_cast %111 : vector<1x32x512xbf16> to vector<32x512xbf16>
    %cst_118 = arith.constant dense<0.000000e+00> : vector<56x512xf32>
    %113 = tpu.matmul %110, %112, %cst_118 {dimension_numbers = #tpu.dot_dimension_numbers<[1], [0], [0], [1], [0, 0, 1, 1], [], []>} : vector<56x32xbf16>, vector<32x512xbf16>, vector<56x512xf32> -> vector<56x512xf32>
    %114 = arith.addf %107, %113 : vector<56x512xf32>
    %c2_119 = arith.constant 2 : index
    %c1_120 = arith.constant 1 : index
    %c0_121 = arith.constant 0 : index
    %c0_122 = arith.constant 0 : index
    %115 = vector.load %arg1[%c2_119, %c1_120, %c0_121, %c0_122] : memref<4x8x8x32xbf16, #tpu.memory_space<vmem>>, vector<1x7x8x32xbf16>
    %116 = vector.shape_cast %115 : vector<1x7x8x32xbf16> to vector<7x8x32xbf16>
    %117 = vector.shape_cast %116 : vector<7x8x32xbf16> to vector<56x32xbf16>
    %c4_123 = arith.constant 4 : index
    %c0_124 = arith.constant 0 : index
    %c0_125 = arith.constant 0 : index
    %118 = vector.load %arg2[%c4_123, %c0_124, %c0_125] : memref<5x32x512xbf16, #tpu.memory_space<vmem>>, vector<1x32x512xbf16>
    %119 = vector.shape_cast %118 : vector<1x32x512xbf16> to vector<32x512xbf16>
    %cst_126 = arith.constant dense<0.000000e+00> : vector<56x512xf32>
    %120 = tpu.matmul %117, %119, %cst_126 {dimension_numbers = #tpu.dot_dimension_numbers<[1], [0], [0], [1], [0, 0, 1, 1], [], []>} : vector<56x32xbf16>, vector<32x512xbf16>, vector<56x512xf32> -> vector<56x512xf32>
    %121 = arith.addf %114, %120 : vector<56x512xf32>
    %c3_127 = arith.constant 3 : index
    %c0_128 = arith.constant 0 : index
    %c0_129 = arith.constant 0 : index
    %c0_130 = arith.constant 0 : index
    %122 = vector.load %arg1[%c3_127, %c0_128, %c0_129, %c0_130] : memref<4x8x8x32xbf16, #tpu.memory_space<vmem>>, vector<1x7x8x32xbf16>
    %123 = vector.shape_cast %122 : vector<1x7x8x32xbf16> to vector<7x8x32xbf16>
    %124 = vector.shape_cast %123 : vector<7x8x32xbf16> to vector<56x32xbf16>
    %c0_131 = arith.constant 0 : index
    %c0_132 = arith.constant 0 : index
    %c0_133 = arith.constant 0 : index
    %125 = vector.load %arg2[%c0_131, %c0_132, %c0_133] : memref<5x32x512xbf16, #tpu.memory_space<vmem>>, vector<1x32x512xbf16>
    %126 = vector.shape_cast %125 : vector<1x32x512xbf16> to vector<32x512xbf16>
    %cst_134 = arith.constant dense<0.000000e+00> : vector<56x512xf32>
    %127 = tpu.matmul %124, %126, %cst_134 {dimension_numbers = #tpu.dot_dimension_numbers<[1], [0], [0], [1], [0, 0, 1, 1], [], []>} : vector<56x32xbf16>, vector<32x512xbf16>, vector<56x512xf32> -> vector<56x512xf32>
    %c0_135 = arith.constant 0 : index
    %c1_136 = arith.constant 1 : index
    %c0_137 = arith.constant 0 : index
    %c0_138 = arith.constant 0 : index
    %128 = vector.load %arg1[%c0_135, %c1_136, %c0_137, %c0_138] : memref<4x8x8x32xbf16, #tpu.memory_space<vmem>>, vector<1x7x8x32xbf16>
    %129 = vector.shape_cast %128 : vector<1x7x8x32xbf16> to vector<7x8x32xbf16>
    %130 = vector.shape_cast %129 : vector<7x8x32xbf16> to vector<56x32xbf16>
    %c1_139 = arith.constant 1 : index
    %c0_140 = arith.constant 0 : index
    %c0_141 = arith.constant 0 : index
    %131 = vector.load %arg2[%c1_139, %c0_140, %c0_141] : memref<5x32x512xbf16, #tpu.memory_space<vmem>>, vector<1x32x512xbf16>
    %132 = vector.shape_cast %131 : vector<1x32x512xbf16> to vector<32x512xbf16>
    %cst_142 = arith.constant dense<0.000000e+00> : vector<56x512xf32>
    %133 = tpu.matmul %130, %132, %cst_142 {dimension_numbers = #tpu.dot_dimension_numbers<[1], [0], [0], [1], [0, 0, 1, 1], [], []>} : vector<56x32xbf16>, vector<32x512xbf16>, vector<56x512xf32> -> vector<56x512xf32>
    %134 = arith.addf %127, %133 : vector<56x512xf32>
    %c1_143 = arith.constant 1 : index
    %c1_144 = arith.constant 1 : index
    %c0_145 = arith.constant 0 : index
    %c0_146 = arith.constant 0 : index
    %135 = vector.load %arg1[%c1_143, %c1_144, %c0_145, %c0_146] : memref<4x8x8x32xbf16, #tpu.memory_space<vmem>>, vector<1x7x8x32xbf16>
    %136 = vector.shape_cast %135 : vector<1x7x8x32xbf16> to vector<7x8x32xbf16>
    %137 = vector.shape_cast %136 : vector<7x8x32xbf16> to vector<56x32xbf16>
    %c2_147 = arith.constant 2 : index
    %c0_148 = arith.constant 0 : index
    %c0_149 = arith.constant 0 : index
    %138 = vector.load %arg2[%c2_147, %c0_148, %c0_149] : memref<5x32x512xbf16, #tpu.memory_space<vmem>>, vector<1x32x512xbf16>
    %139 = vector.shape_cast %138 : vector<1x32x512xbf16> to vector<32x512xbf16>
    %cst_150 = arith.constant dense<0.000000e+00> : vector<56x512xf32>
    %140 = tpu.matmul %137, %139, %cst_150 {dimension_numbers = #tpu.dot_dimension_numbers<[1], [0], [0], [1], [0, 0, 1, 1], [], []>} : vector<56x32xbf16>, vector<32x512xbf16>, vector<56x512xf32> -> vector<56x512xf32>
    %141 = arith.addf %134, %140 : vector<56x512xf32>
    %c2_151 = arith.constant 2 : index
    %c1_152 = arith.constant 1 : index
    %c0_153 = arith.constant 0 : index
    %c0_154 = arith.constant 0 : index
    %142 = vector.load %arg1[%c2_151, %c1_152, %c0_153, %c0_154] : memref<4x8x8x32xbf16, #tpu.memory_space<vmem>>, vector<1x7x8x32xbf16>
    %143 = vector.shape_cast %142 : vector<1x7x8x32xbf16> to vector<7x8x32xbf16>
    %144 = vector.shape_cast %143 : vector<7x8x32xbf16> to vector<56x32xbf16>
    %c3_155 = arith.constant 3 : index
    %c0_156 = arith.constant 0 : index
    %c0_157 = arith.constant 0 : index
    %145 = vector.load %arg2[%c3_155, %c0_156, %c0_157] : memref<5x32x512xbf16, #tpu.memory_space<vmem>>, vector<1x32x512xbf16>
    %146 = vector.shape_cast %145 : vector<1x32x512xbf16> to vector<32x512xbf16>
    %cst_158 = arith.constant dense<0.000000e+00> : vector<56x512xf32>
    %147 = tpu.matmul %144, %146, %cst_158 {dimension_numbers = #tpu.dot_dimension_numbers<[1], [0], [0], [1], [0, 0, 1, 1], [], []>} : vector<56x32xbf16>, vector<32x512xbf16>, vector<56x512xf32> -> vector<56x512xf32>
    %148 = arith.addf %141, %147 : vector<56x512xf32>
    %c3_159 = arith.constant 3 : index
    %c1_160 = arith.constant 1 : index
    %c0_161 = arith.constant 0 : index
    %c0_162 = arith.constant 0 : index
    %149 = vector.load %arg1[%c3_159, %c1_160, %c0_161, %c0_162] : memref<4x8x8x32xbf16, #tpu.memory_space<vmem>>, vector<1x7x8x32xbf16>
    %150 = vector.shape_cast %149 : vector<1x7x8x32xbf16> to vector<7x8x32xbf16>
    %151 = vector.shape_cast %150 : vector<7x8x32xbf16> to vector<56x32xbf16>
    %c4_163 = arith.constant 4 : index
    %c0_164 = arith.constant 0 : index
    %c0_165 = arith.constant 0 : index
    %152 = vector.load %arg2[%c4_163, %c0_164, %c0_165] : memref<5x32x512xbf16, #tpu.memory_space<vmem>>, vector<1x32x512xbf16>
    %153 = vector.shape_cast %152 : vector<1x32x512xbf16> to vector<32x512xbf16>
    %cst_166 = arith.constant dense<0.000000e+00> : vector<56x512xf32>
    %154 = tpu.matmul %151, %153, %cst_166 {dimension_numbers = #tpu.dot_dimension_numbers<[1], [0], [0], [1], [0, 0, 1, 1], [], []>} : vector<56x32xbf16>, vector<32x512xbf16>, vector<56x512xf32> -> vector<56x512xf32>
    %155 = arith.addf %148, %154 : vector<56x512xf32>
    %156 = arith.maximumf %121, %155 : vector<56x512xf32>
    %157 = vector.extract_strided_slice %156 {offsets = [0, 0], sizes = [56, 256], strides = [1, 1]} : vector<56x512xf32> to vector<56x256xf32>
    %158 = vector.extract_strided_slice %156 {offsets = [0, 256], sizes = [56, 256], strides = [1, 1]} : vector<56x512xf32> to vector<56x256xf32>
    %159 = arith.maximumf %157, %158 : vector<56x256xf32>
    %c0_167 = arith.constant 0 : index
    %c0_168 = arith.constant 0 : index
    %160 = vector.load %arg3[%c0_167, %c0_168] : memref<1x256xf32, #tpu.memory_space<vmem>>, vector<1x256xf32>
    %161 = vector.broadcast %160 : vector<1x256xf32> to vector<56x256xf32>
    %162 = arith.addf %159, %161 : vector<56x256xf32>
    %cst_169 = arith.constant 0.000000e+00 : f32
    %163 = vector.broadcast %cst_169 : f32 to vector<56x256xf32>
    %164 = arith.maximumf %162, %163 : vector<56x256xf32>
    %cst_170 = arith.constant 0.000000e+00 : bf16
    %165 = vector.broadcast %cst_170 : bf16 to vector<8x256xbf16>
    %c0_171 = arith.constant 0 : index
    %c0_172 = arith.constant 0 : index
    %c0_173 = arith.constant 0 : index
    %166 = vector.load %arg12[%c0_171, %c0_172, %c0_173] : memref<9x8x256xbf16, #tpu.memory_space<vmem>>, vector<1x8x256xbf16>
    %167 = vector.shape_cast %166 : vector<1x8x256xbf16> to vector<8x256xbf16>
    %168 = vector.shape_cast %165 : vector<8x256xbf16> to vector<1x8x256xbf16>
    tpu.vector_store %arg12[%c0_171, %c0_172, %c0_173], %168 {strides = array<i32>} : memref<9x8x256xbf16, #tpu.memory_space<vmem>>, vector<1x8x256xbf16>,
    %cst_174 = arith.constant 0.000000e+00 : bf16
    %169 = vector.broadcast %cst_174 : bf16 to vector<8x256xbf16>
    %c8_175 = arith.constant 8 : index
    %c0_176 = arith.constant 0 : index
    %c0_177 = arith.constant 0 : index
    %170 = vector.load %arg12[%c8_175, %c0_176, %c0_177] : memref<9x8x256xbf16, #tpu.memory_space<vmem>>, vector<1x8x256xbf16>
    %171 = vector.shape_cast %170 : vector<1x8x256xbf16> to vector<8x256xbf16>
    %172 = vector.shape_cast %169 : vector<8x256xbf16> to vector<1x8x256xbf16>
    tpu.vector_store %arg12[%c8_175, %c0_176, %c0_177], %172 {strides = array<i32>} : memref<9x8x256xbf16, #tpu.memory_space<vmem>>, vector<1x8x256xbf16>,
    %173 = arith.truncf %164 : vector<56x256xf32> to vector<56x256xbf16>
    %174 = vector.shape_cast %173 : vector<56x256xbf16> to vector<7x8x256xbf16>
    %c1_178 = arith.constant 1 : index
    %c0_179 = arith.constant 0 : index
    %c0_180 = arith.constant 0 : index
    %175 = vector.load %arg12[%c1_178, %c0_179, %c0_180] : memref<9x8x256xbf16, #tpu.memory_space<vmem>>, vector<7x8x256xbf16>
    tpu.vector_store %arg12[%c1_178, %c0_179, %c0_180], %174 {strides = array<i32>} : memref<9x8x256xbf16, #tpu.memory_space<vmem>>, vector<7x8x256xbf16>,
    %c0_181 = arith.constant 0 : index
    %c0_182 = arith.constant 0 : index
    %c0_183 = arith.constant 0 : index
    %176 = vector.load %arg11[%c0_181, %c0_182, %c0_183] : memref<9x8x256xbf16, #tpu.memory_space<vmem>>, vector<7x8x256xbf16>
    %177 = vector.shape_cast %176 : vector<7x8x256xbf16> to vector<56x256xbf16>
    %c0_184 = arith.constant 0 : index
    %c0_185 = arith.constant 0 : index
    %c0_186 = arith.constant 0 : index
    %178 = vector.load %arg4[%c0_184, %c0_185, %c0_186] : memref<5x256x512xbf16, #tpu.memory_space<vmem>>, vector<1x256x512xbf16>
    %179 = vector.shape_cast %178 : vector<1x256x512xbf16> to vector<256x512xbf16>
    %cst_187 = arith.constant dense<0.000000e+00> : vector<56x512xf32>
    %180 = tpu.matmul %177, %179, %cst_187 {dimension_numbers = #tpu.dot_dimension_numbers<[1], [0], [0], [1], [0, 0, 1, 1], [], []>} : vector<56x256xbf16>, vector<256x512xbf16>, vector<56x512xf32> -> vector<56x512xf32>
    %c0_188 = arith.constant 0 : index
    %c0_189 = arith.constant 0 : index
    %c0_190 = arith.constant 0 : index
    %181 = vector.load %arg12[%c0_188, %c0_189, %c0_190] : memref<9x8x256xbf16, #tpu.memory_space<vmem>>, vector<7x8x256xbf16>
    %182 = vector.shape_cast %181 : vector<7x8x256xbf16> to vector<56x256xbf16>
    %c1_191 = arith.constant 1 : index
    %c0_192 = arith.constant 0 : index
    %c0_193 = arith.constant 0 : index
    %183 = vector.load %arg4[%c1_191, %c0_192, %c0_193] : memref<5x256x512xbf16, #tpu.memory_space<vmem>>, vector<1x256x512xbf16>
    %184 = vector.shape_cast %183 : vector<1x256x512xbf16> to vector<256x512xbf16>
    %cst_194 = arith.constant dense<0.000000e+00> : vector<56x512xf32>
    %185 = tpu.matmul %182, %184, %cst_194 {dimension_numbers = #tpu.dot_dimension_numbers<[1], [0], [0], [1], [0, 0, 1, 1], [], []>} : vector<56x256xbf16>, vector<256x512xbf16>, vector<56x512xf32> -> vector<56x512xf32>
    %186 = arith.addf %180, %185 : vector<56x512xf32>
    %c1_195 = arith.constant 1 : index
    %c0_196 = arith.constant 0 : index
    %c0_197 = arith.constant 0 : index
    %187 = vector.load %arg11[%c1_195, %c0_196, %c0_197] : memref<9x8x256xbf16, #tpu.memory_space<vmem>>, vector<7x8x256xbf16>
    %188 = vector.shape_cast %187 : vector<7x8x256xbf16> to vector<56x256xbf16>
    %c2_198 = arith.constant 2 : index
    %c0_199 = arith.constant 0 : index
    %c0_200 = arith.constant 0 : index
    %189 = vector.load %arg4[%c2_198, %c0_199, %c0_200] : memref<5x256x512xbf16, #tpu.memory_space<vmem>>, vector<1x256x512xbf16>
    %190 = vector.shape_cast %189 : vector<1x256x512xbf16> to vector<256x512xbf16>
    %cst_201 = arith.constant dense<0.000000e+00> : vector<56x512xf32>
    %191 = tpu.matmul %188, %190, %cst_201 {dimension_numbers = #tpu.dot_dimension_numbers<[1], [0], [0], [1], [0, 0, 1, 1], [], []>} : vector<56x256xbf16>, vector<256x512xbf16>, vector<56x512xf32> -> vector<56x512xf32>
    %192 = arith.addf %186, %191 : vector<56x512xf32>
    %c1_202 = arith.constant 1 : index
    %c0_203 = arith.constant 0 : index
    %c0_204 = arith.constant 0 : index
    %193 = vector.load %arg12[%c1_202, %c0_203, %c0_204] : memref<9x8x256xbf16, #tpu.memory_space<vmem>>, vector<7x8x256xbf16>
    %194 = vector.shape_cast %193 : vector<7x8x256xbf16> to vector<56x256xbf16>
    %c3_205 = arith.constant 3 : index
    %c0_206 = arith.constant 0 : index
    %c0_207 = arith.constant 0 : index
    %195 = vector.load %arg4[%c3_205, %c0_206, %c0_207] : memref<5x256x512xbf16, #tpu.memory_space<vmem>>, vector<1x256x512xbf16>
    %196 = vector.shape_cast %195 : vector<1x256x512xbf16> to vector<256x512xbf16>
    %cst_208 = arith.constant dense<0.000000e+00> : vector<56x512xf32>
    %197 = tpu.matmul %194, %196, %cst_208 {dimension_numbers = #tpu.dot_dimension_numbers<[1], [0], [0], [1], [0, 0, 1, 1], [], []>} : vector<56x256xbf16>, vector<256x512xbf16>, vector<56x512xf32> -> vector<56x512xf32>
    %198 = arith.addf %192, %197 : vector<56x512xf32>
    %c2_209 = arith.constant 2 : index
    %c0_210 = arith.constant 0 : index
    %c0_211 = arith.constant 0 : index
    %199 = vector.load %arg11[%c2_209, %c0_210, %c0_211] : memref<9x8x256xbf16, #tpu.memory_space<vmem>>, vector<7x8x256xbf16>
    %200 = vector.shape_cast %199 : vector<7x8x256xbf16> to vector<56x256xbf16>
    %c4_212 = arith.constant 4 : index
    %c0_213 = arith.constant 0 : index
    %c0_214 = arith.constant 0 : index
    %201 = vector.load %arg4[%c4_212, %c0_213, %c0_214] : memref<5x256x512xbf16, #tpu.memory_space<vmem>>, vector<1x256x512xbf16>
    %202 = vector.shape_cast %201 : vector<1x256x512xbf16> to vector<256x512xbf16>
    %cst_215 = arith.constant dense<0.000000e+00> : vector<56x512xf32>
    %203 = tpu.matmul %200, %202, %cst_215 {dimension_numbers = #tpu.dot_dimension_numbers<[1], [0], [0], [1], [0, 0, 1, 1], [], []>} : vector<56x256xbf16>, vector<256x512xbf16>, vector<56x512xf32> -> vector<56x512xf32>
    %204 = arith.addf %198, %203 : vector<56x512xf32>
    %c0_216 = arith.constant 0 : index
    %c0_217 = arith.constant 0 : index
    %c0_218 = arith.constant 0 : index
    %205 = vector.load %arg12[%c0_216, %c0_217, %c0_218] : memref<9x8x256xbf16, #tpu.memory_space<vmem>>, vector<7x8x256xbf16>
    %206 = vector.shape_cast %205 : vector<7x8x256xbf16> to vector<56x256xbf16>
    %c0_219 = arith.constant 0 : index
    %c0_220 = arith.constant 0 : index
    %c0_221 = arith.constant 0 : index
    %207 = vector.load %arg4[%c0_219, %c0_220, %c0_221] : memref<5x256x512xbf16, #tpu.memory_space<vmem>>, vector<1x256x512xbf16>
    %208 = vector.shape_cast %207 : vector<1x256x512xbf16> to vector<256x512xbf16>
    %cst_222 = arith.constant dense<0.000000e+00> : vector<56x512xf32>
    %209 = tpu.matmul %206, %208, %cst_222 {dimension_numbers = #tpu.dot_dimension_numbers<[1], [0], [0], [1], [0, 0, 1, 1], [], []>} : vector<56x256xbf16>, vector<256x512xbf16>, vector<56x512xf32> -> vector<56x512xf32>
    %c1_223 = arith.constant 1 : index
    %c0_224 = arith.constant 0 : index
    %c0_225 = arith.constant 0 : index
    %210 = vector.load %arg11[%c1_223, %c0_224, %c0_225] : memref<9x8x256xbf16, #tpu.memory_space<vmem>>, vector<7x8x256xbf16>
    %211 = vector.shape_cast %210 : vector<7x8x256xbf16> to vector<56x256xbf16>
    %c1_226 = arith.constant 1 : index
    %c0_227 = arith.constant 0 : index
    %c0_228 = arith.constant 0 : index
    %212 = vector.load %arg4[%c1_226, %c0_227, %c0_228] : memref<5x256x512xbf16, #tpu.memory_space<vmem>>, vector<1x256x512xbf16>
    %213 = vector.shape_cast %212 : vector<1x256x512xbf16> to vector<256x512xbf16>
    %cst_229 = arith.constant dense<0.000000e+00> : vector<56x512xf32>
    %214 = tpu.matmul %211, %213, %cst_229 {dimension_numbers = #tpu.dot_dimension_numbers<[1], [0], [0], [1], [0, 0, 1, 1], [], []>} : vector<56x256xbf16>, vector<256x512xbf16>, vector<56x512xf32> -> vector<56x512xf32>
    %215 = arith.addf %209, %214 : vector<56x512xf32>
    %c1_230 = arith.constant 1 : index
    %c0_231 = arith.constant 0 : index
    %c0_232 = arith.constant 0 : index
    %216 = vector.load %arg12[%c1_230, %c0_231, %c0_232] : memref<9x8x256xbf16, #tpu.memory_space<vmem>>, vector<7x8x256xbf16>
    %217 = vector.shape_cast %216 : vector<7x8x256xbf16> to vector<56x256xbf16>
    %c2_233 = arith.constant 2 : index
    %c0_234 = arith.constant 0 : index
    %c0_235 = arith.constant 0 : index
    %218 = vector.load %arg4[%c2_233, %c0_234, %c0_235] : memref<5x256x512xbf16, #tpu.memory_space<vmem>>, vector<1x256x512xbf16>
    %219 = vector.shape_cast %218 : vector<1x256x512xbf16> to vector<256x512xbf16>
    %cst_236 = arith.constant dense<0.000000e+00> : vector<56x512xf32>
    %220 = tpu.matmul %217, %219, %cst_236 {dimension_numbers = #tpu.dot_dimension_numbers<[1], [0], [0], [1], [0, 0, 1, 1], [], []>} : vector<56x256xbf16>, vector<256x512xbf16>, vector<56x512xf32> -> vector<56x512xf32>
    %221 = arith.addf %215, %220 : vector<56x512xf32>
    %c2_237 = arith.constant 2 : index
    %c0_238 = arith.constant 0 : index
    %c0_239 = arith.constant 0 : index
    %222 = vector.load %arg11[%c2_237, %c0_238, %c0_239] : memref<9x8x256xbf16, #tpu.memory_space<vmem>>, vector<7x8x256xbf16>
    %223 = vector.shape_cast %222 : vector<7x8x256xbf16> to vector<56x256xbf16>
    %c3_240 = arith.constant 3 : index
    %c0_241 = arith.constant 0 : index
    %c0_242 = arith.constant 0 : index
    %224 = vector.load %arg4[%c3_240, %c0_241, %c0_242] : memref<5x256x512xbf16, #tpu.memory_space<vmem>>, vector<1x256x512xbf16>
    %225 = vector.shape_cast %224 : vector<1x256x512xbf16> to vector<256x512xbf16>
    %cst_243 = arith.constant dense<0.000000e+00> : vector<56x512xf32>
    %226 = tpu.matmul %223, %225, %cst_243 {dimension_numbers = #tpu.dot_dimension_numbers<[1], [0], [0], [1], [0, 0, 1, 1], [], []>} : vector<56x256xbf16>, vector<256x512xbf16>, vector<56x512xf32> -> vector<56x512xf32>
    %227 = arith.addf %221, %226 : vector<56x512xf32>
    %c2_244 = arith.constant 2 : index
    %c0_245 = arith.constant 0 : index
    %c0_246 = arith.constant 0 : index
    %228 = vector.load %arg12[%c2_244, %c0_245, %c0_246] : memref<9x8x256xbf16, #tpu.memory_space<vmem>>, vector<7x8x256xbf16>
    %229 = vector.shape_cast %228 : vector<7x8x256xbf16> to vector<56x256xbf16>
    %c4_247 = arith.constant 4 : index
    %c0_248 = arith.constant 0 : index
    %c0_249 = arith.constant 0 : index
    %230 = vector.load %arg4[%c4_247, %c0_248, %c0_249] : memref<5x256x512xbf16, #tpu.memory_space<vmem>>, vector<1x256x512xbf16>
    %231 = vector.shape_cast %230 : vector<1x256x512xbf16> to vector<256x512xbf16>
    %cst_250 = arith.constant dense<0.000000e+00> : vector<56x512xf32>
    %232 = tpu.matmul %229, %231, %cst_250 {dimension_numbers = #tpu.dot_dimension_numbers<[1], [0], [0], [1], [0, 0, 1, 1], [], []>} : vector<56x256xbf16>, vector<256x512xbf16>, vector<56x512xf32> -> vector<56x512xf32>
    %233 = arith.addf %227, %232 : vector<56x512xf32>
    %234 = arith.maximumf %204, %233 : vector<56x512xf32>
    %235 = vector.extract_strided_slice %234 {offsets = [0, 0], sizes = [56, 256], strides = [1, 1]} : vector<56x512xf32> to vector<56x256xf32>
    %236 = vector.extract_strided_slice %234 {offsets = [0, 256], sizes = [56, 256], strides = [1, 1]} : vector<56x512xf32> to vector<56x256xf32>
    %237 = arith.maximumf %235, %236 : vector<56x256xf32>
    %c0_251 = arith.constant 0 : index
    %c0_252 = arith.constant 0 : index
    %238 = vector.load %arg5[%c0_251, %c0_252] : memref<1x256xf32, #tpu.memory_space<vmem>>, vector<1x256xf32>
    %239 = vector.broadcast %238 : vector<1x256xf32> to vector<56x256xf32>
    %240 = arith.addf %237, %239 : vector<56x256xf32>
    %cst_253 = arith.constant 0.000000e+00 : f32
    %241 = vector.broadcast %cst_253 : f32 to vector<56x256xf32>
    %242 = arith.maximumf %240, %241 : vector<56x256xf32>
    %243 = arith.truncf %242 : vector<56x256xf32> to vector<56x256xbf16>
    %244 = vector.shape_cast %243 : vector<56x256xbf16> to vector<7x8x256xbf16>
    %245 = vector.extract_strided_slice %244 {offsets = [0, 0, 0], sizes = [1, 8, 256], strides = [1, 1, 1]} : vector<7x8x256xbf16> to vector<1x8x256xbf16>
    %246 = vector.shape_cast %245 : vector<1x8x256xbf16> to vector<8x256xbf16>
    %c0_254 = arith.constant 0 : index
    %c0_255 = arith.constant 0 : index
    %c0_256 = arith.constant 0 : index
    %247 = vector.load %arg6[%c0_254, %c0_255, %c0_256] : memref<7x256x512xbf16, #tpu.memory_space<vmem>>, vector<1x256x512xbf16>
    %248 = vector.shape_cast %247 : vector<1x256x512xbf16> to vector<256x512xbf16>
    %cst_257 = arith.constant dense<0.000000e+00> : vector<8x512xf32>
    %249 = tpu.matmul %246, %248, %cst_257 {dimension_numbers = #tpu.dot_dimension_numbers<[1], [0], [0], [1], [0, 0, 1, 1], [], []>} : vector<8x256xbf16>, vector<256x512xbf16>, vector<8x512xf32> -> vector<8x512xf32>
    %250 = vector.extract_strided_slice %244 {offsets = [1, 0, 0], sizes = [1, 8, 256], strides = [1, 1, 1]} : vector<7x8x256xbf16> to vector<1x8x256xbf16>
    %251 = vector.shape_cast %250 : vector<1x8x256xbf16> to vector<8x256xbf16>
    %c1_258 = arith.constant 1 : index
    %c0_259 = arith.constant 0 : index
    %c0_260 = arith.constant 0 : index
    %252 = vector.load %arg6[%c1_258, %c0_259, %c0_260] : memref<7x256x512xbf16, #tpu.memory_space<vmem>>, vector<1x256x512xbf16>
    %253 = vector.shape_cast %252 : vector<1x256x512xbf16> to vector<256x512xbf16>
    %cst_261 = arith.constant dense<0.000000e+00> : vector<8x512xf32>
    %254 = tpu.matmul %251, %253, %cst_261 {dimension_numbers = #tpu.dot_dimension_numbers<[1], [0], [0], [1], [0, 0, 1, 1], [], []>} : vector<8x256xbf16>, vector<256x512xbf16>, vector<8x512xf32> -> vector<8x512xf32>
    %255 = arith.addf %249, %254 : vector<8x512xf32>
    %256 = vector.extract_strided_slice %244 {offsets = [2, 0, 0], sizes = [1, 8, 256], strides = [1, 1, 1]} : vector<7x8x256xbf16> to vector<1x8x256xbf16>
    %257 = vector.shape_cast %256 : vector<1x8x256xbf16> to vector<8x256xbf16>
    %c2_262 = arith.constant 2 : index
    %c0_263 = arith.constant 0 : index
    %c0_264 = arith.constant 0 : index
    %258 = vector.load %arg6[%c2_262, %c0_263, %c0_264] : memref<7x256x512xbf16, #tpu.memory_space<vmem>>, vector<1x256x512xbf16>
    %259 = vector.shape_cast %258 : vector<1x256x512xbf16> to vector<256x512xbf16>
    %cst_265 = arith.constant dense<0.000000e+00> : vector<8x512xf32>
    %260 = tpu.matmul %257, %259, %cst_265 {dimension_numbers = #tpu.dot_dimension_numbers<[1], [0], [0], [1], [0, 0, 1, 1], [], []>} : vector<8x256xbf16>, vector<256x512xbf16>, vector<8x512xf32> -> vector<8x512xf32>
    %261 = arith.addf %255, %260 : vector<8x512xf32>
    %262 = vector.extract_strided_slice %244 {offsets = [3, 0, 0], sizes = [1, 8, 256], strides = [1, 1, 1]} : vector<7x8x256xbf16> to vector<1x8x256xbf16>
    %263 = vector.shape_cast %262 : vector<1x8x256xbf16> to vector<8x256xbf16>
    %c3_266 = arith.constant 3 : index
    %c0_267 = arith.constant 0 : index
    %c0_268 = arith.constant 0 : index
    %264 = vector.load %arg6[%c3_266, %c0_267, %c0_268] : memref<7x256x512xbf16, #tpu.memory_space<vmem>>, vector<1x256x512xbf16>
    %265 = vector.shape_cast %264 : vector<1x256x512xbf16> to vector<256x512xbf16>
    %cst_269 = arith.constant dense<0.000000e+00> : vector<8x512xf32>
    %266 = tpu.matmul %263, %265, %cst_269 {dimension_numbers = #tpu.dot_dimension_numbers<[1], [0], [0], [1], [0, 0, 1, 1], [], []>} : vector<8x256xbf16>, vector<256x512xbf16>, vector<8x512xf32> -> vector<8x512xf32>
    %267 = arith.addf %261, %266 : vector<8x512xf32>
    %268 = vector.extract_strided_slice %244 {offsets = [4, 0, 0], sizes = [1, 8, 256], strides = [1, 1, 1]} : vector<7x8x256xbf16> to vector<1x8x256xbf16>
    %269 = vector.shape_cast %268 : vector<1x8x256xbf16> to vector<8x256xbf16>
    %c4_270 = arith.constant 4 : index
    %c0_271 = arith.constant 0 : index
    %c0_272 = arith.constant 0 : index
    %270 = vector.load %arg6[%c4_270, %c0_271, %c0_272] : memref<7x256x512xbf16, #tpu.memory_space<vmem>>, vector<1x256x512xbf16>
    %271 = vector.shape_cast %270 : vector<1x256x512xbf16> to vector<256x512xbf16>
    %cst_273 = arith.constant dense<0.000000e+00> : vector<8x512xf32>
    %272 = tpu.matmul %269, %271, %cst_273 {dimension_numbers = #tpu.dot_dimension_numbers<[1], [0], [0], [1], [0, 0, 1, 1], [], []>} : vector<8x256xbf16>, vector<256x512xbf16>, vector<8x512xf32> -> vector<8x512xf32>
    %273 = arith.addf %267, %272 : vector<8x512xf32>
    %274 = vector.extract_strided_slice %244 {offsets = [5, 0, 0], sizes = [1, 8, 256], strides = [1, 1, 1]} : vector<7x8x256xbf16> to vector<1x8x256xbf16>
    %275 = vector.shape_cast %274 : vector<1x8x256xbf16> to vector<8x256xbf16>
    %c5 = arith.constant 5 : index
    %c0_274 = arith.constant 0 : index
    %c0_275 = arith.constant 0 : index
    %276 = vector.load %arg6[%c5, %c0_274, %c0_275] : memref<7x256x512xbf16, #tpu.memory_space<vmem>>, vector<1x256x512xbf16>
    %277 = vector.shape_cast %276 : vector<1x256x512xbf16> to vector<256x512xbf16>
    %cst_276 = arith.constant dense<0.000000e+00> : vector<8x512xf32>
    %278 = tpu.matmul %275, %277, %cst_276 {dimension_numbers = #tpu.dot_dimension_numbers<[1], [0], [0], [1], [0, 0, 1, 1], [], []>} : vector<8x256xbf16>, vector<256x512xbf16>, vector<8x512xf32> -> vector<8x512xf32>
    %279 = arith.addf %273, %278 : vector<8x512xf32>
    %280 = vector.extract_strided_slice %244 {offsets = [6, 0, 0], sizes = [1, 8, 256], strides = [1, 1, 1]} : vector<7x8x256xbf16> to vector<1x8x256xbf16>
    %281 = vector.shape_cast %280 : vector<1x8x256xbf16> to vector<8x256xbf16>
    %c6 = arith.constant 6 : index
    %c0_277 = arith.constant 0 : index
    %c0_278 = arith.constant 0 : index
    %282 = vector.load %arg6[%c6, %c0_277, %c0_278] : memref<7x256x512xbf16, #tpu.memory_space<vmem>>, vector<1x256x512xbf16>
    %283 = vector.shape_cast %282 : vector<1x256x512xbf16> to vector<256x512xbf16>
    %cst_279 = arith.constant dense<0.000000e+00> : vector<8x512xf32>
    %284 = tpu.matmul %281, %283, %cst_279 {dimension_numbers = #tpu.dot_dimension_numbers<[1], [0], [0], [1], [0, 0, 1, 1], [], []>} : vector<8x256xbf16>, vector<256x512xbf16>, vector<8x512xf32> -> vector<8x512xf32>
    %285 = arith.addf %279, %284 : vector<8x512xf32>
    %c0_280 = arith.constant 0 : index
    %c0_281 = arith.constant 0 : index
    %286 = vector.load %arg7[%c0_280, %c0_281] : memref<1x512xf32, #tpu.memory_space<vmem>>, vector<1x512xf32>
    %287 = vector.broadcast %286 : vector<1x512xf32> to vector<8x512xf32>
    %288 = arith.addf %285, %287 : vector<8x512xf32>
    %cst_282 = arith.constant 0.000000e+00 : f32
    %289 = vector.broadcast %cst_282 : f32 to vector<8x512xf32>
    %290 = arith.maximumf %288, %289 : vector<8x512xf32>
    %291 = arith.truncf %290 : vector<8x512xf32> to vector<8x512xbf16>
    %c0_283 = arith.constant 0 : index
    %c0_284 = arith.constant 0 : index
    %292 = vector.load %arg8[%c0_283, %c0_284] : memref<512x128xbf16, #tpu.memory_space<vmem>>, vector<512x128xbf16>
    %cst_285 = arith.constant dense<0.000000e+00> : vector<8x128xf32>
    %293 = tpu.matmul %291, %292, %cst_285 {dimension_numbers = #tpu.dot_dimension_numbers<[1], [0], [0], [1], [0, 0, 1, 1], [], []>} : vector<8x512xbf16>, vector<512x128xbf16>, vector<8x128xf32> -> vector<8x128xf32>
    %c0_286 = arith.constant 0 : index
    %c0_287 = arith.constant 0 : index
    %294 = vector.load %arg9[%c0_286, %c0_287] : memref<1x128xf32, #tpu.memory_space<vmem>>, vector<1x128xf32>
    %295 = vector.broadcast %294 : vector<1x128xf32> to vector<8x128xf32>
    %296 = arith.addf %293, %295 : vector<8x128xf32>
    %c0_288 = arith.constant 0 : index
    %c0_289 = arith.constant 0 : index
    %297 = vector.load %arg10[%c0_288, %c0_289] : memref<8x128xf32, #tpu.memory_space<vmem>>, vector<8x128xf32>
    tpu.vector_store %arg10[%c0_288, %c0_289], %296 {strides = array<i32>} : memref<8x128xf32, #tpu.memory_space<vmem>>, vector<8x128xf32>,
    return
  }
  func.func @transform_0(%arg0: i32) -> (i32, i32, i32, i32) {
    %c0_i32 = arith.constant 0 : i32
    %c0_i32_0 = arith.constant 0 : i32
    %c0_i32_1 = arith.constant 0 : i32
    %c0_i32_2 = arith.constant 0 : i32
    return %c0_i32, %c0_i32_0, %arg0, %c0_i32_1 : i32, i32, i32, i32
  }
  func.func @transform_1(%arg0: i32) -> (i32, i32, i32) {
    %c0_i32 = arith.constant 0 : i32
    %c0_i32_0 = arith.constant 0 : i32
    %c0_i32_1 = arith.constant 0 : i32
    %c0_i32_2 = arith.constant 0 : i32
    return %c0_i32, %c0_i32_0, %c0_i32_1 : i32, i32, i32
  }
  func.func @transform_2(%arg0: i32) -> (i32, i32) {
    %c0_i32 = arith.constant 0 : i32
    %c0_i32_0 = arith.constant 0 : i32
    %c0_i32_1 = arith.constant 0 : i32
    return %c0_i32, %c0_i32_0 : i32, i32
  }
  func.func @transform_3(%arg0: i32) -> (i32, i32, i32) {
    %c0_i32 = arith.constant 0 : i32
    %c0_i32_0 = arith.constant 0 : i32
    %c0_i32_1 = arith.constant 0 : i32
    %c0_i32_2 = arith.constant 0 : i32
    return %c0_i32, %c0_i32_0, %c0_i32_1 : i32, i32, i32
  }
  func.func @transform_4(%arg0: i32) -> (i32, i32) {
    %c0_i32 = arith.constant 0 : i32
    %c0_i32_0 = arith.constant 0 : i32
    %c0_i32_1 = arith.constant 0 : i32
    return %c0_i32, %c0_i32_0 : i32, i32
  }
  func.func @transform_5(%arg0: i32) -> (i32, i32, i32) {
    %c0_i32 = arith.constant 0 : i32
    %c0_i32_0 = arith.constant 0 : i32
    %c0_i32_1 = arith.constant 0 : i32
    %c0_i32_2 = arith.constant 0 : i32
    return %c0_i32, %c0_i32_0, %c0_i32_1 : i32, i32, i32
  }
  func.func @transform_6(%arg0: i32) -> (i32, i32) {
    %c0_i32 = arith.constant 0 : i32
    %c0_i32_0 = arith.constant 0 : i32
    %c0_i32_1 = arith.constant 0 : i32
    return %c0_i32, %c0_i32_0 : i32, i32
  }
  func.func @transform_7(%arg0: i32) -> (i32, i32) {
    %c0_i32 = arith.constant 0 : i32
    %c0_i32_0 = arith.constant 0 : i32
    %c0_i32_1 = arith.constant 0 : i32
    return %c0_i32, %c0_i32_0 : i32, i32
  }
  func.func @transform_8(%arg0: i32) -> (i32, i32) {
    %c0_i32 = arith.constant 0 : i32
    %c0_i32_0 = arith.constant 0 : i32
    %c0_i32_1 = arith.constant 0 : i32
    return %c0_i32, %c0_i32_0 : i32, i32
  }
  func.func @transform_9(%arg0: i32) -> (i32, i32) {
    %c0_i32 = arith.constant 0 : i32
    %c0_i32_0 = arith.constant 0 : i32
    return %arg0, %c0_i32 : i32, i32
  }
}

</mosaic_0001>

<bundles_post_ra>
// kernel: ptmnist_forward.1
= control target key start
LH: loop header
LB: loop body
LE: loop exit
PB: predicated region body
PF: predicated region fallthrough
CT: control target
= control target key end

     0   :  { %14 = vsyncpa [#allocation5], 0  ;;  %s17993_s0 = inlined_call_operand.vmem [shape: bf16[4,8,8,32], index: 0, kind: input, shape index: {}]   ;;  %s17994_s1 = inlined_call_operand.hbm [shape: bf16[5,32,512], index: 1, kind: input, shape index: {}]   ;;  %s17995_s2 = inlined_call_operand.hbm [shape: f32[1,256], index: 2, kind: input, shape index: {}]   ;;  %s17996_s3 = inlined_call_operand.hbm [shape: bf16[5,256,512], index: 3, kind: input, shape index: {}]   ;;  %s17997_s4 = inlined_call_operand.hbm [shape: f32[1,256], index: 4, kind: input, shape index: {}]   ;;  %s17998_s5 = inlined_call_operand.hbm [shape: bf16[7,256,512], index: 5, kind: input, shape index: {}]   ;;  %s17999_s6 = inlined_call_operand.hbm [shape: f32[1,512], index: 6, kind: input, shape index: {}]   ;;  %s18000_s7 = inlined_call_operand.hbm [shape: bf16[512,128], index: 7, kind: input, shape index: {}]   ;;  %s18001_s8 = inlined_call_operand.hbm [shape: f32[1,128], index: 8, kind: input, shape index: {}]   ;;  %s18002_s9 = inlined_call_operand.vmem [shape: f32[8,128], index: 9, kind: output, shape index: {}]  }
   0x1   :  { %15 = vsyncpa [#allocation7], 0 }
   0x2   :  { %16 = vsyncpa [#allocation10], 0 }
   0x3   :  { %17 = vsyncpa [#allocation13], 0 }
   0x4   :  { %18 = vsyncpa [#allocation16], 0  ;;  %s16048_s30 = smov [#allocation6]   ;;  %s16049_s11 = smov [#allocation9]  }
   0x5   :  { %s39_s10 = sshll.u32 %s16048_s30, 4  ;;  %s61_s12 = sshll.u32 %s16049_s11, 4  ;;  %s40_s10 = int_to_ptr.vmem [resolvable:$true] %s39_s10  ;;  %s62_s12 = int_to_ptr.vmem [resolvable:$true] %s61_s12 }
   0x6   :  { %s15862_s15 = scalar_lea.hbm %s17995_s2, 32 }
   0x7   :  { %p15863_p0 = scmp.ne.s32.totalorder %s17995_s2, %s15862_s15  ;;  %p15866_p1 = scmp.lt.u32.totalorder %s15862_s15, %s17995_s2 }
   0x9   :  { %p15868_p2 = pnand %p15866_p1, %p15863_p0 }
   0xb   :  { %15871 = shalt.err (!%p15868_p2)
}
   0xc   :  { %s15872_s20 = scalar_lea.vmem %s40_s10, 32  ;;  %p15877_p4 = scmp.lt.s32.totalorder %s40_s10, %s40_s10 }
   0xd   :  { %p15873_p3 = scmp.ne.s32.totalorder %s40_s10, %s15872_s20  ;;  %p15878_p5 = scmp.lt.s32.totalorder %s15872_s20, %s15872_s20 }
   0xf   :  { %p15879_p6 = por %p15878_p5, %p15877_p4 }
  0x11   :  { %p15880_p7 = pnand %p15879_p6, %p15873_p3 }
  0x13   :  { %15883 = shalt.err (!%p15880_p7)
}
  0x14   :  { %42 = dma.hbm_to_vmem [thread:$0]  %s17995_s2, 32, %s40_s10, [#allocation7]  }
  0x15   :  { %s15884_s25 = scalar_lea.hbm %s17997_s4, 32 }
  0x16   :  { %p15885_p8 = scmp.ne.s32.totalorder %s17997_s4, %s15884_s25  ;;  %p15888_p9 = scmp.lt.u32.totalorder %s15884_s25, %s17997_s4 }
  0x18   :  { %p15890_p10 = pnand %p15888_p9, %p15885_p8 }
  0x1a   :  { %15893 = shalt.err (!%p15890_p10)
}
  0x1b   :  { %s15894_s30 = scalar_lea.vmem %s62_s12, 32  ;;  %p15899_p12 = scmp.lt.s32.totalorder %s62_s12, %s62_s12 }
  0x1c   :  { %p15895_p11 = scmp.ne.s32.totalorder %s62_s12, %s15894_s30  ;;  %p15900_p13 = scmp.lt.s32.totalorder %s15894_s30, %s15894_s30 }
  0x1e   :  { %p15901_p0 = por %p15900_p13, %p15899_p12 }
  0x20   :  { %p15902_p1 = pnand %p15901_p0, %p15895_p11 }
  0x22   :  { %15905 = shalt.err (!%p15902_p1)
}
  0x23   :  { %64 = dma.hbm_to_vmem [thread:$0]  %s17997_s4, 32, %s62_s12, [#allocation10]  }
  0x24   :  { %s16050_s11 = smov [#allocation12]   ;;  %s16051_s14 = smov [#allocation4]  }
  0x25   :  { %s83_s13 = sshll.u32 %s16050_s11, 4  ;;  %s26_s15 = sshll.u32 %s16051_s14, 4  ;;  %s84_s13 = int_to_ptr.vmem [resolvable:$true] %s83_s13  ;;  %s16135_s15 = int_to_ptr.vmem [resolvable:$true] %s26_s15 }
  0x26   :  { %s15906_s18 = scalar_lea.hbm %s17999_s6, 64 }
  0x27   :  { %p15907_p2 = scmp.ne.s32.totalorder %s17999_s6, %s15906_s18  ;;  %p15910_p3 = scmp.lt.u32.totalorder %s15906_s18, %s17999_s6 }
  0x29   :  { %p15912_p4 = pnand %p15910_p3, %p15907_p2 }
  0x2b   :  { %15915 = shalt.err (!%p15912_p4)
}
  0x2c   :  { %s15916_s4 = scalar_lea.vmem %s84_s13, 64  ;;  %p15921_p6 = scmp.lt.s32.totalorder %s84_s13, %s84_s13 }
  0x2d   :  { %p15917_p5 = scmp.ne.s32.totalorder %s84_s13, %s15916_s4  ;;  %p15922_p7 = scmp.lt.s32.totalorder %s15916_s4, %s15916_s4 }
  0x2f   :  { %p15923_p8 = por %p15922_p7, %p15921_p6 }
  0x31   :  { %p15924_p9 = pnand %p15923_p8, %p15917_p5 }
  0x33   :  { %15927 = shalt.err (!%p15924_p9)
}
  0x34   :  { %86 = dma.hbm_to_vmem [thread:$0]  %s17999_s6, 64, %s84_s13, [#allocation13]  }
  0x35   :  { %s15928_s26 = scalar_lea.hbm %s17994_s1, 5120 }
  0x36   :  { %p15929_p10 = scmp.ne.s32.totalorder %s17994_s1, %s15928_s26  ;;  %p15932_p11 = scmp.lt.u32.totalorder %s15928_s26, %s17994_s1 }
  0x38   :  { %p15934_p12 = pnand %p15932_p11, %p15929_p10 }
  0x3a   :  { %15937 = shalt.err (!%p15934_p12)
}
  0x3b   :  { %s15938_s2 = scalar_lea.vmem %s16135_s15, 5120  ;;  %p15943_p0 = scmp.lt.s32.totalorder %s16135_s15, %s16135_s15 }
  0x3c   :  { %p15939_p13 = scmp.ne.s32.totalorder %s16135_s15, %s15938_s2  ;;  %p15944_p1 = scmp.lt.s32.totalorder %s15938_s2, %s15938_s2 }
  0x3e   :  { %p15945_p2 = por %p15944_p1, %p15943_p0 }
  0x40   :  { %p15946_p3 = pnand %p15945_p2, %p15939_p13 }
  0x42   :  { %15949 = shalt.err (!%p15946_p3)
}
  0x43   :  { %s16052_s6 = smov 256   ;;  %s16053_s10 = smov 16  }
  0x44   :  { %32 = dma.hbm_to_vmem [thread:$0]  %s17994_s1, 5120, %s16135_s15, [#allocation5], %s16052_s6, %s16052_s6, %s16053_s10  }
  0x45   :  { %s16054_s14 = smov [#allocation8]   ;;  %s16055_s17 = smov [#allocation11]  }
  0x46   :  { %s48_s16 = sshll.u32 %s16054_s14, 4  ;;  %s70_s18 = sshll.u32 %s16055_s17, 4  ;;  %s49_s16 = int_to_ptr.vmem [resolvable:$true] %s48_s16  ;;  %s16169_s18 = int_to_ptr.vmem [resolvable:$true] %s70_s18 }
  0x47   :  { %s15950_s21 = scalar_lea.hbm %s17996_s3, 40960 }
  0x48   :  { %p15951_p4 = scmp.ne.s32.totalorder %s17996_s3, %s15950_s21  ;;  %p15954_p5 = scmp.lt.u32.totalorder %s15950_s21, %s17996_s3 }
  0x4a   :  { %p15956_p6 = pnand %p15954_p5, %p15951_p4 }
  0x4c   :  { %15959 = shalt.err (!%p15956_p6)
}
  0x4d   :  { %s15960_s1 = scalar_lea.vmem %s49_s16, 40960  ;;  %p15965_p8 = scmp.lt.s32.totalorder %s49_s16, %s49_s16 }
  0x4e   :  { %p15961_p7 = scmp.ne.s32.totalorder %s49_s16, %s15960_s1  ;;  %p15966_p9 = scmp.lt.s32.totalorder %s15960_s1, %s15960_s1 }
  0x50   :  { %p15967_p10 = por %p15966_p9, %p15965_p8 }
  0x52   :  { %p15968_p11 = pnand %p15967_p10, %p15961_p7 }
  0x54   :  { %15971 = shalt.err (!%p15968_p11)
}
  0x55   :  { %54 = dma.hbm_to_vmem [thread:$0]  %s17996_s3, 40960, %s49_s16, [#allocation7], %s16052_s6, %s16052_s6, %s16053_s10  }
  0x56   :  { %s15972_s27 = scalar_lea.hbm %s17998_s5, 57344 }
  0x57   :  { %p15973_p12 = scmp.ne.s32.totalorder %s17998_s5, %s15972_s27  ;;  %p15976_p13 = scmp.lt.u32.totalorder %s15972_s27, %s17998_s5 }
  0x59   :  { %p15978_p0 = pnand %p15976_p13, %p15973_p12 }
  0x5b   :  { %15981 = shalt.err (!%p15978_p0)
}
  0x5c   :  { %s15982_s11 = scalar_lea.vmem %s16169_s18, 57344  ;;  %p15987_p2 = scmp.lt.s32.totalorder %s16169_s18, %s16169_s18 }
  0x5d   :  { %p15983_p1 = scmp.ne.s32.totalorder %s16169_s18, %s15982_s11  ;;  %p15988_p3 = scmp.lt.s32.totalorder %s15982_s11, %s15982_s11 }
  0x5f   :  { %p15989_p4 = por %p15988_p3, %p15987_p2 }
  0x61   :  { %p15990_p5 = pnand %p15989_p4, %p15983_p1 }
  0x63   :  { %15993 = shalt.err (!%p15990_p5)
}
  0x64   :  { %76 = dma.hbm_to_vmem [thread:$0]  %s17998_s5, 57344, %s16169_s18, [#allocation10], %s16052_s6, %s16052_s6, %s16053_s10  }
  0x65   :  { %s16056_s14 = smov [#allocation14]   ;;  %s15994_s20 = scalar_lea.hbm %s18000_s7, 4096 }
  0x66   :  { %s92_s16 = sshll.u32 %s16056_s14, 4  ;;  %p15995_p6 = scmp.ne.s32.totalorder %s18000_s7, %s15994_s20  ;;  %s93_s16 = int_to_ptr.vmem [resolvable:$true] %s92_s16 }
  0x67   :  { %p15998_p7 = scmp.lt.u32.totalorder %s15994_s20, %s18000_s7 }
  0x69   :  { %p16000_p8 = pnand %p15998_p7, %p15995_p6 }
  0x6b   :  { %16003 = shalt.err (!%p16000_p8)
}
  0x6c   :  { %s16004_s23 = scalar_lea.vmem %s93_s16, 4096  ;;  %p16009_p10 = scmp.lt.s32.totalorder %s93_s16, %s93_s16 }
  0x6d   :  { %p16005_p9 = scmp.ne.s32.totalorder %s93_s16, %s16004_s23  ;;  %p16010_p11 = scmp.lt.s32.totalorder %s16004_s23, %s16004_s23 }
  0x6f   :  { %p16011_p12 = por %p16010_p11, %p16009_p10 }
  0x71   :  { %p16012_p13 = pnand %p16011_p12, %p16005_p9 }
  0x73   :  { %16015 = shalt.err (!%p16012_p13)
}
  0x74   :  { %s16057_s5 = smov 64   ;;  %s16058_s6 = smov 4  }
  0x75   :  { %98 = dma.hbm_to_vmem [thread:$0]  %s18000_s7, 4096, %s93_s16, [#allocation13], %s16057_s5, %s16057_s5, %s16058_s6  }
  0x76   :  { %s16059_s1 = smov [#allocation15]   ;;  %s16016_s26 = scalar_lea.hbm %s18001_s8, 16 }
  0x77   :  { %s105_s15 = sshll.u32 %s16059_s1, 4  ;;  %p16017_p0 = scmp.ne.s32.totalorder %s18001_s8, %s16016_s26  ;;  %s106_s15 = int_to_ptr.vmem [resolvable:$true] %s105_s15 }
  0x78   :  { %p16020_p1 = scmp.lt.u32.totalorder %s16016_s26, %s18001_s8 }
  0x7a   :  { %p16022_p2 = pnand %p16020_p1, %p16017_p0 }
  0x7c   :  { %16025 = shalt.err (!%p16022_p2)
}
  0x7d   :  { %s16026_s2 = scalar_lea.vmem %s106_s15, 16  ;;  %s16030_s7 = scalar_lea.vmem %s106_s15, 32 }
  0x7e   :  { %p16027_p3 = scmp.ne.s32.totalorder %s106_s15, %s16026_s2  ;;  %p16031_p4 = scmp.lt.s32.totalorder %s106_s15, %s106_s15 }
  0x7f   :  { %p16032_p5 = scmp.lt.s32.totalorder %s16030_s7, %s16026_s2 }
  0x81   :  { %p16033_p6 = por %p16032_p5, %p16031_p4 }
  0x83   :  { %p16034_p7 = pnand %p16033_p6, %p16027_p3 }
  0x85   :  { %16037 = shalt.err (!%p16034_p7)
}
  0x86   :  { %108 = dma.hbm_to_vmem [thread:$0]  %s18001_s8, 16, %s106_s15, [#allocation16]  }
  0x87   :  { %16038 = dma.done.wait [#allocation5], 5120  }
  0x88   :  { %16039 = vsyncadd [#allocation5], 4294962176 }
  0x89   :  { %16040 = dma.done.wait [#allocation7], 40992  }
  0x8a   :  { %16041 = vsyncadd [#allocation7], 4294926304 }
  0x8b   :  { %16042 = dma.done.wait [#allocation10], 57376  }
  0x8c   :  { %16043 = vsyncadd [#allocation10], 4294909920 }
  0x8d   :  { %16044 = dma.done.wait [#allocation13], 4160  }
  0x8e   :  { %16045 = vsyncadd [#allocation13], 4294963136 }
  0x8f   :  { %16046 = dma.done.wait [#allocation16], 16  }
  0x90   :  { %16047 = vsyncadd [#allocation16], 4294967280  ;;  %v18003_v0 = vmov 0   ;;  %v16232_v1 = vld [vmem:[#allocation4 + $0x44] ss:$16 sps:$4 sm:$0xff]   ;;  %vm224_vm0 = vcmask 261120  }
  0x91   :  { %269 = vmatprep.mubr.bf16.mxu0 %v18003_v0  ;;  %340 = vmatprep.mubr.bf16.mxu1 %v18003_v0  ;;  %v16234_v2 = vld [vmem:[#allocation4 + $0x4c] ss:$16 sps:$4 sm:$0xff]   ;;  %v14244_v3 = vld [vmem:[#allocation4 + $0x40] ss:$16 sps:$4 sm:$0xff]   ;;  %v14245_v4 = vld [vmem:[#allocation4 + $0x48] ss:$16 sps:$4 sm:$0xff]  }
  0x92   :  { %237 = vmatprep.subr.bf16.mxu0 %v16232_v1  ;;  %308 = vmatprep.subr.bf16.mxu1 %v16234_v2  ;;  %v14246_v5 = vld [vmem:[#allocation4 + $0x64] ss:$16 sps:$4 sm:$0xff]   ;;  %v14248_v6 = vld [vmem:[#allocation4 + $0x6c] ss:$16 sps:$4 sm:$0xff]   ;;  %v14250_v7 = vld [vmem:[#allocation4 + $0x60] ss:$16 sps:$4 sm:$0xff]  }
  0x93   :  { %238 = vmatpush1.bf16.msra.mxu0 %v14244_v3  ;;  %309 = vmatpush1.bf16.msra.mxu1 %v14245_v4  ;;  %v14251_v8 = vld [vmem:[#allocation4 + $0x68] ss:$16 sps:$4 sm:$0xff]   ;;  %v14252_v9 = vld [vmem:[%s17993_s0 + $0x20] sm:$0xff]   ;;  %v14258_v13 = vld [vmem:[#allocation4 + $0xc] ss:$16 sps:$4 sm:$0xff]  }
  0x94   :  { %239 = vmatprep.subr.bf16.mxu0 %v14246_v5  ;;  %310 = vmatprep.subr.bf16.mxu1 %v14248_v6  ;;  %v14253_v10 = vld [vmem:[#allocation4] ss:$16 sps:$4 sm:$0xff]   ;;  %v14255_v11 = vld [vmem:[#allocation4 + $0x4] ss:$16 sps:$4 sm:$0xff]   ;;  %v14256_v12 = vld [vmem:[#allocation4 + $0x8] ss:$16 sps:$4 sm:$0xff]  }
  0x95   :  { %v14261_v14 = vld [vmem:[#allocation4 + $0x20] ss:$16 sps:$4 sm:$0xff]   ;;  %v14263_v15 = vld [vmem:[#allocation4 + $0x24] ss:$16 sps:$4 sm:$0xff]   ;;  %v14264_v16 = vld [vmem:[#allocation4 + $0x28] ss:$16 sps:$4 sm:$0xff]  }
  0x96   :  { %v14266_v17 = vld [vmem:[#allocation4 + $0x2c] ss:$16 sps:$4 sm:$0xff]   ;;  %v14271_v19 = vld [vmem:[#allocation4 + $0x84] ss:$16 sps:$4 sm:$0xff]   ;;  %v14267_v22 = vld [vmem:[%s17993_s0 + $0x38] ss:$0 sps:$4 sm:$0xff]  }
  0x97   :  { %240 = vmatpush1.bf16.msra.mxu0 %v14250_v7  ;;  %311 = vmatpush1.bf16.msra.mxu1 %v14251_v8  ;;  %v14259_v18 = vld [vmem:[%s17993_s0 + $0x28] sm:$0xff]   ;;  %v14260_v21 = vld [vmem:[%s17993_s0 + $0x30] sm:$0xff]   ;;  %v14268_v23 = vld [vmem:[%s17993_s0] sm:$0xff]  }
  0x98   :  { %449 = vmatprep.subr.bf16.mxu0 %v14255_v11  ;;  %520 = vmatprep.subr.bf16.mxu1 %v14258_v13  ;;  %v14274_v20 = vld [vmem:[#allocation4 + $0x8c] ss:$16 sps:$4 sm:$0xff]   ;;  %v14269_v24 = vld [vmem:[#allocation4 + $0x80] ss:$16 sps:$4 sm:$0xff]   ;;  %v14272_v25 = vld [vmem:[#allocation4 + $0x88] ss:$16 sps:$4 sm:$0xff]  }
  0x99   :  { %v14279_v26 = vld [vmem:[#allocation4 + $0xa4] ss:$16 sps:$4 sm:$0xff]   ;;  %v14277_v27 = vld [vmem:[#allocation4 + $0xa0] ss:$16 sps:$4 sm:$0xff]   ;;  %v14282_v28 = vld [vmem:[#allocation4 + $0xac] ss:$16 sps:$4 sm:$0xff]  }
  0x9a   :  { %12132 = vmatmul.mubr.msk.bf16.vlgmr.msra.gmra.mrb[0].mxu0 %vm224_vm0, %v14252_v9  ;;  %12136 = vmatmul.mubr.msk.bf16.vlgmr.msra.gmra.mrb[0].mxu1 %vm224_vm0, %v14252_v9  ;;  %v14280_v29 = vld [vmem:[#allocation4 + $0xa8] ss:$16 sps:$4 sm:$0xff]   ;;  %v14287_v30 = vld [vmem:[#allocation4 + $0xc4] ss:$16 sps:$4 sm:$0xff]   ;;  %v14290_v31 = vld [vmem:[#allocation4 + $0xcc] ss:$16 sps:$4 sm:$0xff]  }
  0x9b   :  { %450 = vmatpush1.bf16.msra.mxu0 %v14253_v10  ;;  %521 = vmatpush1.bf16.msra.mxu1 %v14256_v12  ;;  %v14275_v32 = vld [vmem:[%s17993_s0 + $0x8] sm:$0xff]   ;;  %v14276_v33 = vld [vmem:[%s17993_s0 + $0x10] sm:$0xff]   ;;  %v14283_v34 = vld [vmem:[%s17993_s0 + $0x18] ss:$0 sps:$4 sm:$0xff]  }
  0x9c   :  { %279 = vmatprep.mubr.bf16.mxu0 %v18003_v0  ;;  %350 = vmatprep.mubr.bf16.mxu1 %v18003_v0  ;;  %v16297_v35 = vld [vmem:[%s17993_s0 + $0x40] sm:$0xff]   ;;  %v14288_v37 = vld [vmem:[#allocation4 + $0xc8] ss:$16 sps:$4 sm:$0xff]   ;;  %v14298_v39 = vld [vmem:[#allocation4 + $0xec] ss:$16 sps:$4 sm:$0xff]  }
  0x9d   :  { %451 = vmatprep.subr.bf16.mxu0 %v14263_v15  ;;  %522 = vmatprep.subr.bf16.mxu1 %v14266_v17  ;;  %v14285_v36 = vld [vmem:[#allocation4 + $0xc0] ss:$16 sps:$4 sm:$0xff]   ;;  %v14295_v38 = vld [vmem:[#allocation4 + $0xe4] ss:$16 sps:$4 sm:$0xff]   ;;  %v14296_v41 = vld [vmem:[#allocation4 + $0xe8] ss:$16 sps:$4 sm:$0xff]  }
  0x9e   :  { %v14293_v40 = vld [vmem:[#allocation4 + $0xe0] ss:$16 sps:$4 sm:$0xff]   ;;  %v14303_v42 = vld [vmem:[#allocation4 + $0x104] ss:$16 sps:$4 sm:$0xff]   ;;  %v14306_v43 = vld [vmem:[#allocation4 + $0x10c] ss:$16 sps:$4 sm:$0xff]  }
  0x9f   :  { %452 = vmatpush1.bf16.msra.mxu0 %v14261_v14  ;;  %523 = vmatpush1.bf16.msra.mxu1 %v14264_v16  ;;  %v16308_v44 = vld [vmem:[%s17993_s0 + $0x48] sm:$0xff]   ;;  %v16319_v45 = vld [vmem:[%s17993_s0 + $0x50] sm:$0xff]   ;;  %v16330_v46 = vld [vmem:[%s17993_s0 + $0x58] ss:$0 sps:$4 sm:$0xff]  }
  0xa0   :  { %678 = vmatprep.subr.bf16.mxu0 %v14271_v19  ;;  %749 = vmatprep.subr.bf16.mxu1 %v14274_v20  ;;  %v16341_v47 = vld [vmem:[%s17993_s0 + $0x60] sm:$0xff]   ;;  %v14304_v49 = vld [vmem:[#allocation4 + $0x108] ss:$16 sps:$4 sm:$0xff]   ;;  %v14314_v51 = vld [vmem:[#allocation4 + $0x12c] ss:$16 sps:$4 sm:$0xff]  }
  0xa1   :  { %v14301_v48 = vld [vmem:[#allocation4 + $0x100] ss:$16 sps:$4 sm:$0xff]   ;;  %v14311_v50 = vld [vmem:[#allocation4 + $0x124] ss:$16 sps:$4 sm:$0xff]   ;;  %v14312_v53 = vld [vmem:[#allocation4 + $0x128] ss:$16 sps:$4 sm:$0xff]  }
  0xa2   :  { %12133 = vmatmul.mubr.msk.bf16.gmra.mrb[4].mxu0 %vm224_vm0, %v14259_v18  ;;  %12137 = vmatmul.mubr.msk.bf16.gmra.mrb[4].mxu1 %vm224_vm0, %v14259_v18  ;;  %v14309_v52 = vld [vmem:[#allocation4 + $0x120] ss:$16 sps:$4 sm:$0xff]   ;;  %v16352_v54 = vld [vmem:[%s17993_s0 + $0x68] sm:$0xff]   ;;  %v16376_v56 = vld [vmem:[%s17993_s0 + $0x78] ss:$0 sps:$4 sm:$0xff]  }
  0xa3   :  { %289 = vmatprep.mubr.bf16.mxu0 %v18003_v0  ;;  %360 = vmatprep.mubr.bf16.mxu1 %v18003_v0  ;;  %v16365_v55 = vld [vmem:[%s17993_s0 + $0x70] sm:$0xff]   ;;  %v16387_v57 = vld [vmem:[%s17993_s0 + $0x4] sm:$0xff]   ;;  %v15535_v62 = vld [vmem:[#allocation4 + $0x6c] ss:$16 sps:$4 sm:$0xff]  }
  0xa4   :  { %v15532_v58 = vld [vmem:[#allocation4 + $0x40] ss:$16 sps:$4 sm:$0xff]   ;;  %v15533_v59 = vld [vmem:[#allocation4 + $0x48] ss:$16 sps:$4 sm:$0xff]   ;;  %v15534_v61 = vld [vmem:[#allocation4 + $0x64] ss:$16 sps:$4 sm:$0xff]  }
  0xa5   :  { %v16398_v60 = vld [vmem:[%s17993_s0 + $0xc] sm:$0xff]   ;;  %v16409_v4 = vld [vmem:[%s17993_s0 + $0x14] sm:$0xff]   ;;  %v16420_v5 = vld [vmem:[%s17993_s0 + $0x1c] ss:$0 sps:$4 sm:$0xff]  }
  0xa6   :  { %v15536_v63 = vld [vmem:[#allocation4 + $0x60] ss:$16 sps:$4 sm:$0xff]   ;;  %v15539_v3 = vld [vmem:[#allocation4 + $0xc] ss:$16 sps:$4 sm:$0xff]   ;;  %v15541_v7 = vld [vmem:[#allocation4 + $0x8] ss:$16 sps:$4 sm:$0xff]  }
  0xa7   :  { %v15540_v6 = vld [vmem:[#allocation4] ss:$16 sps:$4 sm:$0xff]   ;;  %v15542_v8 = vld [vmem:[#allocation4 + $0x24] ss:$16 sps:$4 sm:$0xff]   ;;  %v15543_v9 = vld [vmem:[#allocation4 + $0x2c] ss:$16 sps:$4 sm:$0xff]  }
  0xa8   :  { %v15544_v10 = vld [vmem:[#allocation4 + $0x20] ss:$16 sps:$4 sm:$0xff]   ;;  %v15545_v11 = vld [vmem:[#allocation4 + $0x28] ss:$16 sps:$4 sm:$0xff]   ;;  %v15546_v12 = vld [vmem:[#allocation4 + $0x84] ss:$16 sps:$4 sm:$0xff]  }
  0xa9   :  { %v15547_v13 = vld [vmem:[#allocation4 + $0x8c] ss:$16 sps:$4 sm:$0xff]   ;;  %v15548_v14 = vld [vmem:[%s17993_s0 + $0x20] sm:$0xff]   ;;  %v15550_v16 = vld [vmem:[#allocation4 + $0x88] ss:$16 sps:$4 sm:$0xff]  }
  0xaa   :  { %12134 = vmatmul.mubr.msk.bf16.gmra.mrb[8].mxu0 %vm224_vm0, %v14260_v21  ;;  %12138 = vmatmul.mubr.msk.bf16.gmra.mrb[8].mxu1 %vm224_vm0, %v14260_v21  ;;  %v15549_v15 = vld [vmem:[#allocation4 + $0x80] ss:$16 sps:$4 sm:$0xff]   ;;  %v15551_v17 = vld [vmem:[#allocation4 + $0xa4] ss:$16 sps:$4 sm:$0xff]   ;;  %v15552_v18 = vld [vmem:[#allocation4 + $0xac] ss:$16 sps:$4 sm:$0xff]  }
  0xab   :  { %299 = vmatprep.mubr.bf16.mxu0 %v18003_v0  ;;  %370 = vmatprep.mubr.bf16.mxu1 %v18003_v0  ;;  %v15553_v19 = vld [vmem:[#allocation4 + $0xa0] ss:$16 sps:$4 sm:$0xff]   ;;  %v15554_v20 = vld [vmem:[#allocation4 + $0xa8] ss:$16 sps:$4 sm:$0xff]   ;;  %v15555_v21 = vld [vmem:[#allocation4 + $0xc4] ss:$16 sps:$4 sm:$0xff]  }
  0xb2   :  { %12135 = vmatmul.mubr.msk.bf16.gmra.mrb[12].mxu0 %vm224_vm0, %v14267_v22  ;;  %12139 = vmatmul.mubr.msk.bf16.gmra.mrb[12].mxu1 %vm224_vm0, %v14267_v22  ;;  %v15556_v22 = vld [vmem:[#allocation4 + $0xcc] ss:$16 sps:$4 sm:$0xff]  }
  0xb3   :  { %481 = vmatprep.mubr.bf16.mxu0 %v18003_v0  ;;  %552 = vmatprep.mubr.bf16.mxu1 %v18003_v0 }
  0xba   :  { %12152 = vmatmul.mubr.msk.bf16.vlgmr.msra.gmra.mrb[0].mxu0 %vm224_vm0, %v14268_v23  ;;  %12156 = vmatmul.mubr.msk.bf16.vlgmr.msra.gmra.mrb[0].mxu1 %vm224_vm0, %v14268_v23  ;;  %v15557_v23 = vld [vmem:[%s17993_s0 + $0x28] sm:$0xff]  }
  0xbb   :  { %679 = vmatpush1.bf16.msra.mxu0 %v14269_v24  ;;  %750 = vmatpush1.bf16.msra.mxu1 %v14272_v25  ;;  %v15558_v24 = vld [vmem:[%s17993_s0 + $0x30] sm:$0xff]   ;;  %v15559_v25 = vld [vmem:[%s17993_s0 + $0x38] ss:$0 sps:$4 sm:$0xff]  }
  0xbc   :  { %491 = vmatprep.mubr.bf16.mxu0 %v18003_v0  ;;  %562 = vmatprep.mubr.bf16.mxu1 %v18003_v0 }
  0xbd   :  { %680 = vmatprep.subr.bf16.mxu0 %v14279_v26  ;;  %751 = vmatprep.subr.bf16.mxu1 %v14282_v28  ;;  %v16484_v26 = vld [vmem:[#allocation4 + $0xc0] ss:$16 sps:$4 sm:$0xff]   ;;  %v16492_v28 = vld [vmem:[#allocation4 + $0xe4] ss:$16 sps:$4 sm:$0xff]  }
  0xbf   :  { %681 = vmatpush1.bf16.msra.mxu0 %v14277_v27  ;;  %752 = vmatpush1.bf16.msra.mxu1 %v14280_v29  ;;  %v16487_v27 = vld [vmem:[#allocation4 + $0xc8] ss:$16 sps:$4 sm:$0xff]   ;;  %v16495_v29 = vld [vmem:[#allocation4 + $0xec] ss:$16 sps:$4 sm:$0xff]  }
  0xc0   :  { %935 = vmatprep.subr.bf16.mxu0 %v14287_v30  ;;  %1006 = vmatprep.subr.bf16.mxu1 %v14290_v31  ;;  %v16498_v30 = vld [vmem:[#allocation4 + $0xe0] ss:$16 sps:$4 sm:$0xff]   ;;  %v16501_v31 = vld [vmem:[#allocation4 + $0xe8] ss:$16 sps:$4 sm:$0xff]  }
  0xc2   :  { %12153 = vmatmul.mubr.msk.bf16.gmra.mrb[4].mxu0 %vm224_vm0, %v14275_v32  ;;  %12157 = vmatmul.mubr.msk.bf16.gmra.mrb[4].mxu1 %vm224_vm0, %v14275_v32  ;;  %v16504_v32 = vld [vmem:[#allocation4 + $0x104] ss:$16 sps:$4 sm:$0xff]  }
  0xc3   :  { %501 = vmatprep.mubr.bf16.mxu0 %v18003_v0  ;;  %572 = vmatprep.mubr.bf16.mxu1 %v18003_v0 }
  0xca   :  { %12154 = vmatmul.mubr.msk.bf16.gmra.mrb[8].mxu0 %vm224_vm0, %v14276_v33  ;;  %12158 = vmatmul.mubr.msk.bf16.gmra.mrb[8].mxu1 %vm224_vm0, %v14276_v33  ;;  %v16507_v33 = vld [vmem:[#allocation4 + $0x10c] ss:$16 sps:$4 sm:$0xff]  }
  0xcb   :  { %511 = vmatprep.mubr.bf16.mxu0 %v18003_v0  ;;  %582 = vmatprep.mubr.bf16.mxu1 %v18003_v0 }
  0xd2   :  { %12155 = vmatmul.mubr.msk.bf16.gmra.mrb[12].mxu0 %vm224_vm0, %v14283_v34  ;;  %12159 = vmatmul.mubr.msk.bf16.gmra.mrb[12].mxu1 %vm224_vm0, %v14283_v34  ;;  %v16532_v34 = vld [vmem:[#allocation4 + $0x100] ss:$16 sps:$4 sm:$0xff]  }
  0xd3   :  { %710 = vmatprep.mubr.bf16.mxu0 %v18003_v0  ;;  %781 = vmatprep.mubr.bf16.mxu1 %v18003_v0 }
  0xda   :  { %12179 = vmatmul.mubr.msk.bf16.vlgmr.msra.gmra.mrb[0].mxu0 %vm224_vm0, %v16297_v35  ;;  %12183 = vmatmul.mubr.msk.bf16.vlgmr.msra.gmra.mrb[0].mxu1 %vm224_vm0, %v16297_v35 }
  0xdb   :  { %936 = vmatpush1.bf16.msra.mxu0 %v14285_v36  ;;  %1007 = vmatpush1.bf16.msra.mxu1 %v14288_v37  ;;  %v16540_v36 = vld [vmem:[#allocation4 + $0x124] ss:$16 sps:$4 sm:$0xff]   ;;  %v16543_v37 = vld [vmem:[#allocation4 + $0x12c] ss:$16 sps:$4 sm:$0xff]  }
  0xdc   :  { %720 = vmatprep.mubr.bf16.mxu0 %v18003_v0  ;;  %791 = vmatprep.mubr.bf16.mxu1 %v18003_v0 }
  0xdd   :  { %937 = vmatprep.subr.bf16.mxu0 %v14295_v38  ;;  %1008 = vmatprep.subr.bf16.mxu1 %v14298_v39  ;;  %v16546_v38 = vld [vmem:[#allocation4 + $0x120] ss:$16 sps:$4 sm:$0xff]   ;;  %v16549_v39 = vld [vmem:[#allocation4 + $0x128] ss:$16 sps:$4 sm:$0xff]  }
  0xdf   :  { %938 = vmatpush1.bf16.msra.mxu0 %v14293_v40  ;;  %1009 = vmatpush1.bf16.msra.mxu1 %v14296_v41  ;;  %v16552_v40 = vld [vmem:[#allocation4 + $0x44] ss:$16 sps:$4 sm:$0xff]   ;;  %v16555_v41 = vld [vmem:[#allocation4 + $0x4c] ss:$16 sps:$4 sm:$0xff]  }
  0xe0   :  { %1192 = vmatprep.subr.bf16.mxu0 %v14303_v42  ;;  %1263 = vmatprep.subr.bf16.mxu1 %v14306_v43  ;;  %v14320_v42 = vld [vmem:[%s17993_s0 + $0x24] sm:$0xff]   ;;  %v16581_v43 = vld [vmem:[#allocation4 + $0x40] ss:$16 sps:$4 sm:$0xff]  }
  0xe2   :  { %12180 = vmatmul.mubr.msk.bf16.gmra.mrb[4].mxu0 %vm224_vm0, %v16308_v44  ;;  %12184 = vmatmul.mubr.msk.bf16.gmra.mrb[4].mxu1 %vm224_vm0, %v16308_v44 }
  0xe3   :  { %730 = vmatprep.mubr.bf16.mxu0 %v18003_v0  ;;  %801 = vmatprep.mubr.bf16.mxu1 %v18003_v0 }
  0xea   :  { %12181 = vmatmul.mubr.msk.bf16.gmra.mrb[8].mxu0 %vm224_vm0, %v16319_v45  ;;  %12185 = vmatmul.mubr.msk.bf16.gmra.mrb[8].mxu1 %vm224_vm0, %v16319_v45 }
  0xeb   :  { %740 = vmatprep.mubr.bf16.mxu0 %v18003_v0  ;;  %811 = vmatprep.mubr.bf16.mxu1 %v18003_v0 }
  0xf2   :  { %12182 = vmatmul.mubr.msk.bf16.gmra.mrb[12].mxu0 %vm224_vm0, %v16330_v46  ;;  %12186 = vmatmul.mubr.msk.bf16.gmra.mrb[12].mxu1 %vm224_vm0, %v16330_v46 }
  0xf3   :  { %967 = vmatprep.mubr.bf16.mxu0 %v18003_v0  ;;  %1038 = vmatprep.mubr.bf16.mxu1 %v18003_v0 }
  0xfa   :  { %12206 = vmatmul.mubr.msk.bf16.vlgmr.msra.gmra.mrb[0].mxu0 %vm224_vm0, %v16341_v47  ;;  %12210 = vmatmul.mubr.msk.bf16.vlgmr.msra.gmra.mrb[0].mxu1 %vm224_vm0, %v16341_v47 }
  0xfb   :  { %1193 = vmatpush1.bf16.msra.mxu0 %v14301_v48  ;;  %1264 = vmatpush1.bf16.msra.mxu1 %v14304_v49  ;;  %v16598_v48 = vld [vmem:[#allocation4 + $0x60] ss:$16 sps:$4 sm:$0xff]   ;;  %v16601_v49 = vld [vmem:[#allocation4 + $0x68] ss:$16 sps:$4 sm:$0xff]  }
  0xfc   :  { %977 = vmatprep.mubr.bf16.mxu0 %v18003_v0  ;;  %1048 = vmatprep.mubr.bf16.mxu1 %v18003_v0 }
  0xfd   :  { %1194 = vmatprep.subr.bf16.mxu0 %v14311_v50  ;;  %1265 = vmatprep.subr.bf16.mxu1 %v14314_v51  ;;  %v16604_v50 = vld [vmem:[#allocation4 + $0x4] ss:$16 sps:$4 sm:$0xff]   ;;  %v16607_v51 = vld [vmem:[#allocation4 + $0xc] ss:$16 sps:$4 sm:$0xff]  }
  0xff   :  { %1195 = vmatpush1.bf16.msra.mxu0 %v14309_v52  ;;  %1266 = vmatpush1.bf16.msra.mxu1 %v14312_v53  ;;  %v14322_v52 = vld [vmem:[%s17993_s0 + $0x34] sm:$0xff]   ;;  %v14323_v53 = vld [vmem:[%s17993_s0 + $0x3c] ss:$0 sps:$4 sm:$0xff]  }
 0x100   :  { %1362 = vmatprep.subr.bf16.mxu0 %v16232_v1  ;;  %1433 = vmatprep.subr.bf16.mxu1 %v16234_v2  ;;  %v15537_v1 = vld [vmem:[#allocation4 + $0x68] ss:$16 sps:$4 sm:$0xff]   ;;  %v15538_v2 = vld [vmem:[#allocation4 + $0x4] ss:$16 sps:$4 sm:$0xff]  }
 0x102   :  { %12207 = vmatmul.mubr.msk.bf16.gmra.mrb[4].mxu0 %vm224_vm0, %v16352_v54  ;;  %12211 = vmatmul.mubr.msk.bf16.gmra.mrb[4].mxu1 %vm224_vm0, %v16352_v54 }
 0x103   :  { %987 = vmatprep.mubr.bf16.mxu0 %v18003_v0  ;;  %1058 = vmatprep.mubr.bf16.mxu1 %v18003_v0 }
 0x10a   :  { %12208 = vmatmul.mubr.msk.bf16.gmra.mrb[8].mxu0 %vm224_vm0, %v16365_v55  ;;  %12212 = vmatmul.mubr.msk.bf16.gmra.mrb[8].mxu1 %vm224_vm0, %v16365_v55 }
 0x10b   :  { %997 = vmatprep.mubr.bf16.mxu0 %v18003_v0  ;;  %1068 = vmatprep.mubr.bf16.mxu1 %v18003_v0 }
 0x112   :  { %12209 = vmatmul.mubr.msk.bf16.gmra.mrb[12].mxu0 %vm224_vm0, %v16376_v56  ;;  %12213 = vmatmul.mubr.msk.bf16.gmra.mrb[12].mxu1 %vm224_vm0, %v16376_v56 }
 0x113   :  { %1224 = vmatprep.mubr.bf16.mxu0 %v18003_v0  ;;  %1295 = vmatprep.mubr.bf16.mxu1 %v18003_v0 }
 0x11a   :  { %12233 = vmatmul.mubr.msk.bf16.vlgmr.msra.gmra.mrb[0].mxu0 %vm224_vm0, %v16387_v57  ;;  %12237 = vmatmul.mubr.msk.bf16.vlgmr.msra.gmra.mrb[0].mxu1 %vm224_vm0, %v16387_v57 }
 0x11b   :  { %1363 = vmatpush1.bf16.msra.mxu0 %v15532_v58  ;;  %1434 = vmatpush1.bf16.msra.mxu1 %v15533_v59  ;;  %v16650_v58 = vld [vmem:[#allocation4 + $0x24] ss:$16 sps:$4 sm:$0xff]   ;;  %v16653_v59 = vld [vmem:[#allocation4 + $0x2c] ss:$16 sps:$4 sm:$0xff]  }
 0x11c   :  { %1234 = vmatprep.mubr.bf16.mxu0 %v18003_v0  ;;  %1305 = vmatprep.mubr.bf16.mxu1 %v18003_v0 }
 0x11d   :  { %1364 = vmatprep.subr.bf16.mxu0 %v15534_v61  ;;  %1435 = vmatprep.subr.bf16.mxu1 %v15535_v62  ;;  %v16659_v61 = vld [vmem:[#allocation4 + $0x28] ss:$16 sps:$4 sm:$0xff]   ;;  %v16662_v62 = vld [vmem:[#allocation4 + $0x84] ss:$16 sps:$4 sm:$0xff]  }
 0x11f   :  { %1365 = vmatpush1.bf16.msra.mxu0 %v15536_v63  ;;  %1436 = vmatpush1.bf16.msra.mxu1 %v15537_v1  ;;  %v16665_v63 = vld [vmem:[#allocation4 + $0x8c] ss:$16 sps:$4 sm:$0xff]   ;;  %v16677_v1 = vld [vmem:[%s17993_s0 + $0x70] sm:$0xff]  }
 0x120   :  { %1504 = vmatprep.subr.bf16.mxu0 %v15538_v2  ;;  %1575 = vmatprep.subr.bf16.mxu1 %v15539_v3  ;;  %18076 = vst [vmem:[#allocation23_spill] sm:$0xff] %v16677_v1 }
 0x122   :  { %12234 = vmatmul.mubr.msk.bf16.gmra.mrb[4].mxu0 %vm224_vm0, %v16398_v60  ;;  %12238 = vmatmul.mubr.msk.bf16.gmra.mrb[4].mxu1 %vm224_vm0, %v16398_v60 }
 0x123   :  { %1244 = vmatprep.mubr.bf16.mxu0 %v18003_v0  ;;  %1315 = vmatprep.mubr.bf16.mxu1 %v18003_v0 }
 0x12a   :  { %12235 = vmatmul.mubr.msk.bf16.gmra.mrb[8].mxu0 %vm224_vm0, %v16409_v4  ;;  %12239 = vmatmul.mubr.msk.bf16.gmra.mrb[8].mxu1 %vm224_vm0, %v16409_v4 }
 0x12b   :  { %1254 = vmatprep.mubr.bf16.mxu0 %v18003_v0  ;;  %1325 = vmatprep.mubr.bf16.mxu1 %v18003_v0 }
 0x132   :  { %12236 = vmatmul.mubr.msk.bf16.gmra.mrb[12].mxu0 %vm224_vm0, %v16420_v5  ;;  %12240 = vmatmul.mubr.msk.bf16.gmra.mrb[12].mxu1 %vm224_vm0, %v16420_v5 }
 0x133   :  { %1394 = vmatprep.mubr.bf16.mxu0 %v18003_v0  ;;  %1465 = vmatprep.mubr.bf16.mxu1 %v18003_v0 }
 0x13a   :  { %12241 = vmatmul.mubr.msk.bf16.vlgmr.msra.gmra.mrb[16].mxu0 %vm224_vm0, %v16297_v35  ;;  %12245 = vmatmul.mubr.msk.bf16.vlgmr.msra.gmra.mrb[16].mxu1 %vm224_vm0, %v16297_v35  ;;  %v16535_v35 = vld [vmem:[#allocation4 + $0x108] ss:$16 sps:$4 sm:$0xff]  }
 0x13b   :  { %1505 = vmatpush1.bf16.msra.mxu0 %v15540_v6  ;;  %1576 = vmatpush1.bf16.msra.mxu1 %v15541_v7  ;;  %v16696_v6 = vld [vmem:[%s17993_s0 + $0x78] ss:$0 sps:$4 sm:$0xff]  }
 0x13c   :  { %1404 = vmatprep.mubr.bf16.mxu0 %v18003_v0  ;;  %1475 = vmatprep.mubr.bf16.mxu1 %v18003_v0  ;;  %18077 = vst [vmem:[#allocation24_spill] sm:$0xff] %v16696_v6 }
 0x13d   :  { %1506 = vmatprep.subr.bf16.mxu0 %v15542_v8  ;;  %1577 = vmatprep.subr.bf16.mxu1 %v15543_v9 }
 0x13f   :  { %1507 = vmatpush1.bf16.msra.mxu0 %v15544_v10  ;;  %1578 = vmatpush1.bf16.msra.mxu1 %v15545_v11 }
 0x140   :  { %1646 = vmatprep.subr.bf16.mxu0 %v15546_v12  ;;  %1717 = vmatprep.subr.bf16.mxu1 %v15547_v13 }
 0x142   :  { %12242 = vmatmul.mubr.msk.bf16.gmra.mrb[20].mxu0 %vm224_vm0, %v16308_v44  ;;  %12246 = vmatmul.mubr.msk.bf16.gmra.mrb[20].mxu1 %vm224_vm0, %v16308_v44  ;;  %v16584_v44 = vld [vmem:[#allocation4 + $0x48] ss:$16 sps:$4 sm:$0xff]  }
 0x143   :  { %1414 = vmatprep.mubr.bf16.mxu0 %v18003_v0  ;;  %1485 = vmatprep.mubr.bf16.mxu1 %v18003_v0 }
 0x14a   :  { %12243 = vmatmul.mubr.msk.bf16.gmra.mrb[24].mxu0 %vm224_vm0, %v16319_v45  ;;  %12247 = vmatmul.mubr.msk.bf16.gmra.mrb[24].mxu1 %vm224_vm0, %v16319_v45  ;;  %v14321_v45 = vld [vmem:[%s17993_s0 + $0x2c] sm:$0xff]  }
 0x14b   :  { %1424 = vmatprep.mubr.bf16.mxu0 %v18003_v0  ;;  %1495 = vmatprep.mubr.bf16.mxu1 %v18003_v0 }
 0x152   :  { %12244 = vmatmul.mubr.msk.bf16.gmra.mrb[28].mxu0 %vm224_vm0, %v16330_v46  ;;  %12248 = vmatmul.mubr.msk.bf16.gmra.mrb[28].mxu1 %vm224_vm0, %v16330_v46  ;;  %v16592_v46 = vld [vmem:[#allocation4 + $0x64] ss:$16 sps:$4 sm:$0xff]  }
 0x153   :  { %1536 = vmatprep.mubr.bf16.mxu0 %v18003_v0  ;;  %1607 = vmatprep.mubr.bf16.mxu1 %v18003_v0 }
 0x15a   :  { %12249 = vmatmul.mubr.msk.bf16.vlgmr.msra.gmra.mrb[16].mxu0 %vm224_vm0, %v15548_v14  ;;  %12253 = vmatmul.mubr.msk.bf16.vlgmr.msra.gmra.mrb[16].mxu1 %vm224_vm0, %v15548_v14 }
 0x15b   :  { %1647 = vmatpush1.bf16.msra.mxu0 %v15549_v15  ;;  %1718 = vmatpush1.bf16.msra.mxu1 %v15550_v16  ;;  %v14328_v15 = vld [vmem:[%s17993_s0 + $0x40] sm:$0xff]  }
 0x15c   :  { %1546 = vmatprep.mubr.bf16.mxu0 %v18003_v0  ;;  %1617 = vmatprep.mubr.bf16.mxu1 %v18003_v0 }
 0x15d   :  { %1648 = vmatprep.subr.bf16.mxu0 %v15551_v17  ;;  %1719 = vmatprep.subr.bf16.mxu1 %v15552_v18 }
 0x15f   :  { %1649 = vmatpush1.bf16.msra.mxu0 %v15553_v19  ;;  %1720 = vmatpush1.bf16.msra.mxu1 %v15554_v20  ;;  %v16733_v20 = vld [vmem:[#allocation4 + $0x80] ss:$16 sps:$4 sm:$0xff]  }
 0x160   :  { %1816 = vmatprep.subr.bf16.mxu0 %v15555_v21  ;;  %1887 = vmatprep.subr.bf16.mxu1 %v15556_v22  ;;  %v16736_v21 = vld [vmem:[#allocation4 + $0x88] ss:$16 sps:$4 sm:$0xff]  }
 0x162   :  { %12250 = vmatmul.mubr.msk.bf16.gmra.mrb[20].mxu0 %vm224_vm0, %v15557_v23  ;;  %12254 = vmatmul.mubr.msk.bf16.gmra.mrb[20].mxu1 %vm224_vm0, %v15557_v23 }
 0x163   :  { %1556 = vmatprep.mubr.bf16.mxu0 %v18003_v0  ;;  %1627 = vmatprep.mubr.bf16.mxu1 %v18003_v0 }
 0x16a   :  { %12251 = vmatmul.mubr.msk.bf16.gmra.mrb[24].mxu0 %vm224_vm0, %v15558_v24  ;;  %12255 = vmatmul.mubr.msk.bf16.gmra.mrb[24].mxu1 %vm224_vm0, %v15558_v24  ;;  %v16745_v24 = vld [vmem:[#allocation4 + $0xa4] ss:$16 sps:$4 sm:$0xff]  }
 0x16b   :  { %1566 = vmatprep.mubr.bf16.mxu0 %v18003_v0  ;;  %1637 = vmatprep.mubr.bf16.mxu1 %v18003_v0 }
 0x172   :  { %12252 = vmatmul.mubr.msk.bf16.gmra.mrb[28].mxu0 %vm224_vm0, %v15559_v25  ;;  %12256 = vmatmul.mubr.msk.bf16.gmra.mrb[28].mxu1 %vm224_vm0, %v15559_v25  ;;  %v16748_v25 = vld [vmem:[#allocation4 + $0xac] ss:$16 sps:$4 sm:$0xff]  }
 0x173   :  { %1678 = vmatprep.mubr.bf16.mxu0 %v18003_v0  ;;  %1749 = vmatprep.mubr.bf16.mxu1 %v18003_v0 }
 0x17a   :  { %12257 = vmatmul.mubr.msk.bf16.vlgmr.msra.gmra.mrb[16].mxu0 %vm224_vm0, %v16341_v47  ;;  %12261 = vmatmul.mubr.msk.bf16.vlgmr.msra.gmra.mrb[16].mxu1 %vm224_vm0, %v16341_v47  ;;  %v16595_v47 = vld [vmem:[#allocation4 + $0x6c] ss:$16 sps:$4 sm:$0xff]  }
 0x17b   :  { %1817 = vmatpush1.bf16.msra.mxu0 %v16484_v26  ;;  %1888 = vmatpush1.bf16.msra.mxu1 %v16487_v27 }
 0x17c   :  { %1688 = vmatprep.mubr.bf16.mxu0 %v18003_v0  ;;  %1759 = vmatprep.mubr.bf16.mxu1 %v18003_v0 }
 0x17d   :  { %1818 = vmatprep.subr.bf16.mxu0 %v16492_v28  ;;  %1889 = vmatprep.subr.bf16.mxu1 %v16495_v29 }
 0x17f   :  { %1819 = vmatpush1.bf16.msra.mxu0 %v16498_v30  ;;  %1890 = vmatpush1.bf16.msra.mxu1 %v16501_v31 }
 0x180   :  { %2024 = vmatprep.subr.bf16.mxu0 %v16504_v32  ;;  %2095 = vmatprep.subr.bf16.mxu1 %v16507_v33 }
 0x182   :  { %12258 = vmatmul.mubr.msk.bf16.gmra.mrb[20].mxu0 %vm224_vm0, %v16352_v54  ;;  %12262 = vmatmul.mubr.msk.bf16.gmra.mrb[20].mxu1 %vm224_vm0, %v16352_v54  ;;  %v16631_v54 = vld [vmem:[%s17993_s0 + $0x60] sm:$0xff]  }
 0x183   :  { %1698 = vmatprep.mubr.bf16.mxu0 %v18003_v0  ;;  %1769 = vmatprep.mubr.bf16.mxu1 %v18003_v0 }
 0x18a   :  { %12259 = vmatmul.mubr.msk.bf16.gmra.mrb[24].mxu0 %vm224_vm0, %v16365_v55  ;;  %12263 = vmatmul.mubr.msk.bf16.gmra.mrb[24].mxu1 %vm224_vm0, %v16365_v55  ;;  %v16637_v55 = vld [vmem:[#allocation4] ss:$16 sps:$4 sm:$0xff]  }
 0x18b   :  { %1708 = vmatprep.mubr.bf16.mxu0 %v18003_v0  ;;  %1779 = vmatprep.mubr.bf16.mxu1 %v18003_v0 }
 0x192   :  { %12260 = vmatmul.mubr.msk.bf16.gmra.mrb[28].mxu0 %vm224_vm0, %v16376_v56  ;;  %12264 = vmatmul.mubr.msk.bf16.gmra.mrb[28].mxu1 %vm224_vm0, %v16376_v56  ;;  %v16640_v56 = vld [vmem:[#allocation4 + $0x8] ss:$16 sps:$4 sm:$0xff]  }
 0x193   :  { %1848 = vmatprep.mubr.bf16.mxu0 %v18003_v0  ;;  %1919 = vmatprep.mubr.bf16.mxu1 %v18003_v0 }
 0x19a   :  { %12265 = vmatmul.mubr.msk.bf16.vlgmr.msra.gmra.mrb[16].mxu0 %vm224_vm0, %v16387_v57  ;;  %12269 = vmatmul.mubr.msk.bf16.vlgmr.msra.gmra.mrb[16].mxu1 %vm224_vm0, %v16387_v57  ;;  %v16648_v57 = vld [vmem:[%s17993_s0 + $0x68] sm:$0xff]  }
 0x19b   :  { %2025 = vmatpush1.bf16.msra.mxu0 %v16532_v34  ;;  %2096 = vmatpush1.bf16.msra.mxu1 %v16535_v35  ;;  %18075 = vst [vmem:[#allocation22_spill] sm:$0xff] %v16648_v57 }
 0x19c   :  { %1858 = vmatprep.mubr.bf16.mxu0 %v18003_v0  ;;  %1929 = vmatprep.mubr.bf16.mxu1 %v18003_v0 }
 0x19d   :  { %2026 = vmatprep.subr.bf16.mxu0 %v16540_v36  ;;  %2097 = vmatprep.subr.bf16.mxu1 %v16543_v37 }
 0x19f   :  { %2027 = vmatpush1.bf16.msra.mxu0 %v16546_v38  ;;  %2098 = vmatpush1.bf16.msra.mxu1 %v16549_v39 }
 0x1a0   :  { %2431 = vmatprep.subr.bf16.mxu0 %v16552_v40  ;;  %2502 = vmatprep.subr.bf16.mxu1 %v16555_v41 }
 0x1a2   :  { %12266 = vmatmul.mubr.msk.bf16.gmra.mrb[20].mxu0 %vm224_vm0, %v16398_v60  ;;  %12270 = vmatmul.mubr.msk.bf16.gmra.mrb[20].mxu1 %vm224_vm0, %v16398_v60  ;;  %v16656_v60 = vld [vmem:[#allocation4 + $0x20] ss:$16 sps:$4 sm:$0xff]  }
 0x1a3   :  { %1868 = vmatprep.mubr.bf16.mxu0 %v18003_v0  ;;  %1939 = vmatprep.mubr.bf16.mxu1 %v18003_v0 }
 0x1aa   :  { %12267 = vmatmul.mubr.msk.bf16.gmra.mrb[24].mxu0 %vm224_vm0, %v16409_v4  ;;  %12271 = vmatmul.mubr.msk.bf16.gmra.mrb[24].mxu1 %vm224_vm0, %v16409_v4 }
 0x1ab   :  { %1878 = vmatprep.mubr.bf16.mxu0 %v18003_v0  ;;  %1949 = vmatprep.mubr.bf16.mxu1 %v18003_v0 }
 0x1b2   :  { %12268 = vmatmul.mubr.msk.bf16.gmra.mrb[28].mxu0 %vm224_vm0, %v16420_v5  ;;  %12272 = vmatmul.mubr.msk.bf16.gmra.mrb[28].mxu1 %vm224_vm0, %v16420_v5 }
 0x1b3   :  { %2056 = vmatprep.mubr.bf16.mxu0 %v18003_v0  ;;  %2127 = vmatprep.mubr.bf16.mxu1 %v18003_v0 }
 0x1ba   :  { %12284 = vmatmul.mubr.msk.bf16.vlgmr.msra.gmra.mrb[16].mxu0 %vm224_vm0, %v14320_v42  ;;  %12288 = vmatmul.mubr.msk.bf16.vlgmr.msra.gmra.mrb[16].mxu1 %vm224_vm0, %v14320_v42 }
 0x1bb   :  { %2432 = vmatpush1.bf16.msra.mxu0 %v16581_v43  ;;  %2503 = vmatpush1.bf16.msra.mxu1 %v16584_v44 }
 0x1bc   :  { %2066 = vmatprep.mubr.bf16.mxu0 %v18003_v0  ;;  %2137 = vmatprep.mubr.bf16.mxu1 %v18003_v0 }
 0x1bd   :  { %2433 = vmatprep.subr.bf16.mxu0 %v16592_v46  ;;  %2504 = vmatprep.subr.bf16.mxu1 %v16595_v47 }
 0x1bf   :  { %2434 = vmatpush1.bf16.msra.mxu0 %v16598_v48  ;;  %2505 = vmatpush1.bf16.msra.mxu1 %v16601_v49 }
 0x1c0   :  { %2643 = vmatprep.subr.bf16.mxu0 %v16604_v50  ;;  %2714 = vmatprep.subr.bf16.mxu1 %v16607_v51 }
 0x1c2   :  { %12285 = vmatmul.mubr.msk.bf16.gmra.mrb[20].mxu0 %vm224_vm0, %v14321_v45  ;;  %12289 = vmatmul.mubr.msk.bf16.gmra.mrb[20].mxu1 %vm224_vm0, %v14321_v45 }
 0x1c3   :  { %2076 = vmatprep.mubr.bf16.mxu0 %v18003_v0  ;;  %2147 = vmatprep.mubr.bf16.mxu1 %v18003_v0 }
 0x1ca   :  { %12286 = vmatmul.mubr.msk.bf16.gmra.mrb[24].mxu0 %vm224_vm0, %v14322_v52  ;;  %12290 = vmatmul.mubr.msk.bf16.gmra.mrb[24].mxu1 %vm224_vm0, %v14322_v52  ;;  %v14329_v52 = vld [vmem:[%s17993_s0 + $0x48] sm:$0xff]  }
 0x1cb   :  { %2086 = vmatprep.mubr.bf16.mxu0 %v18003_v0  ;;  %2157 = vmatprep.mubr.bf16.mxu1 %v18003_v0 }
 0x1d2   :  { %12287 = vmatmul.mubr.msk.bf16.gmra.mrb[28].mxu0 %vm224_vm0, %v14323_v53  ;;  %12291 = vmatmul.mubr.msk.bf16.gmra.mrb[28].mxu1 %vm224_vm0, %v14323_v53 }
 0x1d3   :  { %2463 = vmatprep.mubr.bf16.mxu0 %v18003_v0  ;;  %2534 = vmatprep.mubr.bf16.mxu1 %v18003_v0 }
 0x1da   :  { %12325 = vmatmul.mubr.msk.bf16.vlgmr.msra.gmra.mrb[32].mxu0 %vm224_vm0, %v16631_v54  ;;  %12329 = vmatmul.mubr.msk.bf16.vlgmr.msra.gmra.mrb[32].mxu1 %vm224_vm0, %v16631_v54 }
 0x1db   :  { %2644 = vmatpush1.bf16.msra.mxu0 %v16637_v55  ;;  %2715 = vmatpush1.bf16.msra.mxu1 %v16640_v56 }
 0x1dc   :  { %2473 = vmatprep.mubr.bf16.mxu0 %v18003_v0  ;;  %2544 = vmatprep.mubr.bf16.mxu1 %v18003_v0 }
 0x1dd   :  { %2645 = vmatprep.subr.bf16.mxu0 %v16650_v58  ;;  %2716 = vmatprep.subr.bf16.mxu1 %v16653_v59 }
 0x1df   :  { %2646 = vmatpush1.bf16.msra.mxu0 %v16656_v60  ;;  %2717 = vmatpush1.bf16.msra.mxu1 %v16659_v61 }
 0x1e0   :  { %2870 = vmatprep.subr.bf16.mxu0 %v16662_v62  ;;  %2941 = vmatprep.subr.bf16.mxu1 %v16665_v63 }
 0x1e2   :  { %12326 = vmatmul.mubr.msk.bf16.gmra.mrb[36].mxu0 %vm224_vm0, %v16648_v57  ;;  %12330 = vmatmul.mubr.msk.bf16.gmra.mrb[36].mxu1 %vm224_vm0, %v16648_v57 }
 0x1e3   :  { %2483 = vmatprep.mubr.bf16.mxu0 %v18003_v0  ;;  %2554 = vmatprep.mubr.bf16.mxu1 %v18003_v0 }
 0x1ea   :  { %12327 = vmatmul.mubr.msk.bf16.gmra.mrb[40].mxu0 %vm224_vm0, %v16677_v1  ;;  %12331 = vmatmul.mubr.msk.bf16.gmra.mrb[40].mxu1 %vm224_vm0, %v16677_v1 }
 0x1eb   :  { %2493 = vmatprep.mubr.bf16.mxu0 %v18003_v0  ;;  %2564 = vmatprep.mubr.bf16.mxu1 %v18003_v0 }
 0x1ed   :  { %v16685_v2 = vpop.f32.mrb[0].mxu0  ;;  %v16687_v3 = vpop.f32.mrb[0].mxu1 }
 0x1ee   :  { %v16689_v4 = vpop.f32.mrb[1].mxu0  ;;  %v16691_v5 = vpop.f32.mrb[1].mxu1 }
 0x1ef   :  { %v16698_v7 = vpop.f32.mrb[2].mxu0  ;;  %v16700_v8 = vpop.f32.mrb[2].mxu1 }
 0x1f0   :  { %v16702_v9 = vpop.f32.mrb[3].mxu0  ;;  %v16704_v10 = vpop.f32.mrb[3].mxu1 }
 0x1f2   :  { %12328 = vmatmul.mubr.msk.bf16.gmra.mrb[44].mxu0 %vm224_vm0, %v16696_v6  ;;  %12332 = vmatmul.mubr.msk.bf16.gmra.mrb[44].mxu1 %vm224_vm0, %v16696_v6  ;;  %v16765_v6 = vld [vmem:[#allocation4 + $0xa8] ss:$16 sps:$4 sm:$0xff]  }
 0x1f3   :  { %2675 = vmatprep.mubr.bf16.mxu0 %v18003_v0  ;;  %2746 = vmatprep.mubr.bf16.mxu1 %v18003_v0  ;;  %18084 = vst [vmem:[#allocation31_spill] sm:$0xff] %v16765_v6 }
 0x1f5   :  { %v16712_v11 = vpop.f32.mrb[4].mxu0  ;;  %v16714_v12 = vpop.f32.mrb[4].mxu1 }
 0x1f6   :  { %v16716_v13 = vpop.f32.mrb[5].mxu0  ;;  %v16718_v14 = vpop.f32.mrb[5].mxu1 }
 0x1f7   :  { %v16723_v16 = vpop.f32.mrb[6].mxu0  ;;  %v16725_v17 = vpop.f32.mrb[6].mxu1 }
 0x1f8   :  { %v16727_v18 = vpop.f32.mrb[7].mxu0  ;;  %v16729_v19 = vpop.f32.mrb[7].mxu1 }
 0x1fa   :  { %12345 = vmatmul.mubr.msk.bf16.vlgmr.msra.gmra.mrb[32].mxu0 %vm224_vm0, %v14328_v15  ;;  %12349 = vmatmul.mubr.msk.bf16.vlgmr.msra.gmra.mrb[32].mxu1 %vm224_vm0, %v14328_v15 }
 0x1fb   :  { %2871 = vmatpush1.bf16.msra.mxu0 %v16733_v20  ;;  %2942 = vmatpush1.bf16.msra.mxu1 %v16736_v21 }
 0x1fc   :  { %2685 = vmatprep.mubr.bf16.mxu0 %v18003_v0  ;;  %2756 = vmatprep.mubr.bf16.mxu1 %v18003_v0  ;;  %v16762_v0 = vld [vmem:[#allocation4 + $0xa0] ss:$16 sps:$4 sm:$0xff]  }
 0x1fd   :  { %v16741_v22 = vpop.f32.mrb[8].mxu0  ;;  %v16743_v23 = vpop.f32.mrb[8].mxu1  ;;  %2872 = vmatprep.subr.bf16.mxu0 %v16745_v24  ;;  %2943 = vmatprep.subr.bf16.mxu1 %v16748_v25  ;;  %18083 = vst [vmem:[#allocation30_spill] sm:$0xff] %v16762_v0 }
 0x1fe   :  { %18078 = vst [vmem:[#allocation25_spill] sm:$0xff] %v16743_v23  ;;  %v16751_v42 = vpop.f32.mrb[9].mxu0  ;;  %v16753_v45 = vpop.f32.mrb[9].mxu1 }
 0x1ff   :  { %18079 = vst [vmem:[#allocation26_spill] sm:$0xff] %v16751_v42  ;;  %18080 = vst [vmem:[#allocation27_spill] sm:$0xff] %v16753_v45  ;;  %v16758_v53 = vpop.f32.mrb[10].mxu0  ;;  %v16760_v15 = vpop.f32.mrb[10].mxu1  ;;  %2873 = vmatpush1.bf16.msra.mxu0 %v16762_v0  ;;  %2944 = vmatpush1.bf16.msra.mxu1 %v16765_v6  ;;  %v16772_v45 = vld [vmem:[#allocation4 + $0xc4] ss:$16 sps:$4 sm:$0xff]  }
 0x200   :  { %18081 = vst [vmem:[#allocation28_spill] sm:$0xff] %v16758_v53  ;;  %18082 = vst [vmem:[#allocation29_spill] sm:$0xff] %v16760_v15  ;;  %v16768_v1 = vpop.f32.mrb[11].mxu0  ;;  %v16770_v57 = vpop.f32.mrb[11].mxu1  ;;  %3125 = vmatprep.subr.bf16.mxu0 %v16772_v45  ;;  %v16775_v42 = vld [vmem:[#allocation4 + $0xcc] ss:$16 sps:$4 sm:$0xff]  }
 0x201   :  { %18085 = vst [vmem:[#allocation32_spill] sm:$0xff] %v16768_v1  ;;  %18086 = vst [vmem:[#allocation33_spill] sm:$0xff] %v16770_v57  ;;  %3196 = vmatprep.subr.bf16.mxu1 %v16775_v42  ;;  %v18089_v15 = vmov 0  }
 0x202   :  { %18087 = vst [vmem:[#allocation34_spill] sm:$0xff] %v16772_v45  ;;  %18088 = vst [vmem:[#allocation35_spill] sm:$0xff] %v16775_v42  ;;  %12346 = vmatmul.mubr.msk.bf16.gmra.mrb[36].mxu0 %vm224_vm0, %v14329_v52  ;;  %12350 = vmatmul.mubr.msk.bf16.gmra.mrb[36].mxu1 %vm224_vm0, %v14329_v52  ;;  %v14330_v42 = vld [vmem:[%s17993_s0 + $0x50] sm:$0xff]  }
 0x203   :  { %2695 = vmatprep.mubr.bf16.mxu0 %v18089_v15  ;;  %2766 = vmatprep.mubr.bf16.mxu1 %v18089_v15 }
 0x205   :  { %v16782_v53 = vpop.f32.mrb[12].mxu0  ;;  %v16784_v1 = vpop.f32.mrb[12].mxu1 }
 0x206   :  { %v16786_v57 = vpop.f32.mrb[13].mxu0  ;;  %v16788_v6 = vpop.f32.mrb[13].mxu1 }
 0x207   :  { %18090 = vst [vmem:[#allocation36_spill] sm:$0xff] %v16788_v6  ;;  %v1260_v45 = vpop.f32.mrb[14].mxu0  ;;  %v1331_v0 = vpop.f32.mrb[14].mxu1  ;;  %v14331_v6 = vld [vmem:[%s17993_s0 + $0x58] ss:$0 sps:$4 sm:$0xff]  }
 0x208   :  { %v1261_v23 = vpop.f32.mrb[15].mxu0  ;;  %v1332_v52 = vpop.f32.mrb[15].mxu1  ;;  %v16807_v0 = vld [vmem:[%s17993_s0 + $0x4] sm:$0xff]  }
 0x20a   :  { %12347 = vmatmul.mubr.msk.bf16.gmra.mrb[40].mxu0 %vm224_vm0, %v14330_v42  ;;  %12351 = vmatmul.mubr.msk.bf16.gmra.mrb[40].mxu1 %vm224_vm0, %v14330_v42 }
 0x20b   :  { %2705 = vmatprep.mubr.bf16.mxu0 %v18089_v15  ;;  %2776 = vmatprep.mubr.bf16.mxu1 %v18089_v15 }
 0x212   :  { %12348 = vmatmul.mubr.msk.bf16.gmra.mrb[44].mxu0 %vm224_vm0, %v14331_v6  ;;  %12352 = vmatmul.mubr.msk.bf16.gmra.mrb[44].mxu1 %vm224_vm0, %v14331_v6  ;;  %v16822_v6 = vld [vmem:[%s17993_s0 + $0xc] sm:$0xff]  }
 0x213   :  { %2902 = vmatprep.mubr.bf16.mxu0 %v18089_v15  ;;  %2973 = vmatprep.mubr.bf16.mxu1 %v18089_v15 }
 0x21a   :  { %12372 = vmatmul.mubr.msk.bf16.vlgmr.msra.gmra.mrb[32].mxu0 %vm224_vm0, %v16807_v0  ;;  %12376 = vmatmul.mubr.msk.bf16.vlgmr.msra.gmra.mrb[32].mxu1 %vm224_vm0, %v16807_v0 }
 0x21b   :  { %3126 = vmatpush1.bf16.msra.mxu0 %v16484_v26  ;;  %3197 = vmatpush1.bf16.msra.mxu1 %v16487_v27  ;;  %v16837_v26 = vld [vmem:[%s17993_s0 + $0x14] sm:$0xff]   ;;  %v16848_v27 = vld [vmem:[%s17993_s0 + $0x1c] ss:$0 sps:$4 sm:$0xff]  }
 0x21c   :  { %2912 = vmatprep.mubr.bf16.mxu0 %v18089_v15  ;;  %2983 = vmatprep.mubr.bf16.mxu1 %v18089_v15 }
 0x21d   :  { %3127 = vmatprep.subr.bf16.mxu0 %v16492_v28  ;;  %3198 = vmatprep.subr.bf16.mxu1 %v16495_v29  ;;  %v16859_v28 = vld [vmem:[%s17993_s0 + $0x24] sm:$0xff]   ;;  %v16874_v29 = vld [vmem:[%s17993_s0 + $0x2c] sm:$0xff]  }
 0x21f   :  { %3128 = vmatpush1.bf16.msra.mxu0 %v16498_v30  ;;  %3199 = vmatpush1.bf16.msra.mxu1 %v16501_v31  ;;  %v16889_v30 = vld [vmem:[%s17993_s0 + $0x34] sm:$0xff]   ;;  %v16900_v31 = vld [vmem:[%s17993_s0 + $0x3c] ss:$0 sps:$4 sm:$0xff]  }
 0x220   :  { %3381 = vmatprep.subr.bf16.mxu0 %v16504_v32  ;;  %3452 = vmatprep.subr.bf16.mxu1 %v16507_v33  ;;  %v16911_v32 = vld [vmem:[%s17993_s0 + $0x44] sm:$0xff]   ;;  %v16926_v33 = vld [vmem:[%s17993_s0 + $0x4c] sm:$0xff]  }
 0x222   :  { %12373 = vmatmul.mubr.msk.bf16.gmra.mrb[36].mxu0 %vm224_vm0, %v16822_v6  ;;  %12377 = vmatmul.mubr.msk.bf16.gmra.mrb[36].mxu1 %vm224_vm0, %v16822_v6 }
 0x223   :  { %2922 = vmatprep.mubr.bf16.mxu0 %v18089_v15  ;;  %2993 = vmatprep.mubr.bf16.mxu1 %v18089_v15 }
 0x22a   :  { %12374 = vmatmul.mubr.msk.bf16.gmra.mrb[40].mxu0 %vm224_vm0, %v16837_v26  ;;  %12378 = vmatmul.mubr.msk.bf16.gmra.mrb[40].mxu1 %vm224_vm0, %v16837_v26 }
 0x22b   :  { %2932 = vmatprep.mubr.bf16.mxu0 %v18089_v15  ;;  %3003 = vmatprep.mubr.bf16.mxu1 %v18089_v15 }
 0x232   :  { %12375 = vmatmul.mubr.msk.bf16.gmra.mrb[44].mxu0 %vm224_vm0, %v16848_v27  ;;  %12379 = vmatmul.mubr.msk.bf16.gmra.mrb[44].mxu1 %vm224_vm0, %v16848_v27 }
 0x233   :  { %3157 = vmatprep.mubr.bf16.mxu0 %v18089_v15  ;;  %3228 = vmatprep.mubr.bf16.mxu1 %v18089_v15 }
 0x23a   :  { %12399 = vmatmul.mubr.msk.bf16.vlgmr.msra.gmra.mrb[32].mxu0 %vm224_vm0, %v16859_v28  ;;  %12403 = vmatmul.mubr.msk.bf16.vlgmr.msra.gmra.mrb[32].mxu1 %vm224_vm0, %v16859_v28 }
 0x23b   :  { %3382 = vmatpush1.bf16.msra.mxu0 %v16532_v34  ;;  %3453 = vmatpush1.bf16.msra.mxu1 %v16535_v35  ;;  %v16941_v34 = vld [vmem:[%s17993_s0 + $0x54] sm:$0xff]   ;;  %v16952_v35 = vld [vmem:[%s17993_s0 + $0x5c] ss:$0 sps:$4 sm:$0xff]  }
 0x23c   :  { %3167 = vmatprep.mubr.bf16.mxu0 %v18089_v15  ;;  %3238 = vmatprep.mubr.bf16.mxu1 %v18089_v15 }
 0x23d   :  { %3383 = vmatprep.subr.bf16.mxu0 %v16540_v36  ;;  %3454 = vmatprep.subr.bf16.mxu1 %v16543_v37  ;;  %v2238_v36 = vlaneseq }
 0x23f   :  { %3384 = vmatpush1.bf16.msra.mxu0 %v16546_v38  ;;  %3455 = vmatpush1.bf16.msra.mxu1 %v16549_v39  ;;  %v16980_v37 = vshrl.u32 %v2238_v36, 7  ;;  %v2236_v39 = vld [vmem:[#allocation6] sm:$0x3] }
 0x240   :  { %3551 = vmatprep.subr.bf16.mxu0 %v16552_v40  ;;  %3622 = vmatprep.subr.bf16.mxu1 %v16555_v41 }
 0x241   :  { %18091 = vst [vmem:[#allocation37_spill] sm:$0xff] %v16980_v37  ;;  %v16987_v38 = vsub.s32 0, %v16980_v37  ;;  %v16990_v40 = vsub.s32 1, %v16980_v37 }
 0x242   :  { %12400 = vmatmul.mubr.msk.bf16.gmra.mrb[36].mxu0 %vm224_vm0, %v16874_v29  ;;  %12404 = vmatmul.mubr.msk.bf16.gmra.mrb[36].mxu1 %vm224_vm0, %v16874_v29 }
 0x243   :  { %3177 = vmatprep.mubr.bf16.mxu0 %v18089_v15  ;;  %3248 = vmatprep.mubr.bf16.mxu1 %v18089_v15  ;;  %18092 = vst [vmem:[#allocation38_spill] sm:$0xff] %v16987_v38  ;;  %18093 = vst [vmem:[#allocation39_spill] sm:$0xff] %v16990_v40 }
 0x24a   :  { %12401 = vmatmul.mubr.msk.bf16.gmra.mrb[40].mxu0 %vm224_vm0, %v16889_v30  ;;  %12405 = vmatmul.mubr.msk.bf16.gmra.mrb[40].mxu1 %vm224_vm0, %v16889_v30 }
 0x24b   :  { %3187 = vmatprep.mubr.bf16.mxu0 %v18089_v15  ;;  %3258 = vmatprep.mubr.bf16.mxu1 %v18089_v15 }
 0x252   :  { %12402 = vmatmul.mubr.msk.bf16.gmra.mrb[44].mxu0 %vm224_vm0, %v16900_v31  ;;  %12406 = vmatmul.mubr.msk.bf16.gmra.mrb[44].mxu1 %vm224_vm0, %v16900_v31 }
 0x253   :  { %3413 = vmatprep.mubr.bf16.mxu0 %v18089_v15  ;;  %3484 = vmatprep.mubr.bf16.mxu1 %v18089_v15 }
 0x25a   :  { %12426 = vmatmul.mubr.msk.bf16.vlgmr.msra.gmra.mrb[32].mxu0 %vm224_vm0, %v16911_v32  ;;  %12430 = vmatmul.mubr.msk.bf16.vlgmr.msra.gmra.mrb[32].mxu1 %vm224_vm0, %v16911_v32 }
 0x25b   :  { %3552 = vmatpush1.bf16.msra.mxu0 %v16581_v43  ;;  %3623 = vmatpush1.bf16.msra.mxu1 %v16584_v44 }
 0x25c   :  { %3423 = vmatprep.mubr.bf16.mxu0 %v18089_v15  ;;  %3494 = vmatprep.mubr.bf16.mxu1 %v18089_v15 }
 0x25d   :  { %3553 = vmatprep.subr.bf16.mxu0 %v16592_v46  ;;  %3624 = vmatprep.subr.bf16.mxu1 %v16595_v47  ;;  %v16997_v47 = vrot.slane %v2236_v39, %v16987_v38 }
 0x25f   :  { %3554 = vmatpush1.bf16.msra.mxu0 %v16598_v48  ;;  %3625 = vmatpush1.bf16.msra.mxu1 %v16601_v49 }
 0x260   :  { %3693 = vmatprep.subr.bf16.mxu0 %v16604_v50  ;;  %3764 = vmatprep.subr.bf16.mxu1 %v16607_v51 }
 0x262   :  { %12427 = vmatmul.mubr.msk.bf16.gmra.mrb[36].mxu0 %vm224_vm0, %v16926_v33  ;;  %12431 = vmatmul.mubr.msk.bf16.gmra.mrb[36].mxu1 %vm224_vm0, %v16926_v33 }
 0x263   :  { %3433 = vmatprep.mubr.bf16.mxu0 %v18089_v15  ;;  %3504 = vmatprep.mubr.bf16.mxu1 %v18089_v15 }
 0x26a   :  { %12428 = vmatmul.mubr.msk.bf16.gmra.mrb[40].mxu0 %vm224_vm0, %v16941_v34  ;;  %12432 = vmatmul.mubr.msk.bf16.gmra.mrb[40].mxu1 %vm224_vm0, %v16941_v34 }
 0x26b   :  { %3443 = vmatprep.mubr.bf16.mxu0 %v18089_v15  ;;  %3514 = vmatprep.mubr.bf16.mxu1 %v18089_v15 }
 0x272   :  { %12429 = vmatmul.mubr.msk.bf16.gmra.mrb[44].mxu0 %vm224_vm0, %v16952_v35  ;;  %12433 = vmatmul.mubr.msk.bf16.gmra.mrb[44].mxu1 %vm224_vm0, %v16952_v35 }
 0x273   :  { %3583 = vmatprep.mubr.bf16.mxu0 %v18089_v15  ;;  %3654 = vmatprep.mubr.bf16.mxu1 %v18089_v15 }
 0x27a   :  { %12434 = vmatmul.mubr.msk.bf16.vlgmr.msra.gmra.mrb[48].mxu0 %vm224_vm0, %v16807_v0  ;;  %12438 = vmatmul.mubr.msk.bf16.vlgmr.msra.gmra.mrb[48].mxu1 %vm224_vm0, %v16807_v0 }
 0x27b   :  { %3694 = vmatpush1.bf16.msra.mxu0 %v16637_v55  ;;  %3765 = vmatpush1.bf16.msra.mxu1 %v16640_v56  ;;  %v17002_v55 = vrot.slane %v2236_v39, %v16990_v40 }
 0x27c   :  { %3593 = vmatprep.mubr.bf16.mxu0 %v18089_v15  ;;  %3664 = vmatprep.mubr.bf16.mxu1 %v18089_v15 }
 0x27d   :  { %3695 = vmatprep.subr.bf16.mxu0 %v16650_v58  ;;  %3766 = vmatprep.subr.bf16.mxu1 %v16653_v59 }
 0x27f   :  { %3696 = vmatpush1.bf16.msra.mxu0 %v16656_v60  ;;  %3767 = vmatpush1.bf16.msra.mxu1 %v16659_v61 }
 0x280   :  { %3835 = vmatprep.subr.bf16.mxu0 %v16662_v62  ;;  %3906 = vmatprep.subr.bf16.mxu1 %v16665_v63 }
 0x282   :  { %12435 = vmatmul.mubr.msk.bf16.gmra.mrb[52].mxu0 %vm224_vm0, %v16822_v6  ;;  %12439 = vmatmul.mubr.msk.bf16.gmra.mrb[52].mxu1 %vm224_vm0, %v16822_v6 }
 0x283   :  { %3603 = vmatprep.mubr.bf16.mxu0 %v18089_v15  ;;  %3674 = vmatprep.mubr.bf16.mxu1 %v18089_v15 }
 0x28a   :  { %12436 = vmatmul.mubr.msk.bf16.gmra.mrb[56].mxu0 %vm224_vm0, %v16837_v26  ;;  %12440 = vmatmul.mubr.msk.bf16.gmra.mrb[56].mxu1 %vm224_vm0, %v16837_v26 }
 0x28b   :  { %3613 = vmatprep.mubr.bf16.mxu0 %v18089_v15  ;;  %3684 = vmatprep.mubr.bf16.mxu1 %v18089_v15 }
 0x28d   :  { %v2058_v41 = vpop.f32.mrb[16].mxu0  ;;  %v2129_v43 = vpop.f32.mrb[16].mxu1 }
 0x28e   :  { %v2194_v44 = vmax.f32 %v16685_v2, %v2058_v41  ;;  %v2196_v46 = vmax.f32 %v16687_v3, %v2129_v43  ;;  %v2060_v48 = vpop.f32.mrb[17].mxu0  ;;  %v2131_v49 = vpop.f32.mrb[17].mxu1 }
 0x28f   :  { %v2195_v50 = vmax.f32 %v16689_v4, %v2060_v48  ;;  %v2197_v51 = vmax.f32 %v16691_v5, %v2131_v49  ;;  %v2062_v56 = vpop.f32.mrb[18].mxu0  ;;  %v2133_v58 = vpop.f32.mrb[18].mxu1 }
 0x290   :  { %v2222_v59 = vmax.f32 %v2194_v44, %v2196_v46  ;;  %v2198_v60 = vmax.f32 %v16698_v7, %v2062_v56  ;;  %v2200_v61 = vmax.f32 %v16700_v8, %v2133_v58  ;;  %v2064_v62 = vpop.f32.mrb[19].mxu0  ;;  %v2135_v63 = vpop.f32.mrb[19].mxu1 }
 0x291   :  { %v2223_v2 = vmax.f32 %v2195_v50, %v2197_v51  ;;  %v2199_v3 = vmax.f32 %v16702_v9, %v2064_v62  ;;  %v2201_v23 = vmax.f32 %v16704_v10, %v2135_v63 }
 0x292   :  { %v2248_v4 = vadd.f32 %v16997_v47, %v2222_v59  ;;  %v2224_v5 = vmax.f32 %v2198_v60, %v2200_v61  ;;  %12437 = vmatmul.mubr.msk.bf16.gmra.mrb[60].mxu0 %vm224_vm0, %v16848_v27  ;;  %12441 = vmatmul.mubr.msk.bf16.gmra.mrb[60].mxu1 %vm224_vm0, %v16848_v27 }
 0x293   :  { %v2249_v7 = vadd.f32 %v17002_v55, %v2223_v2  ;;  %v2225_v42 = vmax.f32 %v2199_v3, %v2201_v23  ;;  %3725 = vmatprep.mubr.bf16.mxu0 %v18089_v15  ;;  %3796 = vmatprep.mubr.bf16.mxu1 %v18089_v15 }
 0x294   :  { %v2262_v8 = vmax.f32 %v2248_v4, 0.0  ;;  %v2250_v9 = vadd.f32 %v16997_v47, %v2224_v5  ;;  %v18094_v4 = vld [vmem:[#allocation25_spill] sm:$0xff] }
 0x295   :  { %v2263_v10 = vmax.f32 %v2249_v7, 0.0  ;;  %v2251_v45 = vadd.f32 %v17002_v55, %v2225_v42  ;;  %v2068_v52 = vpop.f32.mrb[20].mxu0  ;;  %v2139_v0 = vpop.f32.mrb[20].mxu1 }
 0x296   :  { %v2264_v6 = vmax.f32 %v2250_v9, 0.0  ;;  %v2202_v26 = vmax.f32 %v16712_v11, %v2068_v52  ;;  %v2204_v27 = vmax.f32 %v16714_v12, %v2139_v0  ;;  %v2070_v36 = vpop.f32.mrb[21].mxu0  ;;  %v2141_v39 = vpop.f32.mrb[21].mxu1  ;;  %v18096_v52 = vld [vmem:[#allocation27_spill] sm:$0xff] }
 0x297   :  { %v2265_v41 = vmax.f32 %v2251_v45, 0.0  ;;  %v2203_v43 = vmax.f32 %v16716_v13, %v2070_v36  ;;  %v2205_v44 = vmax.f32 %v16718_v14, %v2141_v39  ;;  %v2072_v46 = vpop.f32.mrb[22].mxu0  ;;  %v2143_v48 = vpop.f32.mrb[22].mxu1  ;;  %v17022_v49 = vpack.c.bf16 %v2263_v10, %v2262_v8  ;;  %v18099_v36 = vld [vmem:[#allocation28_spill] sm:$0xff] }
 0x298   :  { %v17024_v50 = vpack.c.bf16 %v2264_v6, %v2262_v8  ;;  %v2226_v51 = vmax.f32 %v2202_v26, %v2204_v27  ;;  %v2206_v56 = vmax.f32 %v16723_v16, %v2072_v46  ;;  %v2208_v11 = vmax.f32 %v16725_v17, %v2143_v48  ;;  %v2074_v58 = vpop.f32.mrb[23].mxu0  ;;  %v2145_v12 = vpop.f32.mrb[23].mxu1  ;;  %v18097_v27 = vld [vmem:[#allocation30_spill] sm:$0xff] }
 0x299   :  { %v17028_v59 = vpack.c.bf16 %v2265_v41, %v2263_v10  ;;  %v2227_v60 = vmax.f32 %v2203_v43, %v2205_v44  ;;  %v2207_v13 = vmax.f32 %v16727_v18, %v2074_v58  ;;  %v2209_v14 = vmax.f32 %v16729_v19, %v2145_v12  ;;  %v18095_v10 = vld [vmem:[#allocation26_spill] sm:$0xff]  ;;  %v18100_v43 = vld [vmem:[#allocation29_spill] sm:$0xff] }
 0x29a   :  { %v2252_v61 = vadd.f32 %v16997_v47, %v2226_v51  ;;  %v2228_v62 = vmax.f32 %v2206_v56, %v2208_v11  ;;  %12442 = vmatmul.mubr.msk.bf16.vlgmr.msra.gmra.mrb[48].mxu0 %vm224_vm0, %v16631_v54  ;;  %12446 = vmatmul.mubr.msk.bf16.vlgmr.msra.gmra.mrb[48].mxu1 %vm224_vm0, %v16631_v54  ;;  %v18101_v48 = vld [vmem:[#allocation34_spill] sm:$0xff]  ;;  %v18102_v11 = vld [vmem:[#allocation32_spill] sm:$0xff]  ;;  %v18103_v12 = vld [vmem:[#allocation33_spill] sm:$0xff] }
 0x29b   :  { %v2253_v16 = vadd.f32 %v17002_v55, %v2227_v60  ;;  %v2229_v17 = vmax.f32 %v2207_v13, %v2209_v14  ;;  %3836 = vmatpush1.bf16.msra.mxu0 %v16733_v20  ;;  %3907 = vmatpush1.bf16.msra.mxu1 %v16736_v21  ;;  %v18104_v13 = vld [vmem:[#allocation35_spill] sm:$0xff] }
 0x29c   :  { %v2266_v63 = vmax.f32 %v2252_v61, 0.0  ;;  %v2254_v18 = vadd.f32 %v16997_v47, %v2228_v62  ;;  %3735 = vmatprep.mubr.bf16.mxu0 %v18089_v15  ;;  %3806 = vmatprep.mubr.bf16.mxu1 %v18089_v15  ;;  %v18105_v62 = vld [vmem:[#allocation22_spill] sm:$0xff] }
 0x29d   :  { %v2267_v19 = vmax.f32 %v2253_v16, 0.0  ;;  %v2255_v2 = vadd.f32 %v17002_v55, %v2229_v17  ;;  %v2078_v3 = vpop.f32.mrb[24].mxu0  ;;  %v2149_v23 = vpop.f32.mrb[24].mxu1  ;;  %3837 = vmatprep.subr.bf16.mxu0 %v16745_v24  ;;  %3908 = vmatprep.subr.bf16.mxu1 %v16748_v25  ;;  %v18098_v25 = vld [vmem:[#allocation31_spill] sm:$0xff] }
 0x29e   :  { %v17046_v54 = vpack.c.bf16 %v2266_v63, %v2264_v6  ;;  %v2268_v20 = vmax.f32 %v2254_v18, 0.0  ;;  %v2210_v21 = vmax.f32 %v16741_v22, %v2078_v3  ;;  %v2212_v5 = vmax.f32 %v18094_v4, %v2149_v23  ;;  %v2080_v7 = vpop.f32.mrb[25].mxu0  ;;  %v2151_v42 = vpop.f32.mrb[25].mxu1 }
 0x29f   :  { %v17050_v8 = vpack.c.bf16 %v2267_v19, %v2265_v41  ;;  %v2269_v9 = vmax.f32 %v2255_v2, 0.0  ;;  %v2211_v45 = vmax.f32 %v18095_v10, %v2080_v7  ;;  %v2213_v0 = vmax.f32 %v18096_v52, %v2151_v42  ;;  %v2082_v26 = vpop.f32.mrb[26].mxu0  ;;  %v2153_v24 = vpop.f32.mrb[26].mxu1  ;;  %3838 = vmatpush1.bf16.msra.mxu0 %v18097_v27  ;;  %3909 = vmatpush1.bf16.msra.mxu1 %v18098_v25 }
 0x2a0   :  { %v17056_v6 = vpack.c.bf16 %v2268_v20, %v2266_v63  ;;  %v2230_v22 = vmax.f32 %v2210_v21, %v2212_v5  ;;  %v2214_v39 = vmax.f32 %v18099_v36, %v2082_v26  ;;  %v2216_v44 = vmax.f32 %v18100_v43, %v2153_v24  ;;  %v2084_v41 = vpop.f32.mrb[27].mxu0  ;;  %v2155_v46 = vpop.f32.mrb[27].mxu1  ;;  %4005 = vmatprep.subr.bf16.mxu0 %v18101_v48  ;;  %v18106_v26 = vld [vmem:[#allocation36_spill] sm:$0xff]  ;;  %v18107_v43 = vld [vmem:[#allocation23_spill] sm:$0xff] }
 0x2a1   :  { %v17061_v51 = vpack.c.bf16 %v2269_v9, %v2267_v19  ;;  %v2231_v56 = vmax.f32 %v2211_v45, %v2213_v0  ;;  %v2215_v58 = vmax.f32 %v18102_v11, %v2084_v41  ;;  %v2217_v60 = vmax.f32 %v18103_v12, %v2155_v46  ;;  %4076 = vmatprep.subr.bf16.mxu1 %v18104_v13  ;;  %v18109_v48 = vld [vmem:[#allocation24_spill] sm:$0xff]  ;;  %v15602_v11 = vld [vmem:[#allocation4 + $0xe4] ss:$16 sps:$4 sm:$0xff]  }
 0x2a2   :  { %v2256_v14 = vadd.f32 %v16997_v47, %v2230_v22  ;;  %v2232_v61 = vmax.f32 %v2214_v39, %v2216_v44  ;;  %12443 = vmatmul.mubr.msk.bf16.gmra.mrb[52].mxu0 %vm224_vm0, %v18105_v62  ;;  %12447 = vmatmul.mubr.msk.bf16.gmra.mrb[52].mxu1 %vm224_vm0, %v18105_v62  ;;  %v15604_v12 = vld [vmem:[#allocation4 + $0xe0] ss:$16 sps:$4 sm:$0xff]   ;;  %v15606_v13 = vld [vmem:[#allocation4 + $0x104] ss:$16 sps:$4 sm:$0xff]   ;;  %v15611_v62 = vld [vmem:[#allocation4 + $0x12c] ss:$16 sps:$4 sm:$0xff]  }
 0x2a3   :  { %v2257_v16 = vadd.f32 %v17002_v55, %v2231_v56  ;;  %v2233_v17 = vmax.f32 %v2215_v58, %v2217_v60  ;;  %3745 = vmatprep.mubr.bf16.mxu0 %v18089_v15  ;;  %3816 = vmatprep.mubr.bf16.mxu1 %v18089_v15  ;;  %v15601_v56 = vld [vmem:[#allocation4 + $0xc8] ss:$16 sps:$4 sm:$0xff]   ;;  %v15603_v58 = vld [vmem:[#allocation4 + $0xec] ss:$16 sps:$4 sm:$0xff]  }
 0x2a4   :  { %v2270_v63 = vmax.f32 %v2256_v14, 0.0  ;;  %v2258_v18 = vadd.f32 %v16997_v47, %v2232_v61  ;;  %v15605_v60 = vld [vmem:[#allocation4 + $0xe8] ss:$16 sps:$4 sm:$0xff]   ;;  %v15607_v14 = vld [vmem:[#allocation4 + $0x10c] ss:$16 sps:$4 sm:$0xff]  }
 0x2a5   :  { %v2271_v19 = vmax.f32 %v2257_v16, 0.0  ;;  %v2259_v2 = vadd.f32 %v17002_v55, %v2233_v17  ;;  %v2088_v3 = vpop.f32.mrb[28].mxu0  ;;  %v2159_v23 = vpop.f32.mrb[28].mxu1  ;;  %v15610_v61 = vld [vmem:[#allocation4 + $0x124] ss:$16 sps:$4 sm:$0xff]  }
 0x2a6   :  { %v17076_v21 = vpack.c.bf16 %v2270_v63, %v2268_v20  ;;  %v17078_v4 = vmax.f32 %v2258_v18, 0.0  ;;  %v2218_v5 = vmax.f32 %v16782_v53, %v2088_v3  ;;  %v2220_v7 = vmax.f32 %v16784_v1, %v2159_v23  ;;  %v2090_v42 = vpop.f32.mrb[29].mxu0  ;;  %v2161_v10 = vpop.f32.mrb[29].mxu1  ;;  %v15612_v16 = vld [vmem:[#allocation4 + $0x120] ss:$16 sps:$4 sm:$0xff]  }
 0x2a7   :  { %v17082_v45 = vpack.c.bf16 %v2271_v19, %v2269_v9  ;;  %v17084_v52 = vmax.f32 %v2259_v2, 0.0  ;;  %v2219_v0 = vmax.f32 %v16786_v57, %v2090_v42  ;;  %v2221_v24 = vmax.f32 %v18106_v26, %v2161_v10  ;;  %v2092_v27 = vpop.f32.mrb[30].mxu0  ;;  %v2163_v25 = vpop.f32.mrb[30].mxu1  ;;  %v15613_v17 = vld [vmem:[#allocation4 + $0x128] ss:$16 sps:$4 sm:$0xff]   ;;  %v14345_v23 = vld [vmem:[%s17993_s0 + $0x6c] sm:$0xff]  }
 0x2a8   :  { %v2234_v20 = vmax.f32 %v2218_v5, %v2220_v7  ;;  %v2093_v22 = vpop.f32.mrb[31].mxu0  ;;  %v2164_v36 = vpop.f32.mrb[31].mxu1  ;;  %v17089_v39 = vpack.c.bf16 %v17078_v4, %v2270_v63  ;;  %v14356_v63 = vld [vmem:[#allocation8 + $0x224] ss:$16 sps:$4 sm:$0xff]   ;;  %v14359_v18 = vld [vmem:[#allocation8 + $0x22c] ss:$16 sps:$4 sm:$0xff]  }
 0x2a9   :  { %v2235_v53 = vmax.f32 %v2219_v0, %v2221_v24  ;;  %v17092_v1 = vpack.c.bf16 %v17084_v52, %v2271_v19  ;;  %v14357_v19 = vld [vmem:[#allocation8 + $0x228] ss:$16 sps:$4 sm:$0xff]   ;;  %v14362_v2 = vld [vmem:[#allocation8 + $0x244] ss:$16 sps:$4 sm:$0xff]   ;;  %v14365_v3 = vld [vmem:[#allocation8 + $0x24c] ss:$16 sps:$4 sm:$0xff]  }
 0x2aa   :  { %v2260_v9 = vadd.f32 %v16997_v47, %v2234_v20  ;;  %12444 = vmatmul.mubr.msk.bf16.gmra.mrb[56].mxu0 %vm224_vm0, %v18107_v43  ;;  %12448 = vmatmul.mubr.msk.bf16.gmra.mrb[56].mxu1 %vm224_vm0, %v18107_v43  ;;  %v14360_v5 = vld [vmem:[#allocation8 + $0x240] ss:$16 sps:$4 sm:$0xff]   ;;  %v14363_v7 = vld [vmem:[#allocation8 + $0x248] ss:$16 sps:$4 sm:$0xff]   ;;  %v14368_v42 = vld [vmem:[#allocation8 + $0x264] ss:$16 sps:$4 sm:$0xff]  }
 0x2ab   :  { %v2261_v57 = vadd.f32 %v17002_v55, %v2235_v53  ;;  %3755 = vmatprep.mubr.bf16.mxu0 %v18089_v15  ;;  %3826 = vmatprep.mubr.bf16.mxu1 %v18089_v15  ;;  %v15600_v55 = vld [vmem:[#allocation4 + $0xc0] ss:$16 sps:$4 sm:$0xff]   ;;  %v14369_v26 = vld [vmem:[#allocation8 + $0x268] ss:$16 sps:$4 sm:$0xff]   ;;  %v14374_v24 = vld [vmem:[#allocation8 + $0x284] ss:$16 sps:$4 sm:$0xff]  }
 0x2ac   :  { %v17102_v44 = vmax.f32 %v2260_v9, 0.0  ;;  %v14371_v10 = vld [vmem:[#allocation8 + $0x26c] ss:$16 sps:$4 sm:$0xff]   ;;  %v14366_v0 = vld [vmem:[#allocation8 + $0x260] ss:$16 sps:$4 sm:$0xff]  }
 0x2ad   :  { %v17104_v41 = vmax.f32 %v2261_v57, 0.0  ;;  %v14377_v27 = vld [vmem:[#allocation8 + $0x28c] ss:$16 sps:$4 sm:$0xff]   ;;  %v14346_v25 = vld [vmem:[%s17993_s0 + $0x74] sm:$0xff]  }
 0x2ae   :  { %v17108_v46 = vpack.c.bf16 %v17102_v44, %v17078_v4  ;;  %v14372_v20 = vld [vmem:[#allocation8 + $0x280] ss:$16 sps:$4 sm:$0xff]   ;;  %v14375_v22 = vld [vmem:[#allocation8 + $0x288] ss:$16 sps:$4 sm:$0xff]   ;;  %v14380_v36 = vld [vmem:[#allocation8 + $0x2a4] ss:$16 sps:$4 sm:$0xff]  }
 0x2af   :  { %v17112_v47 = vpack.c.bf16 %v17104_v41, %v17084_v52  ;;  %v14383_v53 = vld [vmem:[#allocation8 + $0x2ac] ss:$16 sps:$4 sm:$0xff]   ;;  %v14378_v9 = vld [vmem:[#allocation8 + $0x2a0] ss:$16 sps:$4 sm:$0xff]   ;;  %v14381_v43 = vld [vmem:[#allocation8 + $0x2a8] ss:$16 sps:$4 sm:$0xff]  }
 0x2b0   :  { %18108 = vst [vmem:[#allocation25_spill] sm:$0xff] %v17108_v46  ;;  %v14386_v57 = vld [vmem:[#allocation8 + $0x2c4] ss:$16 sps:$4 sm:$0xff]  }
 0x2b2   :  { %12445 = vmatmul.mubr.msk.bf16.gmra.mrb[60].mxu0 %vm224_vm0, %v18109_v48  ;;  %12449 = vmatmul.mubr.msk.bf16.gmra.mrb[60].mxu1 %vm224_vm0, %v18109_v48  ;;  %v14389_v48 = vld [vmem:[#allocation8 + $0x2cc] ss:$16 sps:$4 sm:$0xff]  }
 0x2b3   :  { %3867 = vmatprep.mubr.bf16.mxu0 %v18089_v15  ;;  %3938 = vmatprep.mubr.bf16.mxu1 %v18089_v15 }
 0x2ba   :  { %12450 = vmatmul.mubr.msk.bf16.vlgmr.msra.gmra.mrb[48].mxu0 %vm224_vm0, %v16859_v28  ;;  %12454 = vmatmul.mubr.msk.bf16.vlgmr.msra.gmra.mrb[48].mxu1 %vm224_vm0, %v16859_v28  ;;  %v15608_v28 = vld [vmem:[#allocation4 + $0x100] ss:$16 sps:$4 sm:$0xff]  }
 0x2bb   :  { %4006 = vmatpush1.bf16.msra.mxu0 %v15600_v55  ;;  %4077 = vmatpush1.bf16.msra.mxu1 %v15601_v56  ;;  %v14347_v55 = vld [vmem:[%s17993_s0 + $0x7c] ss:$0 sps:$4 sm:$0xff]   ;;  %v14384_v56 = vld [vmem:[#allocation8 + $0x2c0] ss:$16 sps:$4 sm:$0xff]  }
 0x2bc   :  { %3877 = vmatprep.mubr.bf16.mxu0 %v18089_v15  ;;  %3948 = vmatprep.mubr.bf16.mxu1 %v18089_v15 }
 0x2bd   :  { %4007 = vmatprep.subr.bf16.mxu0 %v15602_v11  ;;  %4078 = vmatprep.subr.bf16.mxu1 %v15603_v58  ;;  %v14387_v11 = vld [vmem:[#allocation8 + $0x2c8] ss:$16 sps:$4 sm:$0xff]   ;;  %v14392_v58 = vld [vmem:[#allocation8 + $0x2e4] ss:$16 sps:$4 sm:$0xff]  }
 0x2bf   :  { %4008 = vmatpush1.bf16.msra.mxu0 %v15604_v12  ;;  %4079 = vmatpush1.bf16.msra.mxu1 %v15605_v60  ;;  %v14395_v12 = vld [vmem:[#allocation8 + $0x2ec] ss:$16 sps:$4 sm:$0xff]   ;;  %v14390_v60 = vld [vmem:[#allocation8 + $0x2e0] ss:$16 sps:$4 sm:$0xff]  }
 0x2c0   :  { %4213 = vmatprep.subr.bf16.mxu0 %v15606_v13  ;;  %4284 = vmatprep.subr.bf16.mxu1 %v15607_v14  ;;  %v14393_v13 = vld [vmem:[#allocation8 + $0x2e8] ss:$16 sps:$4 sm:$0xff]   ;;  %v14398_v14 = vld [vmem:[#allocation8 + $0x304] ss:$16 sps:$4 sm:$0xff]  }
 0x2c2   :  { %12451 = vmatmul.mubr.msk.bf16.gmra.mrb[52].mxu0 %vm224_vm0, %v16874_v29  ;;  %12455 = vmatmul.mubr.msk.bf16.gmra.mrb[52].mxu1 %vm224_vm0, %v16874_v29  ;;  %v15609_v29 = vld [vmem:[#allocation4 + $0x108] ss:$16 sps:$4 sm:$0xff]  }
 0x2c3   :  { %3887 = vmatprep.mubr.bf16.mxu0 %v18089_v15  ;;  %3958 = vmatprep.mubr.bf16.mxu1 %v18089_v15 }
 0x2ca   :  { %12452 = vmatmul.mubr.msk.bf16.gmra.mrb[56].mxu0 %vm224_vm0, %v16889_v30  ;;  %12456 = vmatmul.mubr.msk.bf16.gmra.mrb[56].mxu1 %vm224_vm0, %v16889_v30  ;;  %v14350_v30 = vld [vmem:[#allocation8 + $0x204] ss:$16 sps:$4 sm:$0xff]  }
 0x2cb   :  { %3897 = vmatprep.mubr.bf16.mxu0 %v18089_v15  ;;  %3968 = vmatprep.mubr.bf16.mxu1 %v18089_v15 }
 0x2d2   :  { %12453 = vmatmul.mubr.msk.bf16.gmra.mrb[60].mxu0 %vm224_vm0, %v16900_v31  ;;  %12457 = vmatmul.mubr.msk.bf16.gmra.mrb[60].mxu1 %vm224_vm0, %v16900_v31  ;;  %v14353_v31 = vld [vmem:[#allocation8 + $0x20c] ss:$16 sps:$4 sm:$0xff]  }
 0x2d3   :  { %4037 = vmatprep.mubr.bf16.mxu0 %v18089_v15  ;;  %4108 = vmatprep.mubr.bf16.mxu1 %v18089_v15 }
 0x2da   :  { %12458 = vmatmul.mubr.msk.bf16.vlgmr.msra.gmra.mrb[48].mxu0 %vm224_vm0, %v16911_v32  ;;  %12462 = vmatmul.mubr.msk.bf16.vlgmr.msra.gmra.mrb[48].mxu1 %vm224_vm0, %v16911_v32  ;;  %v14344_v32 = vld [vmem:[%s17993_s0 + $0x64] sm:$0xff]  }
 0x2db   :  { %4214 = vmatpush1.bf16.msra.mxu0 %v15608_v28  ;;  %4285 = vmatpush1.bf16.msra.mxu1 %v15609_v29  ;;  %v14401_v28 = vld [vmem:[#allocation8 + $0x30c] ss:$16 sps:$4 sm:$0xff]   ;;  %v14396_v29 = vld [vmem:[#allocation8 + $0x300] ss:$16 sps:$4 sm:$0xff]  }
 0x2dc   :  { %4047 = vmatprep.mubr.bf16.mxu0 %v18089_v15  ;;  %4118 = vmatprep.mubr.bf16.mxu1 %v18089_v15 }
 0x2dd   :  { %4215 = vmatprep.subr.bf16.mxu0 %v15610_v61  ;;  %4286 = vmatprep.subr.bf16.mxu1 %v15611_v62  ;;  %v14407_v61 = vld [vmem:[#allocation8 + $0x32c] ss:$16 sps:$4 sm:$0xff]   ;;  %v14402_v62 = vld [vmem:[#allocation8 + $0x320] ss:$16 sps:$4 sm:$0xff]  }
 0x2df   :  { %4216 = vmatpush1.bf16.msra.mxu0 %v15612_v16  ;;  %4287 = vmatpush1.bf16.msra.mxu1 %v15613_v17  ;;  %v14405_v16 = vld [vmem:[#allocation8 + $0x328] ss:$16 sps:$4 sm:$0xff]   ;;  %v14410_v17 = vld [vmem:[#allocation8 + $0x344] ss:$16 sps:$4 sm:$0xff]  }
 0x2e0   :  { %5020 = vmatprep.subr.bf16.mxu0 %v14350_v30  ;;  %5091 = vmatprep.subr.bf16.mxu1 %v14353_v31  ;;  %v14399_v30 = vld [vmem:[#allocation8 + $0x308] ss:$16 sps:$4 sm:$0xff]   ;;  %v14404_v31 = vld [vmem:[#allocation8 + $0x324] ss:$16 sps:$4 sm:$0xff]  }
 0x2e2   :  { %12459 = vmatmul.mubr.msk.bf16.gmra.mrb[52].mxu0 %vm224_vm0, %v16926_v33  ;;  %12463 = vmatmul.mubr.msk.bf16.gmra.mrb[52].mxu1 %vm224_vm0, %v16926_v33  ;;  %v14348_v33 = vld [vmem:[#allocation8 + $0x200] ss:$16 sps:$4 sm:$0xff]  }
 0x2e3   :  { %4057 = vmatprep.mubr.bf16.mxu0 %v18089_v15  ;;  %4128 = vmatprep.mubr.bf16.mxu1 %v18089_v15 }
 0x2ea   :  { %12460 = vmatmul.mubr.msk.bf16.gmra.mrb[56].mxu0 %vm224_vm0, %v16941_v34  ;;  %12464 = vmatmul.mubr.msk.bf16.gmra.mrb[56].mxu1 %vm224_vm0, %v16941_v34  ;;  %v14351_v34 = vld [vmem:[#allocation8 + $0x208] ss:$16 sps:$4 sm:$0xff]  }
 0x2eb   :  { %4067 = vmatprep.mubr.bf16.mxu0 %v18089_v15  ;;  %4138 = vmatprep.mubr.bf16.mxu1 %v18089_v15 }
 0x2f2   :  { %12461 = vmatmul.mubr.msk.bf16.gmra.mrb[60].mxu0 %vm224_vm0, %v16952_v35  ;;  %12465 = vmatmul.mubr.msk.bf16.gmra.mrb[60].mxu1 %vm224_vm0, %v16952_v35  ;;  %v14354_v35 = vld [vmem:[#allocation8 + $0x220] ss:$16 sps:$4 sm:$0xff]  }
 0x2f3   :  { %4245 = vmatprep.mubr.bf16.mxu0 %v18089_v15  ;;  %4316 = vmatprep.mubr.bf16.mxu1 %v18089_v15 }
 0x2fa   :  { %12477 = vmatmul.mubr.msk.bf16.vlgmr.msra.gmra.mrb[48].mxu0 %vm224_vm0, %v14344_v32  ;;  %12481 = vmatmul.mubr.msk.bf16.vlgmr.msra.gmra.mrb[48].mxu1 %vm224_vm0, %v14344_v32  ;;  %v14413_v32 = vld [vmem:[#allocation8 + $0x34c] ss:$16 sps:$4 sm:$0xff]  }
 0x2fb   :  { %4255 = vmatprep.mubr.bf16.mxu0 %v18089_v15  ;;  %4326 = vmatprep.mubr.bf16.mxu1 %v18089_v15 }
 0x2fc   :  { %5021 = vmatpush1.bf16.msra.mxu0 %v14348_v33  ;;  %5092 = vmatpush1.bf16.msra.mxu1 %v14351_v34  ;;  %v14408_v33 = vld [vmem:[#allocation8 + $0x340] ss:$16 sps:$4 sm:$0xff]   ;;  %v14411_v34 = vld [vmem:[#allocation8 + $0x348] ss:$16 sps:$4 sm:$0xff]  }
 0x2fd   :  { %5022 = vmatprep.subr.bf16.mxu0 %v14356_v63  ;;  %5093 = vmatprep.subr.bf16.mxu1 %v14359_v18  ;;  %v14416_v63 = vld [vmem:[#allocation8 + $0x364] ss:$16 sps:$4 sm:$0xff]   ;;  %v14419_v18 = vld [vmem:[#allocation8 + $0x36c] ss:$16 sps:$4 sm:$0xff]  }
 0x300   :  { %5023 = vmatpush1.bf16.msra.mxu0 %v14354_v35  ;;  %5094 = vmatpush1.bf16.msra.mxu1 %v14357_v19  ;;  %v14414_v35 = vld [vmem:[#allocation8 + $0x360] ss:$16 sps:$4 sm:$0xff]   ;;  %v14417_v19 = vld [vmem:[#allocation8 + $0x368] ss:$16 sps:$4 sm:$0xff]  }
 0x301   :  { %5024 = vmatprep.subr.bf16.mxu0 %v14362_v2  ;;  %5095 = vmatprep.subr.bf16.mxu1 %v14365_v3  ;;  %v14422_v2 = vld [vmem:[#allocation8 + $0x384] ss:$16 sps:$4 sm:$0xff]   ;;  %v14425_v3 = vld [vmem:[#allocation8 + $0x38c] ss:$16 sps:$4 sm:$0xff]  }
 0x302   :  { %12478 = vmatmul.mubr.msk.bf16.gmra.mrb[52].mxu0 %vm224_vm0, %v14345_v23  ;;  %12482 = vmatmul.mubr.msk.bf16.gmra.mrb[52].mxu1 %vm224_vm0, %v14345_v23  ;;  %v14420_v23 = vld [vmem:[#allocation8 + $0x380] ss:$16 sps:$4 sm:$0xff]  }
 0x303   :  { %4265 = vmatprep.mubr.bf16.mxu0 %v18089_v15  ;;  %4336 = vmatprep.mubr.bf16.mxu1 %v18089_v15 }
 0x304   :  { %5025 = vmatpush1.bf16.msra.mxu0 %v14360_v5  ;;  %5096 = vmatpush1.bf16.msra.mxu1 %v14363_v7  ;;  %v14423_v5 = vld [vmem:[#allocation8 + $0x388] ss:$16 sps:$4 sm:$0xff]  }
 0x305   :  { %5026 = vmatprep.subr.bf16.mxu0 %v14368_v42  ;;  %5097 = vmatprep.subr.bf16.mxu1 %v14371_v10 }
 0x308   :  { %5027 = vmatpush1.bf16.msra.mxu0 %v14366_v0  ;;  %5098 = vmatpush1.bf16.msra.mxu1 %v14369_v26 }
 0x309   :  { %5028 = vmatprep.subr.bf16.mxu0 %v14374_v24  ;;  %5099 = vmatprep.subr.bf16.mxu1 %v14377_v27 }
 0x30a   :  { %12479 = vmatmul.mubr.msk.bf16.gmra.mrb[56].mxu0 %vm224_vm0, %v14346_v25  ;;  %12483 = vmatmul.mubr.msk.bf16.gmra.mrb[56].mxu1 %vm224_vm0, %v14346_v25 }
 0x30b   :  { %4275 = vmatprep.mubr.bf16.mxu0 %v18089_v15  ;;  %4346 = vmatprep.mubr.bf16.mxu1 %v18089_v15 }
 0x30c   :  { %5029 = vmatpush1.bf16.msra.mxu0 %v14372_v20  ;;  %5100 = vmatpush1.bf16.msra.mxu1 %v14375_v22 }
 0x30d   :  { %5030 = vmatprep.subr.bf16.mxu0 %v14380_v36  ;;  %5101 = vmatprep.subr.bf16.mxu1 %v14383_v53 }
 0x310   :  { %5031 = vmatpush1.bf16.msra.mxu0 %v14378_v9  ;;  %5102 = vmatpush1.bf16.msra.mxu1 %v14381_v43 }
 0x311   :  { %5032 = vmatprep.subr.bf16.mxu0 %v14386_v57  ;;  %5103 = vmatprep.subr.bf16.mxu1 %v14389_v48 }
 0x312   :  { %12480 = vmatmul.mubr.msk.bf16.gmra.mrb[60].mxu0 %vm224_vm0, %v14347_v55  ;;  %12484 = vmatmul.mubr.msk.bf16.gmra.mrb[60].mxu1 %vm224_vm0, %v14347_v55 }
 0x314   :  { %5033 = vmatpush1.bf16.msra.mxu0 %v14384_v56  ;;  %5104 = vmatpush1.bf16.msra.mxu1 %v14387_v11 }
 0x315   :  { %5034 = vmatprep.subr.bf16.mxu0 %v14392_v58  ;;  %5105 = vmatprep.subr.bf16.mxu1 %v14395_v12 }
 0x318   :  { %5035 = vmatpush1.bf16.msra.mxu0 %v14390_v60  ;;  %5106 = vmatpush1.bf16.msra.mxu1 %v14393_v13 }
 0x319   :  { %5036 = vmatprep.subr.bf16.mxu0 %v14398_v14  ;;  %5107 = vmatprep.subr.bf16.mxu1 %v14401_v28 }
 0x31c   :  { %5037 = vmatpush1.bf16.msra.mxu0 %v14396_v29  ;;  %5108 = vmatpush1.bf16.msra.mxu1 %v14399_v30 }
 0x31d   :  { %5038 = vmatprep.subr.bf16.mxu0 %v14404_v31  ;;  %5109 = vmatprep.subr.bf16.mxu1 %v14407_v61 }
 0x320   :  { %5039 = vmatpush1.bf16.msra.mxu0 %v14402_v62  ;;  %5110 = vmatpush1.bf16.msra.mxu1 %v14405_v16 }
 0x321   :  { %5040 = vmatprep.subr.bf16.mxu0 %v14410_v17  ;;  %5111 = vmatprep.subr.bf16.mxu1 %v14413_v32  ;;  %v14428_v32 = vld [vmem:[#allocation8 + $0x3a4] ss:$16 sps:$4 sm:$0xff]  }
 0x324   :  { %5041 = vmatpush1.bf16.msra.mxu0 %v14408_v33  ;;  %5112 = vmatpush1.bf16.msra.mxu1 %v14411_v34  ;;  %v14431_v33 = vld [vmem:[#allocation8 + $0x3ac] ss:$16 sps:$4 sm:$0xff]   ;;  %v14426_v34 = vld [vmem:[#allocation8 + $0x3a0] ss:$16 sps:$4 sm:$0xff]  }
 0x325   :  { %5042 = vmatprep.subr.bf16.mxu0 %v14416_v63  ;;  %5113 = vmatprep.subr.bf16.mxu1 %v14419_v18  ;;  %v14429_v63 = vld [vmem:[#allocation8 + $0x3a8] ss:$16 sps:$4 sm:$0xff]   ;;  %v14434_v18 = vld [vmem:[#allocation8 + $0x3c4] ss:$16 sps:$4 sm:$0xff]  }
 0x328   :  { %5043 = vmatpush1.bf16.msra.mxu0 %v14414_v35  ;;  %5114 = vmatpush1.bf16.msra.mxu1 %v14417_v19  ;;  %v14437_v35 = vld [vmem:[#allocation8 + $0x3cc] ss:$16 sps:$4 sm:$0xff]   ;;  %v14432_v19 = vld [vmem:[#allocation8 + $0x3c0] ss:$16 sps:$4 sm:$0xff]  }
 0x329   :  { %5044 = vmatprep.subr.bf16.mxu0 %v14422_v2  ;;  %5115 = vmatprep.subr.bf16.mxu1 %v14425_v3  ;;  %v14435_v2 = vld [vmem:[#allocation8 + $0x3c8] ss:$16 sps:$4 sm:$0xff]   ;;  %v14440_v3 = vld [vmem:[#allocation8 + $0x3e4] ss:$16 sps:$4 sm:$0xff]  }
 0x32c   :  { %5045 = vmatpush1.bf16.msra.mxu0 %v14420_v23  ;;  %5116 = vmatpush1.bf16.msra.mxu1 %v14423_v5  ;;  %v14443_v23 = vld [vmem:[#allocation8 + $0x3ec] ss:$16 sps:$4 sm:$0xff]   ;;  %v14438_v5 = vld [vmem:[#allocation8 + $0x3e0] ss:$16 sps:$4 sm:$0xff]  }
 0x32d   :  { %v17194_v7 = vpop.f32.mrb[32].mxu0  ;;  %v17196_v42 = vpop.f32.mrb[32].mxu1  ;;  %5046 = vmatprep.subr.bf16.mxu0 %v14428_v32  ;;  %5117 = vmatprep.subr.bf16.mxu1 %v14431_v33 }
 0x32e   :  { %v17198_v10 = vpop.f32.mrb[33].mxu0  ;;  %v17200_v0 = vpop.f32.mrb[33].mxu1 }
 0x32f   :  { %v17202_v26 = vpop.f32.mrb[34].mxu0  ;;  %v17204_v24 = vpop.f32.mrb[34].mxu1 }
 0x330   :  { %v17206_v27 = vpop.f32.mrb[35].mxu0  ;;  %v17208_v25 = vpop.f32.mrb[35].mxu1  ;;  %5047 = vmatpush1.bf16.msra.mxu0 %v14426_v34  ;;  %5118 = vmatpush1.bf16.msra.mxu1 %v14429_v63 }
 0x331   :  { %5048 = vmatprep.subr.bf16.mxu0 %v14434_v18  ;;  %5119 = vmatprep.subr.bf16.mxu1 %v14437_v35 }
 0x334   :  { %5049 = vmatpush1.bf16.msra.mxu0 %v14432_v19  ;;  %5120 = vmatpush1.bf16.msra.mxu1 %v14435_v2 }
 0x335   :  { %v17210_v20 = vpop.f32.mrb[36].mxu0  ;;  %v17212_v22 = vpop.f32.mrb[36].mxu1  ;;  %5050 = vmatprep.subr.bf16.mxu0 %v14440_v3  ;;  %5121 = vmatprep.subr.bf16.mxu1 %v14443_v23 }
 0x336   :  { %v17214_v36 = vpop.f32.mrb[37].mxu0  ;;  %v17216_v53 = vpop.f32.mrb[37].mxu1 }
 0x337   :  { %v17218_v9 = vpop.f32.mrb[38].mxu0  ;;  %v17220_v43 = vpop.f32.mrb[38].mxu1 }
 0x338   :  { %v17222_v57 = vpop.f32.mrb[39].mxu0  ;;  %v17224_v48 = vpop.f32.mrb[39].mxu1  ;;  %5051 = vmatpush1.bf16.msra.mxu0 %v14438_v5 }
 0x33d   :  { %v17226_v55 = vpop.f32.mrb[40].mxu0  ;;  %v17228_v56 = vpop.f32.mrb[40].mxu1 }
 0x33e   :  { %v17230_v11 = vpop.f32.mrb[41].mxu0  ;;  %v17232_v58 = vpop.f32.mrb[41].mxu1 }
 0x33f   :  { %v17234_v12 = vpop.f32.mrb[42].mxu0  ;;  %v17236_v60 = vpop.f32.mrb[42].mxu1 }
 0x340   :  { %v17238_v13 = vpop.f32.mrb[43].mxu0  ;;  %v17240_v14 = vpop.f32.mrb[43].mxu1 }
 0x345   :  { %v17242_v28 = vpop.f32.mrb[44].mxu0  ;;  %v17244_v29 = vpop.f32.mrb[44].mxu1 }
 0x346   :  { %v17246_v30 = vpop.f32.mrb[45].mxu0  ;;  %v17248_v31 = vpop.f32.mrb[45].mxu1 }
 0x347   :  { %v3449_v61 = vpop.f32.mrb[46].mxu0  ;;  %v3520_v62 = vpop.f32.mrb[46].mxu1 }
 0x348   :  { %v3450_v16 = vpop.f32.mrb[47].mxu0  ;;  %v3521_v17 = vpop.f32.mrb[47].mxu1  ;;  %v14441_v61 = vld [vmem:[#allocation8 + $0x3e8] ss:$16 sps:$4 sm:$0xff]   ;;  %v14446_v62 = vld [vmem:[#allocation8 + $0x4] ss:$16 sps:$4 sm:$0xff]  }
 0x349   :  { %5122 = vmatpush1.bf16.msra.mxu1 %v14441_v61  ;;  %v14449_v16 = vld [vmem:[#allocation8 + $0xc] ss:$16 sps:$4 sm:$0xff]   ;;  %5519 = vmatprep.subr.bf16.mxu0 %v14446_v62 }
 0x34a   :  { %5590 = vmatprep.subr.bf16.mxu1 %v14449_v16  ;;  %v4425_v17 = vld [vmem:[#allocation6] sm:$0x3] }
 0x34b   :  { %v17253_v18 = vrot.slane %v4425_v17, %v16987_v38  ;;  %v17258_v23 = vrot.slane %v4425_v17, %v16990_v40  ;;  %v17495_v40 = vld [vmem:[#allocation8 + $0x8ac] ss:$16 sps:$4 sm:$0xff]  }
 0x34c   :  { %18117 = vst [vmem:[#allocation32_spill] sm:$0xff] %v17495_v40 }
 0x3cd   :  { %v4247_v32 = vpop.f32.mrb[48].mxu0  ;;  %v4318_v33 = vpop.f32.mrb[48].mxu1 }
 0x3ce   :  { %v4383_v34 = vmax.f32 %v17194_v7, %v4247_v32  ;;  %v4385_v63 = vmax.f32 %v17196_v42, %v4318_v33  ;;  %v4249_v35 = vpop.f32.mrb[49].mxu0  ;;  %v4320_v19 = vpop.f32.mrb[49].mxu1 }
 0x3cf   :  { %v4384_v2 = vmax.f32 %v17198_v10, %v4249_v35  ;;  %v4386_v3 = vmax.f32 %v17200_v0, %v4320_v19  ;;  %v4251_v5 = vpop.f32.mrb[50].mxu0  ;;  %v4322_v61 = vpop.f32.mrb[50].mxu1 }
 0x3d0   :  { %v4411_v62 = vmax.f32 %v4383_v34, %v4385_v63  ;;  %v4387_v16 = vmax.f32 %v17202_v26, %v4251_v5  ;;  %v4389_v7 = vmax.f32 %v17204_v24, %v4322_v61  ;;  %v4253_v42 = vpop.f32.mrb[51].mxu0  ;;  %v4324_v32 = vpop.f32.mrb[51].mxu1 }
 0x3d1   :  { %v4412_v33 = vmax.f32 %v4384_v2, %v4386_v3  ;;  %v4388_v37 = vmax.f32 %v17206_v27, %v4253_v42  ;;  %v4390_v38 = vmax.f32 %v17208_v25, %v4324_v32 }
 0x3d2   :  { %v4437_v10 = vadd.f32 %v17253_v18, %v4411_v62  ;;  %v4413_v0 = vmax.f32 %v4387_v16, %v4389_v7 }
 0x3d3   :  { %v4438_v17 = vadd.f32 %v17258_v23, %v4412_v33  ;;  %v4414_v35 = vmax.f32 %v4388_v37, %v4390_v38 }
 0x3d4   :  { %v4451_v19 = vmax.f32 %v4437_v10, 0.0  ;;  %v4439_v34 = vadd.f32 %v17253_v18, %v4413_v0 }
 0x3d5   :  { %v4452_v63 = vmax.f32 %v4438_v17, 0.0  ;;  %v4440_v26 = vadd.f32 %v17258_v23, %v4414_v35  ;;  %v4257_v24 = vpop.f32.mrb[52].mxu0  ;;  %v4328_v5 = vpop.f32.mrb[52].mxu1 }
 0x3d6   :  { %v4453_v61 = vmax.f32 %v4439_v34, 0.0  ;;  %v4391_v2 = vmax.f32 %v17210_v20, %v4257_v24  ;;  %v4393_v27 = vmax.f32 %v17212_v22, %v4328_v5  ;;  %v4259_v25 = vpop.f32.mrb[53].mxu0  ;;  %v4330_v3 = vpop.f32.mrb[53].mxu1 }
 0x3d7   :  { %v13362_v62 = vpack.c.bf16 %v4452_v63, %v4451_v19  ;;  %v4454_v16 = vmax.f32 %v4440_v26, 0.0  ;;  %v4392_v7 = vmax.f32 %v17214_v36, %v4259_v25  ;;  %v4394_v37 = vmax.f32 %v17216_v53, %v4330_v3  ;;  %v4261_v38 = vpop.f32.mrb[54].mxu0  ;;  %v4332_v42 = vpop.f32.mrb[54].mxu1 }
 0x3d8   :  { %v17272_v32 = vpack.c.bf16 %v4453_v61, %v4451_v19  ;;  %v4415_v33 = vmax.f32 %v4391_v2, %v4393_v27  ;;  %v4395_v10 = vmax.f32 %v17218_v9, %v4261_v38  ;;  %v4397_v0 = vmax.f32 %v17220_v43, %v4332_v42  ;;  %v4263_v20 = vpop.f32.mrb[55].mxu0  ;;  %v4334_v17 = vpop.f32.mrb[55].mxu1  ;;  %v14444_v9 = vld [vmem:[#allocation8] ss:$16 sps:$4 sm:$0xff]   ;;  %v14447_v43 = vld [vmem:[#allocation8 + $0x8] ss:$16 sps:$4 sm:$0xff]  }
 0x3d9   :  { %v17277_v22 = vcombine.low %v18089_v15, %v13362_v62  ;;  %v17279_v35 = vpack.c.bf16 %v4454_v16, %v4452_v63  ;;  %v4416_v34 = vmax.f32 %v4392_v7, %v4394_v37  ;;  %v4396_v36 = vmax.f32 %v17222_v57, %v4263_v20  ;;  %v14452_v2 = vld [vmem:[#allocation8 + $0x24] ss:$16 sps:$4 sm:$0xff]   ;;  %v14455_v57 = vld [vmem:[#allocation8 + $0x2c] ss:$16 sps:$4 sm:$0xff]   ;;  %v14450_v7 = vld [vmem:[#allocation8 + $0x20] ss:$16 sps:$4 sm:$0xff]  }
 0x3da   :  { %v4441_v53 = vadd.f32 %v17253_v18, %v4415_v33  ;;  %v4417_v26 = vmax.f32 %v4395_v10, %v4397_v0  ;;  %v4398_v19 = vmax.f32 %v17224_v48, %v4334_v17  ;;  %v17285_v24 = vcombine.high %v18089_v15, %v13362_v62  ;;  %v14453_v20 = vld [vmem:[#allocation8 + $0x28] ss:$16 sps:$4 sm:$0xff]  }
 0x3db   :  { %v4442_v5 = vadd.f32 %v17258_v23, %v4416_v34 }
 0x3dc   :  { %v4455_v27 = vmax.f32 %v4441_v53, 0.0  ;;  %v17289_v63 = vadd.f32 %v17253_v18, %v4417_v26  ;;  %v4418_v25 = vmax.f32 %v4396_v36, %v4398_v19  ;;  %5052 = vmatprep.mubr.bf16.mxu0 %v17285_v24  ;;  %5123 = vmatprep.mubr.bf16.mxu1 %v17285_v24  ;;  %v14458_v19 = vld [vmem:[#allocation8 + $0x44] ss:$16 sps:$4 sm:$0xff]  }
 0x3dd   :  { %v4456_v3 = vmax.f32 %v4442_v5, 0.0  ;;  %5053 = vmatmul.mubr.bf16.vlgmr.msra.gmra.mrb[64].mxu0 %v17277_v22  ;;  %5124 = vmatmul.mubr.bf16.vlgmr.msra.gmra.mrb[64].mxu1 %v17277_v22  ;;  %v4267_v48 = vpop.f32.mrb[56].mxu0  ;;  %v4338_v62 = vpop.f32.mrb[56].mxu1 }
 0x3de   :  { %v17295_v37 = vpack.c.bf16 %v4455_v27, %v4453_v61  ;;  %v4457_v38 = vmax.f32 %v17289_v63, 0.0  ;;  %v4444_v42 = vadd.f32 %v17258_v23, %v4418_v25  ;;  %5520 = vmatpush1.bf16.msra.mxu0 %v14444_v9  ;;  %5591 = vmatpush1.bf16.msra.mxu1 %v14447_v43  ;;  %v4399_v33 = vmax.f32 %v17226_v55, %v4267_v48  ;;  %v4269_v10 = vpop.f32.mrb[57].mxu0  ;;  %v4340_v0 = vpop.f32.mrb[57].mxu1  ;;  %v14461_v25 = vld [vmem:[#allocation8 + $0x4c] ss:$16 sps:$4 sm:$0xff]  }
 0x3df   :  { %v17300_v17 = vpack.c.bf16 %v4456_v3, %v4454_v16  ;;  %v4401_v34 = vmax.f32 %v17228_v56, %v4338_v62  ;;  %v4400_v36 = vmax.f32 %v17230_v11, %v4269_v10  ;;  %v4402_v61 = vmax.f32 %v17232_v58, %v4340_v0  ;;  %v4271_v53 = vpop.f32.mrb[58].mxu0  ;;  %v4342_v26 = vpop.f32.mrb[58].mxu1  ;;  %5521 = vmatprep.subr.bf16.mxu0 %v14452_v2  ;;  %v14459_v62 = vld [vmem:[#allocation8 + $0x48] ss:$16 sps:$4 sm:$0xff]  }
 0x3e0   :  { %v17305_v5 = vpack.c.bf16 %v4457_v38, %v4455_v27  ;;  %v4458_v9 = vmax.f32 %v4444_v42, 0.0  ;;  %v4403_v55 = vmax.f32 %v17234_v12, %v4271_v53  ;;  %v4405_v43 = vmax.f32 %v17236_v60, %v4342_v26  ;;  %5592 = vmatprep.subr.bf16.mxu1 %v14455_v57  ;;  %v4273_v16 = vpop.f32.mrb[59].mxu0  ;;  %v4344_v63 = vpop.f32.mrb[59].mxu1  ;;  %v14456_v12 = vld [vmem:[#allocation8 + $0x40] ss:$16 sps:$4 sm:$0xff]  }
 0x3e1   :  { %v4419_v56 = vmax.f32 %v4399_v33, %v4401_v34  ;;  %v4420_v48 = vmax.f32 %v4400_v36, %v4402_v61  ;;  %v4404_v11 = vmax.f32 %v17238_v13, %v4273_v16  ;;  %v4406_v58 = vmax.f32 %v17240_v14, %v4344_v63  ;;  %5062 = vmatprep.mubr.bf16.mxu0 %v17300_v17  ;;  %v14464_v13 = vld [vmem:[#allocation8 + $0x64] ss:$16 sps:$4 sm:$0xff]   ;;  %v14467_v33 = vld [vmem:[#allocation8 + $0x6c] ss:$16 sps:$4 sm:$0xff]   ;;  %v14465_v36 = vld [vmem:[#allocation8 + $0x68] ss:$16 sps:$4 sm:$0xff]  }
 0x3e2   :  { %v17312_v2 = vpack.c.bf16 %v4458_v9, %v4456_v3  ;;  %v4421_v27 = vmax.f32 %v4403_v55, %v4405_v43  ;;  %5522 = vmatpush1.bf16.msra.mxu0 %v14450_v7  ;;  %5593 = vmatpush1.bf16.msra.mxu1 %v14453_v20  ;;  %v14462_v3 = vld [vmem:[#allocation8 + $0x60] ss:$16 sps:$4 sm:$0xff]   ;;  %v14470_v43 = vld [vmem:[#allocation8 + $0x84] ss:$16 sps:$4 sm:$0xff]  }
 0x3e3   :  { %v4445_v60 = vadd.f32 %v17253_v18, %v4419_v56  ;;  %v4446_v57 = vadd.f32 %v17258_v23, %v4420_v48  ;;  %v4422_v42 = vmax.f32 %v4404_v11, %v4406_v58  ;;  %5133 = vmatprep.mubr.bf16.mxu1 %v17300_v17  ;;  %5523 = vmatprep.subr.bf16.mxu0 %v14458_v19  ;;  %v14473_v58 = vld [vmem:[#allocation8 + $0x8c] ss:$16 sps:$4 sm:$0xff]  }
 0x3e4   :  { %v4447_v14 = vadd.f32 %v17253_v18, %v4421_v27  ;;  %5594 = vmatprep.subr.bf16.mxu1 %v14461_v25 }
 0x3e5   :  { %v4459_v10 = vmax.f32 %v4445_v60, 0.0  ;;  %v4460_v0 = vmax.f32 %v4446_v57, 0.0  ;;  %v4448_v7 = vadd.f32 %v17258_v23, %v4422_v42  ;;  %5063 = vmatmul.mubr.bf16.gmra.mrb[68].mxu0 %v17295_v37  ;;  %5134 = vmatmul.mubr.bf16.gmra.mrb[68].mxu1 %v17295_v37  ;;  %v4277_v20 = vpop.f32.mrb[60].mxu0  ;;  %v4348_v34 = vpop.f32.mrb[60].mxu1  ;;  %v14468_v60 = vld [vmem:[#allocation8 + $0x80] ss:$16 sps:$4 sm:$0xff]  }
 0x3e6   :  { %v4461_v61 = vmax.f32 %v4447_v14, 0.0  ;;  %5524 = vmatpush1.bf16.msra.mxu0 %v14456_v12  ;;  %5595 = vmatpush1.bf16.msra.mxu1 %v14459_v62  ;;  %v4407_v53 = vmax.f32 %v17242_v28, %v4277_v20  ;;  %v4409_v26 = vmax.f32 %v17244_v29, %v4348_v34  ;;  %v4279_v19 = vpop.f32.mrb[61].mxu0  ;;  %v4350_v55 = vpop.f32.mrb[61].mxu1  ;;  %v14471_v57 = vld [vmem:[#allocation8 + $0x88] ss:$16 sps:$4 sm:$0xff]  }
 0x3e7   :  { %v17323_v16 = vpack.c.bf16 %v4459_v10, %v4457_v38  ;;  %v17325_v63 = vpack.c.bf16 %v4460_v0, %v4458_v9  ;;  %v4462_v25 = vmax.f32 %v4448_v7, 0.0  ;;  %v4408_v56 = vmax.f32 %v17246_v30, %v4279_v19  ;;  %v4281_v48 = vpop.f32.mrb[62].mxu0  ;;  %v4352_v11 = vpop.f32.mrb[62].mxu1  ;;  %5525 = vmatprep.subr.bf16.mxu0 %v14464_v13  ;;  %5596 = vmatprep.subr.bf16.mxu1 %v14467_v33  ;;  %v14476_v13 = vld [vmem:[#allocation8 + $0xa4] ss:$16 sps:$4 sm:$0xff]  }
 0x3e8   :  { %v4423_v27 = vmax.f32 %v4407_v53, %v4409_v26  ;;  %v4410_v28 = vmax.f32 %v17248_v31, %v4350_v55  ;;  %v4282_v12 = vpop.f32.mrb[63].mxu0  ;;  %v4353_v29 = vpop.f32.mrb[63].mxu1  ;;  %v17329_v62 = vpack.c.bf16 %v4461_v61, %v4459_v10  ;;  %v14479_v33 = vld [vmem:[#allocation8 + $0xac] ss:$16 sps:$4 sm:$0xff]   ;;  %v14477_v10 = vld [vmem:[#allocation8 + $0xa8] ss:$16 sps:$4 sm:$0xff]   ;;  %v17353_v53 = vpack.c.bf16 %v4461_v61, %v4461_v61 }
 0x3e9   :  { %5072 = vmatprep.mubr.bf16.mxu0 %v17325_v63  ;;  %5143 = vmatprep.mubr.bf16.mxu1 %v17325_v63  ;;  %v17333_v38 = vpack.c.bf16 %v4462_v25, %v4460_v0  ;;  %v17341_v14 = vpack.c.bf16 %v4462_v25, %v4462_v25  ;;  %v14485_v7 = vld [vmem:[#allocation8 + $0xcc] ss:$16 sps:$4 sm:$0xff]   ;;  %v14480_v34 = vld [vmem:[#allocation8 + $0xc0] ss:$16 sps:$4 sm:$0xff]   ;;  %v14488_v26 = vld [vmem:[#allocation8 + $0xe4] ss:$16 sps:$4 sm:$0xff]   ;;  %v12565_v55 = vcombine.high %v18089_v15, %v17022_v49 }
 0x3ea   :  { %v4449_v30 = vadd.f32 %v17253_v18, %v4423_v27  ;;  %v4424_v9 = vmax.f32 %v4408_v56, %v4410_v28  ;;  %5526 = vmatpush1.bf16.msra.mxu0 %v14462_v3  ;;  %5597 = vmatpush1.bf16.msra.mxu1 %v14465_v36  ;;  %v14474_v3 = vld [vmem:[#allocation8 + $0xa0] ss:$16 sps:$4 sm:$0xff]   ;;  %v14483_v36 = vld [vmem:[#allocation8 + $0xc8] ss:$16 sps:$4 sm:$0xff]   ;;  %v14491_v19 = vld [vmem:[#allocation8 + $0xec] ss:$16 sps:$4 sm:$0xff]  }
 0x3eb   :  { %5527 = vmatprep.subr.bf16.mxu0 %v14470_v43  ;;  %5598 = vmatprep.subr.bf16.mxu1 %v14473_v58  ;;  %v14486_v43 = vld [vmem:[#allocation8 + $0xe0] ss:$16 sps:$4 sm:$0xff]   ;;  %v14494_v56 = vld [vmem:[#allocation8 + $0x104] ss:$16 sps:$4 sm:$0xff]   ;;  %v14497_v48 = vld [vmem:[#allocation8 + $0x10c] ss:$16 sps:$4 sm:$0xff]  }
 0x3ec   :  { %v17336_v31 = vmax.f32 %v4449_v30, 0.0  ;;  %v4450_v42 = vadd.f32 %v17258_v23, %v4424_v9  ;;  %v14482_v23 = vld [vmem:[#allocation8 + $0xc4] ss:$16 sps:$4 sm:$0xff]   ;;  %v14495_v11 = vld [vmem:[#allocation8 + $0x108] ss:$16 sps:$4 sm:$0xff]  }
 0x3ed   :  { %5073 = vmatmul.mubr.bf16.gmra.mrb[72].mxu0 %v17323_v16  ;;  %5144 = vmatmul.mubr.bf16.gmra.mrb[72].mxu1 %v17323_v16  ;;  %v14500_v58 = vld [vmem:[#allocation8 + $0x124] ss:$16 sps:$4 sm:$0xff]   ;;  %v14503_v27 = vld [vmem:[#allocation8 + $0x12c] ss:$16 sps:$4 sm:$0xff]   ;;  %v14498_v28 = vld [vmem:[#allocation8 + $0x120] ss:$16 sps:$4 sm:$0xff]  }
 0x3ee   :  { %v17343_v18 = vmax.f32 %v4450_v42, 0.0  ;;  %5528 = vmatpush1.bf16.msra.mxu0 %v14468_v60  ;;  %5599 = vmatpush1.bf16.msra.mxu1 %v14471_v57  ;;  %v17346_v0 = vpack.c.bf16 %v17336_v31, %v4461_v61  ;;  %v14492_v61 = vld [vmem:[#allocation8 + $0x100] ss:$16 sps:$4 sm:$0xff]   ;;  %v14501_v12 = vld [vmem:[#allocation8 + $0x128] ss:$16 sps:$4 sm:$0xff]  }
 0x3ef   :  { %5082 = vmatprep.mubr.bf16.mxu0 %v17341_v14  ;;  %5153 = vmatprep.mubr.bf16.mxu1 %v17341_v14  ;;  %v14506_v29 = vld [vmem:[#allocation8 + $0x144] ss:$16 sps:$4 sm:$0xff]   ;;  %v14509_v30 = vld [vmem:[#allocation8 + $0x14c] ss:$16 sps:$4 sm:$0xff]   ;;  %v14504_v9 = vld [vmem:[#allocation8 + $0x140] ss:$16 sps:$4 sm:$0xff]  }
 0x3f0   :  { %18110 = vst [vmem:[#allocation26_spill] sm:$0xff] %v17346_v0  ;;  %5529 = vmatprep.subr.bf16.mxu0 %v14476_v13  ;;  %5600 = vmatprep.subr.bf16.mxu1 %v14479_v33  ;;  %v17351_v20 = vpack.c.bf16 %v17343_v18, %v4462_v25  ;;  %v14489_v25 = vld [vmem:[#allocation8 + $0xe8] ss:$16 sps:$4 sm:$0xff]   ;;  %v14512_v57 = vld [vmem:[#allocation8 + $0x164] ss:$16 sps:$4 sm:$0xff]  }
 0x3f1   :  { %v14507_v60 = vld [vmem:[#allocation8 + $0x148] ss:$16 sps:$4 sm:$0xff]   ;;  %v14515_v42 = vld [vmem:[#allocation8 + $0x16c] ss:$16 sps:$4 sm:$0xff]   ;;  %v14510_v13 = vld [vmem:[#allocation8 + $0x160] ss:$16 sps:$4 sm:$0xff]  }
 0x3f2   :  { %18111 = vst [vmem:[#allocation27_spill] sm:$0xff] %v17351_v20  ;;  %5530 = vmatpush1.bf16.msra.mxu0 %v14474_v3  ;;  %5601 = vmatpush1.bf16.msra.mxu1 %v14477_v10  ;;  %v14513_v33 = vld [vmem:[#allocation8 + $0x168] ss:$16 sps:$4 sm:$0xff]   ;;  %v14518_v3 = vld [vmem:[#allocation8 + $0x184] ss:$16 sps:$4 sm:$0xff]  }
 0x3f3   :  { %5531 = vmatprep.subr.bf16.mxu0 %v14482_v23  ;;  %5602 = vmatprep.subr.bf16.mxu1 %v14485_v7  ;;  %v14521_v10 = vld [vmem:[#allocation8 + $0x18c] ss:$16 sps:$4 sm:$0xff]   ;;  %v14516_v23 = vld [vmem:[#allocation8 + $0x180] ss:$16 sps:$4 sm:$0xff]   ;;  %v14519_v7 = vld [vmem:[#allocation8 + $0x188] ss:$16 sps:$4 sm:$0xff]  }
 0x3f4   :  { %v17505_v0 = vld [vmem:[#allocation8 + $0x8a8] ss:$16 sps:$4 sm:$0xff]   ;;  %v17509_v20 = vld [vmem:[#allocation8 + $0x8c4] ss:$16 sps:$4 sm:$0xff]  }
 0x3f5   :  { %5083 = vmatmul.mubr.bf16.gmra.mrb[76].mxu0 %v17353_v53  ;;  %5154 = vmatmul.mubr.bf16.gmra.mrb[76].mxu1 %v17353_v53  ;;  %18119 = vst [vmem:[#allocation35_spill] sm:$0xff] %v17505_v0  ;;  %18120 = vst [vmem:[#allocation22_spill] sm:$0xff] %v17509_v20 }
 0x3f6   :  { %5532 = vmatpush1.bf16.msra.mxu0 %v14480_v34  ;;  %5603 = vmatpush1.bf16.msra.mxu1 %v14483_v36  ;;  %v14524_v34 = vld [vmem:[#allocation8 + $0x1a4] ss:$16 sps:$4 sm:$0xff]   ;;  %v14527_v36 = vld [vmem:[#allocation8 + $0x1ac] ss:$16 sps:$4 sm:$0xff]  }
 0x3f7   :  { %5551 = vmatprep.mubr.bf16.mxu0 %v12565_v55  ;;  %5622 = vmatprep.mubr.bf16.mxu1 %v12565_v55  ;;  %v14530_v55 = vld [vmem:[#allocation8 + $0x1c4] ss:$16 sps:$4 sm:$0xff]  }
 0x3f8   :  { %5533 = vmatprep.subr.bf16.mxu0 %v14488_v26  ;;  %5604 = vmatprep.subr.bf16.mxu1 %v14491_v19  ;;  %v14522_v26 = vld [vmem:[#allocation8 + $0x1a0] ss:$16 sps:$4 sm:$0xff]   ;;  %v14525_v19 = vld [vmem:[#allocation8 + $0x1a8] ss:$16 sps:$4 sm:$0xff]  }
 0x3fa   :  { %5534 = vmatpush1.bf16.msra.mxu0 %v14486_v43  ;;  %5605 = vmatpush1.bf16.msra.mxu1 %v14489_v25  ;;  %v14533_v43 = vld [vmem:[#allocation8 + $0x1cc] ss:$16 sps:$4 sm:$0xff]   ;;  %v14528_v25 = vld [vmem:[#allocation8 + $0x1c0] ss:$16 sps:$4 sm:$0xff]  }
 0x3fb   :  { %5535 = vmatprep.subr.bf16.mxu0 %v14494_v56  ;;  %5606 = vmatprep.subr.bf16.mxu1 %v14497_v48  ;;  %v14531_v56 = vld [vmem:[#allocation8 + $0x1c8] ss:$16 sps:$4 sm:$0xff]   ;;  %v14536_v48 = vld [vmem:[#allocation8 + $0x1e4] ss:$16 sps:$4 sm:$0xff]  }
 0x3fe   :  { %5536 = vmatpush1.bf16.msra.mxu0 %v14492_v61  ;;  %5607 = vmatpush1.bf16.msra.mxu1 %v14495_v11  ;;  %v14539_v61 = vld [vmem:[#allocation8 + $0x1ec] ss:$16 sps:$4 sm:$0xff]   ;;  %v14534_v11 = vld [vmem:[#allocation8 + $0x1e0] ss:$16 sps:$4 sm:$0xff]  }
 0x3ff   :  { %5537 = vmatprep.subr.bf16.mxu0 %v14500_v58  ;;  %5608 = vmatprep.subr.bf16.mxu1 %v14503_v27  ;;  %v14537_v58 = vld [vmem:[#allocation8 + $0x1e8] ss:$16 sps:$4 sm:$0xff]   ;;  %v14542_v27 = vld [vmem:[#allocation8 + $0x404] ss:$16 sps:$4 sm:$0xff]  }
 0x402   :  { %5538 = vmatpush1.bf16.msra.mxu0 %v14498_v28  ;;  %5609 = vmatpush1.bf16.msra.mxu1 %v14501_v12  ;;  %v14545_v28 = vld [vmem:[#allocation8 + $0x40c] ss:$16 sps:$4 sm:$0xff]   ;;  %v12564_v12 = vcombine.low %v18089_v15, %v17022_v49 }
 0x403   :  { %5539 = vmatprep.subr.bf16.mxu0 %v14506_v29  ;;  %5610 = vmatprep.subr.bf16.mxu1 %v14509_v30  ;;  %v14540_v29 = vld [vmem:[#allocation8 + $0x400] ss:$16 sps:$4 sm:$0xff]   ;;  %v14543_v30 = vld [vmem:[#allocation8 + $0x408] ss:$16 sps:$4 sm:$0xff]   ;;  %v14557_v49 = vld [vmem:[#allocation8 + $0x44c] ss:$16 sps:$4 sm:$0xff]  }
 0x406   :  { %5540 = vmatpush1.bf16.msra.mxu0 %v14504_v9  ;;  %5611 = vmatpush1.bf16.msra.mxu1 %v14507_v60  ;;  %v14548_v9 = vld [vmem:[#allocation8 + $0x424] ss:$16 sps:$4 sm:$0xff]   ;;  %v14551_v60 = vld [vmem:[#allocation8 + $0x42c] ss:$16 sps:$4 sm:$0xff]  }
 0x407   :  { %5541 = vmatprep.subr.bf16.mxu0 %v14512_v57  ;;  %5612 = vmatprep.subr.bf16.mxu1 %v14515_v42  ;;  %v14546_v57 = vld [vmem:[#allocation8 + $0x420] ss:$16 sps:$4 sm:$0xff]   ;;  %v14549_v42 = vld [vmem:[#allocation8 + $0x428] ss:$16 sps:$4 sm:$0xff]  }
 0x40a   :  { %5542 = vmatpush1.bf16.msra.mxu0 %v14510_v13  ;;  %5613 = vmatpush1.bf16.msra.mxu1 %v14513_v33  ;;  %v14554_v13 = vld [vmem:[#allocation8 + $0x444] ss:$16 sps:$4 sm:$0xff]   ;;  %v14552_v33 = vld [vmem:[#allocation8 + $0x440] ss:$16 sps:$4 sm:$0xff]  }
 0x40b   :  { %5543 = vmatprep.subr.bf16.mxu0 %v14518_v3  ;;  %5614 = vmatprep.subr.bf16.mxu1 %v14521_v10  ;;  %v14555_v3 = vld [vmem:[#allocation8 + $0x448] ss:$16 sps:$4 sm:$0xff]   ;;  %v14560_v10 = vld [vmem:[#allocation8 + $0x464] ss:$16 sps:$4 sm:$0xff]  }
 0x40e   :  { %5544 = vmatpush1.bf16.msra.mxu0 %v14516_v23  ;;  %5615 = vmatpush1.bf16.msra.mxu1 %v14519_v7  ;;  %v14563_v23 = vld [vmem:[#allocation8 + $0x46c] ss:$16 sps:$4 sm:$0xff]   ;;  %v14558_v7 = vld [vmem:[#allocation8 + $0x460] ss:$16 sps:$4 sm:$0xff]  }
 0x40f   :  { %5545 = vmatprep.subr.bf16.mxu0 %v14524_v34  ;;  %5616 = vmatprep.subr.bf16.mxu1 %v14527_v36  ;;  %v14561_v34 = vld [vmem:[#allocation8 + $0x468] ss:$16 sps:$4 sm:$0xff]   ;;  %v14566_v36 = vld [vmem:[#allocation8 + $0x484] ss:$16 sps:$4 sm:$0xff]  }
 0x412   :  { %5546 = vmatpush1.bf16.msra.mxu0 %v14522_v26  ;;  %5617 = vmatpush1.bf16.msra.mxu1 %v14525_v19  ;;  %v14569_v26 = vld [vmem:[#allocation8 + $0x48c] ss:$16 sps:$4 sm:$0xff]   ;;  %v14564_v19 = vld [vmem:[#allocation8 + $0x480] ss:$16 sps:$4 sm:$0xff]  }
 0x413   :  { %5547 = vmatprep.subr.bf16.mxu0 %v14530_v55  ;;  %5618 = vmatprep.subr.bf16.mxu1 %v14533_v43  ;;  %v14567_v55 = vld [vmem:[#allocation8 + $0x488] ss:$16 sps:$4 sm:$0xff]   ;;  %v13394_v43 = vpack.c.bf16 %v17084_v52, %v17084_v52  ;;  %v13393_v52 = vpack.c.bf16 %v17078_v4, %v17078_v4  ;;  %v14593_v4 = vld [vmem:[#allocation8 + $0x50c] ss:$16 sps:$4 sm:$0xff]  }
 0x416   :  { %5548 = vmatpush1.bf16.msra.mxu0 %v14528_v25  ;;  %5619 = vmatpush1.bf16.msra.mxu1 %v14531_v56  ;;  %v14572_v25 = vld [vmem:[#allocation8 + $0x4a4] ss:$16 sps:$4 sm:$0xff]   ;;  %v14575_v56 = vld [vmem:[#allocation8 + $0x4ac] ss:$16 sps:$4 sm:$0xff]  }
 0x417   :  { %5549 = vmatprep.subr.bf16.mxu0 %v14536_v48  ;;  %5620 = vmatprep.subr.bf16.mxu1 %v14539_v61  ;;  %v14570_v48 = vld [vmem:[#allocation8 + $0x4a0] ss:$16 sps:$4 sm:$0xff]   ;;  %v14573_v61 = vld [vmem:[#allocation8 + $0x4a8] ss:$16 sps:$4 sm:$0xff]  }
 0x41a   :  { %5550 = vmatpush1.bf16.msra.mxu0 %v14534_v11  ;;  %5621 = vmatpush1.bf16.msra.mxu1 %v14537_v58  ;;  %v14578_v11 = vld [vmem:[#allocation8 + $0x4c4] ss:$16 sps:$4 sm:$0xff]   ;;  %v14581_v58 = vld [vmem:[#allocation8 + $0x4cc] ss:$16 sps:$4 sm:$0xff]  }
 0x41b   :  { %6090 = vmatprep.subr.bf16.mxu0 %v14542_v27  ;;  %6161 = vmatprep.subr.bf16.mxu1 %v14545_v28  ;;  %v14576_v27 = vld [vmem:[#allocation8 + $0x4c0] ss:$16 sps:$4 sm:$0xff]   ;;  %v14579_v28 = vld [vmem:[#allocation8 + $0x4c8] ss:$16 sps:$4 sm:$0xff]  }
 0x41d   :  { %5552 = vmatmul.mubr.bf16.vlgmr.msra.gmra.mrb[64].mxu0 %v12564_v12  ;;  %5623 = vmatmul.mubr.bf16.vlgmr.msra.gmra.mrb[64].mxu1 %v12564_v12  ;;  %v14584_v12 = vld [vmem:[#allocation8 + $0x4e4] ss:$16 sps:$4 sm:$0xff]  }
 0x41e   :  { %5561 = vmatprep.mubr.bf16.mxu0 %v17050_v8  ;;  %5632 = vmatprep.mubr.bf16.mxu1 %v17050_v8 }
 0x41f   :  { %6091 = vmatpush1.bf16.msra.mxu0 %v14540_v29  ;;  %6162 = vmatpush1.bf16.msra.mxu1 %v14543_v30  ;;  %v14587_v29 = vld [vmem:[#allocation8 + $0x4ec] ss:$16 sps:$4 sm:$0xff]   ;;  %v14582_v30 = vld [vmem:[#allocation8 + $0x4e0] ss:$16 sps:$4 sm:$0xff]  }
 0x420   :  { %6092 = vmatprep.subr.bf16.mxu0 %v14548_v9  ;;  %6163 = vmatprep.subr.bf16.mxu1 %v14551_v60  ;;  %v14585_v9 = vld [vmem:[#allocation8 + $0x4e8] ss:$16 sps:$4 sm:$0xff]   ;;  %v14590_v60 = vld [vmem:[#allocation8 + $0x504] ss:$16 sps:$4 sm:$0xff]  }
 0x423   :  { %6093 = vmatpush1.bf16.msra.mxu0 %v14546_v57  ;;  %6164 = vmatpush1.bf16.msra.mxu1 %v14549_v42  ;;  %v14588_v57 = vld [vmem:[#allocation8 + $0x500] ss:$16 sps:$4 sm:$0xff]   ;;  %v14591_v42 = vld [vmem:[#allocation8 + $0x508] ss:$16 sps:$4 sm:$0xff]  }
 0x424   :  { %6094 = vmatprep.subr.bf16.mxu0 %v14554_v13  ;;  %6165 = vmatprep.subr.bf16.mxu1 %v14557_v49  ;;  %v14596_v13 = vld [vmem:[#allocation8 + $0x524] ss:$16 sps:$4 sm:$0xff]   ;;  %v14599_v49 = vld [vmem:[#allocation8 + $0x52c] ss:$16 sps:$4 sm:$0xff]  }
 0x425   :  { %5562 = vmatmul.mubr.bf16.gmra.mrb[68].mxu0 %v17046_v54  ;;  %5633 = vmatmul.mubr.bf16.gmra.mrb[68].mxu1 %v17046_v54 }
 0x426   :  { %5571 = vmatprep.mubr.bf16.mxu0 %v17082_v45  ;;  %5642 = vmatprep.mubr.bf16.mxu1 %v17082_v45 }
 0x427   :  { %6095 = vmatpush1.bf16.msra.mxu0 %v14552_v33  ;;  %6166 = vmatpush1.bf16.msra.mxu1 %v14555_v3  ;;  %v14594_v33 = vld [vmem:[#allocation8 + $0x520] ss:$16 sps:$4 sm:$0xff]   ;;  %v14597_v3 = vld [vmem:[#allocation8 + $0x528] ss:$16 sps:$4 sm:$0xff]  }
 0x428   :  { %6096 = vmatprep.subr.bf16.mxu0 %v14560_v10  ;;  %6167 = vmatprep.subr.bf16.mxu1 %v14563_v23  ;;  %v14602_v10 = vld [vmem:[#allocation8 + $0x544] ss:$16 sps:$4 sm:$0xff]   ;;  %v14605_v23 = vld [vmem:[#allocation8 + $0x54c] ss:$16 sps:$4 sm:$0xff]  }
 0x42b   :  { %6097 = vmatpush1.bf16.msra.mxu0 %v14558_v7  ;;  %6168 = vmatpush1.bf16.msra.mxu1 %v14561_v34  ;;  %v14600_v7 = vld [vmem:[#allocation8 + $0x540] ss:$16 sps:$4 sm:$0xff]   ;;  %v14603_v34 = vld [vmem:[#allocation8 + $0x548] ss:$16 sps:$4 sm:$0xff]  }
 0x42c   :  { %6098 = vmatprep.subr.bf16.mxu0 %v14566_v36  ;;  %6169 = vmatprep.subr.bf16.mxu1 %v14569_v26  ;;  %v14608_v36 = vld [vmem:[#allocation8 + $0x564] ss:$16 sps:$4 sm:$0xff]   ;;  %v14611_v26 = vld [vmem:[#allocation8 + $0x56c] ss:$16 sps:$4 sm:$0xff]  }
 0x42d   :  { %5572 = vmatmul.mubr.bf16.gmra.mrb[72].mxu0 %v17076_v21  ;;  %5643 = vmatmul.mubr.bf16.gmra.mrb[72].mxu1 %v17076_v21 }
 0x42e   :  { %5581 = vmatprep.mubr.bf16.mxu0 %v13394_v43  ;;  %5652 = vmatprep.mubr.bf16.mxu1 %v13394_v43  ;;  %v14614_v43 = vld [vmem:[#allocation8 + $0x584] ss:$16 sps:$4 sm:$0xff]  }
 0x42f   :  { %6099 = vmatpush1.bf16.msra.mxu0 %v14564_v19  ;;  %6170 = vmatpush1.bf16.msra.mxu1 %v14567_v55  ;;  %v14606_v19 = vld [vmem:[#allocation8 + $0x560] ss:$16 sps:$4 sm:$0xff]   ;;  %v14609_v55 = vld [vmem:[#allocation8 + $0x568] ss:$16 sps:$4 sm:$0xff]  }
 0x430   :  { %6100 = vmatprep.subr.bf16.mxu0 %v14572_v25  ;;  %6171 = vmatprep.subr.bf16.mxu1 %v14575_v56  ;;  %v14617_v25 = vld [vmem:[#allocation8 + $0x58c] ss:$16 sps:$4 sm:$0xff]   ;;  %v14612_v56 = vld [vmem:[#allocation8 + $0x580] ss:$16 sps:$4 sm:$0xff]  }
 0x433   :  { %6101 = vmatpush1.bf16.msra.mxu0 %v14570_v48  ;;  %6172 = vmatpush1.bf16.msra.mxu1 %v14573_v61  ;;  %v14615_v48 = vld [vmem:[#allocation8 + $0x588] ss:$16 sps:$4 sm:$0xff]   ;;  %v14620_v61 = vld [vmem:[#allocation8 + $0x5a4] ss:$16 sps:$4 sm:$0xff]  }
 0x434   :  { %6102 = vmatprep.subr.bf16.mxu0 %v14578_v11  ;;  %6173 = vmatprep.subr.bf16.mxu1 %v14581_v58  ;;  %v14623_v11 = vld [vmem:[#allocation8 + $0x5ac] ss:$16 sps:$4 sm:$0xff]   ;;  %v14618_v58 = vld [vmem:[#allocation8 + $0x5a0] ss:$16 sps:$4 sm:$0xff]  }
 0x435   :  { %5582 = vmatmul.mubr.bf16.gmra.mrb[76].mxu0 %v13393_v52  ;;  %5653 = vmatmul.mubr.bf16.gmra.mrb[76].mxu1 %v13393_v52  ;;  %v14621_v52 = vld [vmem:[#allocation8 + $0x5a8] ss:$16 sps:$4 sm:$0xff]  }
 0x436   :  { %6122 = vmatprep.mubr.bf16.mxu0 %v17028_v59  ;;  %6193 = vmatprep.mubr.bf16.mxu1 %v17028_v59 }
 0x437   :  { %6103 = vmatpush1.bf16.msra.mxu0 %v14576_v27  ;;  %6174 = vmatpush1.bf16.msra.mxu1 %v14579_v28  ;;  %v14626_v27 = vld [vmem:[#allocation8 + $0x5c4] ss:$16 sps:$4 sm:$0xff]   ;;  %v14629_v28 = vld [vmem:[#allocation8 + $0x5cc] ss:$16 sps:$4 sm:$0xff]  }
 0x438   :  { %6104 = vmatprep.subr.bf16.mxu0 %v14584_v12  ;;  %6175 = vmatprep.subr.bf16.mxu1 %v14587_v29  ;;  %v14624_v12 = vld [vmem:[#allocation8 + $0x5c0] ss:$16 sps:$4 sm:$0xff]   ;;  %v14627_v29 = vld [vmem:[#allocation8 + $0x5c8] ss:$16 sps:$4 sm:$0xff]  }
 0x43b   :  { %6105 = vmatpush1.bf16.msra.mxu0 %v14582_v30  ;;  %6176 = vmatpush1.bf16.msra.mxu1 %v14585_v9  ;;  %v14632_v30 = vld [vmem:[#allocation8 + $0x5e4] ss:$16 sps:$4 sm:$0xff]   ;;  %v14635_v9 = vld [vmem:[#allocation8 + $0x5ec] ss:$16 sps:$4 sm:$0xff]  }
 0x43c   :  { %6106 = vmatprep.subr.bf16.mxu0 %v14590_v60  ;;  %6177 = vmatprep.subr.bf16.mxu1 %v14593_v4  ;;  %v14630_v60 = vld [vmem:[#allocation8 + $0x5e0] ss:$16 sps:$4 sm:$0xff]   ;;  %v14633_v4 = vld [vmem:[#allocation8 + $0x5e8] ss:$16 sps:$4 sm:$0xff]  }
 0x43f   :  { %6107 = vmatpush1.bf16.msra.mxu0 %v14588_v57  ;;  %6178 = vmatpush1.bf16.msra.mxu1 %v14591_v42  ;;  %v14638_v57 = vld [vmem:[#allocation8 + $0x604] ss:$16 sps:$4 sm:$0xff]   ;;  %v14641_v42 = vld [vmem:[#allocation8 + $0x60c] ss:$16 sps:$4 sm:$0xff]  }
 0x440   :  { %6108 = vmatprep.subr.bf16.mxu0 %v14596_v13  ;;  %6179 = vmatprep.subr.bf16.mxu1 %v14599_v49  ;;  %v14636_v13 = vld [vmem:[#allocation8 + $0x600] ss:$16 sps:$4 sm:$0xff]   ;;  %v14639_v49 = vld [vmem:[#allocation8 + $0x608] ss:$16 sps:$4 sm:$0xff]  }
 0x443   :  { %6109 = vmatpush1.bf16.msra.mxu0 %v14594_v33  ;;  %6180 = vmatpush1.bf16.msra.mxu1 %v14597_v3  ;;  %v14644_v33 = vld [vmem:[#allocation8 + $0x624] ss:$16 sps:$4 sm:$0xff]   ;;  %v14647_v3 = vld [vmem:[#allocation8 + $0x62c] ss:$16 sps:$4 sm:$0xff]  }
 0x444   :  { %6110 = vmatprep.subr.bf16.mxu0 %v14602_v10  ;;  %6181 = vmatprep.subr.bf16.mxu1 %v14605_v23  ;;  %v14642_v10 = vld [vmem:[#allocation8 + $0x620] ss:$16 sps:$4 sm:$0xff]   ;;  %v14645_v23 = vld [vmem:[#allocation8 + $0x628] ss:$16 sps:$4 sm:$0xff]  }
 0x447   :  { %6111 = vmatpush1.bf16.msra.mxu0 %v14600_v7  ;;  %6182 = vmatpush1.bf16.msra.mxu1 %v14603_v34  ;;  %v14650_v7 = vld [vmem:[#allocation8 + $0x644] ss:$16 sps:$4 sm:$0xff]   ;;  %v14653_v34 = vld [vmem:[#allocation8 + $0x64c] ss:$16 sps:$4 sm:$0xff]  }
 0x448   :  { %6112 = vmatprep.subr.bf16.mxu0 %v14608_v36  ;;  %6183 = vmatprep.subr.bf16.mxu1 %v14611_v26  ;;  %v14648_v36 = vld [vmem:[#allocation8 + $0x640] ss:$16 sps:$4 sm:$0xff]   ;;  %v14651_v26 = vld [vmem:[#allocation8 + $0x648] ss:$16 sps:$4 sm:$0xff]  }
 0x44b   :  { %6113 = vmatpush1.bf16.msra.mxu0 %v14606_v19  ;;  %6184 = vmatpush1.bf16.msra.mxu1 %v14609_v55  ;;  %v14656_v19 = vld [vmem:[#allocation8 + $0x664] ss:$16 sps:$4 sm:$0xff]   ;;  %v14659_v55 = vld [vmem:[#allocation8 + $0x66c] ss:$16 sps:$4 sm:$0xff]  }
 0x44c   :  { %6114 = vmatprep.subr.bf16.mxu0 %v14614_v43  ;;  %6185 = vmatprep.subr.bf16.mxu1 %v14617_v25  ;;  %v14654_v43 = vld [vmem:[#allocation8 + $0x660] ss:$16 sps:$4 sm:$0xff]   ;;  %v14657_v25 = vld [vmem:[#allocation8 + $0x668] ss:$16 sps:$4 sm:$0xff]  }
 0x44f   :  { %6115 = vmatpush1.bf16.msra.mxu0 %v14612_v56  ;;  %6186 = vmatpush1.bf16.msra.mxu1 %v14615_v48  ;;  %v14662_v56 = vld [vmem:[#allocation8 + $0x684] ss:$16 sps:$4 sm:$0xff]   ;;  %v14665_v48 = vld [vmem:[#allocation8 + $0x68c] ss:$16 sps:$4 sm:$0xff]  }
 0x450   :  { %6116 = vmatprep.subr.bf16.mxu0 %v14620_v61  ;;  %6187 = vmatprep.subr.bf16.mxu1 %v14623_v11  ;;  %v14660_v61 = vld [vmem:[#allocation8 + $0x680] ss:$16 sps:$4 sm:$0xff]   ;;  %v14663_v11 = vld [vmem:[#allocation8 + $0x688] ss:$16 sps:$4 sm:$0xff]  }
 0x453   :  { %6117 = vmatpush1.bf16.msra.mxu0 %v14618_v58  ;;  %6188 = vmatpush1.bf16.msra.mxu1 %v14621_v52  ;;  %v17385_v58 = vpack.c.bf16 %v17104_v41, %v17104_v41  ;;  %v14668_v52 = vld [vmem:[#allocation8 + $0x6a4] ss:$16 sps:$4 sm:$0xff]  }
 0x454   :  { %6118 = vmatprep.subr.bf16.mxu0 %v14626_v27  ;;  %6189 = vmatprep.subr.bf16.mxu1 %v14629_v28  ;;  %v14671_v27 = vld [vmem:[#allocation8 + $0x6ac] ss:$16 sps:$4 sm:$0xff]   ;;  %v14666_v28 = vld [vmem:[#allocation8 + $0x6a0] ss:$16 sps:$4 sm:$0xff]   ;;  %v14674_v41 = vld [vmem:[#allocation8 + $0x6c4] ss:$16 sps:$4 sm:$0xff]  }
 0x457   :  { %6119 = vmatpush1.bf16.msra.mxu0 %v14624_v12  ;;  %6190 = vmatpush1.bf16.msra.mxu1 %v14627_v29  ;;  %v14669_v12 = vld [vmem:[#allocation8 + $0x6a8] ss:$16 sps:$4 sm:$0xff]   ;;  %v14677_v29 = vld [vmem:[#allocation8 + $0x6cc] ss:$16 sps:$4 sm:$0xff]  }
 0x458   :  { %6120 = vmatprep.subr.bf16.mxu0 %v14632_v30  ;;  %6191 = vmatprep.subr.bf16.mxu1 %v14635_v9  ;;  %v17393_v30 = vpack.c.bf16 %v17102_v44, %v17102_v44  ;;  %v14672_v9 = vld [vmem:[#allocation8 + $0x6c0] ss:$16 sps:$4 sm:$0xff]  }
 0x459   :  { %v14678_v44 = vld [vmem:[#allocation8 + $0x6e0] ss:$16 sps:$4 sm:$0xff]  }
 0x45b   :  { %6121 = vmatpush1.bf16.msra.mxu0 %v14630_v60  ;;  %6192 = vmatpush1.bf16.msra.mxu1 %v14633_v4  ;;  %v14675_v60 = vld [vmem:[#allocation8 + $0x6c8] ss:$16 sps:$4 sm:$0xff]   ;;  %v14680_v4 = vld [vmem:[#allocation8 + $0x6e4] ss:$16 sps:$4 sm:$0xff]  }
 0x45c   :  { %6689 = vmatprep.subr.bf16.mxu0 %v14638_v57  ;;  %6760 = vmatprep.subr.bf16.mxu1 %v14641_v42  ;;  %v14683_v57 = vld [vmem:[#allocation8 + $0x6ec] ss:$16 sps:$4 sm:$0xff]   ;;  %v14681_v42 = vld [vmem:[#allocation8 + $0x6e8] ss:$16 sps:$4 sm:$0xff]  }
 0x45e   :  { %6123 = vmatmul.mubr.bf16.vlgmr.msra.gmra.mrb[64].mxu0 %v17024_v50  ;;  %6194 = vmatmul.mubr.bf16.vlgmr.msra.gmra.mrb[64].mxu1 %v17024_v50 }
 0x45f   :  { %6132 = vmatprep.mubr.bf16.mxu0 %v17061_v51  ;;  %6203 = vmatprep.mubr.bf16.mxu1 %v17061_v51 }
 0x460   :  { %6690 = vmatpush1.bf16.msra.mxu0 %v14636_v13  ;;  %6761 = vmatpush1.bf16.msra.mxu1 %v14639_v49  ;;  %v14686_v13 = vld [vmem:[#allocation8 + $0x704] ss:$16 sps:$4 sm:$0xff]   ;;  %v14689_v49 = vld [vmem:[#allocation8 + $0x70c] ss:$16 sps:$4 sm:$0xff]  }
 0x461   :  { %6691 = vmatprep.subr.bf16.mxu0 %v14644_v33  ;;  %6762 = vmatprep.subr.bf16.mxu1 %v14647_v3  ;;  %v14684_v33 = vld [vmem:[#allocation8 + $0x700] ss:$16 sps:$4 sm:$0xff]   ;;  %v14687_v3 = vld [vmem:[#allocation8 + $0x708] ss:$16 sps:$4 sm:$0xff]  }
 0x464   :  { %6692 = vmatpush1.bf16.msra.mxu0 %v14642_v10  ;;  %6763 = vmatpush1.bf16.msra.mxu1 %v14645_v23  ;;  %v14692_v10 = vld [vmem:[#allocation8 + $0x724] ss:$16 sps:$4 sm:$0xff]   ;;  %v14695_v23 = vld [vmem:[#allocation8 + $0x72c] ss:$16 sps:$4 sm:$0xff]  }
 0x465   :  { %6693 = vmatprep.subr.bf16.mxu0 %v14650_v7  ;;  %6764 = vmatprep.subr.bf16.mxu1 %v14653_v34  ;;  %v14690_v7 = vld [vmem:[#allocation8 + $0x720] ss:$16 sps:$4 sm:$0xff]   ;;  %v14693_v34 = vld [vmem:[#allocation8 + $0x728] ss:$16 sps:$4 sm:$0xff]  }
 0x466   :  { %6133 = vmatmul.mubr.bf16.gmra.mrb[68].mxu0 %v17056_v6  ;;  %6204 = vmatmul.mubr.bf16.gmra.mrb[68].mxu1 %v17056_v6 }
 0x467   :  { %6142 = vmatprep.mubr.bf16.mxu0 %v17092_v1  ;;  %6213 = vmatprep.mubr.bf16.mxu1 %v17092_v1 }
 0x468   :  { %6694 = vmatpush1.bf16.msra.mxu0 %v14648_v36  ;;  %6765 = vmatpush1.bf16.msra.mxu1 %v14651_v26  ;;  %v14698_v36 = vld [vmem:[#allocation8 + $0x744] ss:$16 sps:$4 sm:$0xff]   ;;  %v14701_v26 = vld [vmem:[#allocation8 + $0x74c] ss:$16 sps:$4 sm:$0xff]  }
 0x469   :  { %6695 = vmatprep.subr.bf16.mxu0 %v14656_v19  ;;  %6766 = vmatprep.subr.bf16.mxu1 %v14659_v55  ;;  %v14696_v19 = vld [vmem:[#allocation8 + $0x740] ss:$16 sps:$4 sm:$0xff]   ;;  %v14699_v55 = vld [vmem:[#allocation8 + $0x748] ss:$16 sps:$4 sm:$0xff]  }
 0x46c   :  { %6696 = vmatpush1.bf16.msra.mxu0 %v14654_v43  ;;  %6767 = vmatpush1.bf16.msra.mxu1 %v14657_v25  ;;  %v14704_v43 = vld [vmem:[#allocation8 + $0x764] ss:$16 sps:$4 sm:$0xff]   ;;  %v14707_v25 = vld [vmem:[#allocation8 + $0x76c] ss:$16 sps:$4 sm:$0xff]  }
 0x46d   :  { %6697 = vmatprep.subr.bf16.mxu0 %v14662_v56  ;;  %6768 = vmatprep.subr.bf16.mxu1 %v14665_v48  ;;  %v14702_v56 = vld [vmem:[#allocation8 + $0x760] ss:$16 sps:$4 sm:$0xff]   ;;  %v14705_v48 = vld [vmem:[#allocation8 + $0x768] ss:$16 sps:$4 sm:$0xff]  }
 0x46e   :  { %6143 = vmatmul.mubr.bf16.gmra.mrb[72].mxu0 %v17089_v39  ;;  %6214 = vmatmul.mubr.bf16.gmra.mrb[72].mxu1 %v17089_v39 }
 0x46f   :  { %6152 = vmatprep.mubr.bf16.mxu0 %v17385_v58  ;;  %6223 = vmatprep.mubr.bf16.mxu1 %v17385_v58 }
 0x470   :  { %6698 = vmatpush1.bf16.msra.mxu0 %v14660_v61  ;;  %6769 = vmatpush1.bf16.msra.mxu1 %v14663_v11  ;;  %v14710_v61 = vld [vmem:[#allocation8 + $0x784] ss:$16 sps:$4 sm:$0xff]   ;;  %v14713_v11 = vld [vmem:[#allocation8 + $0x78c] ss:$16 sps:$4 sm:$0xff]  }
 0x471   :  { %6699 = vmatprep.subr.bf16.mxu0 %v14668_v52  ;;  %6770 = vmatprep.subr.bf16.mxu1 %v14671_v27  ;;  %v14708_v52 = vld [vmem:[#allocation8 + $0x780] ss:$16 sps:$4 sm:$0xff]   ;;  %v14711_v27 = vld [vmem:[#allocation8 + $0x788] ss:$16 sps:$4 sm:$0xff]  }
 0x474   :  { %6700 = vmatpush1.bf16.msra.mxu0 %v14666_v28  ;;  %6771 = vmatpush1.bf16.msra.mxu1 %v14669_v12  ;;  %v14716_v28 = vld [vmem:[#allocation8 + $0x7a4] ss:$16 sps:$4 sm:$0xff]   ;;  %v14719_v12 = vld [vmem:[#allocation8 + $0x7ac] ss:$16 sps:$4 sm:$0xff]  }
 0x475   :  { %6701 = vmatprep.subr.bf16.mxu0 %v14674_v41  ;;  %6772 = vmatprep.subr.bf16.mxu1 %v14677_v29  ;;  %v14714_v41 = vld [vmem:[#allocation8 + $0x7a0] ss:$16 sps:$4 sm:$0xff]   ;;  %v14717_v29 = vld [vmem:[#allocation8 + $0x7a8] ss:$16 sps:$4 sm:$0xff]  }
 0x476   :  { %6153 = vmatmul.mubr.bf16.gmra.mrb[76].mxu0 %v17393_v30  ;;  %6224 = vmatmul.mubr.bf16.gmra.mrb[76].mxu1 %v17393_v30 }
 0x477   :  { %6721 = vmatprep.mubr.bf16.mxu0 %v17279_v35  ;;  %6792 = vmatprep.mubr.bf16.mxu1 %v17279_v35 }
 0x478   :  { %6702 = vmatpush1.bf16.msra.mxu0 %v14672_v9  ;;  %6773 = vmatpush1.bf16.msra.mxu1 %v14675_v60  ;;  %v17399_v9 = vld [vmem:[#allocation8 + $0x7c4] ss:$16 sps:$4 sm:$0xff]   ;;  %v17401_v60 = vld [vmem:[#allocation8 + $0x7cc] ss:$16 sps:$4 sm:$0xff]  }
 0x479   :  { %6703 = vmatprep.subr.bf16.mxu0 %v14680_v4  ;;  %6774 = vmatprep.subr.bf16.mxu1 %v14683_v57  ;;  %v17403_v4 = vld [vmem:[#allocation8 + $0x7c0] ss:$16 sps:$4 sm:$0xff]   ;;  %v17405_v57 = vld [vmem:[#allocation8 + $0x7c8] ss:$16 sps:$4 sm:$0xff]  }
 0x47c   :  { %6704 = vmatpush1.bf16.msra.mxu0 %v14678_v44  ;;  %6775 = vmatpush1.bf16.msra.mxu1 %v14681_v42  ;;  %v17409_v44 = vld [vmem:[#allocation8 + $0x7e4] ss:$16 sps:$4 sm:$0xff]   ;;  %v17411_v42 = vld [vmem:[#allocation8 + $0x7ec] ss:$16 sps:$4 sm:$0xff]  }
 0x47d   :  { %6705 = vmatprep.subr.bf16.mxu0 %v14686_v13  ;;  %6776 = vmatprep.subr.bf16.mxu1 %v14689_v49  ;;  %v17415_v13 = vld [vmem:[#allocation8 + $0x7e0] ss:$16 sps:$4 sm:$0xff]   ;;  %v17417_v49 = vld [vmem:[#allocation8 + $0x7e8] ss:$16 sps:$4 sm:$0xff]  }
 0x480   :  { %6706 = vmatpush1.bf16.msra.mxu0 %v14684_v33  ;;  %6777 = vmatpush1.bf16.msra.mxu1 %v14687_v3  ;;  %v17421_v33 = vld [vmem:[#allocation8 + $0x804] ss:$16 sps:$4 sm:$0xff]   ;;  %v17423_v3 = vld [vmem:[#allocation8 + $0x80c] ss:$16 sps:$4 sm:$0xff]  }
 0x481   :  { %6707 = vmatprep.subr.bf16.mxu0 %v14692_v10  ;;  %6778 = vmatprep.subr.bf16.mxu1 %v14695_v23  ;;  %v17427_v10 = vld [vmem:[#allocation8 + $0x800] ss:$16 sps:$4 sm:$0xff]   ;;  %v17430_v23 = vld [vmem:[#allocation8 + $0x808] ss:$16 sps:$4 sm:$0xff]  }
 0x484   :  { %6708 = vmatpush1.bf16.msra.mxu0 %v14690_v7  ;;  %6779 = vmatpush1.bf16.msra.mxu1 %v14693_v34  ;;  %v17433_v7 = vld [vmem:[#allocation8 + $0x824] ss:$16 sps:$4 sm:$0xff]   ;;  %v17435_v34 = vld [vmem:[#allocation8 + $0x82c] ss:$16 sps:$4 sm:$0xff]  }
 0x485   :  { %6709 = vmatprep.subr.bf16.mxu0 %v14698_v36  ;;  %6780 = vmatprep.subr.bf16.mxu1 %v14701_v26  ;;  %v17443_v36 = vld [vmem:[#allocation8 + $0x820] ss:$16 sps:$4 sm:$0xff]   ;;  %v17445_v26 = vld [vmem:[#allocation8 + $0x828] ss:$16 sps:$4 sm:$0xff]  }
 0x488   :  { %6710 = vmatpush1.bf16.msra.mxu0 %v14696_v19  ;;  %6781 = vmatpush1.bf16.msra.mxu1 %v14699_v55  ;;  %v17449_v19 = vld [vmem:[#allocation8 + $0x844] ss:$16 sps:$4 sm:$0xff]   ;;  %v17451_v55 = vld [vmem:[#allocation8 + $0x84c] ss:$16 sps:$4 sm:$0xff]  }
 0x489   :  { %6711 = vmatprep.subr.bf16.mxu0 %v14704_v43  ;;  %6782 = vmatprep.subr.bf16.mxu1 %v14707_v25  ;;  %v17455_v43 = vld [vmem:[#allocation8 + $0x840] ss:$16 sps:$4 sm:$0xff]   ;;  %v17457_v25 = vld [vmem:[#allocation8 + $0x848] ss:$16 sps:$4 sm:$0xff]  }
 0x48c   :  { %6712 = vmatpush1.bf16.msra.mxu0 %v14702_v56  ;;  %6783 = vmatpush1.bf16.msra.mxu1 %v14705_v48  ;;  %v17461_v56 = vld [vmem:[#allocation8 + $0x864] ss:$16 sps:$4 sm:$0xff]   ;;  %v17463_v48 = vld [vmem:[#allocation8 + $0x86c] ss:$16 sps:$4 sm:$0xff]  }
 0x48d   :  { %6713 = vmatprep.subr.bf16.mxu0 %v14710_v61  ;;  %6784 = vmatprep.subr.bf16.mxu1 %v14713_v11  ;;  %v17471_v61 = vld [vmem:[#allocation8 + $0x860] ss:$16 sps:$4 sm:$0xff]   ;;  %v17473_v11 = vld [vmem:[#allocation8 + $0x868] ss:$16 sps:$4 sm:$0xff]  }
 0x490   :  { %6714 = vmatpush1.bf16.msra.mxu0 %v14708_v52  ;;  %6785 = vmatpush1.bf16.msra.mxu1 %v14711_v27  ;;  %v17477_v52 = vld [vmem:[#allocation8 + $0x884] ss:$16 sps:$4 sm:$0xff]   ;;  %v17479_v27 = vld [vmem:[#allocation8 + $0x88c] ss:$16 sps:$4 sm:$0xff]  }
 0x491   :  { %6715 = vmatprep.subr.bf16.mxu0 %v14716_v28  ;;  %6786 = vmatprep.subr.bf16.mxu1 %v14719_v12  ;;  %18112 = vst [vmem:[#allocation30_spill] sm:$0xff] %v17477_v52  ;;  %18113 = vst [vmem:[#allocation31_spill] sm:$0xff] %v17479_v27  ;;  %v17483_v28 = vld [vmem:[#allocation8 + $0x880] ss:$16 sps:$4 sm:$0xff]   ;;  %v17485_v12 = vld [vmem:[#allocation8 + $0x888] ss:$16 sps:$4 sm:$0xff]  }
 0x492   :  { %18114 = vst [vmem:[#allocation28_spill] sm:$0xff] %v17483_v28  ;;  %18115 = vst [vmem:[#allocation29_spill] sm:$0xff] %v17485_v12 }
 0x494   :  { %6716 = vmatpush1.bf16.msra.mxu0 %v14714_v41  ;;  %6787 = vmatpush1.bf16.msra.mxu1 %v14717_v29  ;;  %v17489_v41 = vpack.c.bf16 %v17343_v18, %v17343_v18  ;;  %v17493_v29 = vld [vmem:[#allocation8 + $0x8a4] ss:$16 sps:$4 sm:$0xff]   ;;  %v17503_v18 = vld [vmem:[#allocation8 + $0x8a0] ss:$16 sps:$4 sm:$0xff]  }
 0x495   :  { %6717 = vmatprep.subr.bf16.mxu0 %v17399_v9  ;;  %6788 = vmatprep.subr.bf16.mxu1 %v17401_v60  ;;  %18116 = vst [vmem:[#allocation34_spill] sm:$0xff] %v17493_v29  ;;  %18118 = vst [vmem:[#allocation33_spill] sm:$0xff] %v17503_v18 }
 0x498   :  { %6718 = vmatpush1.bf16.msra.mxu0 %v17403_v4  ;;  %6789 = vmatpush1.bf16.msra.mxu1 %v17405_v57 }
 0x499   :  { %6719 = vmatprep.subr.bf16.mxu0 %v17409_v44  ;;  %6790 = vmatprep.subr.bf16.mxu1 %v17411_v42 }
 0x49c   :  { %6720 = vmatpush1.bf16.msra.mxu0 %v17415_v13  ;;  %6791 = vmatpush1.bf16.msra.mxu1 %v17417_v49 }
 0x49d   :  { %7289 = vmatprep.subr.bf16.mxu0 %v17421_v33  ;;  %7360 = vmatprep.subr.bf16.mxu1 %v17423_v3 }
 0x49f   :  { %6722 = vmatmul.mubr.bf16.vlgmr.msra.gmra.mrb[64].mxu0 %v17272_v32  ;;  %6793 = vmatmul.mubr.bf16.vlgmr.msra.gmra.mrb[64].mxu1 %v17272_v32 }
 0x4a0   :  { %6731 = vmatprep.mubr.bf16.mxu0 %v17312_v2  ;;  %6802 = vmatprep.mubr.bf16.mxu1 %v17312_v2 }
 0x4a1   :  { %7290 = vmatpush1.bf16.msra.mxu0 %v17427_v10  ;;  %7361 = vmatpush1.bf16.msra.mxu1 %v17430_v23 }
 0x4a2   :  { %7291 = vmatprep.subr.bf16.mxu0 %v17433_v7  ;;  %7362 = vmatprep.subr.bf16.mxu1 %v17435_v34 }
 0x4a5   :  { %7292 = vmatpush1.bf16.msra.mxu0 %v17443_v36  ;;  %7363 = vmatpush1.bf16.msra.mxu1 %v17445_v26 }
 0x4a6   :  { %7293 = vmatprep.subr.bf16.mxu0 %v17449_v19  ;;  %7364 = vmatprep.subr.bf16.mxu1 %v17451_v55 }
 0x4a7   :  { %6732 = vmatmul.mubr.bf16.gmra.mrb[68].mxu0 %v17305_v5  ;;  %6803 = vmatmul.mubr.bf16.gmra.mrb[68].mxu1 %v17305_v5 }
 0x4a8   :  { %6741 = vmatprep.mubr.bf16.mxu0 %v17333_v38  ;;  %6812 = vmatprep.mubr.bf16.mxu1 %v17333_v38 }
 0x4a9   :  { %7294 = vmatpush1.bf16.msra.mxu0 %v17455_v43  ;;  %7365 = vmatpush1.bf16.msra.mxu1 %v17457_v25 }
 0x4aa   :  { %7295 = vmatprep.subr.bf16.mxu0 %v17461_v56  ;;  %7366 = vmatprep.subr.bf16.mxu1 %v17463_v48 }
 0x4ad   :  { %7296 = vmatpush1.bf16.msra.mxu0 %v17471_v61  ;;  %7367 = vmatpush1.bf16.msra.mxu1 %v17473_v11 }
 0x4ae   :  { %7297 = vmatprep.subr.bf16.mxu0 %v17477_v52  ;;  %7368 = vmatprep.subr.bf16.mxu1 %v17479_v27  ;;  %v17511_v27 = vld [vmem:[#allocation8 + $0x8cc] ss:$16 sps:$4 sm:$0xff]   ;;  %v17515_v52 = vpack.c.bf16 %v17336_v31, %v17336_v31  ;;  %v17535_v31 = vld [vmem:[#allocation8 + $0x8e0] ss:$16 sps:$4 sm:$0xff]  }
 0x4af   :  { %6742 = vmatmul.mubr.bf16.gmra.mrb[72].mxu0 %v17329_v62  ;;  %6813 = vmatmul.mubr.bf16.gmra.mrb[72].mxu1 %v17329_v62  ;;  %18121 = vst [vmem:[#allocation36_spill] sm:$0xff] %v17511_v27  ;;  %18126 = vst [vmem:[#allocation42_spill] sm:$0xff] %v17535_v31 }
 0x4b0   :  { %6751 = vmatprep.mubr.bf16.mxu0 %v17489_v41  ;;  %6822 = vmatprep.mubr.bf16.mxu1 %v17489_v41 }
 0x4b1   :  { %7298 = vmatpush1.bf16.msra.mxu0 %v17483_v28  ;;  %7369 = vmatpush1.bf16.msra.mxu1 %v17485_v12  ;;  %v17519_v12 = vld [vmem:[#allocation8 + $0x8c0] ss:$16 sps:$4 sm:$0xff]   ;;  %v17521_v28 = vld [vmem:[#allocation8 + $0x8c8] ss:$16 sps:$4 sm:$0xff]  }
 0x4b2   :  { %7299 = vmatprep.subr.bf16.mxu0 %v17493_v29  ;;  %7370 = vmatprep.subr.bf16.mxu1 %v17495_v40  ;;  %18122 = vst [vmem:[#allocation23_spill] sm:$0xff] %v17519_v12  ;;  %18123 = vst [vmem:[#allocation24_spill] sm:$0xff] %v17521_v28  ;;  %v17525_v40 = vld [vmem:[#allocation8 + $0x8e4] ss:$16 sps:$4 sm:$0xff]   ;;  %v17527_v29 = vld [vmem:[#allocation8 + $0x8ec] ss:$16 sps:$4 sm:$0xff]  }
 0x4b3   :  { %18124 = vst [vmem:[#allocation40_spill] sm:$0xff] %v17525_v40  ;;  %18125 = vst [vmem:[#allocation41_spill] sm:$0xff] %v17527_v29 }
 0x4b5   :  { %7300 = vmatpush1.bf16.msra.mxu0 %v17503_v18  ;;  %7371 = vmatpush1.bf16.msra.mxu1 %v17505_v0  ;;  %v17543_v0 = vld [vmem:[#allocation8 + $0x90c] ss:$16 sps:$4 sm:$0xff]   ;;  %v17547_v18 = vld [vmem:[#allocation8 + $0x900] ss:$16 sps:$4 sm:$0xff]  }
 0x4b6   :  { %7301 = vmatprep.subr.bf16.mxu0 %v17509_v20  ;;  %7372 = vmatprep.subr.bf16.mxu1 %v17511_v27  ;;  %v17537_v20 = vld [vmem:[#allocation8 + $0x8e8] ss:$16 sps:$4 sm:$0xff]   ;;  %v17541_v27 = vld [vmem:[#allocation8 + $0x904] ss:$16 sps:$4 sm:$0xff]   ;;  %18129 = vst [vmem:[#allocation45_spill] sm:$0xff] %v17543_v0  ;;  %18130 = vst [vmem:[#allocation46_spill] sm:$0xff] %v17547_v18 }
 0x4b7   :  { %6752 = vmatmul.mubr.bf16.gmra.mrb[76].mxu0 %v17515_v52  ;;  %6823 = vmatmul.mubr.bf16.gmra.mrb[76].mxu1 %v17515_v52  ;;  %18127 = vst [vmem:[#allocation43_spill] sm:$0xff] %v17537_v20  ;;  %18128 = vst [vmem:[#allocation44_spill] sm:$0xff] %v17541_v27 }
 0x4b8   :  { %7321 = vmatprep.mubr.bf16.mxu0 %v17050_v8  ;;  %7392 = vmatprep.mubr.bf16.mxu1 %v17050_v8 }
 0x4b9   :  { %7302 = vmatpush1.bf16.msra.mxu0 %v17519_v12  ;;  %7373 = vmatpush1.bf16.msra.mxu1 %v17521_v28  ;;  %v17549_v12 = vld [vmem:[#allocation8 + $0x908] ss:$16 sps:$4 sm:$0xff]   ;;  %v17553_v28 = vld [vmem:[#allocation8 + $0x924] ss:$16 sps:$4 sm:$0xff]  }
 0x4ba   :  { %7303 = vmatprep.subr.bf16.mxu0 %v17525_v40  ;;  %7374 = vmatprep.subr.bf16.mxu1 %v17527_v29  ;;  %18131 = vst [vmem:[#allocation47_spill] sm:$0xff] %v17549_v12  ;;  %18132 = vst [vmem:[#allocation48_spill] sm:$0xff] %v17553_v28  ;;  %v17555_v40 = vld [vmem:[#allocation8 + $0x92c] ss:$16 sps:$4 sm:$0xff]   ;;  %v17559_v29 = vld [vmem:[#allocation8 + $0x920] ss:$16 sps:$4 sm:$0xff]  }
 0x4bb   :  { %18133 = vst [vmem:[#allocation49_spill] sm:$0xff] %v17555_v40  ;;  %18134 = vst [vmem:[#allocation50_spill] sm:$0xff] %v17559_v29 }
 0x4bd   :  { %7304 = vmatpush1.bf16.msra.mxu0 %v17535_v31  ;;  %7375 = vmatpush1.bf16.msra.mxu1 %v17537_v20  ;;  %v17561_v31 = vld [vmem:[#allocation8 + $0x928] ss:$16 sps:$4 sm:$0xff]   ;;  %v17565_v20 = vld [vmem:[#allocation8 + $0x944] ss:$16 sps:$4 sm:$0xff]  }
 0x4be   :  { %7305 = vmatprep.subr.bf16.mxu0 %v17541_v27  ;;  %7376 = vmatprep.subr.bf16.mxu1 %v17543_v0  ;;  %18135 = vst [vmem:[#allocation51_spill] sm:$0xff] %v17561_v31  ;;  %18136 = vst [vmem:[#allocation52_spill] sm:$0xff] %v17565_v20  ;;  %v17567_v27 = vld [vmem:[#allocation8 + $0x94c] ss:$16 sps:$4 sm:$0xff]   ;;  %v17571_v0 = vld [vmem:[#allocation8 + $0x940] ss:$16 sps:$4 sm:$0xff]  }
 0x4bf   :  { %18137 = vst [vmem:[#allocation53_spill] sm:$0xff] %v17567_v27  ;;  %18138 = vst [vmem:[#allocation54_spill] sm:$0xff] %v17571_v0 }
 0x4c1   :  { %7306 = vmatpush1.bf16.msra.mxu0 %v17547_v18  ;;  %7377 = vmatpush1.bf16.msra.mxu1 %v17549_v12  ;;  %v17573_v18 = vld [vmem:[#allocation8 + $0x948] ss:$16 sps:$4 sm:$0xff]   ;;  %v17577_v12 = vld [vmem:[#allocation8 + $0x964] ss:$16 sps:$4 sm:$0xff]  }
 0x4c2   :  { %7307 = vmatprep.subr.bf16.mxu0 %v17553_v28  ;;  %7378 = vmatprep.subr.bf16.mxu1 %v17555_v40  ;;  %18139 = vst [vmem:[#allocation55_spill] sm:$0xff] %v17573_v18  ;;  %18140 = vst [vmem:[#allocation56_spill] sm:$0xff] %v17577_v12  ;;  %v17579_v28 = vld [vmem:[#allocation8 + $0x96c] ss:$16 sps:$4 sm:$0xff]   ;;  %v17583_v40 = vld [vmem:[#allocation8 + $0x960] ss:$16 sps:$4 sm:$0xff]  }
 0x4c3   :  { %18141 = vst [vmem:[#allocation57_spill] sm:$0xff] %v17579_v28  ;;  %18142 = vst [vmem:[#allocation58_spill] sm:$0xff] %v17583_v40 }
 0x4c5   :  { %7308 = vmatpush1.bf16.msra.mxu0 %v17559_v29  ;;  %7379 = vmatpush1.bf16.msra.mxu1 %v17561_v31  ;;  %v17585_v29 = vld [vmem:[#allocation8 + $0x968] ss:$16 sps:$4 sm:$0xff]   ;;  %v17589_v31 = vld [vmem:[#allocation8 + $0x984] ss:$16 sps:$4 sm:$0xff]  }
 0x4c6   :  { %7309 = vmatprep.subr.bf16.mxu0 %v17565_v20  ;;  %7380 = vmatprep.subr.bf16.mxu1 %v17567_v27  ;;  %18143 = vst [vmem:[#allocation59_spill] sm:$0xff] %v17585_v29  ;;  %18144 = vst [vmem:[#allocation60_spill] sm:$0xff] %v17589_v31  ;;  %v17591_v20 = vld [vmem:[#allocation8 + $0x98c] ss:$16 sps:$4 sm:$0xff]   ;;  %v17595_v27 = vld [vmem:[#allocation8 + $0x980] ss:$16 sps:$4 sm:$0xff]  }
 0x4c7   :  { %18145 = vst [vmem:[#allocation61_spill] sm:$0xff] %v17591_v20  ;;  %18146 = vst [vmem:[#allocation62_spill] sm:$0xff] %v17595_v27 }
 0x4c9   :  { %7310 = vmatpush1.bf16.msra.mxu0 %v17571_v0  ;;  %7381 = vmatpush1.bf16.msra.mxu1 %v17573_v18  ;;  %v17597_v0 = vld [vmem:[#allocation8 + $0x988] ss:$16 sps:$4 sm:$0xff]   ;;  %v17601_v18 = vld [vmem:[#allocation8 + $0x9a4] ss:$16 sps:$4 sm:$0xff]  }
 0x4ca   :  { %7311 = vmatprep.subr.bf16.mxu0 %v17577_v12  ;;  %7382 = vmatprep.subr.bf16.mxu1 %v17579_v28  ;;  %18147 = vst [vmem:[#allocation63_spill] sm:$0xff] %v17597_v0  ;;  %18148 = vst [vmem:[#allocation64_spill] sm:$0xff] %v17601_v18  ;;  %v17603_v12 = vld [vmem:[#allocation8 + $0x9ac] ss:$16 sps:$4 sm:$0xff]   ;;  %v17607_v28 = vld [vmem:[#allocation8 + $0x9a0] ss:$16 sps:$4 sm:$0xff]  }
 0x4cb   :  { %18149 = vst [vmem:[#allocation65_spill] sm:$0xff] %v17603_v12  ;;  %18150 = vst [vmem:[#allocation66_spill] sm:$0xff] %v17607_v28 }
 0x4cd   :  { %7312 = vmatpush1.bf16.msra.mxu0 %v17583_v40  ;;  %7383 = vmatpush1.bf16.msra.mxu1 %v17585_v29  ;;  %v17609_v40 = vld [vmem:[#allocation8 + $0x9a8] ss:$16 sps:$4 sm:$0xff]   ;;  %v17613_v29 = vld [vmem:[#allocation8 + $0x9c4] ss:$16 sps:$4 sm:$0xff]  }
 0x4ce   :  { %7313 = vmatprep.subr.bf16.mxu0 %v17589_v31  ;;  %7384 = vmatprep.subr.bf16.mxu1 %v17591_v20  ;;  %18151 = vst [vmem:[#allocation67_spill] sm:$0xff] %v17609_v40  ;;  %18152 = vst [vmem:[#allocation68_spill] sm:$0xff] %v17613_v29  ;;  %v17615_v31 = vld [vmem:[#allocation8 + $0x9cc] ss:$16 sps:$4 sm:$0xff]   ;;  %v17619_v20 = vld [vmem:[#allocation8 + $0x9c0] ss:$16 sps:$4 sm:$0xff]  }
 0x4cf   :  { %18153 = vst [vmem:[#allocation69_spill] sm:$0xff] %v17615_v31  ;;  %18154 = vst [vmem:[#allocation70_spill] sm:$0xff] %v17619_v20 }
 0x4d1   :  { %7314 = vmatpush1.bf16.msra.mxu0 %v17595_v27  ;;  %7385 = vmatpush1.bf16.msra.mxu1 %v17597_v0  ;;  %v17621_v27 = vld [vmem:[#allocation8 + $0x9c8] ss:$16 sps:$4 sm:$0xff]   ;;  %v17625_v0 = vld [vmem:[#allocation8 + $0x9e4] ss:$16 sps:$4 sm:$0xff]  }
 0x4d2   :  { %7315 = vmatprep.subr.bf16.mxu0 %v17601_v18  ;;  %7386 = vmatprep.subr.bf16.mxu1 %v17603_v12  ;;  %18155 = vst [vmem:[#allocation71_spill] sm:$0xff] %v17621_v27  ;;  %18156 = vst [vmem:[#allocation72_spill] sm:$0xff] %v17625_v0  ;;  %v17627_v18 = vld [vmem:[#allocation8 + $0x9ec] ss:$16 sps:$4 sm:$0xff]   ;;  %v17631_v12 = vld [vmem:[#allocation8 + $0x9e0] ss:$16 sps:$4 sm:$0xff]  }
 0x4d3   :  { %18157 = vst [vmem:[#allocation73_spill] sm:$0xff] %v17627_v18  ;;  %18158 = vst [vmem:[#allocation74_spill] sm:$0xff] %v17631_v12 }
 0x4d5   :  { %7316 = vmatpush1.bf16.msra.mxu0 %v17607_v28  ;;  %7387 = vmatpush1.bf16.msra.mxu1 %v17609_v40  ;;  %v17633_v28 = vld [vmem:[#allocation8 + $0x9e8] ss:$16 sps:$4 sm:$0xff]   ;;  %v15631_v40 = vld [vmem:[#allocation8 + $0x28c] ss:$16 sps:$4 sm:$0xff]  }
 0x4d6   :  { %7317 = vmatprep.subr.bf16.mxu0 %v17613_v29  ;;  %7388 = vmatprep.subr.bf16.mxu1 %v17615_v31  ;;  %18159 = vst [vmem:[#allocation75_spill] sm:$0xff] %v17633_v28  ;;  %v15614_v31 = vld [vmem:[#allocation8 + $0x204] ss:$16 sps:$4 sm:$0xff]   ;;  %v15615_v29 = vld [vmem:[#allocation8 + $0x20c] ss:$16 sps:$4 sm:$0xff]  }
 0x4d9   :  { %7318 = vmatpush1.bf16.msra.mxu0 %v17619_v20  ;;  %7389 = vmatpush1.bf16.msra.mxu1 %v17621_v27  ;;  %v15616_v27 = vld [vmem:[#allocation8 + $0x200] ss:$16 sps:$4 sm:$0xff]   ;;  %v15623_v20 = vld [vmem:[#allocation8 + $0x24c] ss:$16 sps:$4 sm:$0xff]  }
 0x4da   :  { %7319 = vmatprep.subr.bf16.mxu0 %v17625_v0  ;;  %7390 = vmatprep.subr.bf16.mxu1 %v17627_v18  ;;  %v15617_v0 = vld [vmem:[#allocation8 + $0x208] ss:$16 sps:$4 sm:$0xff]   ;;  %v15618_v18 = vld [vmem:[#allocation8 + $0x224] ss:$16 sps:$4 sm:$0xff]  }
 0x4dd   :  { %7320 = vmatpush1.bf16.msra.mxu0 %v17631_v12  ;;  %7391 = vmatpush1.bf16.msra.mxu1 %v17633_v28  ;;  %v15619_v12 = vld [vmem:[#allocation8 + $0x22c] ss:$16 sps:$4 sm:$0xff]   ;;  %v15620_v28 = vld [vmem:[#allocation8 + $0x220] ss:$16 sps:$4 sm:$0xff]  }
 0x4de   :  { %7459 = vmatprep.subr.bf16.mxu0 %v15614_v31  ;;  %7530 = vmatprep.subr.bf16.mxu1 %v15615_v29  ;;  %v15621_v31 = vld [vmem:[#allocation8 + $0x228] ss:$16 sps:$4 sm:$0xff]   ;;  %v15622_v29 = vld [vmem:[#allocation8 + $0x244] ss:$16 sps:$4 sm:$0xff]  }
 0x4e0   :  { %7322 = vmatmul.mubr.bf16.vlgmr.msra.gmra.mrb[64].mxu0 %v17046_v54  ;;  %7393 = vmatmul.mubr.bf16.vlgmr.msra.gmra.mrb[64].mxu1 %v17046_v54 }
 0x4e1   :  { %7331 = vmatprep.mubr.bf16.mxu0 %v17082_v45  ;;  %7402 = vmatprep.mubr.bf16.mxu1 %v17082_v45 }
 0x4e2   :  { %7460 = vmatpush1.bf16.msra.mxu0 %v15616_v27  ;;  %7531 = vmatpush1.bf16.msra.mxu1 %v15617_v0  ;;  %v15624_v0 = vld [vmem:[#allocation8 + $0x240] ss:$16 sps:$4 sm:$0xff]   ;;  %v15625_v27 = vld [vmem:[#allocation8 + $0x248] ss:$16 sps:$4 sm:$0xff]  }
 0x4e3   :  { %7461 = vmatprep.subr.bf16.mxu0 %v15618_v18  ;;  %7532 = vmatprep.subr.bf16.mxu1 %v15619_v12  ;;  %v15626_v12 = vld [vmem:[#allocation8 + $0x264] ss:$16 sps:$4 sm:$0xff]   ;;  %v17649_v18 = vcombine.high %v18089_v15, %v18089_v15 }
 0x4e6   :  { %7462 = vmatpush1.bf16.msra.mxu0 %v15620_v28  ;;  %7533 = vmatpush1.bf16.msra.mxu1 %v15621_v31  ;;  %v15627_v28 = vld [vmem:[#allocation8 + $0x26c] ss:$16 sps:$4 sm:$0xff]   ;;  %v15629_v31 = vld [vmem:[#allocation8 + $0x268] ss:$16 sps:$4 sm:$0xff]  }
 0x4e7   :  { %7463 = vmatprep.subr.bf16.mxu0 %v15622_v29  ;;  %7534 = vmatprep.subr.bf16.mxu1 %v15623_v20  ;;  %v15628_v20 = vld [vmem:[#allocation8 + $0x260] ss:$16 sps:$4 sm:$0xff]   ;;  %v15630_v29 = vld [vmem:[#allocation8 + $0x284] ss:$16 sps:$4 sm:$0xff]  }
 0x4e8   :  { %7332 = vmatmul.mubr.bf16.gmra.mrb[68].mxu0 %v17076_v21  ;;  %7403 = vmatmul.mubr.bf16.gmra.mrb[68].mxu1 %v17076_v21 }
 0x4e9   :  { %7341 = vmatprep.mubr.bf16.mxu0 %v17112_v47  ;;  %7412 = vmatprep.mubr.bf16.mxu1 %v17112_v47 }
 0x4ea   :  { %7464 = vmatpush1.bf16.msra.mxu0 %v15624_v0  ;;  %7535 = vmatpush1.bf16.msra.mxu1 %v15625_v27  ;;  %v15632_v0 = vld [vmem:[#allocation8 + $0x280] ss:$16 sps:$4 sm:$0xff]   ;;  %v15633_v27 = vld [vmem:[#allocation8 + $0x288] ss:$16 sps:$4 sm:$0xff]  }
 0x4eb   :  { %7465 = vmatprep.subr.bf16.mxu0 %v15626_v12  ;;  %7536 = vmatprep.subr.bf16.mxu1 %v15627_v28  ;;  %v15634_v12 = vld [vmem:[#allocation8 + $0x2a4] ss:$16 sps:$4 sm:$0xff]   ;;  %v15635_v28 = vld [vmem:[#allocation8 + $0x2ac] ss:$16 sps:$4 sm:$0xff]  }
 0x4ee   :  { %7466 = vmatpush1.bf16.msra.mxu0 %v15628_v20  ;;  %7537 = vmatpush1.bf16.msra.mxu1 %v15629_v31  ;;  %v17657_v20 = vcombine.low %v18089_v15, %v18089_v15  ;;  %v15637_v31 = vld [vmem:[#allocation8 + $0x2a8] ss:$16 sps:$4 sm:$0xff]  }
 0x4ef   :  { %7467 = vmatprep.subr.bf16.mxu0 %v15630_v29  ;;  %7538 = vmatprep.subr.bf16.mxu1 %v15631_v40  ;;  %v15636_v40 = vld [vmem:[#allocation8 + $0x2a0] ss:$16 sps:$4 sm:$0xff]   ;;  %v15638_v29 = vld [vmem:[#allocation8 + $0x2c4] ss:$16 sps:$4 sm:$0xff]   ;;  %v15641_v15 = vld [vmem:[#allocation8 + $0x2c8] ss:$16 sps:$4 sm:$0xff]  }
 0x4f0   :  { %7342 = vmatmul.mubr.bf16.gmra.mrb[72].mxu0 %v17108_v46  ;;  %7413 = vmatmul.mubr.bf16.gmra.mrb[72].mxu1 %v17108_v46  ;;  %18160 = vst [vmem:[#allocation76_spill] sm:$0xff] %v17657_v20  ;;  %v15639_v46 = vld [vmem:[#allocation8 + $0x2cc] ss:$16 sps:$4 sm:$0xff]  }
 0x4f1   :  { %7351 = vmatprep.mubr.bf16.mxu0 %v17649_v18  ;;  %7422 = vmatprep.mubr.bf16.mxu1 %v17649_v18 }
 0x4f2   :  { %7468 = vmatpush1.bf16.msra.mxu0 %v15632_v0  ;;  %7539 = vmatpush1.bf16.msra.mxu1 %v15633_v27  ;;  %v15640_v0 = vld [vmem:[#allocation8 + $0x2c0] ss:$16 sps:$4 sm:$0xff]   ;;  %v15642_v27 = vld [vmem:[#allocation8 + $0x2e4] ss:$16 sps:$4 sm:$0xff]  }
 0x4f3   :  { %7469 = vmatprep.subr.bf16.mxu0 %v15634_v12  ;;  %7540 = vmatprep.subr.bf16.mxu1 %v15635_v28  ;;  %v15643_v12 = vld [vmem:[#allocation8 + $0x2ec] ss:$16 sps:$4 sm:$0xff]   ;;  %v15644_v28 = vld [vmem:[#allocation8 + $0x2e0] ss:$16 sps:$4 sm:$0xff]  }
 0x4f6   :  { %7470 = vmatpush1.bf16.msra.mxu0 %v15636_v40  ;;  %7541 = vmatpush1.bf16.msra.mxu1 %v15637_v31  ;;  %v15645_v40 = vld [vmem:[#allocation8 + $0x2e8] ss:$16 sps:$4 sm:$0xff]   ;;  %v15647_v31 = vld [vmem:[#allocation8 + $0x30c] ss:$16 sps:$4 sm:$0xff]  }
 0x4f7   :  { %7471 = vmatprep.subr.bf16.mxu0 %v15638_v29  ;;  %7542 = vmatprep.subr.bf16.mxu1 %v15639_v46  ;;  %v15646_v46 = vld [vmem:[#allocation8 + $0x304] ss:$16 sps:$4 sm:$0xff]   ;;  %v15648_v29 = vld [vmem:[#allocation8 + $0x300] ss:$16 sps:$4 sm:$0xff]  }
 0x4f8   :  { %7352 = vmatmul.mubr.bf16.gmra.mrb[76].mxu0 %v17657_v20  ;;  %7423 = vmatmul.mubr.bf16.gmra.mrb[76].mxu1 %v17657_v20  ;;  %v15649_v20 = vld [vmem:[#allocation8 + $0x308] ss:$16 sps:$4 sm:$0xff]  }
 0x4f9   :  { %7491 = vmatprep.mubr.bf16.mxu0 %v17028_v59  ;;  %7562 = vmatprep.mubr.bf16.mxu1 %v17028_v59  ;;  %v15650_v59 = vld [vmem:[#allocation8 + $0x324] ss:$16 sps:$4 sm:$0xff]  }
 0x4fa   :  { %7472 = vmatpush1.bf16.msra.mxu0 %v15640_v0  ;;  %7543 = vmatpush1.bf16.msra.mxu1 %v15641_v15  ;;  %v15651_v0 = vld [vmem:[#allocation8 + $0x32c] ss:$16 sps:$4 sm:$0xff]   ;;  %v15652_v15 = vld [vmem:[#allocation8 + $0x320] ss:$16 sps:$4 sm:$0xff]  }
 0x4fb   :  { %7473 = vmatprep.subr.bf16.mxu0 %v15642_v27  ;;  %7544 = vmatprep.subr.bf16.mxu1 %v15643_v12  ;;  %v15653_v27 = vld [vmem:[#allocation8 + $0x328] ss:$16 sps:$4 sm:$0xff]   ;;  %v15654_v12 = vld [vmem:[#allocation8 + $0x344] ss:$16 sps:$4 sm:$0xff]  }
 0x4fe   :  { %7474 = vmatpush1.bf16.msra.mxu0 %v15644_v28  ;;  %7545 = vmatpush1.bf16.msra.mxu1 %v15645_v40  ;;  %v15655_v28 = vld [vmem:[#allocation8 + $0x34c] ss:$16 sps:$4 sm:$0xff]   ;;  %v15656_v40 = vld [vmem:[#allocation8 + $0x340] ss:$16 sps:$4 sm:$0xff]  }
 0x4ff   :  { %7475 = vmatprep.subr.bf16.mxu0 %v15646_v46  ;;  %7546 = vmatprep.subr.bf16.mxu1 %v15647_v31  ;;  %v15657_v46 = vld [vmem:[#allocation8 + $0x348] ss:$16 sps:$4 sm:$0xff]   ;;  %v15658_v31 = vld [vmem:[#allocation8 + $0x364] ss:$16 sps:$4 sm:$0xff]  }
 0x502   :  { %7476 = vmatpush1.bf16.msra.mxu0 %v15648_v29  ;;  %7547 = vmatpush1.bf16.msra.mxu1 %v15649_v20  ;;  %v15659_v29 = vld [vmem:[#allocation8 + $0x36c] ss:$16 sps:$4 sm:$0xff]   ;;  %v15660_v20 = vld [vmem:[#allocation8 + $0x360] ss:$16 sps:$4 sm:$0xff]  }
 0x503   :  { %7477 = vmatprep.subr.bf16.mxu0 %v15650_v59  ;;  %7548 = vmatprep.subr.bf16.mxu1 %v15651_v0  ;;  %v15661_v59 = vld [vmem:[#allocation8 + $0x368] ss:$16 sps:$4 sm:$0xff]   ;;  %v15662_v0 = vld [vmem:[#allocation8 + $0x384] ss:$16 sps:$4 sm:$0xff]  }
 0x506   :  { %7478 = vmatpush1.bf16.msra.mxu0 %v15652_v15  ;;  %7549 = vmatpush1.bf16.msra.mxu1 %v15653_v27  ;;  %v15663_v15 = vld [vmem:[#allocation8 + $0x38c] ss:$16 sps:$4 sm:$0xff]   ;;  %v15664_v27 = vld [vmem:[#allocation8 + $0x380] ss:$16 sps:$4 sm:$0xff]  }
 0x507   :  { %7479 = vmatprep.subr.bf16.mxu0 %v15654_v12  ;;  %7550 = vmatprep.subr.bf16.mxu1 %v15655_v28  ;;  %v15665_v12 = vld [vmem:[#allocation8 + $0x388] ss:$16 sps:$4 sm:$0xff]   ;;  %v15666_v28 = vld [vmem:[#allocation8 + $0x3a4] ss:$16 sps:$4 sm:$0xff]  }
 0x50a   :  { %7480 = vmatpush1.bf16.msra.mxu0 %v15656_v40  ;;  %7551 = vmatpush1.bf16.msra.mxu1 %v15657_v46  ;;  %v15667_v40 = vld [vmem:[#allocation8 + $0x3ac] ss:$16 sps:$4 sm:$0xff]   ;;  %v15668_v46 = vld [vmem:[#allocation8 + $0x3a0] ss:$16 sps:$4 sm:$0xff]  }
 0x50b   :  { %7481 = vmatprep.subr.bf16.mxu0 %v15658_v31  ;;  %7552 = vmatprep.subr.bf16.mxu1 %v15659_v29  ;;  %v15669_v31 = vld [vmem:[#allocation8 + $0x3a8] ss:$16 sps:$4 sm:$0xff]   ;;  %v15670_v29 = vld [vmem:[#allocation8 + $0x3c4] ss:$16 sps:$4 sm:$0xff]  }
 0x50e   :  { %7482 = vmatpush1.bf16.msra.mxu0 %v15660_v20  ;;  %7553 = vmatpush1.bf16.msra.mxu1 %v15661_v59  ;;  %v15671_v20 = vld [vmem:[#allocation8 + $0x3cc] ss:$16 sps:$4 sm:$0xff]   ;;  %v15672_v59 = vld [vmem:[#allocation8 + $0x3c0] ss:$16 sps:$4 sm:$0xff]  }
 0x50f   :  { %7483 = vmatprep.subr.bf16.mxu0 %v15662_v0  ;;  %7554 = vmatprep.subr.bf16.mxu1 %v15663_v15  ;;  %v15673_v0 = vld [vmem:[#allocation8 + $0x3c8] ss:$16 sps:$4 sm:$0xff]   ;;  %v15674_v15 = vld [vmem:[#allocation8 + $0x3e4] ss:$16 sps:$4 sm:$0xff]  }
 0x512   :  { %7484 = vmatpush1.bf16.msra.mxu0 %v15664_v27  ;;  %7555 = vmatpush1.bf16.msra.mxu1 %v15665_v12  ;;  %v15675_v27 = vld [vmem:[#allocation8 + $0x3ec] ss:$16 sps:$4 sm:$0xff]   ;;  %v15676_v12 = vld [vmem:[#allocation8 + $0x3e0] ss:$16 sps:$4 sm:$0xff]  }
 0x513   :  { %7485 = vmatprep.subr.bf16.mxu0 %v15666_v28  ;;  %7556 = vmatprep.subr.bf16.mxu1 %v15667_v40  ;;  %v15677_v28 = vld [vmem:[#allocation8 + $0x3e8] ss:$16 sps:$4 sm:$0xff]   ;;  %v15678_v40 = vld [vmem:[#allocation8 + $0x4] ss:$16 sps:$4 sm:$0xff]  }
 0x516   :  { %7486 = vmatpush1.bf16.msra.mxu0 %v15668_v46  ;;  %7557 = vmatpush1.bf16.msra.mxu1 %v15669_v31  ;;  %v15679_v46 = vld [vmem:[#allocation8 + $0xc] ss:$16 sps:$4 sm:$0xff]   ;;  %v15680_v31 = vld [vmem:[#allocation8] ss:$16 sps:$4 sm:$0xff]  }
 0x517   :  { %7487 = vmatprep.subr.bf16.mxu0 %v15670_v29  ;;  %7558 = vmatprep.subr.bf16.mxu1 %v15671_v20  ;;  %v15681_v29 = vld [vmem:[#allocation8 + $0x8] ss:$16 sps:$4 sm:$0xff]   ;;  %v15682_v20 = vld [vmem:[#allocation8 + $0x24] ss:$16 sps:$4 sm:$0xff]  }
 0x51a   :  { %7488 = vmatpush1.bf16.msra.mxu0 %v15672_v59  ;;  %7559 = vmatpush1.bf16.msra.mxu1 %v15673_v0  ;;  %v15683_v59 = vld [vmem:[#allocation8 + $0x2c] ss:$16 sps:$4 sm:$0xff]   ;;  %v15684_v0 = vld [vmem:[#allocation8 + $0x20] ss:$16 sps:$4 sm:$0xff]  }
 0x51b   :  { %7489 = vmatprep.subr.bf16.mxu0 %v15674_v15  ;;  %7560 = vmatprep.subr.bf16.mxu1 %v15675_v27  ;;  %v15685_v15 = vld [vmem:[#allocation8 + $0x28] ss:$16 sps:$4 sm:$0xff]   ;;  %v15686_v27 = vld [vmem:[#allocation8 + $0x44] ss:$16 sps:$4 sm:$0xff]  }
 0x51e   :  { %7490 = vmatpush1.bf16.msra.mxu0 %v15676_v12  ;;  %7561 = vmatpush1.bf16.msra.mxu1 %v15677_v28  ;;  %v15687_v12 = vld [vmem:[#allocation8 + $0x4c] ss:$16 sps:$4 sm:$0xff]   ;;  %v15690_v28 = vld [vmem:[#allocation8 + $0x64] ss:$16 sps:$4 sm:$0xff]  }
 0x51f   :  { %7601 = vmatprep.subr.bf16.mxu0 %v15678_v40  ;;  %7672 = vmatprep.subr.bf16.mxu1 %v15679_v46  ;;  %v15691_v40 = vld [vmem:[#allocation8 + $0x6c] ss:$16 sps:$4 sm:$0xff]   ;;  %v15692_v46 = vld [vmem:[#allocation8 + $0x60] ss:$16 sps:$4 sm:$0xff]  }
 0x521   :  { %7492 = vmatmul.mubr.bf16.vlgmr.msra.gmra.mrb[80].mxu0 %v17024_v50  ;;  %7563 = vmatmul.mubr.bf16.vlgmr.msra.gmra.mrb[80].mxu1 %v17024_v50  ;;  %v15688_v50 = vld [vmem:[#allocation8 + $0x40] ss:$16 sps:$4 sm:$0xff]  }
 0x522   :  { %7501 = vmatprep.mubr.bf16.mxu0 %v17061_v51  ;;  %7572 = vmatprep.mubr.bf16.mxu1 %v17061_v51  ;;  %v15689_v51 = vld [vmem:[#allocation8 + $0x48] ss:$16 sps:$4 sm:$0xff]  }
 0x523   :  { %7602 = vmatpush1.bf16.msra.mxu0 %v15680_v31  ;;  %7673 = vmatpush1.bf16.msra.mxu1 %v15681_v29  ;;  %v15693_v31 = vld [vmem:[#allocation8 + $0x68] ss:$16 sps:$4 sm:$0xff]   ;;  %v15694_v29 = vld [vmem:[#allocation8 + $0x84] ss:$16 sps:$4 sm:$0xff]  }
 0x524   :  { %7603 = vmatprep.subr.bf16.mxu0 %v15682_v20  ;;  %7674 = vmatprep.subr.bf16.mxu1 %v15683_v59  ;;  %v15695_v20 = vld [vmem:[#allocation8 + $0x8c] ss:$16 sps:$4 sm:$0xff]   ;;  %v15698_v59 = vld [vmem:[#allocation8 + $0xa4] ss:$16 sps:$4 sm:$0xff]  }
 0x527   :  { %7604 = vmatpush1.bf16.msra.mxu0 %v15684_v0  ;;  %7675 = vmatpush1.bf16.msra.mxu1 %v15685_v15  ;;  %v15699_v0 = vld [vmem:[#allocation8 + $0xac] ss:$16 sps:$4 sm:$0xff]   ;;  %v15700_v15 = vld [vmem:[#allocation8 + $0xa0] ss:$16 sps:$4 sm:$0xff]  }
 0x528   :  { %7605 = vmatprep.subr.bf16.mxu0 %v15686_v27  ;;  %7676 = vmatprep.subr.bf16.mxu1 %v15687_v12  ;;  %v15701_v27 = vld [vmem:[#allocation8 + $0xa8] ss:$16 sps:$4 sm:$0xff]   ;;  %v15702_v12 = vld [vmem:[#allocation8 + $0xc4] ss:$16 sps:$4 sm:$0xff]  }
 0x529   :  { %7502 = vmatmul.mubr.bf16.gmra.mrb[84].mxu0 %v17056_v6  ;;  %7573 = vmatmul.mubr.bf16.gmra.mrb[84].mxu1 %v17056_v6  ;;  %v15696_v6 = vld [vmem:[#allocation8 + $0x80] ss:$16 sps:$4 sm:$0xff]  }
 0x52a   :  { %7511 = vmatprep.mubr.bf16.mxu0 %v17092_v1  ;;  %7582 = vmatprep.mubr.bf16.mxu1 %v17092_v1  ;;  %v15697_v1 = vld [vmem:[#allocation8 + $0x88] ss:$16 sps:$4 sm:$0xff]  }
 0x52b   :  { %7606 = vmatpush1.bf16.msra.mxu0 %v15688_v50  ;;  %7677 = vmatpush1.bf16.msra.mxu1 %v15689_v51  ;;  %v15703_v50 = vld [vmem:[#allocation8 + $0xcc] ss:$16 sps:$4 sm:$0xff]   ;;  %v15706_v51 = vld [vmem:[#allocation8 + $0xe4] ss:$16 sps:$4 sm:$0xff]  }
 0x52c   :  { %7607 = vmatprep.subr.bf16.mxu0 %v15690_v28  ;;  %7678 = vmatprep.subr.bf16.mxu1 %v15691_v40  ;;  %v15707_v28 = vld [vmem:[#allocation8 + $0xec] ss:$16 sps:$4 sm:$0xff]   ;;  %v15708_v40 = vld [vmem:[#allocation8 + $0xe0] ss:$16 sps:$4 sm:$0xff]  }
 0x52f   :  { %7608 = vmatpush1.bf16.msra.mxu0 %v15692_v46  ;;  %7679 = vmatpush1.bf16.msra.mxu1 %v15693_v31  ;;  %v15709_v46 = vld [vmem:[#allocation8 + $0xe8] ss:$16 sps:$4 sm:$0xff]   ;;  %v15710_v31 = vld [vmem:[#allocation8 + $0x104] ss:$16 sps:$4 sm:$0xff]  }
 0x530   :  { %7609 = vmatprep.subr.bf16.mxu0 %v15694_v29  ;;  %7680 = vmatprep.subr.bf16.mxu1 %v15695_v20  ;;  %v15711_v29 = vld [vmem:[#allocation8 + $0x10c] ss:$16 sps:$4 sm:$0xff]   ;;  %v15713_v20 = vld [vmem:[#allocation8 + $0x108] ss:$16 sps:$4 sm:$0xff]  }
 0x531   :  { %7512 = vmatmul.mubr.bf16.gmra.mrb[88].mxu0 %v17089_v39  ;;  %7583 = vmatmul.mubr.bf16.gmra.mrb[88].mxu1 %v17089_v39  ;;  %v15704_v39 = vld [vmem:[#allocation8 + $0xc0] ss:$16 sps:$4 sm:$0xff]  }
 0x532   :  { %7521 = vmatprep.mubr.bf16.mxu0 %v17385_v58  ;;  %7592 = vmatprep.mubr.bf16.mxu1 %v17385_v58  ;;  %v15705_v58 = vld [vmem:[#allocation8 + $0xc8] ss:$16 sps:$4 sm:$0xff]  }
 0x533   :  { %7610 = vmatpush1.bf16.msra.mxu0 %v15696_v6  ;;  %7681 = vmatpush1.bf16.msra.mxu1 %v15697_v1  ;;  %v15715_v6 = vld [vmem:[#allocation8 + $0x12c] ss:$16 sps:$4 sm:$0xff]   ;;  %v15716_v1 = vld [vmem:[#allocation8 + $0x120] ss:$16 sps:$4 sm:$0xff]  }
 0x534   :  { %7611 = vmatprep.subr.bf16.mxu0 %v15698_v59  ;;  %7682 = vmatprep.subr.bf16.mxu1 %v15699_v0  ;;  %v15717_v59 = vld [vmem:[#allocation8 + $0x128] ss:$16 sps:$4 sm:$0xff]   ;;  %v15718_v0 = vld [vmem:[#allocation8 + $0x144] ss:$16 sps:$4 sm:$0xff]  }
 0x537   :  { %7612 = vmatpush1.bf16.msra.mxu0 %v15700_v15  ;;  %7683 = vmatpush1.bf16.msra.mxu1 %v15701_v27  ;;  %v15719_v15 = vld [vmem:[#allocation8 + $0x14c] ss:$16 sps:$4 sm:$0xff]   ;;  %v15720_v27 = vld [vmem:[#allocation8 + $0x140] ss:$16 sps:$4 sm:$0xff]  }
 0x538   :  { %7613 = vmatprep.subr.bf16.mxu0 %v15702_v12  ;;  %7684 = vmatprep.subr.bf16.mxu1 %v15703_v50  ;;  %v15721_v12 = vld [vmem:[#allocation8 + $0x148] ss:$16 sps:$4 sm:$0xff]   ;;  %v15722_v50 = vld [vmem:[#allocation8 + $0x164] ss:$16 sps:$4 sm:$0xff]  }
 0x539   :  { %7522 = vmatmul.mubr.bf16.gmra.mrb[92].mxu0 %v17393_v30  ;;  %7593 = vmatmul.mubr.bf16.gmra.mrb[92].mxu1 %v17393_v30  ;;  %v15712_v30 = vld [vmem:[#allocation8 + $0x100] ss:$16 sps:$4 sm:$0xff]  }
 0x53a   :  { %7633 = vmatprep.mubr.bf16.mxu0 %v17285_v24  ;;  %7704 = vmatprep.mubr.bf16.mxu1 %v17285_v24  ;;  %v15714_v24 = vld [vmem:[#allocation8 + $0x124] ss:$16 sps:$4 sm:$0xff]  }
 0x53b   :  { %7614 = vmatpush1.bf16.msra.mxu0 %v15704_v39  ;;  %7685 = vmatpush1.bf16.msra.mxu1 %v15705_v58  ;;  %v15723_v39 = vld [vmem:[#allocation8 + $0x16c] ss:$16 sps:$4 sm:$0xff]   ;;  %v15724_v58 = vld [vmem:[#allocation8 + $0x160] ss:$16 sps:$4 sm:$0xff]  }
 0x53c   :  { %7615 = vmatprep.subr.bf16.mxu0 %v15706_v51  ;;  %7686 = vmatprep.subr.bf16.mxu1 %v15707_v28  ;;  %v15725_v51 = vld [vmem:[#allocation8 + $0x168] ss:$16 sps:$4 sm:$0xff]   ;;  %v15726_v28 = vld [vmem:[#allocation8 + $0x184] ss:$16 sps:$4 sm:$0xff]  }
 0x53f   :  { %7616 = vmatpush1.bf16.msra.mxu0 %v15708_v40  ;;  %7687 = vmatpush1.bf16.msra.mxu1 %v15709_v46  ;;  %v15727_v40 = vld [vmem:[#allocation8 + $0x18c] ss:$16 sps:$4 sm:$0xff]   ;;  %v15728_v46 = vld [vmem:[#allocation8 + $0x180] ss:$16 sps:$4 sm:$0xff]  }
 0x540   :  { %7617 = vmatprep.subr.bf16.mxu0 %v15710_v31  ;;  %7688 = vmatprep.subr.bf16.mxu1 %v15711_v29  ;;  %v15729_v31 = vld [vmem:[#allocation8 + $0x188] ss:$16 sps:$4 sm:$0xff]   ;;  %v15730_v29 = vld [vmem:[#allocation8 + $0x1a4] ss:$16 sps:$4 sm:$0xff]  }
 0x543   :  { %7618 = vmatpush1.bf16.msra.mxu0 %v15712_v30  ;;  %7689 = vmatpush1.bf16.msra.mxu1 %v15713_v20  ;;  %v15731_v30 = vld [vmem:[#allocation8 + $0x1ac] ss:$16 sps:$4 sm:$0xff]   ;;  %v15732_v20 = vld [vmem:[#allocation8 + $0x1a0] ss:$16 sps:$4 sm:$0xff]  }
 0x544   :  { %7619 = vmatprep.subr.bf16.mxu0 %v15714_v24  ;;  %7690 = vmatprep.subr.bf16.mxu1 %v15715_v6  ;;  %v15733_v24 = vld [vmem:[#allocation8 + $0x1a8] ss:$16 sps:$4 sm:$0xff]   ;;  %v15734_v6 = vld [vmem:[#allocation8 + $0x1c4] ss:$16 sps:$4 sm:$0xff]  }
 0x547   :  { %7620 = vmatpush1.bf16.msra.mxu0 %v15716_v1  ;;  %7691 = vmatpush1.bf16.msra.mxu1 %v15717_v59  ;;  %v15735_v1 = vld [vmem:[#allocation8 + $0x1cc] ss:$16 sps:$4 sm:$0xff]   ;;  %v15736_v59 = vld [vmem:[#allocation8 + $0x1c0] ss:$16 sps:$4 sm:$0xff]  }
 0x548   :  { %7621 = vmatprep.subr.bf16.mxu0 %v15718_v0  ;;  %7692 = vmatprep.subr.bf16.mxu1 %v15719_v15  ;;  %v15737_v0 = vld [vmem:[#allocation8 + $0x1c8] ss:$16 sps:$4 sm:$0xff]   ;;  %v15738_v15 = vld [vmem:[#allocation8 + $0x1e4] ss:$16 sps:$4 sm:$0xff]  }
 0x54b   :  { %7622 = vmatpush1.bf16.msra.mxu0 %v15720_v27  ;;  %7693 = vmatpush1.bf16.msra.mxu1 %v15721_v12  ;;  %v15739_v27 = vld [vmem:[#allocation8 + $0x1ec] ss:$16 sps:$4 sm:$0xff]   ;;  %v15740_v12 = vld [vmem:[#allocation8 + $0x1e0] ss:$16 sps:$4 sm:$0xff]  }
 0x54c   :  { %7623 = vmatprep.subr.bf16.mxu0 %v15722_v50  ;;  %7694 = vmatprep.subr.bf16.mxu1 %v15723_v39  ;;  %v15741_v50 = vld [vmem:[#allocation8 + $0x1e8] ss:$16 sps:$4 sm:$0xff]   ;;  %v15742_v39 = vld [vmem:[#allocation8 + $0x404] ss:$16 sps:$4 sm:$0xff]  }
 0x54f   :  { %7624 = vmatpush1.bf16.msra.mxu0 %v15724_v58  ;;  %7695 = vmatpush1.bf16.msra.mxu1 %v15725_v51  ;;  %v15743_v58 = vld [vmem:[#allocation8 + $0x40c] ss:$16 sps:$4 sm:$0xff]   ;;  %v15744_v51 = vld [vmem:[#allocation8 + $0x400] ss:$16 sps:$4 sm:$0xff]  }
 0x550   :  { %7625 = vmatprep.subr.bf16.mxu0 %v15726_v28  ;;  %7696 = vmatprep.subr.bf16.mxu1 %v15727_v40  ;;  %v15745_v28 = vld [vmem:[#allocation8 + $0x408] ss:$16 sps:$4 sm:$0xff]   ;;  %v15746_v40 = vld [vmem:[#allocation8 + $0x424] ss:$16 sps:$4 sm:$0xff]  }
 0x553   :  { %7626 = vmatpush1.bf16.msra.mxu0 %v15728_v46  ;;  %7697 = vmatpush1.bf16.msra.mxu1 %v15729_v31  ;;  %v15747_v46 = vld [vmem:[#allocation8 + $0x42c] ss:$16 sps:$4 sm:$0xff]   ;;  %v15748_v31 = vld [vmem:[#allocation8 + $0x420] ss:$16 sps:$4 sm:$0xff]  }
 0x554   :  { %7627 = vmatprep.subr.bf16.mxu0 %v15730_v29  ;;  %7698 = vmatprep.subr.bf16.mxu1 %v15731_v30  ;;  %v15749_v29 = vld [vmem:[#allocation8 + $0x428] ss:$16 sps:$4 sm:$0xff]   ;;  %v15750_v30 = vld [vmem:[#allocation8 + $0x444] ss:$16 sps:$4 sm:$0xff]  }
 0x557   :  { %7628 = vmatpush1.bf16.msra.mxu0 %v15732_v20  ;;  %7699 = vmatpush1.bf16.msra.mxu1 %v15733_v24  ;;  %v15751_v20 = vld [vmem:[#allocation8 + $0x44c] ss:$16 sps:$4 sm:$0xff]   ;;  %v15753_v24 = vld [vmem:[#allocation8 + $0x448] ss:$16 sps:$4 sm:$0xff]  }
 0x558   :  { %7629 = vmatprep.subr.bf16.mxu0 %v15734_v6  ;;  %7700 = vmatprep.subr.bf16.mxu1 %v15735_v1  ;;  %v15754_v6 = vld [vmem:[#allocation8 + $0x464] ss:$16 sps:$4 sm:$0xff]   ;;  %v15755_v1 = vld [vmem:[#allocation8 + $0x46c] ss:$16 sps:$4 sm:$0xff]  }
 0x55b   :  { %7630 = vmatpush1.bf16.msra.mxu0 %v15736_v59  ;;  %7701 = vmatpush1.bf16.msra.mxu1 %v15737_v0  ;;  %v15756_v59 = vld [vmem:[#allocation8 + $0x460] ss:$16 sps:$4 sm:$0xff]   ;;  %v15757_v0 = vld [vmem:[#allocation8 + $0x468] ss:$16 sps:$4 sm:$0xff]  }
 0x55c   :  { %7631 = vmatprep.subr.bf16.mxu0 %v15738_v15  ;;  %7702 = vmatprep.subr.bf16.mxu1 %v15739_v27  ;;  %v15758_v15 = vld [vmem:[#allocation8 + $0x484] ss:$16 sps:$4 sm:$0xff]   ;;  %v15759_v27 = vld [vmem:[#allocation8 + $0x48c] ss:$16 sps:$4 sm:$0xff]  }
 0x55f   :  { %7632 = vmatpush1.bf16.msra.mxu0 %v15740_v12  ;;  %7703 = vmatpush1.bf16.msra.mxu1 %v15741_v50  ;;  %v15760_v12 = vld [vmem:[#allocation8 + $0x480] ss:$16 sps:$4 sm:$0xff]   ;;  %v15761_v50 = vld [vmem:[#allocation8 + $0x488] ss:$16 sps:$4 sm:$0xff]  }
 0x560   :  { %7743 = vmatprep.subr.bf16.mxu0 %v15742_v39  ;;  %7814 = vmatprep.subr.bf16.mxu1 %v15743_v58  ;;  %v15762_v39 = vld [vmem:[#allocation8 + $0x4a4] ss:$16 sps:$4 sm:$0xff]   ;;  %v15763_v58 = vld [vmem:[#allocation8 + $0x4ac] ss:$16 sps:$4 sm:$0xff]  }
 0x562   :  { %7634 = vmatmul.mubr.bf16.vlgmr.msra.gmra.mrb[80].mxu0 %v17277_v22  ;;  %7705 = vmatmul.mubr.bf16.vlgmr.msra.gmra.mrb[80].mxu1 %v17277_v22  ;;  %v15752_v22 = vld [vmem:[#allocation8 + $0x440] ss:$16 sps:$4 sm:$0xff]  }
 0x563   :  { %7643 = vmatprep.mubr.bf16.mxu0 %v17300_v17  ;;  %7714 = vmatprep.mubr.bf16.mxu1 %v17300_v17 }
 0x564   :  { %7744 = vmatpush1.bf16.msra.mxu0 %v15744_v51  ;;  %7815 = vmatpush1.bf16.msra.mxu1 %v15745_v28  ;;  %v15764_v51 = vld [vmem:[#allocation8 + $0x4a0] ss:$16 sps:$4 sm:$0xff]   ;;  %v15765_v28 = vld [vmem:[#allocation8 + $0x4a8] ss:$16 sps:$4 sm:$0xff]  }
 0x565   :  { %7745 = vmatprep.subr.bf16.mxu0 %v15746_v40  ;;  %7816 = vmatprep.subr.bf16.mxu1 %v15747_v46  ;;  %v15766_v40 = vld [vmem:[#allocation8 + $0x4c4] ss:$16 sps:$4 sm:$0xff]   ;;  %v15767_v46 = vld [vmem:[#allocation8 + $0x4cc] ss:$16 sps:$4 sm:$0xff]  }
 0x568   :  { %7746 = vmatpush1.bf16.msra.mxu0 %v15748_v31  ;;  %7817 = vmatpush1.bf16.msra.mxu1 %v15749_v29  ;;  %v15769_v31 = vld [vmem:[#allocation8 + $0x4c8] ss:$16 sps:$4 sm:$0xff]   ;;  %v15770_v29 = vld [vmem:[#allocation8 + $0x4e4] ss:$16 sps:$4 sm:$0xff]  }
 0x569   :  { %7747 = vmatprep.subr.bf16.mxu0 %v15750_v30  ;;  %7818 = vmatprep.subr.bf16.mxu1 %v15751_v20  ;;  %v15771_v30 = vld [vmem:[#allocation8 + $0x4ec] ss:$16 sps:$4 sm:$0xff]   ;;  %v15772_v20 = vld [vmem:[#allocation8 + $0x4e0] ss:$16 sps:$4 sm:$0xff]  }
 0x56a   :  { %7644 = vmatmul.mubr.bf16.gmra.mrb[84].mxu0 %v17295_v37  ;;  %7715 = vmatmul.mubr.bf16.gmra.mrb[84].mxu1 %v17295_v37 }
 0x56b   :  { %7653 = vmatprep.mubr.bf16.mxu0 %v17325_v63  ;;  %7724 = vmatprep.mubr.bf16.mxu1 %v17325_v63 }
 0x56c   :  { %7748 = vmatpush1.bf16.msra.mxu0 %v15752_v22  ;;  %7819 = vmatpush1.bf16.msra.mxu1 %v15753_v24  ;;  %v15773_v22 = vld [vmem:[#allocation8 + $0x4e8] ss:$16 sps:$4 sm:$0xff]   ;;  %v15774_v24 = vld [vmem:[#allocation8 + $0x504] ss:$16 sps:$4 sm:$0xff]  }
 0x56d   :  { %7749 = vmatprep.subr.bf16.mxu0 %v15754_v6  ;;  %7820 = vmatprep.subr.bf16.mxu1 %v15755_v1  ;;  %v15775_v6 = vld [vmem:[#allocation8 + $0x50c] ss:$16 sps:$4 sm:$0xff]   ;;  %v15777_v1 = vld [vmem:[#allocation8 + $0x508] ss:$16 sps:$4 sm:$0xff]  }
 0x570   :  { %7750 = vmatpush1.bf16.msra.mxu0 %v15756_v59  ;;  %7821 = vmatpush1.bf16.msra.mxu1 %v15757_v0  ;;  %v15779_v59 = vld [vmem:[#allocation8 + $0x52c] ss:$16 sps:$4 sm:$0xff]   ;;  %v15780_v0 = vld [vmem:[#allocation8 + $0x520] ss:$16 sps:$4 sm:$0xff]  }
 0x571   :  { %7751 = vmatprep.subr.bf16.mxu0 %v15758_v15  ;;  %7822 = vmatprep.subr.bf16.mxu1 %v15759_v27  ;;  %v15781_v15 = vld [vmem:[#allocation8 + $0x528] ss:$16 sps:$4 sm:$0xff]   ;;  %v15782_v27 = vld [vmem:[#allocation8 + $0x544] ss:$16 sps:$4 sm:$0xff]  }
 0x572   :  { %7654 = vmatmul.mubr.bf16.gmra.mrb[88].mxu0 %v17323_v16  ;;  %7725 = vmatmul.mubr.bf16.gmra.mrb[88].mxu1 %v17323_v16 }
 0x573   :  { %7663 = vmatprep.mubr.bf16.mxu0 %v17341_v14  ;;  %7734 = vmatprep.mubr.bf16.mxu1 %v17341_v14  ;;  %v15768_v14 = vld [vmem:[#allocation8 + $0x4c0] ss:$16 sps:$4 sm:$0xff]  }
 0x574   :  { %7752 = vmatpush1.bf16.msra.mxu0 %v15760_v12  ;;  %7823 = vmatpush1.bf16.msra.mxu1 %v15761_v50  ;;  %v15783_v12 = vld [vmem:[#allocation8 + $0x54c] ss:$16 sps:$4 sm:$0xff]   ;;  %v15784_v50 = vld [vmem:[#allocation8 + $0x540] ss:$16 sps:$4 sm:$0xff]  }
 0x575   :  { %7753 = vmatprep.subr.bf16.mxu0 %v15762_v39  ;;  %7824 = vmatprep.subr.bf16.mxu1 %v15763_v58  ;;  %v15785_v39 = vld [vmem:[#allocation8 + $0x548] ss:$16 sps:$4 sm:$0xff]   ;;  %v15786_v58 = vld [vmem:[#allocation8 + $0x564] ss:$16 sps:$4 sm:$0xff]  }
 0x578   :  { %7754 = vmatpush1.bf16.msra.mxu0 %v15764_v51  ;;  %7825 = vmatpush1.bf16.msra.mxu1 %v15765_v28  ;;  %v15787_v51 = vld [vmem:[#allocation8 + $0x56c] ss:$16 sps:$4 sm:$0xff]   ;;  %v15788_v28 = vld [vmem:[#allocation8 + $0x560] ss:$16 sps:$4 sm:$0xff]  }
 0x579   :  { %7755 = vmatprep.subr.bf16.mxu0 %v15766_v40  ;;  %7826 = vmatprep.subr.bf16.mxu1 %v15767_v46  ;;  %v15789_v40 = vld [vmem:[#allocation8 + $0x568] ss:$16 sps:$4 sm:$0xff]   ;;  %v15790_v46 = vld [vmem:[#allocation8 + $0x584] ss:$16 sps:$4 sm:$0xff]  }
 0x57a   :  { %7664 = vmatmul.mubr.bf16.gmra.mrb[92].mxu0 %v17353_v53  ;;  %7735 = vmatmul.mubr.bf16.gmra.mrb[92].mxu1 %v17353_v53  ;;  %v15776_v53 = vld [vmem:[#allocation8 + $0x500] ss:$16 sps:$4 sm:$0xff]  }
 0x57b   :  { %7775 = vmatprep.mubr.bf16.mxu0 %v17279_v35  ;;  %7846 = vmatprep.mubr.bf16.mxu1 %v17279_v35  ;;  %v15778_v35 = vld [vmem:[#allocation8 + $0x524] ss:$16 sps:$4 sm:$0xff]  }
 0x57c   :  { %7756 = vmatpush1.bf16.msra.mxu0 %v15768_v14  ;;  %7827 = vmatpush1.bf16.msra.mxu1 %v15769_v31  ;;  %v15791_v14 = vld [vmem:[#allocation8 + $0x58c] ss:$16 sps:$4 sm:$0xff]   ;;  %v15792_v31 = vld [vmem:[#allocation8 + $0x580] ss:$16 sps:$4 sm:$0xff]  }
 0x57d   :  { %7757 = vmatprep.subr.bf16.mxu0 %v15770_v29  ;;  %7828 = vmatprep.subr.bf16.mxu1 %v15771_v30  ;;  %v15793_v29 = vld [vmem:[#allocation8 + $0x588] ss:$16 sps:$4 sm:$0xff]   ;;  %v15794_v30 = vld [vmem:[#allocation8 + $0x5a4] ss:$16 sps:$4 sm:$0xff]  }
 0x580   :  { %7758 = vmatpush1.bf16.msra.mxu0 %v15772_v20  ;;  %7829 = vmatpush1.bf16.msra.mxu1 %v15773_v22  ;;  %v15795_v20 = vld [vmem:[#allocation8 + $0x5ac] ss:$16 sps:$4 sm:$0xff]   ;;  %v15796_v22 = vld [vmem:[#allocation8 + $0x5a0] ss:$16 sps:$4 sm:$0xff]  }
 0x581   :  { %7759 = vmatprep.subr.bf16.mxu0 %v15774_v24  ;;  %7830 = vmatprep.subr.bf16.mxu1 %v15775_v6  ;;  %v15797_v24 = vld [vmem:[#allocation8 + $0x5a8] ss:$16 sps:$4 sm:$0xff]   ;;  %v15798_v6 = vld [vmem:[#allocation8 + $0x5c4] ss:$16 sps:$4 sm:$0xff]  }
 0x584   :  { %7760 = vmatpush1.bf16.msra.mxu0 %v15776_v53  ;;  %7831 = vmatpush1.bf16.msra.mxu1 %v15777_v1  ;;  %v15799_v53 = vld [vmem:[#allocation8 + $0x5cc] ss:$16 sps:$4 sm:$0xff]   ;;  %v15800_v1 = vld [vmem:[#allocation8 + $0x5c0] ss:$16 sps:$4 sm:$0xff]  }
 0x585   :  { %7761 = vmatprep.subr.bf16.mxu0 %v15778_v35  ;;  %7832 = vmatprep.subr.bf16.mxu1 %v15779_v59  ;;  %v15801_v35 = vld [vmem:[#allocation8 + $0x5c8] ss:$16 sps:$4 sm:$0xff]   ;;  %v15802_v59 = vld [vmem:[#allocation8 + $0x5e4] ss:$16 sps:$4 sm:$0xff]  }
 0x588   :  { %7762 = vmatpush1.bf16.msra.mxu0 %v15780_v0  ;;  %7833 = vmatpush1.bf16.msra.mxu1 %v15781_v15  ;;  %v15803_v0 = vld [vmem:[#allocation8 + $0x5ec] ss:$16 sps:$4 sm:$0xff]   ;;  %v15804_v15 = vld [vmem:[#allocation8 + $0x5e0] ss:$16 sps:$4 sm:$0xff]  }
 0x589   :  { %7763 = vmatprep.subr.bf16.mxu0 %v15782_v27  ;;  %7834 = vmatprep.subr.bf16.mxu1 %v15783_v12  ;;  %v15805_v27 = vld [vmem:[#allocation8 + $0x5e8] ss:$16 sps:$4 sm:$0xff]   ;;  %v15806_v12 = vld [vmem:[#allocation8 + $0x604] ss:$16 sps:$4 sm:$0xff]  }
 0x58c   :  { %7764 = vmatpush1.bf16.msra.mxu0 %v15784_v50  ;;  %7835 = vmatpush1.bf16.msra.mxu1 %v15785_v39  ;;  %v15807_v50 = vld [vmem:[#allocation8 + $0x60c] ss:$16 sps:$4 sm:$0xff]   ;;  %v15808_v39 = vld [vmem:[#allocation8 + $0x600] ss:$16 sps:$4 sm:$0xff]  }
 0x58d   :  { %7765 = vmatprep.subr.bf16.mxu0 %v15786_v58  ;;  %7836 = vmatprep.subr.bf16.mxu1 %v15787_v51  ;;  %v15809_v58 = vld [vmem:[#allocation8 + $0x608] ss:$16 sps:$4 sm:$0xff]   ;;  %v15810_v51 = vld [vmem:[#allocation8 + $0x624] ss:$16 sps:$4 sm:$0xff]  }
 0x590   :  { %7766 = vmatpush1.bf16.msra.mxu0 %v15788_v28  ;;  %7837 = vmatpush1.bf16.msra.mxu1 %v15789_v40  ;;  %v15811_v28 = vld [vmem:[#allocation8 + $0x62c] ss:$16 sps:$4 sm:$0xff]   ;;  %v15812_v40 = vld [vmem:[#allocation8 + $0x620] ss:$16 sps:$4 sm:$0xff]  }
 0x591   :  { %7767 = vmatprep.subr.bf16.mxu0 %v15790_v46  ;;  %7838 = vmatprep.subr.bf16.mxu1 %v15791_v14  ;;  %v15813_v46 = vld [vmem:[#allocation8 + $0x628] ss:$16 sps:$4 sm:$0xff]   ;;  %v15814_v14 = vld [vmem:[#allocation8 + $0x644] ss:$16 sps:$4 sm:$0xff]  }
 0x594   :  { %7768 = vmatpush1.bf16.msra.mxu0 %v15792_v31  ;;  %7839 = vmatpush1.bf16.msra.mxu1 %v15793_v29  ;;  %v15815_v31 = vld [vmem:[#allocation8 + $0x64c] ss:$16 sps:$4 sm:$0xff]   ;;  %v15818_v29 = vld [vmem:[#allocation8 + $0x664] ss:$16 sps:$4 sm:$0xff]  }
 0x595   :  { %7769 = vmatprep.subr.bf16.mxu0 %v15794_v30  ;;  %7840 = vmatprep.subr.bf16.mxu1 %v15795_v20  ;;  %v15819_v30 = vld [vmem:[#allocation8 + $0x66c] ss:$16 sps:$4 sm:$0xff]   ;;  %v15820_v20 = vld [vmem:[#allocation8 + $0x660] ss:$16 sps:$4 sm:$0xff]  }
 0x598   :  { %7770 = vmatpush1.bf16.msra.mxu0 %v15796_v22  ;;  %7841 = vmatpush1.bf16.msra.mxu1 %v15797_v24  ;;  %v15821_v22 = vld [vmem:[#allocation8 + $0x668] ss:$16 sps:$4 sm:$0xff]   ;;  %v15822_v24 = vld [vmem:[#allocation8 + $0x684] ss:$16 sps:$4 sm:$0xff]  }
 0x599   :  { %7771 = vmatprep.subr.bf16.mxu0 %v15798_v6  ;;  %7842 = vmatprep.subr.bf16.mxu1 %v15799_v53  ;;  %v15823_v6 = vld [vmem:[#allocation8 + $0x68c] ss:$16 sps:$4 sm:$0xff]  }
 0x59c   :  { %7772 = vmatpush1.bf16.msra.mxu0 %v15800_v1  ;;  %7843 = vmatpush1.bf16.msra.mxu1 %v15801_v35  ;;  %v15824_v35 = vld [vmem:[#allocation8 + $0x680] ss:$16 sps:$4 sm:$0xff]  }
 0x59d   :  { %7773 = vmatprep.subr.bf16.mxu0 %v15802_v59  ;;  %7844 = vmatprep.subr.bf16.mxu1 %v15803_v0  ;;  %v15825_v59 = vld [vmem:[#allocation8 + $0x688] ss:$16 sps:$4 sm:$0xff]  }
 0x5a0   :  { %7774 = vmatpush1.bf16.msra.mxu0 %v15804_v15  ;;  %7845 = vmatpush1.bf16.msra.mxu1 %v15805_v27  ;;  %v15827_v27 = vld [vmem:[#allocation8 + $0x6ac] ss:$16 sps:$4 sm:$0xff]  }
 0x5a1   :  { %7913 = vmatprep.subr.bf16.mxu0 %v15806_v12  ;;  %7984 = vmatprep.subr.bf16.mxu1 %v15807_v50 }
 0x5a3   :  { %7776 = vmatmul.mubr.bf16.vlgmr.msra.gmra.mrb[80].mxu0 %v17272_v32  ;;  %7847 = vmatmul.mubr.bf16.vlgmr.msra.gmra.mrb[80].mxu1 %v17272_v32  ;;  %v15816_v32 = vld [vmem:[#allocation8 + $0x640] ss:$16 sps:$4 sm:$0xff]  }
 0x5a4   :  { %7785 = vmatprep.mubr.bf16.mxu0 %v17312_v2  ;;  %7856 = vmatprep.mubr.bf16.mxu1 %v17312_v2  ;;  %v15817_v2 = vld [vmem:[#allocation8 + $0x648] ss:$16 sps:$4 sm:$0xff]  }
 0x5a5   :  { %7914 = vmatpush1.bf16.msra.mxu0 %v15808_v39  ;;  %7985 = vmatpush1.bf16.msra.mxu1 %v15809_v58  ;;  %v15829_v39 = vld [vmem:[#allocation8 + $0x6a8] ss:$16 sps:$4 sm:$0xff]   ;;  %v15830_v58 = vld [vmem:[#allocation8 + $0x6c4] ss:$16 sps:$4 sm:$0xff]  }
 0x5a6   :  { %7915 = vmatprep.subr.bf16.mxu0 %v15810_v51  ;;  %7986 = vmatprep.subr.bf16.mxu1 %v15811_v28  ;;  %v15831_v51 = vld [vmem:[#allocation8 + $0x6cc] ss:$16 sps:$4 sm:$0xff]  }
 0x5a9   :  { %7916 = vmatpush1.bf16.msra.mxu0 %v15812_v40  ;;  %7987 = vmatpush1.bf16.msra.mxu1 %v15813_v46 }
 0x5aa   :  { %7917 = vmatprep.subr.bf16.mxu0 %v15814_v14  ;;  %7988 = vmatprep.subr.bf16.mxu1 %v15815_v31  ;;  %v15832_v31 = vld [vmem:[#allocation8 + $0x6c0] ss:$16 sps:$4 sm:$0xff]  }
 0x5ab   :  { %7786 = vmatmul.mubr.bf16.gmra.mrb[84].mxu0 %v17305_v5  ;;  %7857 = vmatmul.mubr.bf16.gmra.mrb[84].mxu1 %v17305_v5 }
 0x5ac   :  { %7795 = vmatprep.mubr.bf16.mxu0 %v17333_v38  ;;  %7866 = vmatprep.mubr.bf16.mxu1 %v17333_v38 }
 0x5ad   :  { %7918 = vmatpush1.bf16.msra.mxu0 %v15816_v32  ;;  %7989 = vmatpush1.bf16.msra.mxu1 %v15817_v2  ;;  %v15833_v32 = vld [vmem:[#allocation8 + $0x6c8] ss:$16 sps:$4 sm:$0xff]  }
 0x5ae   :  { %7919 = vmatprep.subr.bf16.mxu0 %v15818_v29  ;;  %7990 = vmatprep.subr.bf16.mxu1 %v15819_v30  ;;  %v15835_v30 = vld [vmem:[#allocation8 + $0x6ec] ss:$16 sps:$4 sm:$0xff]  }
 0x5b1   :  { %7920 = vmatpush1.bf16.msra.mxu0 %v15820_v20  ;;  %7991 = vmatpush1.bf16.msra.mxu1 %v15821_v22 }
 0x5b2   :  { %7921 = vmatprep.subr.bf16.mxu0 %v15822_v24  ;;  %7992 = vmatprep.subr.bf16.mxu1 %v15823_v6  ;;  %v15837_v24 = vld [vmem:[#allocation8 + $0x6e8] ss:$16 sps:$4 sm:$0xff]   ;;  %v15838_v6 = vld [vmem:[#allocation8 + $0x704] ss:$16 sps:$4 sm:$0xff]  }
 0x5b3   :  { %7796 = vmatmul.mubr.bf16.gmra.mrb[88].mxu0 %v17329_v62  ;;  %7867 = vmatmul.mubr.bf16.gmra.mrb[88].mxu1 %v17329_v62  ;;  %v17705_v5 = vpop.f32.mrb[64].mxu0  ;;  %v17707_v38 = vpop.f32.mrb[64].mxu1  ;;  %v15826_v62 = vld [vmem:[#allocation8 + $0x6a4] ss:$16 sps:$4 sm:$0xff]  }
 0x5b4   :  { %7805 = vmatprep.mubr.bf16.mxu0 %v17489_v41  ;;  %7876 = vmatprep.mubr.bf16.mxu1 %v17489_v41  ;;  %v17711_v53 = vpop.f32.mrb[65].mxu0  ;;  %v17713_v1 = vpop.f32.mrb[65].mxu1  ;;  %v15828_v41 = vld [vmem:[#allocation8 + $0x6a0] ss:$16 sps:$4 sm:$0xff]  }
 0x5b5   :  { %7922 = vmatpush1.bf16.msra.mxu0 %v15824_v35  ;;  %7993 = vmatpush1.bf16.msra.mxu1 %v15825_v59  ;;  %v17715_v0 = vpop.f32.mrb[66].mxu0  ;;  %v17717_v15 = vpop.f32.mrb[66].mxu1  ;;  %v15839_v35 = vld [vmem:[#allocation8 + $0x70c] ss:$16 sps:$4 sm:$0xff]  }
 0x5b6   :  { %7923 = vmatprep.subr.bf16.mxu0 %v15826_v62  ;;  %7994 = vmatprep.subr.bf16.mxu1 %v15827_v27  ;;  %v17719_v12 = vpop.f32.mrb[67].mxu0  ;;  %v17721_v50 = vpop.f32.mrb[67].mxu1 }
 0x5b9   :  { %7924 = vmatpush1.bf16.msra.mxu0 %v15828_v41  ;;  %7995 = vmatpush1.bf16.msra.mxu1 %v15829_v39  ;;  %v15840_v39 = vld [vmem:[#allocation8 + $0x700] ss:$16 sps:$4 sm:$0xff]  }
 0x5ba   :  { %7925 = vmatprep.subr.bf16.mxu0 %v15830_v58  ;;  %7996 = vmatprep.subr.bf16.mxu1 %v15831_v51  ;;  %v15841_v58 = vld [vmem:[#allocation8 + $0x708] ss:$16 sps:$4 sm:$0xff]  }
 0x5bb   :  { %7806 = vmatmul.mubr.bf16.gmra.mrb[92].mxu0 %v17515_v52  ;;  %7877 = vmatmul.mubr.bf16.gmra.mrb[92].mxu1 %v17515_v52  ;;  %v17725_v28 = vpop.f32.mrb[68].mxu0  ;;  %v17727_v40 = vpop.f32.mrb[68].mxu1  ;;  %v15834_v52 = vld [vmem:[#allocation8 + $0x6e4] ss:$16 sps:$4 sm:$0xff]  }
 0x5bc   :  { %7945 = vmatprep.mubr.bf16.mxu0 %v17050_v8  ;;  %8016 = vmatprep.mubr.bf16.mxu1 %v17050_v8  ;;  %v17731_v46 = vpop.f32.mrb[69].mxu0  ;;  %v17733_v14 = vpop.f32.mrb[69].mxu1  ;;  %v15836_v8 = vld [vmem:[#allocation8 + $0x6e0] ss:$16 sps:$4 sm:$0xff]  }
 0x5bd   :  { %7926 = vmatpush1.bf16.msra.mxu0 %v15832_v31  ;;  %7997 = vmatpush1.bf16.msra.mxu1 %v15833_v32  ;;  %v17735_v2 = vpop.f32.mrb[70].mxu0  ;;  %v17737_v29 = vpop.f32.mrb[70].mxu1  ;;  %v15842_v32 = vld [vmem:[#allocation8 + $0x724] ss:$16 sps:$4 sm:$0xff]  }
 0x5be   :  { %7927 = vmatprep.subr.bf16.mxu0 %v15834_v52  ;;  %7998 = vmatprep.subr.bf16.mxu1 %v15835_v30  ;;  %v17739_v20 = vpop.f32.mrb[71].mxu0  ;;  %v17741_v22 = vpop.f32.mrb[71].mxu1  ;;  %v15843_v52 = vld [vmem:[#allocation8 + $0x72c] ss:$16 sps:$4 sm:$0xff]  }
 0x5c1   :  { %7928 = vmatpush1.bf16.msra.mxu0 %v15836_v8  ;;  %7999 = vmatpush1.bf16.msra.mxu1 %v15837_v24  ;;  %v15844_v24 = vld [vmem:[#allocation8 + $0x720] ss:$16 sps:$4 sm:$0xff]  }
 0x5c2   :  { %7929 = vmatprep.subr.bf16.mxu0 %v15838_v6  ;;  %8000 = vmatprep.subr.bf16.mxu1 %v15839_v35  ;;  %v15845_v6 = vld [vmem:[#allocation8 + $0x728] ss:$16 sps:$4 sm:$0xff]   ;;  %v15846_v35 = vld [vmem:[#allocation8 + $0x744] ss:$16 sps:$4 sm:$0xff]  }
 0x5c3   :  { %v17743_v59 = vpop.f32.mrb[72].mxu0  ;;  %v17745_v62 = vpop.f32.mrb[72].mxu1 }
 0x5c4   :  { %v17747_v27 = vpop.f32.mrb[73].mxu0  ;;  %v17749_v41 = vpop.f32.mrb[73].mxu1 }
 0x5c5   :  { %18161 = vst [vmem:[#allocation77_spill] sm:$0xff] %v17747_v27  ;;  %18162 = vst [vmem:[#allocation78_spill] sm:$0xff] %v17749_v41  ;;  %7930 = vmatpush1.bf16.msra.mxu0 %v15840_v39  ;;  %8001 = vmatpush1.bf16.msra.mxu1 %v15841_v58  ;;  %v17751_v51 = vpop.f32.mrb[74].mxu0  ;;  %v17753_v31 = vpop.f32.mrb[74].mxu1  ;;  %v15847_v39 = vld [vmem:[#allocation8 + $0x74c] ss:$16 sps:$4 sm:$0xff]  }
 0x5c6   :  { %18163 = vst [vmem:[#allocation79_spill] sm:$0xff] %v17751_v51  ;;  %18164 = vst [vmem:[#allocation80_spill] sm:$0xff] %v17753_v31  ;;  %7931 = vmatprep.subr.bf16.mxu0 %v15842_v32  ;;  %8002 = vmatprep.subr.bf16.mxu1 %v15843_v52  ;;  %v17755_v30 = vpop.f32.mrb[75].mxu0  ;;  %v17757_v8 = vpop.f32.mrb[75].mxu1  ;;  %v15848_v52 = vld [vmem:[#allocation8 + $0x740] ss:$16 sps:$4 sm:$0xff]  }
 0x5c7   :  { %18165 = vst [vmem:[#allocation81_spill] sm:$0xff] %v17755_v30  ;;  %18166 = vst [vmem:[#allocation82_spill] sm:$0xff] %v17757_v8  ;;  %v15849_v30 = vld [vmem:[#allocation8 + $0x748] ss:$16 sps:$4 sm:$0xff]   ;;  %v15850_v41 = vld [vmem:[#allocation8 + $0x764] ss:$16 sps:$4 sm:$0xff]  }
 0x5c8   :  { %v15852_v27 = vld [vmem:[#allocation8 + $0x760] ss:$16 sps:$4 sm:$0xff]  }
 0x5c9   :  { %7932 = vmatpush1.bf16.msra.mxu0 %v15844_v24  ;;  %8003 = vmatpush1.bf16.msra.mxu1 %v15845_v6  ;;  %v15851_v6 = vld [vmem:[#allocation8 + $0x76c] ss:$16 sps:$4 sm:$0xff]  }
 0x5ca   :  { %7933 = vmatprep.subr.bf16.mxu0 %v15846_v35  ;;  %8004 = vmatprep.subr.bf16.mxu1 %v15847_v39 }
 0x5cb   :  { %v17759_v58 = vpop.f32.mrb[76].mxu0  ;;  %v17761_v51 = vpop.f32.mrb[76].mxu1 }
 0x5cc   :  { %18167 = vst [vmem:[#allocation83_spill] sm:$0xff] %v17759_v58  ;;  %18168 = vst [vmem:[#allocation84_spill] sm:$0xff] %v17761_v51  ;;  %v17763_v31 = vpop.f32.mrb[77].mxu0  ;;  %v17765_v32 = vpop.f32.mrb[77].mxu1  ;;  %v15853_v58 = vld [vmem:[#allocation8 + $0x768] ss:$16 sps:$4 sm:$0xff]  }
 0x5cd   :  { %18169 = vst [vmem:[#allocation85_spill] sm:$0xff] %v17763_v31  ;;  %18170 = vst [vmem:[#allocation86_spill] sm:$0xff] %v17765_v32  ;;  %7934 = vmatpush1.bf16.msra.mxu0 %v15848_v52  ;;  %8005 = vmatpush1.bf16.msra.mxu1 %v15849_v30  ;;  %v7357_v8 = vpop.f32.mrb[78].mxu0  ;;  %v7428_v24 = vpop.f32.mrb[78].mxu1  ;;  %v15854_v51 = vld [vmem:[#allocation8 + $0x784] ss:$16 sps:$4 sm:$0xff]  }
 0x5ce   :  { %7935 = vmatprep.subr.bf16.mxu0 %v15850_v41  ;;  %8006 = vmatprep.subr.bf16.mxu1 %v15851_v6  ;;  %v7358_v35 = vpop.f32.mrb[79].mxu0  ;;  %v7429_v39 = vpop.f32.mrb[79].mxu1  ;;  %v15855_v31 = vld [vmem:[#allocation8 + $0x78c] ss:$16 sps:$4 sm:$0xff]   ;;  %v15856_v32 = vld [vmem:[#allocation8 + $0x780] ss:$16 sps:$4 sm:$0xff]  }
 0x5cf   :  { %v15857_v52 = vld [vmem:[#allocation8 + $0x788] ss:$16 sps:$4 sm:$0xff]   ;;  %v15858_v30 = vld [vmem:[#allocation8 + $0x7a4] ss:$16 sps:$4 sm:$0xff]   ;;  %v15859_v8 = vld [vmem:[#allocation8 + $0x7ac] ss:$16 sps:$4 sm:$0xff]  }
 0x5d0   :  { %v15860_v41 = vld [vmem:[#allocation8 + $0x7a0] ss:$16 sps:$4 sm:$0xff]   ;;  %v15861_v24 = vld [vmem:[#allocation8 + $0x7a8] ss:$16 sps:$4 sm:$0xff]  }
 0x5d1   :  { %7936 = vmatpush1.bf16.msra.mxu0 %v15852_v27  ;;  %8007 = vmatpush1.bf16.msra.mxu1 %v15853_v58  ;;  %v18200_v27 = vld [vmem:[#allocation55_spill] sm:$0xff]  ;;  %v18203_v58 = vld [vmem:[#allocation58_spill] sm:$0xff]  ;;  %v18205_v6 = vld [vmem:[#allocation60_spill] sm:$0xff] }
 0x5d2   :  { %7937 = vmatprep.subr.bf16.mxu0 %v15854_v51  ;;  %8008 = vmatprep.subr.bf16.mxu1 %v15855_v31  ;;  %v18201_v51 = vld [vmem:[#allocation56_spill] sm:$0xff]  ;;  %v18202_v31 = vld [vmem:[#allocation57_spill] sm:$0xff]  ;;  %v18207_v39 = vld [vmem:[#allocation62_spill] sm:$0xff] }
 0x5d3   :  { %v18206_v35 = vld [vmem:[#allocation61_spill] sm:$0xff] }
 0x5d5   :  { %7938 = vmatpush1.bf16.msra.mxu0 %v15856_v32  ;;  %8009 = vmatpush1.bf16.msra.mxu1 %v15857_v52  ;;  %v18204_v32 = vld [vmem:[#allocation59_spill] sm:$0xff] }
 0x5d6   :  { %7939 = vmatprep.subr.bf16.mxu0 %v15858_v30  ;;  %8010 = vmatprep.subr.bf16.mxu1 %v15859_v8  ;;  %v18208_v52 = vld [vmem:[#allocation63_spill] sm:$0xff]  ;;  %v18209_v30 = vld [vmem:[#allocation64_spill] sm:$0xff]  ;;  %v18210_v8 = vld [vmem:[#allocation65_spill] sm:$0xff] }
 0x5d9   :  { %7940 = vmatpush1.bf16.msra.mxu0 %v15860_v41  ;;  %8011 = vmatpush1.bf16.msra.mxu1 %v15861_v24  ;;  %v18211_v41 = vld [vmem:[#allocation66_spill] sm:$0xff]  ;;  %v18212_v24 = vld [vmem:[#allocation67_spill] sm:$0xff] }
 0x5da   :  { %7941 = vmatprep.subr.bf16.mxu0 %v17399_v9  ;;  %8012 = vmatprep.subr.bf16.mxu1 %v17401_v60  ;;  %v18175_v9 = vld [vmem:[#allocation29_spill] sm:$0xff]  ;;  %v18176_v60 = vld [vmem:[#allocation34_spill] sm:$0xff] }
 0x5dd   :  { %7942 = vmatpush1.bf16.msra.mxu0 %v17403_v4  ;;  %8013 = vmatpush1.bf16.msra.mxu1 %v17405_v57  ;;  %v18177_v4 = vld [vmem:[#allocation32_spill] sm:$0xff]  ;;  %v18178_v57 = vld [vmem:[#allocation33_spill] sm:$0xff] }
 0x5de   :  { %7943 = vmatprep.subr.bf16.mxu0 %v17409_v44  ;;  %8014 = vmatprep.subr.bf16.mxu1 %v17411_v42  ;;  %v18179_v44 = vld [vmem:[#allocation35_spill] sm:$0xff]  ;;  %v18180_v42 = vld [vmem:[#allocation22_spill] sm:$0xff] }
 0x5e1   :  { %7944 = vmatpush1.bf16.msra.mxu0 %v17415_v13  ;;  %8015 = vmatpush1.bf16.msra.mxu1 %v17417_v49  ;;  %v18181_v13 = vld [vmem:[#allocation36_spill] sm:$0xff] }
 0x5e2   :  { %8128 = vmatprep.subr.bf16.mxu0 %v17421_v33  ;;  %8199 = vmatprep.subr.bf16.mxu1 %v17423_v3  ;;  %v18182_v49 = vld [vmem:[#allocation76_spill] sm:$0xff]  ;;  %v18183_v33 = vld [vmem:[#allocation23_spill] sm:$0xff] }
 0x5e3   :  { %v18184_v3 = vld [vmem:[#allocation24_spill] sm:$0xff] }
 0x5e4   :  { %7946 = vmatmul.mubr.bf16.vlgmr.msra.gmra.mrb[80].mxu0 %v17046_v54  ;;  %8017 = vmatmul.mubr.bf16.vlgmr.msra.gmra.mrb[80].mxu1 %v17046_v54  ;;  %v18171_v54 = vld [vmem:[#allocation30_spill] sm:$0xff] }
 0x5e5   :  { %7955 = vmatprep.mubr.bf16.mxu0 %v17082_v45  ;;  %8026 = vmatprep.mubr.bf16.mxu1 %v17082_v45  ;;  %v18172_v45 = vld [vmem:[#allocation31_spill] sm:$0xff] }
 0x5e6   :  { %8129 = vmatpush1.bf16.msra.mxu0 %v17427_v10  ;;  %8200 = vmatpush1.bf16.msra.mxu1 %v17430_v23  ;;  %v18185_v10 = vld [vmem:[#allocation40_spill] sm:$0xff]  ;;  %v18186_v23 = vld [vmem:[#allocation41_spill] sm:$0xff] }
 0x5e7   :  { %8130 = vmatprep.subr.bf16.mxu0 %v17433_v7  ;;  %8201 = vmatprep.subr.bf16.mxu1 %v17435_v34  ;;  %v18187_v7 = vld [vmem:[#allocation42_spill] sm:$0xff]  ;;  %v18188_v34 = vld [vmem:[#allocation43_spill] sm:$0xff] }
 0x5ea   :  { %8131 = vmatpush1.bf16.msra.mxu0 %v17443_v36  ;;  %8202 = vmatpush1.bf16.msra.mxu1 %v17445_v26  ;;  %v18189_v36 = vld [vmem:[#allocation44_spill] sm:$0xff]  ;;  %v18190_v26 = vld [vmem:[#allocation45_spill] sm:$0xff] }
 0x5eb   :  { %8132 = vmatprep.subr.bf16.mxu0 %v17449_v19  ;;  %8203 = vmatprep.subr.bf16.mxu1 %v17451_v55  ;;  %v18191_v19 = vld [vmem:[#allocation46_spill] sm:$0xff]  ;;  %v18192_v55 = vld [vmem:[#allocation47_spill] sm:$0xff] }
 0x5ec   :  { %7956 = vmatmul.mubr.bf16.gmra.mrb[84].mxu0 %v17076_v21  ;;  %8027 = vmatmul.mubr.bf16.gmra.mrb[84].mxu1 %v17076_v21  ;;  %v18173_v21 = vld [vmem:[#allocation25_spill] sm:$0xff] }
 0x5ed   :  { %7965 = vmatprep.mubr.bf16.mxu0 %v17112_v47  ;;  %8036 = vmatprep.mubr.bf16.mxu1 %v17112_v47  ;;  %v18174_v47 = vld [vmem:[#allocation28_spill] sm:$0xff] }
 0x5ee   :  { %8133 = vmatpush1.bf16.msra.mxu0 %v17455_v43  ;;  %8204 = vmatpush1.bf16.msra.mxu1 %v17457_v25  ;;  %v18194_v43 = vld [vmem:[#allocation49_spill] sm:$0xff]  ;;  %v18195_v25 = vld [vmem:[#allocation50_spill] sm:$0xff] }
 0x5ef   :  { %8134 = vmatprep.subr.bf16.mxu0 %v17461_v56  ;;  %8205 = vmatprep.subr.bf16.mxu1 %v17463_v48  ;;  %v18196_v56 = vld [vmem:[#allocation51_spill] sm:$0xff]  ;;  %v18197_v48 = vld [vmem:[#allocation52_spill] sm:$0xff] }
 0x5f2   :  { %8135 = vmatpush1.bf16.msra.mxu0 %v17471_v61  ;;  %8206 = vmatpush1.bf16.msra.mxu1 %v17473_v11  ;;  %v18198_v61 = vld [vmem:[#allocation53_spill] sm:$0xff]  ;;  %v18199_v11 = vld [vmem:[#allocation54_spill] sm:$0xff] }
 0x5f3   :  { %8136 = vmatprep.subr.bf16.mxu0 %v18171_v54  ;;  %8207 = vmatprep.subr.bf16.mxu1 %v18172_v45  ;;  %v18213_v54 = vld [vmem:[#allocation68_spill] sm:$0xff]  ;;  %v18214_v45 = vld [vmem:[#allocation69_spill] sm:$0xff] }
 0x5f4   :  { %7966 = vmatmul.mubr.bf16.gmra.mrb[88].mxu0 %v18173_v21  ;;  %8037 = vmatmul.mubr.bf16.gmra.mrb[88].mxu1 %v18173_v21  ;;  %v18215_v21 = vld [vmem:[#allocation70_spill] sm:$0xff] }
 0x5f5   :  { %7975 = vmatprep.mubr.bf16.mxu0 %v17649_v18  ;;  %8046 = vmatprep.mubr.bf16.mxu1 %v17649_v18 }
 0x5f6   :  { %8137 = vmatpush1.bf16.msra.mxu0 %v18174_v47  ;;  %8208 = vmatpush1.bf16.msra.mxu1 %v18175_v9  ;;  %v18216_v47 = vld [vmem:[#allocation71_spill] sm:$0xff]  ;;  %v18217_v9 = vld [vmem:[#allocation72_spill] sm:$0xff] }
 0x5f7   :  { %8138 = vmatprep.subr.bf16.mxu0 %v18176_v60  ;;  %8209 = vmatprep.subr.bf16.mxu1 %v18177_v4  ;;  %v18218_v60 = vld [vmem:[#allocation73_spill] sm:$0xff] }
 0x5f8   :  { %v14830_v4 = vld [vmem:[#allocation11 + $0x204] ss:$16 sps:$4 sm:$0xff]  }
 0x5fa   :  { %8139 = vmatpush1.bf16.msra.mxu0 %v18178_v57  ;;  %8210 = vmatpush1.bf16.msra.mxu1 %v18179_v44  ;;  %v14833_v57 = vld [vmem:[#allocation11 + $0x20c] ss:$16 sps:$4 sm:$0xff]  }
 0x5fb   :  { %8140 = vmatprep.subr.bf16.mxu0 %v18180_v42  ;;  %8211 = vmatprep.subr.bf16.mxu1 %v18181_v13  ;;  %v18219_v44 = vld [vmem:[#allocation74_spill] sm:$0xff]  ;;  %v18220_v42 = vld [vmem:[#allocation75_spill] sm:$0xff] }
 0x5fc   :  { %7976 = vmatmul.mubr.bf16.gmra.mrb[92].mxu0 %v18182_v49  ;;  %8047 = vmatmul.mubr.bf16.gmra.mrb[92].mxu1 %v18182_v49  ;;  %v14828_v13 = vld [vmem:[#allocation11 + $0x200] ss:$16 sps:$4 sm:$0xff]  }
 0x5fd   :  { %8160 = vmatprep.mubr.bf16.mxu0 %v17300_v17  ;;  %8231 = vmatprep.mubr.bf16.mxu1 %v17300_v17  ;;  %v18193_v17 = vld [vmem:[#allocation48_spill] sm:$0xff] }
 0x5fe   :  { %8141 = vmatpush1.bf16.msra.mxu0 %v18183_v33  ;;  %8212 = vmatpush1.bf16.msra.mxu1 %v18184_v3  ;;  %v14831_v33 = vld [vmem:[#allocation11 + $0x208] ss:$16 sps:$4 sm:$0xff]   ;;  %v14836_v3 = vld [vmem:[#allocation11 + $0x224] ss:$16 sps:$4 sm:$0xff]  }
 0x5ff   :  { %8142 = vmatprep.subr.bf16.mxu0 %v18185_v10  ;;  %8213 = vmatprep.subr.bf16.mxu1 %v18186_v23  ;;  %v14839_v10 = vld [vmem:[#allocation11 + $0x22c] ss:$16 sps:$4 sm:$0xff]   ;;  %v14834_v23 = vld [vmem:[#allocation11 + $0x220] ss:$16 sps:$4 sm:$0xff]  }
 0x602   :  { %8143 = vmatpush1.bf16.msra.mxu0 %v18187_v7  ;;  %8214 = vmatpush1.bf16.msra.mxu1 %v18188_v34  ;;  %v14837_v7 = vld [vmem:[#allocation11 + $0x228] ss:$16 sps:$4 sm:$0xff]   ;;  %v14842_v34 = vld [vmem:[#allocation11 + $0x244] ss:$16 sps:$4 sm:$0xff]  }
 0x603   :  { %8144 = vmatprep.subr.bf16.mxu0 %v18189_v36  ;;  %8215 = vmatprep.subr.bf16.mxu1 %v18190_v26  ;;  %v14845_v36 = vld [vmem:[#allocation11 + $0x24c] ss:$16 sps:$4 sm:$0xff]   ;;  %v14840_v26 = vld [vmem:[#allocation11 + $0x240] ss:$16 sps:$4 sm:$0xff]  }
 0x606   :  { %8145 = vmatpush1.bf16.msra.mxu0 %v18191_v19  ;;  %8216 = vmatpush1.bf16.msra.mxu1 %v18192_v55  ;;  %v14843_v19 = vld [vmem:[#allocation11 + $0x248] ss:$16 sps:$4 sm:$0xff]   ;;  %v14848_v55 = vld [vmem:[#allocation11 + $0x264] ss:$16 sps:$4 sm:$0xff]  }
 0x607   :  { %8146 = vmatprep.subr.bf16.mxu0 %v18193_v17  ;;  %8217 = vmatprep.subr.bf16.mxu1 %v18194_v43  ;;  %v14846_v17 = vld [vmem:[#allocation11 + $0x260] ss:$16 sps:$4 sm:$0xff]   ;;  %v14849_v43 = vld [vmem:[#allocation11 + $0x268] ss:$16 sps:$4 sm:$0xff]  }
 0x60a   :  { %8147 = vmatpush1.bf16.msra.mxu0 %v18195_v25  ;;  %8218 = vmatpush1.bf16.msra.mxu1 %v18196_v56  ;;  %v14854_v25 = vld [vmem:[#allocation11 + $0x284] ss:$16 sps:$4 sm:$0xff]   ;;  %v14857_v56 = vld [vmem:[#allocation11 + $0x28c] ss:$16 sps:$4 sm:$0xff]  }
 0x60b   :  { %8148 = vmatprep.subr.bf16.mxu0 %v18197_v48  ;;  %8219 = vmatprep.subr.bf16.mxu1 %v18198_v61  ;;  %v14852_v48 = vld [vmem:[#allocation11 + $0x280] ss:$16 sps:$4 sm:$0xff]   ;;  %v14855_v61 = vld [vmem:[#allocation11 + $0x288] ss:$16 sps:$4 sm:$0xff]  }
 0x60e   :  { %8149 = vmatpush1.bf16.msra.mxu0 %v18199_v11  ;;  %8220 = vmatpush1.bf16.msra.mxu1 %v18200_v27  ;;  %v14860_v11 = vld [vmem:[#allocation11 + $0x2a4] ss:$16 sps:$4 sm:$0xff]  }
 0x60f   :  { %8150 = vmatprep.subr.bf16.mxu0 %v18201_v51  ;;  %8221 = vmatprep.subr.bf16.mxu1 %v18202_v31  ;;  %v18222_v27 = vld [vmem:[#allocation26_spill] sm:$0xff]  ;;  %v14858_v51 = vld [vmem:[#allocation11 + $0x2a0] ss:$16 sps:$4 sm:$0xff]  }
 0x610   :  { %v14861_v31 = vld [vmem:[#allocation11 + $0x2a8] ss:$16 sps:$4 sm:$0xff]  }
 0x612   :  { %8151 = vmatpush1.bf16.msra.mxu0 %v18203_v58  ;;  %8222 = vmatpush1.bf16.msra.mxu1 %v18204_v32  ;;  %v14866_v58 = vld [vmem:[#allocation11 + $0x2c4] ss:$16 sps:$4 sm:$0xff]   ;;  %v14869_v32 = vld [vmem:[#allocation11 + $0x2cc] ss:$16 sps:$4 sm:$0xff]  }
 0x613   :  { %8152 = vmatprep.subr.bf16.mxu0 %v18205_v6  ;;  %8223 = vmatprep.subr.bf16.mxu1 %v18206_v35  ;;  %v14864_v6 = vld [vmem:[#allocation11 + $0x2c0] ss:$16 sps:$4 sm:$0xff]   ;;  %v14867_v35 = vld [vmem:[#allocation11 + $0x2c8] ss:$16 sps:$4 sm:$0xff]  }
 0x616   :  { %8153 = vmatpush1.bf16.msra.mxu0 %v18207_v39  ;;  %8224 = vmatpush1.bf16.msra.mxu1 %v18208_v52  ;;  %v14872_v39 = vld [vmem:[#allocation11 + $0x2e4] ss:$16 sps:$4 sm:$0xff]   ;;  %v14875_v52 = vld [vmem:[#allocation11 + $0x2ec] ss:$16 sps:$4 sm:$0xff]  }
 0x617   :  { %8154 = vmatprep.subr.bf16.mxu0 %v18209_v30  ;;  %8225 = vmatprep.subr.bf16.mxu1 %v18210_v8  ;;  %v14873_v30 = vld [vmem:[#allocation11 + $0x2e8] ss:$16 sps:$4 sm:$0xff]   ;;  %v14878_v8 = vld [vmem:[#allocation11 + $0x304] ss:$16 sps:$4 sm:$0xff]  }
 0x61a   :  { %8155 = vmatpush1.bf16.msra.mxu0 %v18211_v41  ;;  %8226 = vmatpush1.bf16.msra.mxu1 %v18212_v24  ;;  %v14881_v41 = vld [vmem:[#allocation11 + $0x30c] ss:$16 sps:$4 sm:$0xff]   ;;  %v14876_v24 = vld [vmem:[#allocation11 + $0x300] ss:$16 sps:$4 sm:$0xff]  }
 0x61b   :  { %8156 = vmatprep.subr.bf16.mxu0 %v18213_v54  ;;  %8227 = vmatprep.subr.bf16.mxu1 %v18214_v45  ;;  %v14879_v54 = vld [vmem:[#allocation11 + $0x308] ss:$16 sps:$4 sm:$0xff]   ;;  %v14884_v45 = vld [vmem:[#allocation11 + $0x324] ss:$16 sps:$4 sm:$0xff]  }
 0x61e   :  { %8157 = vmatpush1.bf16.msra.mxu0 %v18215_v21  ;;  %8228 = vmatpush1.bf16.msra.mxu1 %v18216_v47  ;;  %v14887_v21 = vld [vmem:[#allocation11 + $0x32c] ss:$16 sps:$4 sm:$0xff]   ;;  %v14882_v47 = vld [vmem:[#allocation11 + $0x320] ss:$16 sps:$4 sm:$0xff]  }
 0x61f   :  { %8158 = vmatprep.subr.bf16.mxu0 %v18217_v9  ;;  %8229 = vmatprep.subr.bf16.mxu1 %v18218_v60  ;;  %v14890_v9 = vld [vmem:[#allocation11 + $0x344] ss:$16 sps:$4 sm:$0xff]   ;;  %v14893_v60 = vld [vmem:[#allocation11 + $0x34c] ss:$16 sps:$4 sm:$0xff]  }
 0x622   :  { %8159 = vmatpush1.bf16.msra.mxu0 %v18219_v44  ;;  %8230 = vmatpush1.bf16.msra.mxu1 %v18220_v42  ;;  %v14896_v44 = vld [vmem:[#allocation11 + $0x364] ss:$16 sps:$4 sm:$0xff]   ;;  %v14899_v42 = vld [vmem:[#allocation11 + $0x36c] ss:$16 sps:$4 sm:$0xff]  }
 0x623   :  { %8863 = vmatprep.subr.bf16.mxu0 %v14830_v4  ;;  %8904 = vmatprep.subr.bf16.mxu1 %v14833_v57  ;;  %v14888_v4 = vld [vmem:[#allocation11 + $0x340] ss:$16 sps:$4 sm:$0xff]   ;;  %v14891_v57 = vld [vmem:[#allocation11 + $0x348] ss:$16 sps:$4 sm:$0xff]  }
 0x625   :  { %8161 = vmatmul.mubr.bf16.vlgmr.msra.gmra.mrb[80].mxu0 %v17295_v37  ;;  %8232 = vmatmul.mubr.bf16.vlgmr.msra.gmra.mrb[80].mxu1 %v17295_v37  ;;  %v14851_v37 = vld [vmem:[#allocation11 + $0x26c] ss:$16 sps:$4 sm:$0xff]  }
 0x626   :  { %8170 = vmatprep.mubr.bf16.mxu0 %v17325_v63  ;;  %8241 = vmatprep.mubr.bf16.mxu1 %v17325_v63  ;;  %v18221_v63 = vld [vmem:[#allocation27_spill] sm:$0xff] }
 0x627   :  { %8864 = vmatpush1.bf16.msra.mxu0 %v14828_v13  ;;  %8905 = vmatpush1.bf16.msra.mxu1 %v14831_v33  ;;  %v14894_v13 = vld [vmem:[#allocation11 + $0x360] ss:$16 sps:$4 sm:$0xff]   ;;  %v14897_v33 = vld [vmem:[#allocation11 + $0x368] ss:$16 sps:$4 sm:$0xff]  }
 0x628   :  { %8865 = vmatprep.subr.bf16.mxu0 %v14836_v3  ;;  %8906 = vmatprep.subr.bf16.mxu1 %v14839_v10  ;;  %v14902_v3 = vld [vmem:[#allocation11 + $0x384] ss:$16 sps:$4 sm:$0xff]   ;;  %v14905_v10 = vld [vmem:[#allocation11 + $0x38c] ss:$16 sps:$4 sm:$0xff]  }
 0x62b   :  { %8866 = vmatpush1.bf16.msra.mxu0 %v14834_v23  ;;  %8907 = vmatpush1.bf16.msra.mxu1 %v14837_v7  ;;  %v14900_v23 = vld [vmem:[#allocation11 + $0x380] ss:$16 sps:$4 sm:$0xff]   ;;  %v14903_v7 = vld [vmem:[#allocation11 + $0x388] ss:$16 sps:$4 sm:$0xff]  }
 0x62c   :  { %8867 = vmatprep.subr.bf16.mxu0 %v14842_v34  ;;  %8908 = vmatprep.subr.bf16.mxu1 %v14845_v36  ;;  %v14908_v34 = vld [vmem:[#allocation11 + $0x3a4] ss:$16 sps:$4 sm:$0xff]   ;;  %v14911_v36 = vld [vmem:[#allocation11 + $0x3ac] ss:$16 sps:$4 sm:$0xff]  }
 0x62d   :  { %8171 = vmatmul.mubr.bf16.gmra.mrb[84].mxu0 %v17323_v16  ;;  %8242 = vmatmul.mubr.bf16.gmra.mrb[84].mxu1 %v17323_v16  ;;  %v14863_v16 = vld [vmem:[#allocation11 + $0x2ac] ss:$16 sps:$4 sm:$0xff]  }
 0x62e   :  { %8180 = vmatprep.mubr.bf16.mxu0 %v18221_v63  ;;  %8251 = vmatprep.mubr.bf16.mxu1 %v18221_v63  ;;  %v14912_v63 = vld [vmem:[#allocation11 + $0x3c0] ss:$16 sps:$4 sm:$0xff]  }
 0x62f   :  { %8868 = vmatpush1.bf16.msra.mxu0 %v14840_v26  ;;  %8909 = vmatpush1.bf16.msra.mxu1 %v14843_v19  ;;  %v14906_v26 = vld [vmem:[#allocation11 + $0x3a0] ss:$16 sps:$4 sm:$0xff]   ;;  %v14909_v19 = vld [vmem:[#allocation11 + $0x3a8] ss:$16 sps:$4 sm:$0xff]  }
 0x630   :  { %8869 = vmatprep.subr.bf16.mxu0 %v14848_v55  ;;  %8910 = vmatprep.subr.bf16.mxu1 %v14851_v37  ;;  %v14914_v55 = vld [vmem:[#allocation11 + $0x3c4] ss:$16 sps:$4 sm:$0xff]   ;;  %v14917_v37 = vld [vmem:[#allocation11 + $0x3cc] ss:$16 sps:$4 sm:$0xff]  }
 0x633   :  { %8870 = vmatpush1.bf16.msra.mxu0 %v14846_v17  ;;  %8911 = vmatpush1.bf16.msra.mxu1 %v14849_v43  ;;  %v14915_v17 = vld [vmem:[#allocation11 + $0x3c8] ss:$16 sps:$4 sm:$0xff]   ;;  %v14920_v43 = vld [vmem:[#allocation11 + $0x3e4] ss:$16 sps:$4 sm:$0xff]  }
 0x634   :  { %8871 = vmatprep.subr.bf16.mxu0 %v14854_v25  ;;  %8912 = vmatprep.subr.bf16.mxu1 %v14857_v56  ;;  %v14923_v25 = vld [vmem:[#allocation11 + $0x3ec] ss:$16 sps:$4 sm:$0xff]   ;;  %v14918_v56 = vld [vmem:[#allocation11 + $0x3e0] ss:$16 sps:$4 sm:$0xff]  }
 0x635   :  { %8181 = vmatmul.mubr.bf16.gmra.mrb[88].mxu0 %v18222_v27  ;;  %8252 = vmatmul.mubr.bf16.gmra.mrb[88].mxu1 %v18222_v27 }
 0x636   :  { %8190 = vmatprep.mubr.bf16.mxu0 %v17649_v18  ;;  %8261 = vmatprep.mubr.bf16.mxu1 %v17649_v18  ;;  %v14870_v18 = vld [vmem:[#allocation11 + $0x2e0] ss:$16 sps:$4 sm:$0xff]  }
 0x637   :  { %8872 = vmatpush1.bf16.msra.mxu0 %v14852_v48  ;;  %8913 = vmatpush1.bf16.msra.mxu1 %v14855_v61  ;;  %v14921_v48 = vld [vmem:[#allocation11 + $0x3e8] ss:$16 sps:$4 sm:$0xff]   ;;  %v14926_v61 = vld [vmem:[#allocation11 + $0x4] ss:$16 sps:$4 sm:$0xff]  }
 0x638   :  { %8873 = vmatprep.subr.bf16.mxu0 %v14860_v11  ;;  %8914 = vmatprep.subr.bf16.mxu1 %v14863_v16  ;;  %v14929_v11 = vld [vmem:[#allocation11 + $0xc] ss:$16 sps:$4 sm:$0xff]  }
 0x639   :  { %v8340_v16 = vld [vmem:[#allocation9] sm:$0x3] }
 0x63b   :  { %8874 = vmatpush1.bf16.msra.mxu0 %v14858_v51  ;;  %8915 = vmatpush1.bf16.msra.mxu1 %v14861_v31 }
 0x63c   :  { %8875 = vmatprep.subr.bf16.mxu0 %v14866_v58  ;;  %8916 = vmatprep.subr.bf16.mxu1 %v14869_v32  ;;  %v18223_v32 = vld [vmem:[#allocation38_spill] sm:$0xff] }
 0x63d   :  { %8191 = vmatmul.mubr.bf16.gmra.mrb[92].mxu0 %v18182_v49  ;;  %8262 = vmatmul.mubr.bf16.gmra.mrb[92].mxu1 %v18182_v49  ;;  %v14885_v49 = vld [vmem:[#allocation11 + $0x328] ss:$16 sps:$4 sm:$0xff]  }
 0x63f   :  { %8876 = vmatpush1.bf16.msra.mxu0 %v14864_v6  ;;  %8917 = vmatpush1.bf16.msra.mxu1 %v14867_v35  ;;  %v17872_v6 = vrot.slane %v8340_v16, %v18223_v32 }
 0x640   :  { %8877 = vmatprep.subr.bf16.mxu0 %v14872_v39  ;;  %8918 = vmatprep.subr.bf16.mxu1 %v14875_v52 }
 0x643   :  { %8878 = vmatpush1.bf16.msra.mxu0 %v14870_v18  ;;  %8919 = vmatpush1.bf16.msra.mxu1 %v14873_v30 }
 0x644   :  { %8879 = vmatprep.subr.bf16.mxu0 %v14878_v8  ;;  %8920 = vmatprep.subr.bf16.mxu1 %v14881_v41 }
 0x647   :  { %8880 = vmatpush1.bf16.msra.mxu0 %v14876_v24  ;;  %8921 = vmatpush1.bf16.msra.mxu1 %v14879_v54  ;;  %v18224_v24 = vld [vmem:[#allocation39_spill] sm:$0xff] }
 0x648   :  { %8881 = vmatprep.subr.bf16.mxu0 %v14884_v45  ;;  %8922 = vmatprep.subr.bf16.mxu1 %v14887_v21  ;;  %v17877_v54 = vrot.slane %v8340_v16, %v18224_v24 }
 0x64b   :  { %8882 = vmatpush1.bf16.msra.mxu0 %v14882_v47  ;;  %8923 = vmatpush1.bf16.msra.mxu1 %v14885_v49 }
 0x64c   :  { %8883 = vmatprep.subr.bf16.mxu0 %v14890_v9  ;;  %8924 = vmatprep.subr.bf16.mxu1 %v14893_v60 }
 0x64f   :  { %8884 = vmatpush1.bf16.msra.mxu0 %v14888_v4  ;;  %8925 = vmatpush1.bf16.msra.mxu1 %v14891_v57 }
 0x650   :  { %8885 = vmatprep.subr.bf16.mxu0 %v14896_v44  ;;  %8926 = vmatprep.subr.bf16.mxu1 %v14899_v42 }
 0x653   :  { %8886 = vmatpush1.bf16.msra.mxu0 %v14894_v13  ;;  %8927 = vmatpush1.bf16.msra.mxu1 %v14897_v33 }
 0x654   :  { %8887 = vmatprep.subr.bf16.mxu0 %v14902_v3  ;;  %8928 = vmatprep.subr.bf16.mxu1 %v14905_v10 }
 0x657   :  { %8888 = vmatpush1.bf16.msra.mxu0 %v14900_v23  ;;  %8929 = vmatpush1.bf16.msra.mxu1 %v14903_v7 }
 0x658   :  { %8889 = vmatprep.subr.bf16.mxu0 %v14908_v34  ;;  %8930 = vmatprep.subr.bf16.mxu1 %v14911_v36 }
 0x65b   :  { %8890 = vmatpush1.bf16.msra.mxu0 %v14906_v26  ;;  %8931 = vmatpush1.bf16.msra.mxu1 %v14909_v19 }
 0x65c   :  { %8891 = vmatprep.subr.bf16.mxu0 %v14914_v55  ;;  %8932 = vmatprep.subr.bf16.mxu1 %v14917_v37 }
 0x65f   :  { %8892 = vmatpush1.bf16.msra.mxu0 %v14912_v63  ;;  %8933 = vmatpush1.bf16.msra.mxu1 %v14915_v17 }
 0x660   :  { %8893 = vmatprep.subr.bf16.mxu0 %v14920_v43  ;;  %8934 = vmatprep.subr.bf16.mxu1 %v14923_v25  ;;  %v14927_v25 = vld [vmem:[#allocation11 + $0x8] ss:$16 sps:$4 sm:$0xff]  }
 0x663   :  { %8894 = vmatpush1.bf16.msra.mxu0 %v14918_v56  ;;  %8935 = vmatpush1.bf16.msra.mxu1 %v14921_v48 }
 0x664   :  { %9269 = vmatprep.subr.bf16.mxu0 %v14926_v61  ;;  %9310 = vmatprep.subr.bf16.mxu1 %v14929_v11  ;;  %v14932_v61 = vld [vmem:[#allocation11 + $0x24] ss:$16 sps:$4 sm:$0xff]   ;;  %v14935_v11 = vld [vmem:[#allocation11 + $0x2c] ss:$16 sps:$4 sm:$0xff]  }
 0x6f8   :  { %v8162_v27 = vpop.f32.mrb[80].mxu0  ;;  %v8233_v51 = vpop.f32.mrb[80].mxu1 }
 0x6f9   :  { %v8298_v31 = vmax.f32 %v17705_v5, %v8162_v27  ;;  %v8300_v58 = vmax.f32 %v17707_v38, %v8233_v51  ;;  %v8164_v35 = vpop.f32.mrb[81].mxu0  ;;  %v8235_v39 = vpop.f32.mrb[81].mxu1 }
 0x6fa   :  { %v8299_v52 = vmax.f32 %v17711_v53, %v8164_v35  ;;  %v8301_v18 = vmax.f32 %v17713_v1, %v8235_v39  ;;  %v8166_v30 = vpop.f32.mrb[82].mxu0  ;;  %v8237_v8 = vpop.f32.mrb[82].mxu1 }
 0x6fb   :  { %v8326_v41 = vmax.f32 %v8298_v31, %v8300_v58  ;;  %v8302_v45 = vmax.f32 %v17715_v0, %v8166_v30  ;;  %v8304_v5 = vmax.f32 %v17717_v15, %v8237_v8  ;;  %v8168_v38 = vpop.f32.mrb[83].mxu0  ;;  %v8239_v21 = vpop.f32.mrb[83].mxu1  ;;  %v14930_v31 = vld [vmem:[#allocation11 + $0x20] ss:$16 sps:$4 sm:$0xff]   ;;  %v14933_v58 = vld [vmem:[#allocation11 + $0x28] ss:$16 sps:$4 sm:$0xff]  }
 0x6fc   :  { %v8327_v47 = vmax.f32 %v8299_v52, %v8301_v18  ;;  %v8303_v49 = vmax.f32 %v17719_v12, %v8168_v38  ;;  %v8305_v9 = vmax.f32 %v17721_v50, %v8239_v21  ;;  %v14938_v30 = vld [vmem:[#allocation11 + $0x44] ss:$16 sps:$4 sm:$0xff]   ;;  %v14941_v8 = vld [vmem:[#allocation11 + $0x4c] ss:$16 sps:$4 sm:$0xff]  }
 0x6fd   :  { %v17884_v53 = vadd.f32 %v17872_v6, %v8326_v41  ;;  %v8328_v1 = vmax.f32 %v8302_v45, %v8304_v5  ;;  %v18225_v41 = vld [vmem:[#allocation77_spill] sm:$0xff]  ;;  %v18226_v5 = vld [vmem:[#allocation78_spill] sm:$0xff] }
 0x6fe   :  { %v8329_v60 = vmax.f32 %v8303_v49, %v8305_v9  ;;  %v8353_v4 = vadd.f32 %v17877_v54, %v8327_v47  ;;  %v18227_v9 = vld [vmem:[#allocation79_spill] sm:$0xff] }
 0x6ff   :  { %v8354_v57 = vadd.f32 %v17872_v6, %v8328_v1 }
 0x700   :  { %v8355_v0 = vadd.f32 %v17877_v54, %v8329_v60  ;;  %v8172_v44 = vpop.f32.mrb[84].mxu0  ;;  %v8243_v15 = vpop.f32.mrb[84].mxu1  ;;  %v8367_v63 = vmax.f32 %v8353_v4, 0.0 }
 0x701   :  { %v8368_v42 = vmax.f32 %v8354_v57, 0.0  ;;  %v8306_v13 = vmax.f32 %v17725_v28, %v8172_v44  ;;  %v8308_v12 = vmax.f32 %v17727_v40, %v8243_v15  ;;  %v8174_v33 = vpop.f32.mrb[85].mxu0  ;;  %v8245_v50 = vpop.f32.mrb[85].mxu1  ;;  %v18230_v15 = vld [vmem:[#allocation82_spill] sm:$0xff] }
 0x702   :  { %v8307_v3 = vmax.f32 %v17731_v46, %v8174_v33  ;;  %v8309_v10 = vmax.f32 %v17733_v14, %v8245_v50  ;;  %v8176_v23 = vpop.f32.mrb[86].mxu0  ;;  %v8247_v7 = vpop.f32.mrb[86].mxu1  ;;  %v8369_v34 = vmax.f32 %v8355_v0, 0.0  ;;  %v14924_v46 = vld [vmem:[#allocation11] ss:$16 sps:$4 sm:$0xff]  }
 0x703   :  { %v8330_v36 = vmax.f32 %v8306_v13, %v8308_v12  ;;  %v8310_v26 = vmax.f32 %v17735_v2, %v8176_v23  ;;  %v8312_v19 = vmax.f32 %v17737_v29, %v8247_v7  ;;  %v8178_v55 = vpop.f32.mrb[87].mxu0  ;;  %v8249_v37 = vpop.f32.mrb[87].mxu1  ;;  %v13369_v14 = vpack.c.bf16 %v8368_v42, %v8368_v42  ;;  %v18229_v0 = vld [vmem:[#allocation81_spill] sm:$0xff]  ;;  %v14939_v12 = vld [vmem:[#allocation11 + $0x48] ss:$16 sps:$4 sm:$0xff]  }
 0x704   :  { %v8331_v28 = vmax.f32 %v8307_v3, %v8309_v10  ;;  %v8311_v40 = vmax.f32 %v17739_v20, %v8178_v55  ;;  %v8313_v17 = vmax.f32 %v17741_v22, %v8249_v37  ;;  %v13370_v43 = vpack.c.bf16 %v8369_v34, %v8369_v34  ;;  %v14936_v13 = vld [vmem:[#allocation11 + $0x40] ss:$16 sps:$4 sm:$0xff]   ;;  %v14944_v3 = vld [vmem:[#allocation11 + $0x64] ss:$16 sps:$4 sm:$0xff]   ;;  %v14947_v10 = vld [vmem:[#allocation11 + $0x6c] ss:$16 sps:$4 sm:$0xff]  }
 0x705   :  { %v17898_v56 = vadd.f32 %v17872_v6, %v8330_v36  ;;  %v8332_v48 = vmax.f32 %v8310_v26, %v8312_v19  ;;  %v13372_v22 = vpack.c.bf16 %v8367_v63, %v8367_v63  ;;  %v14942_v55 = vld [vmem:[#allocation11 + $0x60] ss:$16 sps:$4 sm:$0xff]   ;;  %v14945_v37 = vld [vmem:[#allocation11 + $0x68] ss:$16 sps:$4 sm:$0xff]  }
 0x706   :  { %v17901_v2 = vadd.f32 %v17877_v54, %v8331_v28  ;;  %v8333_v29 = vmax.f32 %v8311_v40, %v8313_v17  ;;  %8895 = vmatprep.mubr.bf16.mxu0 %v13370_v43  ;;  %8936 = vmatprep.mubr.bf16.mxu1 %v13370_v43  ;;  %v18231_v63 = vld [vmem:[#allocation83_spill] sm:$0xff]  ;;  %v18232_v40 = vld [vmem:[#allocation84_spill] sm:$0xff] }
 0x707   :  { %v17904_v20 = vadd.f32 %v17872_v6, %v8332_v48  ;;  %8896 = vmatmul.mubr.bf16.vlgmr.msra.gmra.mrb[96].mxu0 %v13369_v14  ;;  %8937 = vmatmul.mubr.bf16.vlgmr.msra.gmra.mrb[96].mxu1 %v13369_v14  ;;  %v14953_v14 = vld [vmem:[#allocation11 + $0x8c] ss:$16 sps:$4 sm:$0xff]  }
 0x708   :  { %v17907_v16 = vadd.f32 %v17877_v54, %v8333_v29  ;;  %9270 = vmatpush1.bf16.msra.mxu0 %v14924_v46  ;;  %9311 = vmatpush1.bf16.msra.mxu1 %v14927_v25  ;;  %v8182_v27 = vpop.f32.mrb[88].mxu0  ;;  %v8253_v51 = vpop.f32.mrb[88].mxu1  ;;  %v14950_v25 = vld [vmem:[#allocation11 + $0x84] ss:$16 sps:$4 sm:$0xff]  }
 0x709   :  { %v8314_v35 = vmax.f32 %v17743_v59, %v8182_v27  ;;  %v8316_v39 = vmax.f32 %v17745_v62, %v8253_v51  ;;  %9301 = vmatprep.mubr.bf16.mxu0 %v13372_v22  ;;  %9342 = vmatprep.mubr.bf16.mxu1 %v13372_v22  ;;  %v8184_v52 = vpop.f32.mrb[89].mxu0  ;;  %v8255_v18 = vpop.f32.mrb[89].mxu1  ;;  %v18228_v59 = vld [vmem:[#allocation80_spill] sm:$0xff]  ;;  %v18233_v48 = vld [vmem:[#allocation85_spill] sm:$0xff] }
 0x70a   :  { %v8315_v45 = vmax.f32 %v18225_v41, %v8184_v52  ;;  %v8317_v38 = vmax.f32 %v18226_v5, %v8255_v18  ;;  %v8186_v21 = vpop.f32.mrb[90].mxu0  ;;  %v8257_v47 = vpop.f32.mrb[90].mxu1  ;;  %9271 = vmatprep.subr.bf16.mxu0 %v14932_v61  ;;  %9312 = vmatprep.subr.bf16.mxu1 %v14935_v11  ;;  %v18234_v61 = vld [vmem:[#allocation86_spill] sm:$0xff] }
 0x70b   :  { %v8334_v49 = vmax.f32 %v8314_v35, %v8316_v39  ;;  %v8318_v1 = vmax.f32 %v18227_v9, %v8186_v21  ;;  %v8320_v60 = vmax.f32 %v18228_v59, %v8257_v47  ;;  %v8188_v62 = vpop.f32.mrb[91].mxu0  ;;  %v8259_v4 = vpop.f32.mrb[91].mxu1  ;;  %v14948_v39 = vld [vmem:[#allocation11 + $0x80] ss:$16 sps:$4 sm:$0xff]   ;;  %v14951_v52 = vld [vmem:[#allocation11 + $0x88] ss:$16 sps:$4 sm:$0xff]  }
 0x70c   :  { %v8335_v57 = vmax.f32 %v8315_v45, %v8317_v38  ;;  %v8319_v44 = vmax.f32 %v18229_v0, %v8188_v62  ;;  %v8321_v42 = vmax.f32 %v18230_v15, %v8259_v4  ;;  %9272 = vmatpush1.bf16.msra.mxu0 %v14930_v31  ;;  %9313 = vmatpush1.bf16.msra.mxu1 %v14933_v58  ;;  %v14954_v45 = vld [vmem:[#allocation11 + $0xa0] ss:$16 sps:$4 sm:$0xff]   ;;  %v14957_v5 = vld [vmem:[#allocation11 + $0xa8] ss:$16 sps:$4 sm:$0xff]   ;;  %v14962_v38 = vld [vmem:[#allocation11 + $0xc4] ss:$16 sps:$4 sm:$0xff]  }
 0x70d   :  { %v17918_v33 = vadd.f32 %v17872_v6, %v8334_v49  ;;  %v8336_v50 = vmax.f32 %v8318_v1, %v8320_v60  ;;  %9273 = vmatprep.subr.bf16.mxu0 %v14938_v30  ;;  %9314 = vmatprep.subr.bf16.mxu1 %v14941_v8  ;;  %v14956_v30 = vld [vmem:[#allocation11 + $0xa4] ss:$16 sps:$4 sm:$0xff]   ;;  %v14959_v8 = vld [vmem:[#allocation11 + $0xac] ss:$16 sps:$4 sm:$0xff]   ;;  %v14960_v47 = vld [vmem:[#allocation11 + $0xc0] ss:$16 sps:$4 sm:$0xff]  }
 0x70e   :  { %v17921_v23 = vadd.f32 %v17877_v54, %v8335_v57  ;;  %v8337_v7 = vmax.f32 %v8319_v44, %v8321_v42  ;;  %v14965_v21 = vld [vmem:[#allocation11 + $0xcc] ss:$16 sps:$4 sm:$0xff]   ;;  %v14968_v49 = vld [vmem:[#allocation11 + $0xe4] ss:$16 sps:$4 sm:$0xff]   ;;  %v14969_v1 = vld [vmem:[#allocation11 + $0xe8] ss:$16 sps:$4 sm:$0xff]  }
 0x70f   :  { %v17924_v34 = vadd.f32 %v17872_v6, %v8336_v50  ;;  %v14971_v9 = vld [vmem:[#allocation11 + $0xec] ss:$16 sps:$4 sm:$0xff]   ;;  %v14974_v59 = vld [vmem:[#allocation11 + $0x104] ss:$16 sps:$4 sm:$0xff]   ;;  %v14972_v62 = vld [vmem:[#allocation11 + $0x100] ss:$16 sps:$4 sm:$0xff]  }
 0x710   :  { %v17927_v36 = vadd.f32 %v17877_v54, %v8337_v7  ;;  %9274 = vmatpush1.bf16.msra.mxu0 %v14936_v13  ;;  %9315 = vmatpush1.bf16.msra.mxu1 %v14939_v12  ;;  %v8192_v26 = vpop.f32.mrb[92].mxu0  ;;  %v8263_v19 = vpop.f32.mrb[92].mxu1  ;;  %v14977_v60 = vld [vmem:[#allocation11 + $0x10c] ss:$16 sps:$4 sm:$0xff]   ;;  %v14975_v4 = vld [vmem:[#allocation11 + $0x108] ss:$16 sps:$4 sm:$0xff]  }
 0x711   :  { %v8322_v28 = vmax.f32 %v18231_v63, %v8192_v26  ;;  %v8324_v17 = vmax.f32 %v18232_v40, %v8263_v19  ;;  %v8194_v43 = vpop.f32.mrb[93].mxu0  ;;  %v8265_v46 = vpop.f32.mrb[93].mxu1  ;;  %9275 = vmatprep.subr.bf16.mxu0 %v14944_v3  ;;  %9316 = vmatprep.subr.bf16.mxu1 %v14947_v10  ;;  %v14980_v57 = vld [vmem:[#allocation11 + $0x124] ss:$16 sps:$4 sm:$0xff]   ;;  %v14983_v0 = vld [vmem:[#allocation11 + $0x12c] ss:$16 sps:$4 sm:$0xff]  }
 0x712   :  { %v8323_v29 = vmax.f32 %v18233_v48, %v8194_v43  ;;  %v8325_v11 = vmax.f32 %v18234_v61, %v8265_v46  ;;  %v8196_v22 = vpop.f32.mrb[94].mxu0  ;;  %v8267_v27 = vpop.f32.mrb[94].mxu1  ;;  %v14978_v44 = vld [vmem:[#allocation11 + $0x120] ss:$16 sps:$4 sm:$0xff]   ;;  %v14981_v15 = vld [vmem:[#allocation11 + $0x128] ss:$16 sps:$4 sm:$0xff]  }
 0x713   :  { %v8338_v51 = vmax.f32 %v8322_v28, %v8324_v17  ;;  %v8197_v31 = vpop.f32.mrb[95].mxu0  ;;  %v8268_v58 = vpop.f32.mrb[95].mxu1  ;;  %v14986_v42 = vld [vmem:[#allocation11 + $0x144] ss:$16 sps:$4 sm:$0xff]   ;;  %v14989_v13 = vld [vmem:[#allocation11 + $0x14c] ss:$16 sps:$4 sm:$0xff]  }
 0x714   :  { %v8339_v35 = vmax.f32 %v8323_v29, %v8325_v11  ;;  %9276 = vmatpush1.bf16.msra.mxu0 %v14942_v55  ;;  %9317 = vmatpush1.bf16.msra.mxu1 %v14945_v37  ;;  %v14984_v12 = vld [vmem:[#allocation11 + $0x140] ss:$16 sps:$4 sm:$0xff]   ;;  %v14987_v50 = vld [vmem:[#allocation11 + $0x148] ss:$16 sps:$4 sm:$0xff]   ;;  %v14992_v3 = vld [vmem:[#allocation11 + $0x164] ss:$16 sps:$4 sm:$0xff]  }
 0x715   :  { %v17934_v18 = vadd.f32 %v17872_v6, %v8338_v51  ;;  %9277 = vmatprep.subr.bf16.mxu0 %v14950_v25  ;;  %9318 = vmatprep.subr.bf16.mxu1 %v14953_v14  ;;  %v14963_v6 = vld [vmem:[#allocation11 + $0xc8] ss:$16 sps:$4 sm:$0xff]   ;;  %v14995_v10 = vld [vmem:[#allocation11 + $0x16c] ss:$16 sps:$4 sm:$0xff]   ;;  %v14990_v7 = vld [vmem:[#allocation11 + $0x160] ss:$16 sps:$4 sm:$0xff]  }
 0x716   :  { %v17937_v41 = vadd.f32 %v17877_v54, %v8339_v35  ;;  %v14966_v54 = vld [vmem:[#allocation11 + $0xe0] ss:$16 sps:$4 sm:$0xff]   ;;  %v14993_v26 = vld [vmem:[#allocation11 + $0x168] ss:$16 sps:$4 sm:$0xff]   ;;  %v14998_v19 = vld [vmem:[#allocation11 + $0x184] ss:$16 sps:$4 sm:$0xff]  }
 0x717   :  { %v15001_v55 = vld [vmem:[#allocation11 + $0x18c] ss:$16 sps:$4 sm:$0xff]   ;;  %v14996_v37 = vld [vmem:[#allocation11 + $0x180] ss:$16 sps:$4 sm:$0xff]   ;;  %v14999_v63 = vld [vmem:[#allocation11 + $0x188] ss:$16 sps:$4 sm:$0xff]  }
 0x718   :  { %9278 = vmatpush1.bf16.msra.mxu0 %v14948_v39  ;;  %9319 = vmatpush1.bf16.msra.mxu1 %v14951_v52  ;;  %v15004_v28 = vld [vmem:[#allocation11 + $0x1a4] ss:$16 sps:$4 sm:$0xff]   ;;  %v15007_v40 = vld [vmem:[#allocation11 + $0x1ac] ss:$16 sps:$4 sm:$0xff]   ;;  %v15002_v17 = vld [vmem:[#allocation11 + $0x1a0] ss:$16 sps:$4 sm:$0xff]  }
 0x719   :  { %9279 = vmatprep.subr.bf16.mxu0 %v14956_v30  ;;  %9320 = vmatprep.subr.bf16.mxu1 %v14959_v8  ;;  %v15005_v43 = vld [vmem:[#allocation11 + $0x1a8] ss:$16 sps:$4 sm:$0xff]   ;;  %v15010_v46 = vld [vmem:[#allocation11 + $0x1c4] ss:$16 sps:$4 sm:$0xff]   ;;  %v15013_v25 = vld [vmem:[#allocation11 + $0x1cc] ss:$16 sps:$4 sm:$0xff]  }
 0x71a   :  { %v15008_v14 = vld [vmem:[#allocation11 + $0x1c0] ss:$16 sps:$4 sm:$0xff]   ;;  %v15011_v48 = vld [vmem:[#allocation11 + $0x1c8] ss:$16 sps:$4 sm:$0xff]   ;;  %v15016_v29 = vld [vmem:[#allocation11 + $0x1e4] ss:$16 sps:$4 sm:$0xff]  }
 0x71b   :  { %v15019_v61 = vld [vmem:[#allocation11 + $0x1ec] ss:$16 sps:$4 sm:$0xff]   ;;  %v15014_v11 = vld [vmem:[#allocation11 + $0x1e0] ss:$16 sps:$4 sm:$0xff]   ;;  %v15017_v22 = vld [vmem:[#allocation11 + $0x1e8] ss:$16 sps:$4 sm:$0xff]  }
 0x71c   :  { %9280 = vmatpush1.bf16.msra.mxu0 %v14954_v45  ;;  %9321 = vmatpush1.bf16.msra.mxu1 %v14957_v5  ;;  %v8366_v27 = vmax.f32 %v17884_v53, 0.0  ;;  %v15022_v51 = vld [vmem:[#allocation11 + $0x404] ss:$16 sps:$4 sm:$0xff]   ;;  %v15025_v31 = vld [vmem:[#allocation11 + $0x40c] ss:$16 sps:$4 sm:$0xff]   ;;  %v8371_v58 = vmax.f32 %v17901_v2, 0.0 }
 0x71d   :  { %9281 = vmatprep.subr.bf16.mxu0 %v14962_v38  ;;  %9322 = vmatprep.subr.bf16.mxu1 %v14965_v21  ;;  %v15020_v35 = vld [vmem:[#allocation11 + $0x400] ss:$16 sps:$4 sm:$0xff]   ;;  %v15023_v52 = vld [vmem:[#allocation11 + $0x408] ss:$16 sps:$4 sm:$0xff]   ;;  %v15028_v8 = vld [vmem:[#allocation11 + $0x424] ss:$16 sps:$4 sm:$0xff]  }
 0x71e   :  { %v13371_v39 = vpack.c.bf16 %v8366_v27, %v8366_v27  ;;  %v13374_v30 = vpack.c.bf16 %v8371_v58, %v8371_v58  ;;  %v15031_v45 = vld [vmem:[#allocation11 + $0x42c] ss:$16 sps:$4 sm:$0xff]   ;;  %v15026_v53 = vld [vmem:[#allocation11 + $0x420] ss:$16 sps:$4 sm:$0xff]   ;;  %v15029_v5 = vld [vmem:[#allocation11 + $0x428] ss:$16 sps:$4 sm:$0xff]  }
 0x71f   :  { %v15034_v38 = vld [vmem:[#allocation11 + $0x444] ss:$16 sps:$4 sm:$0xff]   ;;  %v15037_v2 = vld [vmem:[#allocation11 + $0x44c] ss:$16 sps:$4 sm:$0xff]   ;;  %v15032_v21 = vld [vmem:[#allocation11 + $0x440] ss:$16 sps:$4 sm:$0xff]  }
 0x720   :  { %9282 = vmatpush1.bf16.msra.mxu0 %v14960_v47  ;;  %9323 = vmatpush1.bf16.msra.mxu1 %v14963_v6  ;;  %v15035_v47 = vld [vmem:[#allocation11 + $0x448] ss:$16 sps:$4 sm:$0xff]   ;;  %v15040_v6 = vld [vmem:[#allocation11 + $0x464] ss:$16 sps:$4 sm:$0xff]   ;;  %v15097_v27 = vld [vmem:[#allocation11 + $0x58c] ss:$16 sps:$4 sm:$0xff]  }
 0x721   :  { %9283 = vmatprep.subr.bf16.mxu0 %v14968_v49  ;;  %9324 = vmatprep.subr.bf16.mxu1 %v14971_v9  ;;  %v15043_v49 = vld [vmem:[#allocation11 + $0x46c] ss:$16 sps:$4 sm:$0xff]   ;;  %v15038_v9 = vld [vmem:[#allocation11 + $0x460] ss:$16 sps:$4 sm:$0xff]   ;;  %v15100_v58 = vld [vmem:[#allocation11 + $0x5a4] ss:$16 sps:$4 sm:$0xff]  }
 0x724   :  { %9284 = vmatpush1.bf16.msra.mxu0 %v14966_v54  ;;  %9325 = vmatpush1.bf16.msra.mxu1 %v14969_v1  ;;  %v15041_v54 = vld [vmem:[#allocation11 + $0x468] ss:$16 sps:$4 sm:$0xff]   ;;  %v15046_v1 = vld [vmem:[#allocation11 + $0x484] ss:$16 sps:$4 sm:$0xff]  }
 0x725   :  { %9285 = vmatprep.subr.bf16.mxu0 %v14974_v59  ;;  %9326 = vmatprep.subr.bf16.mxu1 %v14977_v60  ;;  %v15049_v59 = vld [vmem:[#allocation11 + $0x48c] ss:$16 sps:$4 sm:$0xff]   ;;  %v15044_v60 = vld [vmem:[#allocation11 + $0x480] ss:$16 sps:$4 sm:$0xff]  }
 0x728   :  { %9286 = vmatpush1.bf16.msra.mxu0 %v14972_v62  ;;  %9327 = vmatpush1.bf16.msra.mxu1 %v14975_v4  ;;  %v15047_v62 = vld [vmem:[#allocation11 + $0x488] ss:$16 sps:$4 sm:$0xff]   ;;  %v15052_v4 = vld [vmem:[#allocation11 + $0x4a4] ss:$16 sps:$4 sm:$0xff]  }
 0x729   :  { %9287 = vmatprep.subr.bf16.mxu0 %v14980_v57  ;;  %9328 = vmatprep.subr.bf16.mxu1 %v14983_v0  ;;  %v15055_v57 = vld [vmem:[#allocation11 + $0x4ac] ss:$16 sps:$4 sm:$0xff]   ;;  %v15050_v0 = vld [vmem:[#allocation11 + $0x4a0] ss:$16 sps:$4 sm:$0xff]  }
 0x72c   :  { %9288 = vmatpush1.bf16.msra.mxu0 %v14978_v44  ;;  %9329 = vmatpush1.bf16.msra.mxu1 %v14981_v15  ;;  %v15053_v44 = vld [vmem:[#allocation11 + $0x4a8] ss:$16 sps:$4 sm:$0xff]   ;;  %v15058_v15 = vld [vmem:[#allocation11 + $0x4c4] ss:$16 sps:$4 sm:$0xff]  }
 0x72d   :  { %9289 = vmatprep.subr.bf16.mxu0 %v14986_v42  ;;  %9330 = vmatprep.subr.bf16.mxu1 %v14989_v13  ;;  %v15061_v42 = vld [vmem:[#allocation11 + $0x4cc] ss:$16 sps:$4 sm:$0xff]   ;;  %v15056_v13 = vld [vmem:[#allocation11 + $0x4c0] ss:$16 sps:$4 sm:$0xff]  }
 0x730   :  { %9290 = vmatpush1.bf16.msra.mxu0 %v14984_v12  ;;  %9331 = vmatpush1.bf16.msra.mxu1 %v14987_v50  ;;  %v15059_v12 = vld [vmem:[#allocation11 + $0x4c8] ss:$16 sps:$4 sm:$0xff]   ;;  %v15064_v50 = vld [vmem:[#allocation11 + $0x4e4] ss:$16 sps:$4 sm:$0xff]  }
 0x731   :  { %9291 = vmatprep.subr.bf16.mxu0 %v14992_v3  ;;  %9332 = vmatprep.subr.bf16.mxu1 %v14995_v10  ;;  %v15067_v3 = vld [vmem:[#allocation11 + $0x4ec] ss:$16 sps:$4 sm:$0xff]   ;;  %v15062_v10 = vld [vmem:[#allocation11 + $0x4e0] ss:$16 sps:$4 sm:$0xff]  }
 0x734   :  { %9292 = vmatpush1.bf16.msra.mxu0 %v14990_v7  ;;  %9333 = vmatpush1.bf16.msra.mxu1 %v14993_v26  ;;  %v15065_v7 = vld [vmem:[#allocation11 + $0x4e8] ss:$16 sps:$4 sm:$0xff]   ;;  %v15070_v26 = vld [vmem:[#allocation11 + $0x504] ss:$16 sps:$4 sm:$0xff]  }
 0x735   :  { %9293 = vmatprep.subr.bf16.mxu0 %v14998_v19  ;;  %9334 = vmatprep.subr.bf16.mxu1 %v15001_v55  ;;  %v15073_v19 = vld [vmem:[#allocation11 + $0x50c] ss:$16 sps:$4 sm:$0xff]   ;;  %v15068_v55 = vld [vmem:[#allocation11 + $0x500] ss:$16 sps:$4 sm:$0xff]  }
 0x738   :  { %9294 = vmatpush1.bf16.msra.mxu0 %v14996_v37  ;;  %9335 = vmatpush1.bf16.msra.mxu1 %v14999_v63  ;;  %v15071_v37 = vld [vmem:[#allocation11 + $0x508] ss:$16 sps:$4 sm:$0xff]   ;;  %v15076_v63 = vld [vmem:[#allocation11 + $0x524] ss:$16 sps:$4 sm:$0xff]  }
 0x739   :  { %9295 = vmatprep.subr.bf16.mxu0 %v15004_v28  ;;  %9336 = vmatprep.subr.bf16.mxu1 %v15007_v40  ;;  %v15079_v28 = vld [vmem:[#allocation11 + $0x52c] ss:$16 sps:$4 sm:$0xff]   ;;  %v15074_v40 = vld [vmem:[#allocation11 + $0x520] ss:$16 sps:$4 sm:$0xff]  }
 0x73c   :  { %9296 = vmatpush1.bf16.msra.mxu0 %v15002_v17  ;;  %9337 = vmatpush1.bf16.msra.mxu1 %v15005_v43  ;;  %v15077_v17 = vld [vmem:[#allocation11 + $0x528] ss:$16 sps:$4 sm:$0xff]   ;;  %v15082_v43 = vld [vmem:[#allocation11 + $0x544] ss:$16 sps:$4 sm:$0xff]  }
 0x73d   :  { %9297 = vmatprep.subr.bf16.mxu0 %v15010_v46  ;;  %9338 = vmatprep.subr.bf16.mxu1 %v15013_v25  ;;  %v15085_v46 = vld [vmem:[#allocation11 + $0x54c] ss:$16 sps:$4 sm:$0xff]   ;;  %v15080_v25 = vld [vmem:[#allocation11 + $0x540] ss:$16 sps:$4 sm:$0xff]  }
 0x740   :  { %9298 = vmatpush1.bf16.msra.mxu0 %v15008_v14  ;;  %9339 = vmatpush1.bf16.msra.mxu1 %v15011_v48  ;;  %v15083_v14 = vld [vmem:[#allocation11 + $0x548] ss:$16 sps:$4 sm:$0xff]   ;;  %v15088_v48 = vld [vmem:[#allocation11 + $0x564] ss:$16 sps:$4 sm:$0xff]  }
 0x741   :  { %9299 = vmatprep.subr.bf16.mxu0 %v15016_v29  ;;  %9340 = vmatprep.subr.bf16.mxu1 %v15019_v61  ;;  %v15091_v29 = vld [vmem:[#allocation11 + $0x56c] ss:$16 sps:$4 sm:$0xff]   ;;  %v15086_v61 = vld [vmem:[#allocation11 + $0x560] ss:$16 sps:$4 sm:$0xff]  }
 0x744   :  { %9300 = vmatpush1.bf16.msra.mxu0 %v15014_v11  ;;  %9341 = vmatpush1.bf16.msra.mxu1 %v15017_v22  ;;  %v15089_v11 = vld [vmem:[#allocation11 + $0x568] ss:$16 sps:$4 sm:$0xff]   ;;  %v15094_v22 = vld [vmem:[#allocation11 + $0x584] ss:$16 sps:$4 sm:$0xff]  }
 0x745   :  { %9740 = vmatprep.subr.bf16.mxu0 %v15022_v51  ;;  %9781 = vmatprep.subr.bf16.mxu1 %v15025_v31  ;;  %v15092_v51 = vld [vmem:[#allocation11 + $0x580] ss:$16 sps:$4 sm:$0xff]   ;;  %v15095_v31 = vld [vmem:[#allocation11 + $0x588] ss:$16 sps:$4 sm:$0xff]  }
 0x747   :  { %9302 = vmatmul.mubr.bf16.vlgmr.msra.gmra.mrb[100].mxu0 %v13371_v39  ;;  %9343 = vmatmul.mubr.bf16.vlgmr.msra.gmra.mrb[100].mxu1 %v13371_v39  ;;  %v15098_v39 = vld [vmem:[#allocation11 + $0x5a0] ss:$16 sps:$4 sm:$0xff]  }
 0x748   :  { %9741 = vmatpush1.bf16.msra.mxu0 %v15020_v35  ;;  %9772 = vmatprep.mubr.bf16.mxu0 %v13374_v30  ;;  %v15103_v35 = vld [vmem:[#allocation11 + $0x5ac] ss:$16 sps:$4 sm:$0xff]  }
 0x749   :  { %9782 = vmatpush1.bf16.msra.mxu1 %v15023_v52  ;;  %9813 = vmatprep.mubr.bf16.mxu1 %v13374_v30  ;;  %v15101_v52 = vld [vmem:[#allocation11 + $0x5a8] ss:$16 sps:$4 sm:$0xff]   ;;  %v15106_v30 = vld [vmem:[#allocation11 + $0x5c4] ss:$16 sps:$4 sm:$0xff]  }
 0x74a   :  { %9742 = vmatprep.subr.bf16.mxu0 %v15028_v8  ;;  %9783 = vmatprep.subr.bf16.mxu1 %v15031_v45  ;;  %v15109_v8 = vld [vmem:[#allocation11 + $0x5cc] ss:$16 sps:$4 sm:$0xff]   ;;  %v15104_v45 = vld [vmem:[#allocation11 + $0x5c0] ss:$16 sps:$4 sm:$0xff]  }
 0x74c   :  { %9743 = vmatpush1.bf16.msra.mxu0 %v15026_v53  ;;  %v15107_v53 = vld [vmem:[#allocation11 + $0x5c8] ss:$16 sps:$4 sm:$0xff]  }
 0x74d   :  { %9784 = vmatpush1.bf16.msra.mxu1 %v15029_v5  ;;  %9744 = vmatprep.subr.bf16.mxu0 %v15034_v38  ;;  %v15112_v5 = vld [vmem:[#allocation11 + $0x5e4] ss:$16 sps:$4 sm:$0xff]   ;;  %v15115_v38 = vld [vmem:[#allocation11 + $0x5ec] ss:$16 sps:$4 sm:$0xff]  }
 0x74e   :  { %9785 = vmatprep.subr.bf16.mxu1 %v15037_v2  ;;  %v15110_v2 = vld [vmem:[#allocation11 + $0x5e0] ss:$16 sps:$4 sm:$0xff]  }
 0x750   :  { %9745 = vmatpush1.bf16.msra.mxu0 %v15032_v21  ;;  %v8370_v21 = vmax.f32 %v17898_v56, 0.0  ;;  %v15122_v56 = vld [vmem:[#allocation11 + $0x620] ss:$16 sps:$4 sm:$0xff]  }
 0x751   :  { %9786 = vmatpush1.bf16.msra.mxu1 %v15035_v47  ;;  %9746 = vmatprep.subr.bf16.mxu0 %v15040_v6  ;;  %v15113_v47 = vld [vmem:[#allocation11 + $0x5e8] ss:$16 sps:$4 sm:$0xff]   ;;  %v15118_v6 = vld [vmem:[#allocation11 + $0x604] ss:$16 sps:$4 sm:$0xff]  }
 0x752   :  { %9787 = vmatprep.subr.bf16.mxu1 %v15043_v49  ;;  %v15121_v49 = vld [vmem:[#allocation11 + $0x60c] ss:$16 sps:$4 sm:$0xff]  }
 0x754   :  { %9747 = vmatpush1.bf16.msra.mxu0 %v15038_v9  ;;  %v8373_v9 = vmax.f32 %v17907_v16, 0.0  ;;  %v15133_v16 = vld [vmem:[#allocation11 + $0x64c] ss:$16 sps:$4 sm:$0xff]  }
 0x755   :  { %9788 = vmatpush1.bf16.msra.mxu1 %v15041_v54  ;;  %9748 = vmatprep.subr.bf16.mxu0 %v15046_v1  ;;  %v15116_v54 = vld [vmem:[#allocation11 + $0x600] ss:$16 sps:$4 sm:$0xff]   ;;  %v13373_v1 = vpack.c.bf16 %v8370_v21, %v8370_v21 }
 0x756   :  { %9789 = vmatprep.subr.bf16.mxu1 %v15049_v59  ;;  %v15119_v59 = vld [vmem:[#allocation11 + $0x608] ss:$16 sps:$4 sm:$0xff]   ;;  %v15188_v21 = vld [vmem:[#allocation11 + $0x780] ss:$16 sps:$4 sm:$0xff]  }
 0x758   :  { %9749 = vmatpush1.bf16.msra.mxu0 %v15044_v60  ;;  %v15124_v60 = vld [vmem:[#allocation11 + $0x624] ss:$16 sps:$4 sm:$0xff]  }
 0x759   :  { %9790 = vmatpush1.bf16.msra.mxu1 %v15047_v62  ;;  %9750 = vmatprep.subr.bf16.mxu0 %v15052_v4  ;;  %v13376_v62 = vpack.c.bf16 %v8373_v9, %v8373_v9  ;;  %v15127_v4 = vld [vmem:[#allocation11 + $0x62c] ss:$16 sps:$4 sm:$0xff]   ;;  %v15194_v9 = vld [vmem:[#allocation11 + $0x7a0] ss:$16 sps:$4 sm:$0xff]  }
 0x75a   :  { %9791 = vmatprep.subr.bf16.mxu1 %v15055_v57  ;;  %v15125_v57 = vld [vmem:[#allocation11 + $0x628] ss:$16 sps:$4 sm:$0xff]  }
 0x75c   :  { %9751 = vmatpush1.bf16.msra.mxu0 %v15050_v0  ;;  %v15130_v0 = vld [vmem:[#allocation11 + $0x644] ss:$16 sps:$4 sm:$0xff]  }
 0x75d   :  { %9792 = vmatpush1.bf16.msra.mxu1 %v15053_v44  ;;  %9752 = vmatprep.subr.bf16.mxu0 %v15058_v15  ;;  %v15128_v44 = vld [vmem:[#allocation11 + $0x640] ss:$16 sps:$4 sm:$0xff]   ;;  %v15131_v15 = vld [vmem:[#allocation11 + $0x648] ss:$16 sps:$4 sm:$0xff]  }
 0x75e   :  { %9793 = vmatprep.subr.bf16.mxu1 %v15061_v42  ;;  %v15136_v42 = vld [vmem:[#allocation11 + $0x664] ss:$16 sps:$4 sm:$0xff]  }
 0x760   :  { %9753 = vmatpush1.bf16.msra.mxu0 %v15056_v13  ;;  %v15139_v13 = vld [vmem:[#allocation11 + $0x66c] ss:$16 sps:$4 sm:$0xff]  }
 0x761   :  { %9794 = vmatpush1.bf16.msra.mxu1 %v15059_v12  ;;  %9754 = vmatprep.subr.bf16.mxu0 %v15064_v50  ;;  %v15134_v12 = vld [vmem:[#allocation11 + $0x660] ss:$16 sps:$4 sm:$0xff]   ;;  %v15137_v50 = vld [vmem:[#allocation11 + $0x668] ss:$16 sps:$4 sm:$0xff]  }
 0x762   :  { %9795 = vmatprep.subr.bf16.mxu1 %v15067_v3  ;;  %v15142_v3 = vld [vmem:[#allocation11 + $0x684] ss:$16 sps:$4 sm:$0xff]  }
 0x764   :  { %9755 = vmatpush1.bf16.msra.mxu0 %v15062_v10  ;;  %v15145_v10 = vld [vmem:[#allocation11 + $0x68c] ss:$16 sps:$4 sm:$0xff]  }
 0x765   :  { %9796 = vmatpush1.bf16.msra.mxu1 %v15065_v7  ;;  %9756 = vmatprep.subr.bf16.mxu0 %v15070_v26  ;;  %v15140_v7 = vld [vmem:[#allocation11 + $0x680] ss:$16 sps:$4 sm:$0xff]   ;;  %v15143_v26 = vld [vmem:[#allocation11 + $0x688] ss:$16 sps:$4 sm:$0xff]  }
 0x766   :  { %9797 = vmatprep.subr.bf16.mxu1 %v15073_v19  ;;  %v15148_v19 = vld [vmem:[#allocation11 + $0x6a4] ss:$16 sps:$4 sm:$0xff]  }
 0x768   :  { %9757 = vmatpush1.bf16.msra.mxu0 %v15068_v55  ;;  %v15151_v55 = vld [vmem:[#allocation11 + $0x6ac] ss:$16 sps:$4 sm:$0xff]  }
 0x769   :  { %9798 = vmatpush1.bf16.msra.mxu1 %v15071_v37  ;;  %9758 = vmatprep.subr.bf16.mxu0 %v15076_v63  ;;  %v15146_v37 = vld [vmem:[#allocation11 + $0x6a0] ss:$16 sps:$4 sm:$0xff]   ;;  %v15149_v63 = vld [vmem:[#allocation11 + $0x6a8] ss:$16 sps:$4 sm:$0xff]  }
 0x76a   :  { %9799 = vmatprep.subr.bf16.mxu1 %v15079_v28  ;;  %v15154_v28 = vld [vmem:[#allocation11 + $0x6c4] ss:$16 sps:$4 sm:$0xff]  }
 0x76c   :  { %9759 = vmatpush1.bf16.msra.mxu0 %v15074_v40  ;;  %v15157_v40 = vld [vmem:[#allocation11 + $0x6cc] ss:$16 sps:$4 sm:$0xff]  }
 0x76d   :  { %9800 = vmatpush1.bf16.msra.mxu1 %v15077_v17  ;;  %9760 = vmatprep.subr.bf16.mxu0 %v15082_v43  ;;  %v15152_v17 = vld [vmem:[#allocation11 + $0x6c0] ss:$16 sps:$4 sm:$0xff]   ;;  %v15155_v43 = vld [vmem:[#allocation11 + $0x6c8] ss:$16 sps:$4 sm:$0xff]  }
 0x76e   :  { %9801 = vmatprep.subr.bf16.mxu1 %v15085_v46  ;;  %v15160_v46 = vld [vmem:[#allocation11 + $0x6e4] ss:$16 sps:$4 sm:$0xff]  }
 0x770   :  { %9761 = vmatpush1.bf16.msra.mxu0 %v15080_v25  ;;  %v15163_v25 = vld [vmem:[#allocation11 + $0x6ec] ss:$16 sps:$4 sm:$0xff]  }
 0x771   :  { %9802 = vmatpush1.bf16.msra.mxu1 %v15083_v14  ;;  %9762 = vmatprep.subr.bf16.mxu0 %v15088_v48  ;;  %v15158_v14 = vld [vmem:[#allocation11 + $0x6e0] ss:$16 sps:$4 sm:$0xff]   ;;  %v15161_v48 = vld [vmem:[#allocation11 + $0x6e8] ss:$16 sps:$4 sm:$0xff]  }
 0x772   :  { %9803 = vmatprep.subr.bf16.mxu1 %v15091_v29  ;;  %v15166_v29 = vld [vmem:[#allocation11 + $0x704] ss:$16 sps:$4 sm:$0xff]  }
 0x774   :  { %9763 = vmatpush1.bf16.msra.mxu0 %v15086_v61  ;;  %v15169_v61 = vld [vmem:[#allocation11 + $0x70c] ss:$16 sps:$4 sm:$0xff]  }
 0x775   :  { %9804 = vmatpush1.bf16.msra.mxu1 %v15089_v11  ;;  %9764 = vmatprep.subr.bf16.mxu0 %v15094_v22  ;;  %v15164_v11 = vld [vmem:[#allocation11 + $0x700] ss:$16 sps:$4 sm:$0xff]   ;;  %v15167_v22 = vld [vmem:[#allocation11 + $0x708] ss:$16 sps:$4 sm:$0xff]  }
 0x776   :  { %9805 = vmatprep.subr.bf16.mxu1 %v15097_v27  ;;  %v15172_v27 = vld [vmem:[#allocation11 + $0x724] ss:$16 sps:$4 sm:$0xff]  }
 0x778   :  { %9765 = vmatpush1.bf16.msra.mxu0 %v15092_v51  ;;  %v15175_v51 = vld [vmem:[#allocation11 + $0x72c] ss:$16 sps:$4 sm:$0xff]  }
 0x779   :  { %9806 = vmatpush1.bf16.msra.mxu1 %v15095_v31  ;;  %9766 = vmatprep.subr.bf16.mxu0 %v15100_v58  ;;  %v15170_v31 = vld [vmem:[#allocation11 + $0x720] ss:$16 sps:$4 sm:$0xff]   ;;  %v15173_v58 = vld [vmem:[#allocation11 + $0x728] ss:$16 sps:$4 sm:$0xff]  }
 0x77a   :  { %9807 = vmatprep.subr.bf16.mxu1 %v15103_v35  ;;  %v15178_v35 = vld [vmem:[#allocation11 + $0x744] ss:$16 sps:$4 sm:$0xff]  }
 0x77c   :  { %9767 = vmatpush1.bf16.msra.mxu0 %v15098_v39  ;;  %v15181_v39 = vld [vmem:[#allocation11 + $0x74c] ss:$16 sps:$4 sm:$0xff]  }
 0x77d   :  { %9808 = vmatpush1.bf16.msra.mxu1 %v15101_v52  ;;  %9768 = vmatprep.subr.bf16.mxu0 %v15106_v30  ;;  %v15176_v52 = vld [vmem:[#allocation11 + $0x740] ss:$16 sps:$4 sm:$0xff]   ;;  %v15179_v30 = vld [vmem:[#allocation11 + $0x748] ss:$16 sps:$4 sm:$0xff]  }
 0x77e   :  { %9809 = vmatprep.subr.bf16.mxu1 %v15109_v8  ;;  %v15184_v8 = vld [vmem:[#allocation11 + $0x764] ss:$16 sps:$4 sm:$0xff]  }
 0x780   :  { %9769 = vmatpush1.bf16.msra.mxu0 %v15104_v45  ;;  %v15187_v45 = vld [vmem:[#allocation11 + $0x76c] ss:$16 sps:$4 sm:$0xff]  }
 0x781   :  { %9810 = vmatpush1.bf16.msra.mxu1 %v15107_v53  ;;  %9770 = vmatprep.subr.bf16.mxu0 %v15112_v5  ;;  %v15182_v53 = vld [vmem:[#allocation11 + $0x760] ss:$16 sps:$4 sm:$0xff]   ;;  %v15185_v5 = vld [vmem:[#allocation11 + $0x768] ss:$16 sps:$4 sm:$0xff]  }
 0x782   :  { %9811 = vmatprep.subr.bf16.mxu1 %v15115_v38  ;;  %v15190_v38 = vld [vmem:[#allocation11 + $0x784] ss:$16 sps:$4 sm:$0xff]  }
 0x784   :  { %9771 = vmatpush1.bf16.msra.mxu0 %v15110_v2  ;;  %v15193_v2 = vld [vmem:[#allocation11 + $0x78c] ss:$16 sps:$4 sm:$0xff]  }
 0x785   :  { %9812 = vmatpush1.bf16.msra.mxu1 %v15113_v47  ;;  %10215 = vmatprep.subr.bf16.mxu0 %v15118_v6  ;;  %v15191_v47 = vld [vmem:[#allocation11 + $0x788] ss:$16 sps:$4 sm:$0xff]   ;;  %v15196_v6 = vld [vmem:[#allocation11 + $0x7a4] ss:$16 sps:$4 sm:$0xff]  }
 0x786   :  { %10256 = vmatprep.subr.bf16.mxu1 %v15121_v49  ;;  %v15199_v49 = vld [vmem:[#allocation11 + $0x7ac] ss:$16 sps:$4 sm:$0xff]  }
 0x787   :  { %9773 = vmatmul.mubr.bf16.vlgmr.msra.gmra.mrb[104].mxu0 %v13373_v1 }
 0x788   :  { %9814 = vmatmul.mubr.bf16.vlgmr.msra.gmra.mrb[104].mxu1 %v13373_v1  ;;  %10216 = vmatpush1.bf16.msra.mxu0 %v15116_v54  ;;  %v15197_v54 = vld [vmem:[#allocation11 + $0x7a8] ss:$16 sps:$4 sm:$0xff]   ;;  %v15202_v1 = vld [vmem:[#allocation11 + $0x7c4] ss:$16 sps:$4 sm:$0xff]  }
 0x789   :  { %10247 = vmatprep.mubr.bf16.mxu0 %v13376_v62  ;;  %10257 = vmatpush1.bf16.msra.mxu1 %v15119_v59  ;;  %v15205_v59 = vld [vmem:[#allocation11 + $0x7cc] ss:$16 sps:$4 sm:$0xff]  }
 0x78a   :  { %10288 = vmatprep.mubr.bf16.mxu1 %v13376_v62  ;;  %10217 = vmatprep.subr.bf16.mxu0 %v15124_v60  ;;  %v15200_v60 = vld [vmem:[#allocation11 + $0x7c0] ss:$16 sps:$4 sm:$0xff]   ;;  %v15203_v62 = vld [vmem:[#allocation11 + $0x7c8] ss:$16 sps:$4 sm:$0xff]  }
 0x78b   :  { %10258 = vmatprep.subr.bf16.mxu1 %v15127_v4  ;;  %v15208_v4 = vld [vmem:[#allocation11 + $0x7e4] ss:$16 sps:$4 sm:$0xff]  }
 0x78c   :  { %10218 = vmatpush1.bf16.msra.mxu0 %v15122_v56  ;;  %v15211_v56 = vld [vmem:[#allocation11 + $0x7ec] ss:$16 sps:$4 sm:$0xff]  }
 0x78d   :  { %10259 = vmatpush1.bf16.msra.mxu1 %v15125_v57  ;;  %10219 = vmatprep.subr.bf16.mxu0 %v15130_v0  ;;  %v15206_v57 = vld [vmem:[#allocation11 + $0x7e0] ss:$16 sps:$4 sm:$0xff]   ;;  %v8372_v0 = vmax.f32 %v17904_v20, 0.0 }
 0x78e   :  { %10260 = vmatprep.subr.bf16.mxu1 %v15133_v16  ;;  %v15209_v16 = vld [vmem:[#allocation11 + $0x7e8] ss:$16 sps:$4 sm:$0xff]   ;;  %v15218_v20 = vld [vmem:[#allocation11 + $0x820] ss:$16 sps:$4 sm:$0xff]  }
 0x790   :  { %10220 = vmatpush1.bf16.msra.mxu0 %v15128_v44  ;;  %v15214_v44 = vld [vmem:[#allocation11 + $0x804] ss:$16 sps:$4 sm:$0xff]  }
 0x791   :  { %10261 = vmatpush1.bf16.msra.mxu1 %v15131_v15  ;;  %10221 = vmatprep.subr.bf16.mxu0 %v15136_v42  ;;  %v15217_v15 = vld [vmem:[#allocation11 + $0x80c] ss:$16 sps:$4 sm:$0xff]   ;;  %v8375_v42 = vmax.f32 %v17921_v23, 0.0 }
 0x792   :  { %10262 = vmatprep.subr.bf16.mxu1 %v15139_v13  ;;  %v15212_v13 = vld [vmem:[#allocation11 + $0x800] ss:$16 sps:$4 sm:$0xff]   ;;  %v15229_v23 = vld [vmem:[#allocation11 + $0x84c] ss:$16 sps:$4 sm:$0xff]  }
 0x794   :  { %10222 = vmatpush1.bf16.msra.mxu0 %v15134_v12  ;;  %v13375_v12 = vpack.c.bf16 %v8372_v0, %v8372_v0  ;;  %v15280_v0 = vld [vmem:[#allocation11 + $0x964] ss:$16 sps:$4 sm:$0xff]  }
 0x795   :  { %10263 = vmatpush1.bf16.msra.mxu1 %v15137_v50  ;;  %10223 = vmatprep.subr.bf16.mxu0 %v15142_v3  ;;  %v15215_v50 = vld [vmem:[#allocation11 + $0x808] ss:$16 sps:$4 sm:$0xff]   ;;  %v15220_v3 = vld [vmem:[#allocation11 + $0x824] ss:$16 sps:$4 sm:$0xff]  }
 0x796   :  { %10264 = vmatprep.subr.bf16.mxu1 %v15145_v10  ;;  %v13378_v10 = vpack.c.bf16 %v8375_v42, %v8375_v42  ;;  %v15286_v42 = vld [vmem:[#allocation11 + $0x984] ss:$16 sps:$4 sm:$0xff]  }
 0x798   :  { %10224 = vmatpush1.bf16.msra.mxu0 %v15140_v7  ;;  %v15223_v7 = vld [vmem:[#allocation11 + $0x82c] ss:$16 sps:$4 sm:$0xff]  }
 0x799   :  { %10265 = vmatpush1.bf16.msra.mxu1 %v15143_v26  ;;  %10225 = vmatprep.subr.bf16.mxu0 %v15148_v19  ;;  %v15221_v26 = vld [vmem:[#allocation11 + $0x828] ss:$16 sps:$4 sm:$0xff]   ;;  %v15226_v19 = vld [vmem:[#allocation11 + $0x844] ss:$16 sps:$4 sm:$0xff]  }
 0x79a   :  { %10266 = vmatprep.subr.bf16.mxu1 %v15151_v55  ;;  %v15224_v55 = vld [vmem:[#allocation11 + $0x840] ss:$16 sps:$4 sm:$0xff]  }
 0x79c   :  { %10226 = vmatpush1.bf16.msra.mxu0 %v15146_v37  ;;  %v15227_v37 = vld [vmem:[#allocation11 + $0x848] ss:$16 sps:$4 sm:$0xff]  }
 0x79d   :  { %10267 = vmatpush1.bf16.msra.mxu1 %v15149_v63  ;;  %10227 = vmatprep.subr.bf16.mxu0 %v15154_v28  ;;  %v15232_v63 = vld [vmem:[#allocation11 + $0x864] ss:$16 sps:$4 sm:$0xff]   ;;  %v15235_v28 = vld [vmem:[#allocation11 + $0x86c] ss:$16 sps:$4 sm:$0xff]  }
 0x79e   :  { %10268 = vmatprep.subr.bf16.mxu1 %v15157_v40  ;;  %v15230_v40 = vld [vmem:[#allocation11 + $0x860] ss:$16 sps:$4 sm:$0xff]  }
 0x7a0   :  { %10228 = vmatpush1.bf16.msra.mxu0 %v15152_v17  ;;  %v15233_v17 = vld [vmem:[#allocation11 + $0x868] ss:$16 sps:$4 sm:$0xff]  }
 0x7a1   :  { %10269 = vmatpush1.bf16.msra.mxu1 %v15155_v43  ;;  %10229 = vmatprep.subr.bf16.mxu0 %v15160_v46  ;;  %v15238_v43 = vld [vmem:[#allocation11 + $0x884] ss:$16 sps:$4 sm:$0xff]   ;;  %v15241_v46 = vld [vmem:[#allocation11 + $0x88c] ss:$16 sps:$4 sm:$0xff]  }
 0x7a2   :  { %10270 = vmatprep.subr.bf16.mxu1 %v15163_v25  ;;  %v15236_v25 = vld [vmem:[#allocation11 + $0x880] ss:$16 sps:$4 sm:$0xff]  }
 0x7a4   :  { %10230 = vmatpush1.bf16.msra.mxu0 %v15158_v14  ;;  %v15239_v14 = vld [vmem:[#allocation11 + $0x888] ss:$16 sps:$4 sm:$0xff]  }
 0x7a5   :  { %10271 = vmatpush1.bf16.msra.mxu1 %v15161_v48  ;;  %10231 = vmatprep.subr.bf16.mxu0 %v15166_v29  ;;  %v15244_v48 = vld [vmem:[#allocation11 + $0x8a4] ss:$16 sps:$4 sm:$0xff]   ;;  %v15247_v29 = vld [vmem:[#allocation11 + $0x8ac] ss:$16 sps:$4 sm:$0xff]  }
 0x7a6   :  { %10272 = vmatprep.subr.bf16.mxu1 %v15169_v61  ;;  %v15242_v61 = vld [vmem:[#allocation11 + $0x8a0] ss:$16 sps:$4 sm:$0xff]  }
 0x7a8   :  { %10232 = vmatpush1.bf16.msra.mxu0 %v15164_v11  ;;  %v15245_v11 = vld [vmem:[#allocation11 + $0x8a8] ss:$16 sps:$4 sm:$0xff]  }
 0x7a9   :  { %10273 = vmatpush1.bf16.msra.mxu1 %v15167_v22  ;;  %10233 = vmatprep.subr.bf16.mxu0 %v15172_v27  ;;  %v15250_v22 = vld [vmem:[#allocation11 + $0x8c4] ss:$16 sps:$4 sm:$0xff]  }
 0x7aa   :  { %10274 = vmatprep.subr.bf16.mxu1 %v15175_v51 }
 0x7ac   :  { %10234 = vmatpush1.bf16.msra.mxu0 %v15170_v31  ;;  %v15253_v31 = vld [vmem:[#allocation11 + $0x8cc] ss:$16 sps:$4 sm:$0xff]  }
 0x7ad   :  { %10275 = vmatpush1.bf16.msra.mxu1 %v15173_v58  ;;  %10235 = vmatprep.subr.bf16.mxu0 %v15178_v35 }
 0x7ae   :  { %10276 = vmatprep.subr.bf16.mxu1 %v15181_v39 }
 0x7b0   :  { %10236 = vmatpush1.bf16.msra.mxu0 %v15176_v52 }
 0x7b1   :  { %10277 = vmatpush1.bf16.msra.mxu1 %v15179_v30  ;;  %10237 = vmatprep.subr.bf16.mxu0 %v15184_v8  ;;  %v15248_v30 = vld [vmem:[#allocation11 + $0x8c0] ss:$16 sps:$4 sm:$0xff]  }
 0x7b2   :  { %10278 = vmatprep.subr.bf16.mxu1 %v15187_v45 }
 0x7b4   :  { %10238 = vmatpush1.bf16.msra.mxu0 %v15182_v53  ;;  %v15251_v53 = vld [vmem:[#allocation11 + $0x8c8] ss:$16 sps:$4 sm:$0xff]  }
 0x7b5   :  { %10279 = vmatpush1.bf16.msra.mxu1 %v15185_v5  ;;  %10239 = vmatprep.subr.bf16.mxu0 %v15190_v38  ;;  %v15256_v5 = vld [vmem:[#allocation11 + $0x8e4] ss:$16 sps:$4 sm:$0xff]   ;;  %v15259_v38 = vld [vmem:[#allocation11 + $0x8ec] ss:$16 sps:$4 sm:$0xff]  }
 0x7b6   :  { %10280 = vmatprep.subr.bf16.mxu1 %v15193_v2  ;;  %v15254_v2 = vld [vmem:[#allocation11 + $0x8e0] ss:$16 sps:$4 sm:$0xff]  }
 0x7b8   :  { %10240 = vmatpush1.bf16.msra.mxu0 %v15188_v21  ;;  %v15257_v21 = vld [vmem:[#allocation11 + $0x8e8] ss:$16 sps:$4 sm:$0xff]  }
 0x7b9   :  { %10281 = vmatpush1.bf16.msra.mxu1 %v15191_v47  ;;  %10241 = vmatprep.subr.bf16.mxu0 %v15196_v6  ;;  %v15262_v47 = vld [vmem:[#allocation11 + $0x904] ss:$16 sps:$4 sm:$0xff]   ;;  %v15265_v6 = vld [vmem:[#allocation11 + $0x90c] ss:$16 sps:$4 sm:$0xff]  }
 0x7ba   :  { %10282 = vmatprep.subr.bf16.mxu1 %v15199_v49  ;;  %v15260_v49 = vld [vmem:[#allocation11 + $0x900] ss:$16 sps:$4 sm:$0xff]  }
 0x7bc   :  { %10242 = vmatpush1.bf16.msra.mxu0 %v15194_v9  ;;  %v15263_v9 = vld [vmem:[#allocation11 + $0x908] ss:$16 sps:$4 sm:$0xff]  }
 0x7bd   :  { %10283 = vmatpush1.bf16.msra.mxu1 %v15197_v54  ;;  %10243 = vmatprep.subr.bf16.mxu0 %v15202_v1  ;;  %v15268_v54 = vld [vmem:[#allocation11 + $0x924] ss:$16 sps:$4 sm:$0xff]   ;;  %v15271_v1 = vld [vmem:[#allocation11 + $0x92c] ss:$16 sps:$4 sm:$0xff]  }
 0x7be   :  { %10284 = vmatprep.subr.bf16.mxu1 %v15205_v59  ;;  %v15266_v59 = vld [vmem:[#allocation11 + $0x920] ss:$16 sps:$4 sm:$0xff]  }
 0x7c0   :  { %10244 = vmatpush1.bf16.msra.mxu0 %v15200_v60  ;;  %v15269_v60 = vld [vmem:[#allocation11 + $0x928] ss:$16 sps:$4 sm:$0xff]  }
 0x7c1   :  { %10285 = vmatpush1.bf16.msra.mxu1 %v15203_v62  ;;  %10245 = vmatprep.subr.bf16.mxu0 %v15208_v4  ;;  %v15274_v62 = vld [vmem:[#allocation11 + $0x944] ss:$16 sps:$4 sm:$0xff]   ;;  %v15277_v4 = vld [vmem:[#allocation11 + $0x94c] ss:$16 sps:$4 sm:$0xff]  }
 0x7c2   :  { %10286 = vmatprep.subr.bf16.mxu1 %v15211_v56  ;;  %v15272_v56 = vld [vmem:[#allocation11 + $0x940] ss:$16 sps:$4 sm:$0xff]  }
 0x7c4   :  { %10246 = vmatpush1.bf16.msra.mxu0 %v15206_v57  ;;  %v15275_v57 = vld [vmem:[#allocation11 + $0x948] ss:$16 sps:$4 sm:$0xff]  }
 0x7c5   :  { %10287 = vmatpush1.bf16.msra.mxu1 %v15209_v16  ;;  %10690 = vmatprep.subr.bf16.mxu0 %v15214_v44  ;;  %v15283_v16 = vld [vmem:[#allocation11 + $0x96c] ss:$16 sps:$4 sm:$0xff]   ;;  %v15278_v44 = vld [vmem:[#allocation11 + $0x960] ss:$16 sps:$4 sm:$0xff]  }
 0x7c6   :  { %10731 = vmatprep.subr.bf16.mxu1 %v15217_v15  ;;  %v15281_v15 = vld [vmem:[#allocation11 + $0x968] ss:$16 sps:$4 sm:$0xff]  }
 0x7c7   :  { %10248 = vmatmul.mubr.bf16.vlgmr.msra.gmra.mrb[108].mxu0 %v13375_v12 }
 0x7c8   :  { %10289 = vmatmul.mubr.bf16.vlgmr.msra.gmra.mrb[108].mxu1 %v13375_v12  ;;  %10691 = vmatpush1.bf16.msra.mxu0 %v15212_v13  ;;  %v15289_v13 = vld [vmem:[#allocation11 + $0x98c] ss:$16 sps:$4 sm:$0xff]   ;;  %v15284_v12 = vld [vmem:[#allocation11 + $0x980] ss:$16 sps:$4 sm:$0xff]  }
 0x7c9   :  { %10722 = vmatprep.mubr.bf16.mxu0 %v13378_v10  ;;  %10732 = vmatpush1.bf16.msra.mxu1 %v15215_v50  ;;  %v15287_v50 = vld [vmem:[#allocation11 + $0x988] ss:$16 sps:$4 sm:$0xff]  }
 0x7ca   :  { %10763 = vmatprep.mubr.bf16.mxu1 %v13378_v10  ;;  %10692 = vmatprep.subr.bf16.mxu0 %v15220_v3  ;;  %v15292_v3 = vld [vmem:[#allocation11 + $0x9a4] ss:$16 sps:$4 sm:$0xff]   ;;  %v15295_v10 = vld [vmem:[#allocation11 + $0x9ac] ss:$16 sps:$4 sm:$0xff]  }
 0x7cb   :  { %10733 = vmatprep.subr.bf16.mxu1 %v15223_v7  ;;  %v15290_v7 = vld [vmem:[#allocation11 + $0x9a0] ss:$16 sps:$4 sm:$0xff]  }
 0x7cc   :  { %10693 = vmatpush1.bf16.msra.mxu0 %v15218_v20  ;;  %v15293_v20 = vld [vmem:[#allocation11 + $0x9a8] ss:$16 sps:$4 sm:$0xff]  }
 0x7cd   :  { %10734 = vmatpush1.bf16.msra.mxu1 %v15221_v26  ;;  %10694 = vmatprep.subr.bf16.mxu0 %v15226_v19  ;;  %v15298_v26 = vld [vmem:[#allocation11 + $0x9c4] ss:$16 sps:$4 sm:$0xff]   ;;  %v15301_v19 = vld [vmem:[#allocation11 + $0x9cc] ss:$16 sps:$4 sm:$0xff]  }
 0x7ce   :  { %10735 = vmatprep.subr.bf16.mxu1 %v15229_v23  ;;  %v15296_v23 = vld [vmem:[#allocation11 + $0x9c0] ss:$16 sps:$4 sm:$0xff]  }
 0x7d0   :  { %10695 = vmatpush1.bf16.msra.mxu0 %v15224_v55  ;;  %v15299_v55 = vld [vmem:[#allocation11 + $0x9c8] ss:$16 sps:$4 sm:$0xff]  }
 0x7d1   :  { %10736 = vmatpush1.bf16.msra.mxu1 %v15227_v37  ;;  %10696 = vmatprep.subr.bf16.mxu0 %v15232_v63  ;;  %v15304_v37 = vld [vmem:[#allocation11 + $0x9e4] ss:$16 sps:$4 sm:$0xff]   ;;  %v15307_v63 = vld [vmem:[#allocation11 + $0x9ec] ss:$16 sps:$4 sm:$0xff]  }
 0x7d2   :  { %10737 = vmatprep.subr.bf16.mxu1 %v15235_v28  ;;  %v15302_v28 = vld [vmem:[#allocation11 + $0x9e0] ss:$16 sps:$4 sm:$0xff]  }
 0x7d4   :  { %10697 = vmatpush1.bf16.msra.mxu0 %v15230_v40  ;;  %v8374_v40 = vmax.f32 %v17918_v33, 0.0  ;;  %v15314_v33 = vld [vmem:[#allocation11 + $0xa20] ss:$16 sps:$4 sm:$0xff]  }
 0x7d5   :  { %10738 = vmatpush1.bf16.msra.mxu1 %v15233_v17  ;;  %10698 = vmatprep.subr.bf16.mxu0 %v15238_v43  ;;  %v15305_v17 = vld [vmem:[#allocation11 + $0x9e8] ss:$16 sps:$4 sm:$0xff]   ;;  %v15310_v43 = vld [vmem:[#allocation11 + $0xa04] ss:$16 sps:$4 sm:$0xff]  }
 0x7d6   :  { %10739 = vmatprep.subr.bf16.mxu1 %v15241_v46  ;;  %v15313_v46 = vld [vmem:[#allocation11 + $0xa0c] ss:$16 sps:$4 sm:$0xff]  }
 0x7d8   :  { %10699 = vmatpush1.bf16.msra.mxu0 %v15236_v25  ;;  %v8377_v25 = vmax.f32 %v17927_v36, 0.0  ;;  %v15325_v36 = vld [vmem:[#allocation11 + $0xa4c] ss:$16 sps:$4 sm:$0xff]  }
 0x7d9   :  { %10740 = vmatpush1.bf16.msra.mxu1 %v15239_v14  ;;  %10700 = vmatprep.subr.bf16.mxu0 %v15244_v48  ;;  %v15308_v14 = vld [vmem:[#allocation11 + $0xa00] ss:$16 sps:$4 sm:$0xff]   ;;  %v13377_v48 = vpack.c.bf16 %v8374_v40, %v8374_v40 }
 0x7da   :  { %v17945_v27 = vpop.f32.mrb[96].mxu0  ;;  %v17947_v51 = vpop.f32.mrb[96].mxu1  ;;  %10741 = vmatprep.subr.bf16.mxu1 %v15247_v29  ;;  %v15311_v29 = vld [vmem:[#allocation11 + $0xa08] ss:$16 sps:$4 sm:$0xff]   ;;  %v15368_v40 = vld [vmem:[#allocation11 + $0xb40] ss:$16 sps:$4 sm:$0xff]  }
 0x7db   :  { %v17949_v58 = vpop.f32.mrb[97].mxu0  ;;  %v17951_v35 = vpop.f32.mrb[97].mxu1 }
 0x7dc   :  { %10701 = vmatpush1.bf16.msra.mxu0 %v15242_v61  ;;  %v8901_v39 = vpop.f32.mrb[98].mxu0  ;;  %v8942_v52 = vpop.f32.mrb[98].mxu1  ;;  %v15316_v61 = vld [vmem:[#allocation11 + $0xa24] ss:$16 sps:$4 sm:$0xff]  }
 0x7dd   :  { %10742 = vmatpush1.bf16.msra.mxu1 %v15245_v11  ;;  %v8902_v8 = vpop.f32.mrb[99].mxu0  ;;  %v8943_v45 = vpop.f32.mrb[99].mxu1  ;;  %10702 = vmatprep.subr.bf16.mxu0 %v15250_v22  ;;  %v13380_v11 = vpack.c.bf16 %v8377_v25, %v8377_v25  ;;  %v15319_v22 = vld [vmem:[#allocation11 + $0xa2c] ss:$16 sps:$4 sm:$0xff]   ;;  %v15322_v39 = vld [vmem:[#allocation11 + $0xa44] ss:$16 sps:$4 sm:$0xff]  }
 0x7de   :  { %10743 = vmatprep.subr.bf16.mxu1 %v15253_v31  ;;  %v15317_v31 = vld [vmem:[#allocation11 + $0xa28] ss:$16 sps:$4 sm:$0xff]   ;;  %v15320_v52 = vld [vmem:[#allocation11 + $0xa40] ss:$16 sps:$4 sm:$0xff]   ;;  %v15328_v8 = vld [vmem:[#allocation11 + $0xa64] ss:$16 sps:$4 sm:$0xff]  }
 0x7df   :  { %v15331_v45 = vld [vmem:[#allocation11 + $0xa6c] ss:$16 sps:$4 sm:$0xff]   ;;  %v15374_v25 = vld [vmem:[#allocation11 + $0xb60] ss:$16 sps:$4 sm:$0xff]  }
 0x7e0   :  { %10703 = vmatpush1.bf16.msra.mxu0 %v15248_v30  ;;  %v15323_v30 = vld [vmem:[#allocation11 + $0xa48] ss:$16 sps:$4 sm:$0xff]  }
 0x7e1   :  { %10744 = vmatpush1.bf16.msra.mxu1 %v15251_v53  ;;  %10704 = vmatprep.subr.bf16.mxu0 %v15256_v5  ;;  %v15326_v53 = vld [vmem:[#allocation11 + $0xa60] ss:$16 sps:$4 sm:$0xff]   ;;  %v15329_v5 = vld [vmem:[#allocation11 + $0xa68] ss:$16 sps:$4 sm:$0xff]  }
 0x7e2   :  { %10745 = vmatprep.subr.bf16.mxu1 %v15259_v38  ;;  %v15334_v38 = vld [vmem:[#allocation11 + $0xa84] ss:$16 sps:$4 sm:$0xff]  }
 0x7e4   :  { %10705 = vmatpush1.bf16.msra.mxu0 %v15254_v2  ;;  %v15337_v2 = vld [vmem:[#allocation11 + $0xa8c] ss:$16 sps:$4 sm:$0xff]  }
 0x7e5   :  { %10746 = vmatpush1.bf16.msra.mxu1 %v15257_v21  ;;  %10706 = vmatprep.subr.bf16.mxu0 %v15262_v47  ;;  %v15332_v21 = vld [vmem:[#allocation11 + $0xa80] ss:$16 sps:$4 sm:$0xff]   ;;  %v15335_v47 = vld [vmem:[#allocation11 + $0xa88] ss:$16 sps:$4 sm:$0xff]  }
 0x7e6   :  { %10747 = vmatprep.subr.bf16.mxu1 %v15265_v6  ;;  %v15340_v6 = vld [vmem:[#allocation11 + $0xaa4] ss:$16 sps:$4 sm:$0xff]  }
 0x7e8   :  { %10707 = vmatpush1.bf16.msra.mxu0 %v15260_v49  ;;  %v15343_v49 = vld [vmem:[#allocation11 + $0xaac] ss:$16 sps:$4 sm:$0xff]  }
 0x7e9   :  { %10748 = vmatpush1.bf16.msra.mxu1 %v15263_v9  ;;  %10708 = vmatprep.subr.bf16.mxu0 %v15268_v54  ;;  %v15338_v9 = vld [vmem:[#allocation11 + $0xaa0] ss:$16 sps:$4 sm:$0xff]   ;;  %v15341_v54 = vld [vmem:[#allocation11 + $0xaa8] ss:$16 sps:$4 sm:$0xff]  }
 0x7ea   :  { %10749 = vmatprep.subr.bf16.mxu1 %v15271_v1  ;;  %v15346_v1 = vld [vmem:[#allocation11 + $0xac4] ss:$16 sps:$4 sm:$0xff]  }
 0x7ec   :  { %10709 = vmatpush1.bf16.msra.mxu0 %v15266_v59 }
 0x7ed   :  { %10750 = vmatpush1.bf16.msra.mxu1 %v15269_v60  ;;  %10710 = vmatprep.subr.bf16.mxu0 %v15274_v62  ;;  %v15349_v62 = vld [vmem:[#allocation11 + $0xacc] ss:$16 sps:$4 sm:$0xff]  }
 0x7ee   :  { %10751 = vmatprep.subr.bf16.mxu1 %v15277_v4 }
 0x7f0   :  { %10711 = vmatpush1.bf16.msra.mxu0 %v15272_v56 }
 0x7f1   :  { %10752 = vmatpush1.bf16.msra.mxu1 %v15275_v57  ;;  %10712 = vmatprep.subr.bf16.mxu0 %v15280_v0 }
 0x7f2   :  { %10753 = vmatprep.subr.bf16.mxu1 %v15283_v16 }
 0x7f4   :  { %10713 = vmatpush1.bf16.msra.mxu0 %v15278_v44 }
 0x7f5   :  { %10754 = vmatpush1.bf16.msra.mxu1 %v15281_v15  ;;  %10714 = vmatprep.subr.bf16.mxu0 %v15286_v42 }
 0x7f6   :  { %10755 = vmatprep.subr.bf16.mxu1 %v15289_v13  ;;  %v15344_v13 = vld [vmem:[#allocation11 + $0xac0] ss:$16 sps:$4 sm:$0xff]  }
 0x7f8   :  { %10715 = vmatpush1.bf16.msra.mxu0 %v15284_v12 }
 0x7f9   :  { %10756 = vmatpush1.bf16.msra.mxu1 %v15287_v50  ;;  %10716 = vmatprep.subr.bf16.mxu0 %v15292_v3  ;;  %v15352_v3 = vld [vmem:[#allocation11 + $0xae4] ss:$16 sps:$4 sm:$0xff]  }
 0x7fa   :  { %10757 = vmatprep.subr.bf16.mxu1 %v15295_v10  ;;  %v15350_v10 = vld [vmem:[#allocation11 + $0xae0] ss:$16 sps:$4 sm:$0xff]  }
 0x7fc   :  { %10717 = vmatpush1.bf16.msra.mxu0 %v15290_v7  ;;  %v15358_v7 = vld [vmem:[#allocation11 + $0xb04] ss:$16 sps:$4 sm:$0xff]  }
 0x7fd   :  { %10758 = vmatpush1.bf16.msra.mxu1 %v15293_v20  ;;  %10718 = vmatprep.subr.bf16.mxu0 %v15298_v26  ;;  %v15356_v20 = vld [vmem:[#allocation11 + $0xb00] ss:$16 sps:$4 sm:$0xff]   ;;  %v15359_v26 = vld [vmem:[#allocation11 + $0xb08] ss:$16 sps:$4 sm:$0xff]  }
 0x7fe   :  { %10759 = vmatprep.subr.bf16.mxu1 %v15301_v19  ;;  %v15364_v19 = vld [vmem:[#allocation11 + $0xb24] ss:$16 sps:$4 sm:$0xff]  }
 0x800   :  { %10719 = vmatpush1.bf16.msra.mxu0 %v15296_v23  ;;  %v15367_v23 = vld [vmem:[#allocation11 + $0xb2c] ss:$16 sps:$4 sm:$0xff]  }
 0x801   :  { %10760 = vmatpush1.bf16.msra.mxu1 %v15299_v55  ;;  %10720 = vmatprep.subr.bf16.mxu0 %v15304_v37  ;;  %v15362_v55 = vld [vmem:[#allocation11 + $0xb20] ss:$16 sps:$4 sm:$0xff]   ;;  %v15365_v37 = vld [vmem:[#allocation11 + $0xb28] ss:$16 sps:$4 sm:$0xff]  }
 0x802   :  { %10761 = vmatprep.subr.bf16.mxu1 %v15307_v63  ;;  %v15370_v63 = vld [vmem:[#allocation11 + $0xb44] ss:$16 sps:$4 sm:$0xff]  }
 0x804   :  { %10721 = vmatpush1.bf16.msra.mxu0 %v15302_v28  ;;  %v15373_v28 = vld [vmem:[#allocation11 + $0xb4c] ss:$16 sps:$4 sm:$0xff]  }
 0x805   :  { %10762 = vmatpush1.bf16.msra.mxu1 %v15305_v17  ;;  %11165 = vmatprep.subr.bf16.mxu0 %v15310_v43  ;;  %v15371_v17 = vld [vmem:[#allocation11 + $0xb48] ss:$16 sps:$4 sm:$0xff]   ;;  %v15376_v43 = vld [vmem:[#allocation11 + $0xb64] ss:$16 sps:$4 sm:$0xff]  }
 0x806   :  { %11206 = vmatprep.subr.bf16.mxu1 %v15313_v46  ;;  %v15379_v46 = vld [vmem:[#allocation11 + $0xb6c] ss:$16 sps:$4 sm:$0xff]  }
 0x807   :  { %10723 = vmatmul.mubr.bf16.vlgmr.msra.gmra.mrb[112].mxu0 %v13377_v48 }
 0x808   :  { %10764 = vmatmul.mubr.bf16.vlgmr.msra.gmra.mrb[112].mxu1 %v13377_v48  ;;  %11166 = vmatpush1.bf16.msra.mxu0 %v15308_v14  ;;  %v15377_v14 = vld [vmem:[#allocation11 + $0xb68] ss:$16 sps:$4 sm:$0xff]   ;;  %v15382_v48 = vld [vmem:[#allocation11 + $0xb84] ss:$16 sps:$4 sm:$0xff]  }
 0x809   :  { %11197 = vmatprep.mubr.bf16.mxu0 %v13380_v11  ;;  %11207 = vmatpush1.bf16.msra.mxu1 %v15311_v29  ;;  %v15385_v29 = vld [vmem:[#allocation11 + $0xb8c] ss:$16 sps:$4 sm:$0xff]  }
 0x80a   :  { %11238 = vmatprep.mubr.bf16.mxu1 %v13380_v11  ;;  %11167 = vmatprep.subr.bf16.mxu0 %v15316_v61  ;;  %v15380_v61 = vld [vmem:[#allocation11 + $0xb80] ss:$16 sps:$4 sm:$0xff]   ;;  %v15383_v11 = vld [vmem:[#allocation11 + $0xb88] ss:$16 sps:$4 sm:$0xff]  }
 0x80b   :  { %11208 = vmatprep.subr.bf16.mxu1 %v15319_v22  ;;  %v15388_v22 = vld [vmem:[#allocation11 + $0xba4] ss:$16 sps:$4 sm:$0xff]  }
 0x80c   :  { %11168 = vmatpush1.bf16.msra.mxu0 %v15314_v33  ;;  %v15391_v33 = vld [vmem:[#allocation11 + $0xbac] ss:$16 sps:$4 sm:$0xff]  }
 0x80d   :  { %11209 = vmatpush1.bf16.msra.mxu1 %v15317_v31  ;;  %11169 = vmatprep.subr.bf16.mxu0 %v15322_v39  ;;  %v15386_v31 = vld [vmem:[#allocation11 + $0xba0] ss:$16 sps:$4 sm:$0xff]   ;;  %v15389_v39 = vld [vmem:[#allocation11 + $0xba8] ss:$16 sps:$4 sm:$0xff]  }
 0x80e   :  { %11210 = vmatprep.subr.bf16.mxu1 %v15325_v36  ;;  %v15394_v36 = vld [vmem:[#allocation11 + $0xbc4] ss:$16 sps:$4 sm:$0xff]  }
 0x810   :  { %11170 = vmatpush1.bf16.msra.mxu0 %v15320_v52  ;;  %v15397_v52 = vld [vmem:[#allocation11 + $0xbcc] ss:$16 sps:$4 sm:$0xff]  }
 0x811   :  { %11211 = vmatpush1.bf16.msra.mxu1 %v15323_v30  ;;  %11171 = vmatprep.subr.bf16.mxu0 %v15328_v8  ;;  %v15392_v30 = vld [vmem:[#allocation11 + $0xbc0] ss:$16 sps:$4 sm:$0xff]   ;;  %v15395_v8 = vld [vmem:[#allocation11 + $0xbc8] ss:$16 sps:$4 sm:$0xff]  }
 0x812   :  { %11212 = vmatprep.subr.bf16.mxu1 %v15331_v45  ;;  %v15400_v45 = vld [vmem:[#allocation11 + $0xbe4] ss:$16 sps:$4 sm:$0xff]  }
 0x814   :  { %11172 = vmatpush1.bf16.msra.mxu0 %v15326_v53  ;;  %v15403_v53 = vld [vmem:[#allocation11 + $0xbec] ss:$16 sps:$4 sm:$0xff]  }
 0x815   :  { %11213 = vmatpush1.bf16.msra.mxu1 %v15329_v5  ;;  %11173 = vmatprep.subr.bf16.mxu0 %v15334_v38  ;;  %v15398_v5 = vld [vmem:[#allocation11 + $0xbe0] ss:$16 sps:$4 sm:$0xff]   ;;  %v8376_v38 = vmax.f32 %v17924_v34, 0.0 }
 0x816   :  { %11214 = vmatprep.subr.bf16.mxu1 %v15337_v2  ;;  %v15401_v2 = vld [vmem:[#allocation11 + $0xbe8] ss:$16 sps:$4 sm:$0xff]   ;;  %v15410_v34 = vld [vmem:[#allocation11 + $0xc20] ss:$16 sps:$4 sm:$0xff]  }
 0x818   :  { %11174 = vmatpush1.bf16.msra.mxu0 %v15332_v21  ;;  %v15406_v21 = vld [vmem:[#allocation11 + $0xc04] ss:$16 sps:$4 sm:$0xff]  }
 0x819   :  { %11215 = vmatpush1.bf16.msra.mxu1 %v15335_v47  ;;  %11175 = vmatprep.subr.bf16.mxu0 %v15340_v6  ;;  %v15409_v47 = vld [vmem:[#allocation11 + $0xc0c] ss:$16 sps:$4 sm:$0xff]   ;;  %v8379_v6 = vmax.f32 %v17937_v41, 0.0 }
 0x81a   :  { %v9303_v59 = vpop.f32.mrb[100].mxu0  ;;  %v9344_v60 = vpop.f32.mrb[100].mxu1  ;;  %11216 = vmatprep.subr.bf16.mxu1 %v15343_v49  ;;  %v15404_v49 = vld [vmem:[#allocation11 + $0xc00] ss:$16 sps:$4 sm:$0xff]   ;;  %v15421_v41 = vld [vmem:[#allocation11 + $0xc4c] ss:$16 sps:$4 sm:$0xff]  }
 0x81b   :  { %v17956_v4 = vadd.f32 %v9303_v59, %v17945_v27  ;;  %v17959_v56 = vadd.f32 %v9344_v60, %v17947_v51  ;;  %v9305_v57 = vpop.f32.mrb[101].mxu0  ;;  %v9346_v0 = vpop.f32.mrb[101].mxu1  ;;  %v15347_v27 = vld [vmem:[#allocation11 + $0xac8] ss:$16 sps:$4 sm:$0xff]   ;;  %v15355_v51 = vld [vmem:[#allocation11 + $0xaec] ss:$16 sps:$4 sm:$0xff]   ;;  %v13382_v59 = vpack.c.bf16 %v8379_v6, %v8379_v6 }
 0x81c   :  { %v17962_v16 = vadd.f32 %v9305_v57, %v17949_v58  ;;  %v17965_v44 = vadd.f32 %v9346_v0, %v17951_v35  ;;  %v9307_v15 = vpop.f32.mrb[102].mxu0  ;;  %v9348_v42 = vpop.f32.mrb[102].mxu1  ;;  %11176 = vmatpush1.bf16.msra.mxu0 %v15338_v9  ;;  %v15353_v58 = vld [vmem:[#allocation11 + $0xae8] ss:$16 sps:$4 sm:$0xff]   ;;  %v15361_v35 = vld [vmem:[#allocation11 + $0xb0c] ss:$16 sps:$4 sm:$0xff]   ;;  %v13379_v9 = vpack.c.bf16 %v8376_v38, %v8376_v38 }
 0x81d   :  { %11217 = vmatpush1.bf16.msra.mxu1 %v15341_v54  ;;  %v9308_v12 = vpop.f32.mrb[103].mxu0  ;;  %v9349_v50 = vpop.f32.mrb[103].mxu1  ;;  %11177 = vmatprep.subr.bf16.mxu0 %v15346_v1  ;;  %v15407_v54 = vld [vmem:[#allocation11 + $0xc08] ss:$16 sps:$4 sm:$0xff]   ;;  %v15412_v1 = vld [vmem:[#allocation11 + $0xc24] ss:$16 sps:$4 sm:$0xff]  }
 0x81e   :  { %11218 = vmatprep.subr.bf16.mxu1 %v15349_v62  ;;  %v15415_v60 = vld [vmem:[#allocation11 + $0xc2c] ss:$16 sps:$4 sm:$0xff]   ;;  %v15413_v62 = vld [vmem:[#allocation11 + $0xc28] ss:$16 sps:$4 sm:$0xff]   ;;  %v15418_v57 = vld [vmem:[#allocation11 + $0xc44] ss:$16 sps:$4 sm:$0xff]  }
 0x81f   :  { %v15416_v0 = vld [vmem:[#allocation11 + $0xc40] ss:$16 sps:$4 sm:$0xff]   ;;  %v15419_v15 = vld [vmem:[#allocation11 + $0xc48] ss:$16 sps:$4 sm:$0xff]   ;;  %v15424_v42 = vld [vmem:[#allocation11 + $0xc64] ss:$16 sps:$4 sm:$0xff]  }
 0x820   :  { %11178 = vmatpush1.bf16.msra.mxu0 %v15344_v13  ;;  %v15427_v13 = vld [vmem:[#allocation11 + $0xc6c] ss:$16 sps:$4 sm:$0xff]   ;;  %v15422_v12 = vld [vmem:[#allocation11 + $0xc60] ss:$16 sps:$4 sm:$0xff]   ;;  %v15425_v50 = vld [vmem:[#allocation11 + $0xc68] ss:$16 sps:$4 sm:$0xff]  }
 0x821   :  { %11219 = vmatpush1.bf16.msra.mxu1 %v15347_v27  ;;  %11179 = vmatprep.subr.bf16.mxu0 %v15352_v3  ;;  %v15430_v27 = vld [vmem:[#allocation11 + $0xc84] ss:$16 sps:$4 sm:$0xff]   ;;  %v15433_v3 = vld [vmem:[#allocation11 + $0xc8c] ss:$16 sps:$4 sm:$0xff]  }
 0x822   :  { %11220 = vmatprep.subr.bf16.mxu1 %v15355_v51  ;;  %v15428_v51 = vld [vmem:[#allocation11 + $0xc80] ss:$16 sps:$4 sm:$0xff]   ;;  %v15472_v38 = vld [vmem:[#allocation11 + $0xd64] ss:$16 sps:$4 sm:$0xff]  }
 0x823   :  { %v15478_v6 = vld [vmem:[#allocation11 + $0xd84] ss:$16 sps:$4 sm:$0xff]  }
 0x824   :  { %11180 = vmatpush1.bf16.msra.mxu0 %v15350_v10  ;;  %v15431_v10 = vld [vmem:[#allocation11 + $0xc88] ss:$16 sps:$4 sm:$0xff]  }
 0x825   :  { %11221 = vmatpush1.bf16.msra.mxu1 %v15353_v58  ;;  %11181 = vmatprep.subr.bf16.mxu0 %v15358_v7  ;;  %v15436_v58 = vld [vmem:[#allocation11 + $0xca4] ss:$16 sps:$4 sm:$0xff]   ;;  %v15439_v7 = vld [vmem:[#allocation11 + $0xcac] ss:$16 sps:$4 sm:$0xff]  }
 0x826   :  { %11222 = vmatprep.subr.bf16.mxu1 %v15361_v35  ;;  %v15434_v35 = vld [vmem:[#allocation11 + $0xca0] ss:$16 sps:$4 sm:$0xff]  }
 0x828   :  { %11182 = vmatpush1.bf16.msra.mxu0 %v15356_v20  ;;  %v15437_v20 = vld [vmem:[#allocation11 + $0xca8] ss:$16 sps:$4 sm:$0xff]  }
 0x829   :  { %11223 = vmatpush1.bf16.msra.mxu1 %v15359_v26  ;;  %11183 = vmatprep.subr.bf16.mxu0 %v15364_v19  ;;  %v15442_v26 = vld [vmem:[#allocation11 + $0xcc4] ss:$16 sps:$4 sm:$0xff]  }
 0x82a   :  { %11224 = vmatprep.subr.bf16.mxu1 %v15367_v23  ;;  %v15445_v23 = vld [vmem:[#allocation11 + $0xccc] ss:$16 sps:$4 sm:$0xff]  }
 0x82c   :  { %11184 = vmatpush1.bf16.msra.mxu0 %v15362_v55 }
 0x82d   :  { %11225 = vmatpush1.bf16.msra.mxu1 %v15365_v37  ;;  %11185 = vmatprep.subr.bf16.mxu0 %v15370_v63 }
 0x82e   :  { %11226 = vmatprep.subr.bf16.mxu1 %v15373_v28 }
 0x830   :  { %11186 = vmatpush1.bf16.msra.mxu0 %v15368_v40 }
 0x831   :  { %11227 = vmatpush1.bf16.msra.mxu1 %v15371_v17  ;;  %11187 = vmatprep.subr.bf16.mxu0 %v15376_v43 }
 0x832   :  { %11228 = vmatprep.subr.bf16.mxu1 %v15379_v46  ;;  %v15440_v46 = vld [vmem:[#allocation11 + $0xcc0] ss:$16 sps:$4 sm:$0xff]  }
 0x834   :  { %11188 = vmatpush1.bf16.msra.mxu0 %v15374_v25 }
 0x835   :  { %11229 = vmatpush1.bf16.msra.mxu1 %v15377_v14  ;;  %11189 = vmatprep.subr.bf16.mxu0 %v15382_v48 }
 0x836   :  { %11230 = vmatprep.subr.bf16.mxu1 %v15385_v29  ;;  %v15448_v29 = vld [vmem:[#allocation11 + $0xce4] ss:$16 sps:$4 sm:$0xff]  }
 0x838   :  { %11190 = vmatpush1.bf16.msra.mxu0 %v15380_v61 }
 0x839   :  { %11231 = vmatpush1.bf16.msra.mxu1 %v15383_v11  ;;  %11191 = vmatprep.subr.bf16.mxu0 %v15388_v22  ;;  %v15446_v11 = vld [vmem:[#allocation11 + $0xce0] ss:$16 sps:$4 sm:$0xff]   ;;  %v15454_v22 = vld [vmem:[#allocation11 + $0xd04] ss:$16 sps:$4 sm:$0xff]  }
 0x83a   :  { %11232 = vmatprep.subr.bf16.mxu1 %v15391_v33  ;;  %v15457_v33 = vld [vmem:[#allocation11 + $0xd0c] ss:$16 sps:$4 sm:$0xff]  }
 0x83c   :  { %11192 = vmatpush1.bf16.msra.mxu0 %v15386_v31  ;;  %v15455_v31 = vld [vmem:[#allocation11 + $0xd08] ss:$16 sps:$4 sm:$0xff]  }
 0x83d   :  { %11233 = vmatpush1.bf16.msra.mxu1 %v15389_v39  ;;  %11193 = vmatprep.subr.bf16.mxu0 %v15394_v36  ;;  %v15460_v39 = vld [vmem:[#allocation11 + $0xd24] ss:$16 sps:$4 sm:$0xff]   ;;  %v15463_v36 = vld [vmem:[#allocation11 + $0xd2c] ss:$16 sps:$4 sm:$0xff]  }
 0x83e   :  { %11234 = vmatprep.subr.bf16.mxu1 %v15397_v52  ;;  %v15458_v52 = vld [vmem:[#allocation11 + $0xd20] ss:$16 sps:$4 sm:$0xff]  }
 0x840   :  { %11194 = vmatpush1.bf16.msra.mxu0 %v15392_v30  ;;  %v15461_v30 = vld [vmem:[#allocation11 + $0xd28] ss:$16 sps:$4 sm:$0xff]  }
 0x841   :  { %11235 = vmatpush1.bf16.msra.mxu1 %v15395_v8  ;;  %11195 = vmatprep.subr.bf16.mxu0 %v15400_v45  ;;  %v15466_v8 = vld [vmem:[#allocation11 + $0xd44] ss:$16 sps:$4 sm:$0xff]   ;;  %v15469_v45 = vld [vmem:[#allocation11 + $0xd4c] ss:$16 sps:$4 sm:$0xff]  }
 0x842   :  { %11236 = vmatprep.subr.bf16.mxu1 %v15403_v53  ;;  %v15464_v53 = vld [vmem:[#allocation11 + $0xd40] ss:$16 sps:$4 sm:$0xff]  }
 0x844   :  { %11196 = vmatpush1.bf16.msra.mxu0 %v15398_v5  ;;  %v15467_v5 = vld [vmem:[#allocation11 + $0xd48] ss:$16 sps:$4 sm:$0xff]  }
 0x845   :  { %11237 = vmatpush1.bf16.msra.mxu1 %v15401_v2  ;;  %11640 = vmatprep.subr.bf16.mxu0 %v15406_v21  ;;  %v15475_v2 = vld [vmem:[#allocation11 + $0xd6c] ss:$16 sps:$4 sm:$0xff]   ;;  %v15470_v21 = vld [vmem:[#allocation11 + $0xd60] ss:$16 sps:$4 sm:$0xff]  }
 0x846   :  { %11681 = vmatprep.subr.bf16.mxu1 %v15409_v47  ;;  %v15473_v47 = vld [vmem:[#allocation11 + $0xd68] ss:$16 sps:$4 sm:$0xff]  }
 0x847   :  { %11198 = vmatmul.mubr.bf16.vlgmr.msra.gmra.mrb[116].mxu0 %v13379_v9 }
 0x848   :  { %11239 = vmatmul.mubr.bf16.vlgmr.msra.gmra.mrb[116].mxu1 %v13379_v9  ;;  %11641 = vmatpush1.bf16.msra.mxu0 %v15404_v49  ;;  %v15481_v49 = vld [vmem:[#allocation11 + $0xd8c] ss:$16 sps:$4 sm:$0xff]   ;;  %v15476_v9 = vld [vmem:[#allocation11 + $0xd80] ss:$16 sps:$4 sm:$0xff]  }
 0x849   :  { %11672 = vmatprep.mubr.bf16.mxu0 %v13382_v59  ;;  %11682 = vmatpush1.bf16.msra.mxu1 %v15407_v54  ;;  %v15479_v54 = vld [vmem:[#allocation11 + $0xd88] ss:$16 sps:$4 sm:$0xff]  }
 0x84a   :  { %11713 = vmatprep.mubr.bf16.mxu1 %v13382_v59  ;;  %11642 = vmatprep.subr.bf16.mxu0 %v15412_v1  ;;  %v15484_v1 = vld [vmem:[#allocation11 + $0xda4] ss:$16 sps:$4 sm:$0xff]   ;;  %v15487_v59 = vld [vmem:[#allocation11 + $0xdac] ss:$16 sps:$4 sm:$0xff]  }
 0x84b   :  { %11683 = vmatprep.subr.bf16.mxu1 %v15415_v60  ;;  %v15482_v60 = vld [vmem:[#allocation11 + $0xda0] ss:$16 sps:$4 sm:$0xff]  }
 0x84c   :  { %11643 = vmatpush1.bf16.msra.mxu0 %v15410_v34  ;;  %v15485_v34 = vld [vmem:[#allocation11 + $0xda8] ss:$16 sps:$4 sm:$0xff]  }
 0x84d   :  { %11684 = vmatpush1.bf16.msra.mxu1 %v15413_v62  ;;  %11644 = vmatprep.subr.bf16.mxu0 %v15418_v57  ;;  %v15490_v62 = vld [vmem:[#allocation11 + $0xdc4] ss:$16 sps:$4 sm:$0xff]   ;;  %v15493_v57 = vld [vmem:[#allocation11 + $0xdcc] ss:$16 sps:$4 sm:$0xff]  }
 0x84e   :  { %11685 = vmatprep.subr.bf16.mxu1 %v15421_v41  ;;  %v15488_v41 = vld [vmem:[#allocation11 + $0xdc0] ss:$16 sps:$4 sm:$0xff]  }
 0x850   :  { %11645 = vmatpush1.bf16.msra.mxu0 %v15416_v0  ;;  %v15491_v0 = vld [vmem:[#allocation11 + $0xdc8] ss:$16 sps:$4 sm:$0xff]  }
 0x851   :  { %11686 = vmatpush1.bf16.msra.mxu1 %v15419_v15  ;;  %11646 = vmatprep.subr.bf16.mxu0 %v15424_v42  ;;  %v15496_v15 = vld [vmem:[#allocation11 + $0xde4] ss:$16 sps:$4 sm:$0xff]   ;;  %v15499_v42 = vld [vmem:[#allocation11 + $0xdec] ss:$16 sps:$4 sm:$0xff]  }
 0x852   :  { %11687 = vmatprep.subr.bf16.mxu1 %v15427_v13  ;;  %v15494_v13 = vld [vmem:[#allocation11 + $0xde0] ss:$16 sps:$4 sm:$0xff]  }
 0x854   :  { %11647 = vmatpush1.bf16.msra.mxu0 %v15422_v12  ;;  %v8378_v12 = vmax.f32 %v17934_v18, 0.0 }
 0x855   :  { %11688 = vmatpush1.bf16.msra.mxu1 %v15425_v50  ;;  %11648 = vmatprep.subr.bf16.mxu0 %v15430_v27  ;;  %v15497_v50 = vld [vmem:[#allocation11 + $0xde8] ss:$16 sps:$4 sm:$0xff]  }
 0x856   :  { %11689 = vmatprep.subr.bf16.mxu1 %v15433_v3  ;;  %v13381_v27 = vpack.c.bf16 %v8378_v12, %v8378_v12 }
 0x858   :  { %11649 = vmatpush1.bf16.msra.mxu0 %v15428_v51 }
 0x859   :  { %11690 = vmatpush1.bf16.msra.mxu1 %v15431_v10  ;;  %11650 = vmatprep.subr.bf16.mxu0 %v15436_v58 }
 0x85a   :  { %v9774_v19 = vpop.f32.mrb[104].mxu0  ;;  %11691 = vmatprep.subr.bf16.mxu1 %v15439_v7 }
 0x85b   :  { %v17970_v55 = vadd.f32 %v9774_v19, %v17956_v4  ;;  %v9815_v37 = vpop.f32.mrb[104].mxu1  ;;  %v9776_v63 = vpop.f32.mrb[105].mxu0  ;;  %v15443_v4 = vld [vmem:[#allocation11 + $0xcc8] ss:$16 sps:$4 sm:$0xff]  }
 0x85c   :  { %v17973_v28 = vadd.f32 %v9815_v37, %v17959_v56  ;;  %v17976_v40 = vadd.f32 %v9776_v63, %v17962_v16  ;;  %v9817_v17 = vpop.f32.mrb[105].mxu1  ;;  %v9778_v43 = vpop.f32.mrb[106].mxu0  ;;  %11651 = vmatpush1.bf16.msra.mxu0 %v15434_v35  ;;  %v15451_v56 = vld [vmem:[#allocation11 + $0xcec] ss:$16 sps:$4 sm:$0xff]   ;;  %v15449_v16 = vld [vmem:[#allocation11 + $0xce8] ss:$16 sps:$4 sm:$0xff]  }
 0x85d   :  { %v17979_v25 = vadd.f32 %v9817_v17, %v17965_v44  ;;  %v9819_v14 = vpop.f32.mrb[106].mxu1  ;;  %11692 = vmatpush1.bf16.msra.mxu1 %v15437_v20  ;;  %v9779_v48 = vpop.f32.mrb[107].mxu0  ;;  %11652 = vmatprep.subr.bf16.mxu0 %v15442_v26  ;;  %v15452_v44 = vld [vmem:[#allocation11 + $0xd00] ss:$16 sps:$4 sm:$0xff]   ;;  %v15500_v63 = vld [vmem:[#allocation14 + $0x40] sm:$0xff]  }
 0x85e   :  { %v9820_v61 = vpop.f32.mrb[107].mxu1  ;;  %11693 = vmatprep.subr.bf16.mxu1 %v15445_v23  ;;  %v15501_v17 = vld [vmem:[#allocation14 + $0xc0] sm:$0xff]   ;;  %v15504_v14 = vld [vmem:[#allocation14 + $0x48] sm:$0xff]  }
 0x85f   :  { %v15502_v43 = vld [vmem:[#allocation14] sm:$0xff]   ;;  %v15505_v48 = vld [vmem:[#allocation14 + $0xc8] sm:$0xff]   ;;  %v15512_v61 = vld [vmem:[#allocation14 + $0x58] sm:$0xff]  }
 0x860   :  { %11653 = vmatpush1.bf16.msra.mxu0 %v15440_v46  ;;  %v15503_v46 = vld [vmem:[#allocation14 + $0x80] sm:$0xff]  }
 0x861   :  { %11694 = vmatpush1.bf16.msra.mxu1 %v15443_v4  ;;  %11654 = vmatprep.subr.bf16.mxu0 %v15448_v29  ;;  %v15509_v4 = vld [vmem:[#allocation14 + $0xd0] sm:$0xff]  }
 0x862   :  { %11695 = vmatprep.subr.bf16.mxu1 %v15451_v56  ;;  %v15511_v29 = vld [vmem:[#allocation14 + $0x90] sm:$0xff]   ;;  %v15513_v56 = vld [vmem:[#allocation14 + $0xd8] sm:$0xff]  }
 0x864   :  { %11655 = vmatpush1.bf16.msra.mxu0 %v15446_v11  ;;  %v15514_v11 = vld [vmem:[#allocation14 + $0x18] sm:$0xff]  }
 0x865   :  { %11696 = vmatpush1.bf16.msra.mxu1 %v15449_v16  ;;  %11656 = vmatprep.subr.bf16.mxu0 %v15454_v22  ;;  %v15515_v16 = vld [vmem:[#allocation14 + $0x98] sm:$0xff]   ;;  %v15516_v22 = vld [vmem:[#allocation14 + $0x60] sm:$0xff]  }
 0x866   :  { %11697 = vmatprep.subr.bf16.mxu1 %v15457_v33  ;;  %v15517_v33 = vld [vmem:[#allocation14 + $0xe0] sm:$0xff]  }
 0x868   :  { %11657 = vmatpush1.bf16.msra.mxu0 %v15452_v44  ;;  %v15518_v44 = vld [vmem:[#allocation14 + $0x20] sm:$0xff]  }
 0x869   :  { %11698 = vmatpush1.bf16.msra.mxu1 %v15455_v31  ;;  %11658 = vmatprep.subr.bf16.mxu0 %v15460_v39  ;;  %v15519_v31 = vld [vmem:[#allocation14 + $0xa0] sm:$0xff]   ;;  %v15520_v39 = vld [vmem:[#allocation14 + $0x68] sm:$0xff]  }
 0x86a   :  { %11699 = vmatprep.subr.bf16.mxu1 %v15463_v36  ;;  %v15521_v36 = vld [vmem:[#allocation14 + $0xe8] sm:$0xff]  }
 0x86c   :  { %11659 = vmatpush1.bf16.msra.mxu0 %v15458_v52 }
 0x86d   :  { %11700 = vmatpush1.bf16.msra.mxu1 %v15461_v30  ;;  %11660 = vmatprep.subr.bf16.mxu0 %v15466_v8  ;;  %v15522_v30 = vld [vmem:[#allocation14 + $0x28] sm:$0xff]  }
 0x86e   :  { %11701 = vmatprep.subr.bf16.mxu1 %v15469_v45  ;;  %v15523_v8 = vld [vmem:[#allocation14 + $0xa8] sm:$0xff]  }
 0x870   :  { %11661 = vmatpush1.bf16.msra.mxu0 %v15464_v53 }
 0x871   :  { %11702 = vmatpush1.bf16.msra.mxu1 %v15467_v5  ;;  %11662 = vmatprep.subr.bf16.mxu0 %v15472_v38 }
 0x872   :  { %11703 = vmatprep.subr.bf16.mxu1 %v15475_v2 }
 0x874   :  { %11663 = vmatpush1.bf16.msra.mxu0 %v15470_v21 }
 0x875   :  { %11704 = vmatpush1.bf16.msra.mxu1 %v15473_v47  ;;  %11664 = vmatprep.subr.bf16.mxu0 %v15478_v6 }
 0x876   :  { %11705 = vmatprep.subr.bf16.mxu1 %v15481_v49 }
 0x878   :  { %11665 = vmatpush1.bf16.msra.mxu0 %v15476_v9 }
 0x879   :  { %11706 = vmatpush1.bf16.msra.mxu1 %v15479_v54  ;;  %11666 = vmatprep.subr.bf16.mxu0 %v15484_v1  ;;  %v15524_v54 = vld [vmem:[#allocation14 + $0x70] sm:$0xff]  }
 0x87a   :  { %11707 = vmatprep.subr.bf16.mxu1 %v15487_v59  ;;  %v15525_v1 = vld [vmem:[#allocation14 + $0xf0] sm:$0xff]  }
 0x87c   :  { %11667 = vmatpush1.bf16.msra.mxu0 %v15482_v60  ;;  %v15526_v60 = vld [vmem:[#allocation14 + $0x30] sm:$0xff]  }
 0x87d   :  { %11708 = vmatpush1.bf16.msra.mxu1 %v15485_v34  ;;  %11668 = vmatprep.subr.bf16.mxu0 %v15490_v62  ;;  %v15527_v34 = vld [vmem:[#allocation14 + $0xb0] sm:$0xff]   ;;  %v15528_v62 = vld [vmem:[#allocation14 + $0x78] sm:$0xff]  }
 0x87e   :  { %11709 = vmatprep.subr.bf16.mxu1 %v15493_v57  ;;  %v15529_v57 = vld [vmem:[#allocation14 + $0xf8] sm:$0xff]  }
 0x880   :  { %11669 = vmatpush1.bf16.msra.mxu0 %v15488_v41  ;;  %v15530_v41 = vld [vmem:[#allocation14 + $0x38] sm:$0xff]  }
 0x881   :  { %11710 = vmatpush1.bf16.msra.mxu1 %v15491_v0  ;;  %11670 = vmatprep.subr.bf16.mxu0 %v15496_v15  ;;  %v15531_v0 = vld [vmem:[#allocation14 + $0xb8] sm:$0xff]  }
 0x882   :  { %11711 = vmatprep.subr.bf16.mxu1 %v15499_v42 }
 0x884   :  { %11671 = vmatpush1.bf16.msra.mxu0 %v15494_v13 }
 0x885   :  { %11712 = vmatpush1.bf16.msra.mxu1 %v15497_v50  ;;  %13415 = vmatprep.subr.bf16.mxu0 %v15500_v63 }
 0x886   :  { %13437 = vmatprep.subr.bf16.mxu1 %v15501_v17 }
 0x887   :  { %11673 = vmatmul.mubr.bf16.vlgmr.msra.gmra.mrb[120].mxu0 %v13381_v27 }
 0x888   :  { %11714 = vmatmul.mubr.bf16.vlgmr.msra.gmra.mrb[120].mxu1 %v13381_v27  ;;  %13416 = vmatpush3.bf16.msra.mxu0 %v15502_v43 }
 0x889   :  { %13438 = vmatpush3.bf16.msra.mxu1 %v15503_v46  ;;  %13417 = vmatprep.subr.bf16.mxu0 %v15504_v14 }
 0x88a   :  { %13439 = vmatprep.subr.bf16.mxu1 %v15505_v48 }
 0x89a   :  { %v10249_v3 = vpop.f32.mrb[108].mxu0 }
 0x89b   :  { %v10297_v51 = vadd.f32 %v10249_v3, %v17970_v55  ;;  %v10290_v10 = vpop.f32.mrb[108].mxu1  ;;  %v10251_v58 = vpop.f32.mrb[109].mxu0  ;;  %v15506_v55 = vld [vmem:[#allocation14 + $0x8] sm:$0xff]  }
 0x89c   :  { %v10299_v7 = vadd.f32 %v10290_v10, %v17973_v28  ;;  %v10298_v35 = vadd.f32 %v10251_v58, %v17976_v40  ;;  %v10292_v20 = vpop.f32.mrb[109].mxu1  ;;  %v10253_v18 = vpop.f32.mrb[110].mxu0  ;;  %v15507_v28 = vld [vmem:[#allocation14 + $0x88] sm:$0xff]   ;;  %v15508_v40 = vld [vmem:[#allocation14 + $0x50] sm:$0xff]   ;;  %13418 = vmatpush3.bf16.msra.mxu0 %v15506_v55 }
 0x89d   :  { %v10300_v26 = vadd.f32 %v10292_v20, %v17979_v25  ;;  %v10294_v19 = vpop.f32.mrb[110].mxu1  ;;  %v10254_v23 = vpop.f32.mrb[111].mxu0  ;;  %13440 = vmatpush3.bf16.msra.mxu1 %v15507_v28  ;;  %v15510_v25 = vld [vmem:[#allocation14 + $0x10] sm:$0xff]   ;;  %13419 = vmatprep.subr.bf16.mxu0 %v15508_v40  ;;  %v11726_v20 = vld [vmem:[#allocation12] sm:$0xf] }
 0x89e   :  { %v10295_v37 = vpop.f32.mrb[111].mxu1  ;;  %13441 = vmatprep.subr.bf16.mxu1 %v15509_v4  ;;  %v18235_v18 = vld [vmem:[#allocation37_spill] sm:$0xff]  ;;  %v11731_v23 = vrot.slane %v11726_v20, %v18223_v32  ;;  %v11735_v17 = vrot.slane %v11726_v20, %v18224_v24 }
 0x89f   :  { %v11742_v19 = vsub.s32 3, %v18235_v18 }
 0x8a0   :  { %13420 = vmatpush3.bf16.msra.mxu0 %v15510_v25 }
 0x8a1   :  { %13442 = vmatpush3.bf16.msra.mxu1 %v15511_v29  ;;  %13421 = vmatprep.subr.bf16.mxu0 %v15512_v61  ;;  %v11743_v48 = vrot.slane %v11726_v20, %v11742_v19 }
 0x8a2   :  { %13443 = vmatprep.subr.bf16.mxu1 %v15513_v56 }
 0x8a4   :  { %13422 = vmatpush3.bf16.msra.mxu0 %v15514_v11 }
 0x8a5   :  { %13444 = vmatpush3.bf16.msra.mxu1 %v15515_v16  ;;  %13423 = vmatprep.subr.bf16.mxu0 %v15516_v22 }
 0x8a6   :  { %13445 = vmatprep.subr.bf16.mxu1 %v15517_v33 }
 0x8a8   :  { %13424 = vmatpush3.bf16.msra.mxu0 %v15518_v44 }
 0x8a9   :  { %13446 = vmatpush3.bf16.msra.mxu1 %v15519_v31  ;;  %13425 = vmatprep.subr.bf16.mxu0 %v15520_v39 }
 0x8aa   :  { %13447 = vmatprep.subr.bf16.mxu1 %v15521_v36 }
 0x8ac   :  { %13426 = vmatpush3.bf16.msra.mxu0 %v15522_v30 }
 0x8ad   :  { %13448 = vmatpush3.bf16.msra.mxu1 %v15523_v8  ;;  %13427 = vmatprep.subr.bf16.mxu0 %v15524_v54 }
 0x8ae   :  { %13449 = vmatprep.subr.bf16.mxu1 %v15525_v1 }
 0x8b0   :  { %13428 = vmatpush3.bf16.msra.mxu0 %v15526_v60 }
 0x8b1   :  { %13450 = vmatpush3.bf16.msra.mxu1 %v15527_v34  ;;  %13429 = vmatprep.subr.bf16.mxu0 %v15528_v62 }
 0x8b2   :  { %13451 = vmatprep.subr.bf16.mxu1 %v15529_v57 }
 0x8b4   :  { %13430 = vmatpush3.bf16.msra.mxu0 %v15530_v41 }
 0x8b5   :  { %13452 = vmatpush3.bf16.msra.mxu1 %v15531_v0 }
 0x8da   :  { %v10724_v52 = vpop.f32.mrb[112].mxu0 }
 0x8db   :  { %v10772_v45 = vadd.f32 %v10724_v52, %v10297_v51  ;;  %v10765_v53 = vpop.f32.mrb[112].mxu1  ;;  %v10726_v5 = vpop.f32.mrb[113].mxu0 }
 0x8dc   :  { %v10774_v38 = vadd.f32 %v10765_v53, %v10299_v7  ;;  %v10773_v2 = vadd.f32 %v10726_v5, %v10298_v35  ;;  %v10767_v21 = vpop.f32.mrb[113].mxu1  ;;  %v10728_v47 = vpop.f32.mrb[114].mxu0  ;;  %v13322_v53 = vld [vmem:[#allocation15] ss:$0 sm:$0xff] }
 0x8dd   :  { %v10775_v6 = vadd.f32 %v10767_v21, %v10300_v26  ;;  %v10769_v49 = vpop.f32.mrb[114].mxu1  ;;  %v10729_v9 = vpop.f32.mrb[115].mxu0  ;;  %v11738_v26 = vsub.s32 2, %v18235_v18 }
 0x8de   :  { %v10770_v59 = vpop.f32.mrb[115].mxu1 }
 0x8df   :  { %v11739_v63 = vrot.slane %v11726_v20, %v11738_v26 }
 0x91a   :  { %v11199_v15 = vpop.f32.mrb[116].mxu0 }
 0x91b   :  { %v11247_v42 = vadd.f32 %v11199_v15, %v10772_v45  ;;  %v11240_v13 = vpop.f32.mrb[116].mxu1  ;;  %v11201_v12 = vpop.f32.mrb[117].mxu0 }
 0x91c   :  { %v11249_v50 = vadd.f32 %v11240_v13, %v10774_v38  ;;  %v11248_v27 = vadd.f32 %v11201_v12, %v10773_v2  ;;  %v11242_v3 = vpop.f32.mrb[117].mxu1  ;;  %v11203_v51 = vpop.f32.mrb[118].mxu0 }
 0x91d   :  { %v11250_v10 = vadd.f32 %v11242_v3, %v10775_v6  ;;  %v11244_v58 = vpop.f32.mrb[118].mxu1  ;;  %v11204_v7 = vpop.f32.mrb[119].mxu0 }
 0x91e   :  { %v11245_v35 = vpop.f32.mrb[119].mxu1 }
 0x95a   :  { %v11674_v37 = vpop.f32.mrb[120].mxu0 }
 0x95b   :  { %v11722_v43 = vadd.f32 %v11674_v37, %v11247_v42  ;;  %v11715_v46 = vpop.f32.mrb[120].mxu1  ;;  %v11676_v14 = vpop.f32.mrb[121].mxu0 }
 0x95c   :  { %v11724_v55 = vadd.f32 %v11715_v46, %v11249_v50  ;;  %v11723_v28 = vadd.f32 %v11676_v14, %v11248_v27  ;;  %v11717_v40 = vpop.f32.mrb[121].mxu1  ;;  %v11678_v4 = vpop.f32.mrb[122].mxu0 }
 0x95d   :  { %v11748_v25 = vadd.f32 %v11731_v23, %v11722_v43  ;;  %v11725_v29 = vadd.f32 %v11717_v40, %v11250_v10  ;;  %v11719_v61 = vpop.f32.mrb[122].mxu1  ;;  %v11679_v56 = vpop.f32.mrb[123].mxu0 }
 0x95e   :  { %v11750_v11 = vadd.f32 %v11739_v63, %v11724_v55  ;;  %v11749_v16 = vadd.f32 %v11735_v17, %v11723_v28  ;;  %v11720_v22 = vpop.f32.mrb[123].mxu1 }
 0x95f   :  { %v11752_v32 = vmax.f32 %v11748_v25, 0.0  ;;  %v11751_v33 = vadd.f32 %v11743_v48, %v11725_v29 }
 0x960   :  { %v11754_v44 = vmax.f32 %v11750_v11, 0.0  ;;  %v11753_v31 = vmax.f32 %v11749_v16, 0.0 }
 0x961   :  { %v11755_v24 = vmax.f32 %v11751_v33, 0.0  ;;  %v11756_v36 = vpack.c.bf16 %v11752_v32, %v11752_v32 }
 0x962   :  { %v11757_v39 = vpack.c.bf16 %v11753_v31, %v11753_v31  ;;  %v11758_v30 = vpack.c.bf16 %v11754_v44, %v11754_v44 }
 0x963   :  { %v11759_v52 = vpack.c.bf16 %v11755_v24, %v11755_v24 }
 0x964   :  { %12055 = vmatprep.mubr.bf16.mxu0 %v11757_v39 }
 0x965   :  { %12095 = vmatprep.mubr.bf16.mxu1 %v11759_v52  ;;  %12056 = vmatmul.mubr.bf16.vlgmr.msra.gmra.mrb[124].mxu0 %v11756_v36 }
 0x966   :  { %12096 = vmatmul.mubr.bf16.vlgmr.msra.gmra.mrb[124].mxu1 %v11758_v30 }
 0xa38   :  { %v13431_v8 = vpop.f32.mrb[124].mxu0 }
 0xa39   :  { %v13453_v45 = vpop.f32.mrb[124].mxu1  ;;  %v13432_v5 = vpop.f32.mrb[125].mxu0 }
 0xa3a   :  { %v13433_v38 = vadd.f32 %v13432_v5, %v13431_v8  ;;  %v13454_v2 = vpop.f32.mrb[125].mxu1  ;;  %v13434_v21 = vpop.f32.mrb[126].mxu0 }
 0xa3b   :  { %v13455_v47 = vadd.f32 %v13454_v2, %v13453_v45  ;;  %v13456_v6 = vpop.f32.mrb[126].mxu1  ;;  %v13435_v49 = vpop.f32.mrb[127].mxu0 }
 0xa3c   :  { %v12058_v9 = vadd.f32 %v13433_v38, %v13322_v53  ;;  %v13457_v54 = vpop.f32.mrb[127].mxu1 }
 0xa3e   :  { %v12098_v1 = vadd.f32 %v13455_v47, %v12058_v9 }
 0xa40   :  { %12103 = vst [vmem:[%s18002_s9] sm:$0xff] %v12098_v1 }
 0xa41   :  { %12108 = vsyncpa [#allocation5], 1 }
 0xa42   :  { %12109 = vsyncpa [#allocation7], 1 }
 0xa43   :  { %12110 = vsyncpa [#allocation10], 1 }
 0xa44   :  { %12111 = vsyncpa [#allocation13], 1 }
 0xa45   :  { %12112 = vsyncpa [#allocation16], 1 }

</bundles_post_ra>
